<compile_context>
chip_gen: v7x
topology: tpu7x:2x2x1
jax: 0.10.0
libtpu: 0.0.40
codegen_flags: <defaults>
</compile_context>

<pallas_src>
import functools
import math

import jax
import jax.numpy as jnp
from jax.experimental import pallas as pl
from jax.experimental.pallas import tpu as pltpu

BN_EPS = 1e-5                     # nn.BatchNorm2d default
LANE = 128                        # channel padding target (lane width)
VMEM_LIMIT = 32 * 1024 * 1024     # conservative cap, safe on v5e/v6e/v7x


# ---------------------------------------------------------------------------
# Tile-size helpers (all static, trace-time).
# ---------------------------------------------------------------------------
def _round_up(c, m=LANE):
    return ((c + m - 1) // m) * m


def _pick_row_tile(ho, row_bytes, target_bytes=2 * 1024 * 1024):
    """Largest divisor of `ho` whose body tile stays under target_bytes."""
    cap = max(1, min(ho, target_bytes // max(row_bytes, 1)))
    for d in range(cap, 0, -1):
        if ho % d == 0:
            return d
    return 1


def _pick_m_tile(m, target=2048):
    """Row-tile for the elementwise pass: multiple of 8 dividing m (or m)."""
    if m <= target:
        return m
    d = target - (target % 8)
    while d >= 8:
        if m % d == 0:
            return d
        d -= 8
    return m


# ---------------------------------------------------------------------------
# Pallas kernel 1: conv (KHxKW, stride 1 after wrapper transforms) + partial
# BatchNorm statistics.  Grid = (batch, output-row tiles), all "parallel".
# ---------------------------------------------------------------------------
def _conv_bn_stats_kernel(*refs, kh, kw, th, wo, has_halo):
    if has_halo:
        xb_ref, xh_ref, w_ref, y_ref, st_ref, win_ref = refs
        # Assemble the (th + kh - 1, Win, Kc) window once in VMEM scratch.
        win_ref[0:th, :, :] = xb_ref[0]
        win_ref[th:th + kh - 1, :, :] = xh_ref[0, 0]
    else:
        xb_ref, w_ref, y_ref, st_ref = refs

    kc = w_ref.shape[1]
    cop = w_ref.shape[2]

    acc = jnp.zeros((th * wo, cop), jnp.float32)
    for ky in range(kh):
        for kx in range(kw):
            if has_halo:
                patch = win_ref[ky:ky + th, kx:kx + wo, :]
            else:                       # 1x1 conv: whole body block
                patch = xb_ref[0]
            patch = patch.reshape(th * wo, kc).astype(jnp.bfloat16)
            acc = acc + jnp.dot(patch, w_ref[ky * kw + kx],
                                preferred_element_type=jnp.float32)

    y_ref[0, 0] = acc
    # Per-block partial BN statistics (summed on the host side -> exact
    # global batch statistics, keeps every grid axis "parallel").
    st_ref[0, 0, 0:1, :] = jnp.sum(acc, axis=0, keepdims=True)
    st_ref[0, 0, 1:2, :] = jnp.sum(acc * acc, axis=0, keepdims=True)


def conv_bn_stats(x, w_packed, kh, kw):
    """x: (N, Hin, Win, Kc) bf16; w_packed: (kh*kw, Kc, Cop) bf16.

    Returns conv output y: (N, Ho, Wo, Cop) f32 and partial stats
    (N, T, 2, Cop) f32 (sum, sum_sq per row-tile block).
    """
    n, hin, win_, kc = x.shape
    taps, kc_w, cop = w_packed.shape
    assert taps == kh * kw and kc_w == kc
    ho = hin - kh + 1
    wo = win_ - kw + 1

    row_bytes = win_ * kc * 2                      # one bf16 input row
    th = _pick_row_tile(ho, row_bytes)
    t = ho // th
    has_halo = kh > 1

    in_specs = [pl.BlockSpec((1, th, win_, kc), lambda ni, ti: (ni, ti, 0, 0))]
    args = [x]
    if has_halo:
        halo = jnp.stack(
            [x[:, (tt + 1) * th:(tt + 1) * th + kh - 1] for tt in range(t)],
            axis=1)                                 # (N, T, kh-1, Win, Kc)
        in_specs.append(pl.BlockSpec((1, 1, kh - 1, win_, kc),
                                     lambda ni, ti: (ni, ti, 0, 0, 0)))
        args.append(halo)
    in_specs.append(pl.BlockSpec((taps, kc, cop), lambda ni, ti: (0, 0, 0)))
    args.append(w_packed)

    out_shape = (jax.ShapeDtypeStruct((n, t, th * wo, cop), jnp.float32),
                 jax.ShapeDtypeStruct((n, t, 2, cop), jnp.float32))
    out_specs = [pl.BlockSpec((1, 1, th * wo, cop), lambda ni, ti: (ni, ti, 0, 0)),
                 pl.BlockSpec((1, 1, 2, cop), lambda ni, ti: (ni, ti, 0, 0))]
    scratch = ([pltpu.VMEM((th + kh - 1, win_, kc), jnp.bfloat16)]
               if has_halo else [])

    kernel = functools.partial(_conv_bn_stats_kernel, kh=kh, kw=kw, th=th,
                               wo=wo, has_halo=has_halo)
    y, st = pl.pallas_call(
        kernel,
        out_shape=out_shape,
        grid_spec=pltpu.PrefetchScalarGridSpec(
            num_scalar_prefetch=0,
            grid=(n, t),
            in_specs=in_specs,
            out_specs=out_specs,
            scratch_shapes=scratch),
        compiler_params=pltpu.CompilerParams(
            dimension_semantics=("parallel", "parallel"),
            vmem_limit_bytes=VMEM_LIMIT),
    )(*args)
    return y.reshape(n, ho, wo, cop), st


# ---------------------------------------------------------------------------
# Pallas kernel 2: fused BN-apply (+ optional BN'd shortcut residual) + ReLU,
# tiled over M = N*Ho*Wo rows.  Per-channel scale/bias precomputed -> only a
# couple of VALU ops per element, lane-dense (Cp multiple of 128) stores.
# ---------------------------------------------------------------------------
def _bn_act_kernel(*refs, has_residual):
    if has_residual:
        y_ref, r_ref, sm_ref, sr_ref, b_ref, o_ref = refs
        out = (y_ref[...].astype(jnp.float32) * sm_ref[...]
               + r_ref[...].astype(jnp.float32) * sr_ref[...] + b_ref[...])
    else:
        y_ref, sm_ref, b_ref, o_ref = refs
        out = y_ref[...].astype(jnp.float32) * sm_ref[...] + b_ref[...]
    o_ref[...] = jnp.maximum(out, 0.0).astype(o_ref.dtype)


def bn_act(y2d, scale, bias, residual=None, scale_res=None,
           out_dtype=jnp.float32):
    m, c = y2d.shape
    tm = _pick_m_tile(m)
    grid = (m // tm,)
    row_spec = pl.BlockSpec((tm, c), lambda i: (i, 0))
    vec_spec = pl.BlockSpec((1, c), lambda i: (0, 0))

    if residual is not None:
        args = [y2d, residual, scale, scale_res, bias]
        in_specs = [row_spec, row_spec, vec_spec, vec_spec, vec_spec]
    else:
        args = [y2d, scale, bias]
        in_specs = [row_spec, vec_spec, vec_spec]

    kernel = functools.partial(_bn_act_kernel,
                               has_residual=residual is not None)
    return pl.pallas_call(
        kernel,
        out_shape=jax.ShapeDtypeStruct((m, c), out_dtype),
        grid_spec=pltpu.PrefetchScalarGridSpec(
            num_scalar_prefetch=0,
            grid=grid,
            in_specs=in_specs,
            out_specs=row_spec),
        compiler_params=pltpu.CompilerParams(
            dimension_semantics=("parallel",),
            vmem_limit_bytes=VMEM_LIMIT),
    )(*args)


# ---------------------------------------------------------------------------
# Wrapper-level layout plumbing (cheap XLA ops: pad / reshape / transpose).
# ---------------------------------------------------------------------------
def _pad_channels(x, cp):
    c = x.shape[-1]
    if c == cp:
        return x
    return jnp.pad(x, ((0, 0), (0, 0), (0, 0), (0, cp - c)))


def _space_to_depth2(x):
    """(N, 2a, 2b, C) -> (N, a, b, 4C) with channel order (py, px, c)."""
    n, hp, wp, c = x.shape
    assert hp % 2 == 0 and wp % 2 == 0
    x = x.reshape(n, hp // 2, 2, wp // 2, 2, c)
    x = x.transpose(0, 1, 3, 2, 4, 5)
    return x.reshape(n, hp // 2, wp // 2, 4 * c)


def _fold_bn(stats, gamma, beta, count, eps=BN_EPS):
    """Partial (sum, sum_sq) blocks -> per-channel (scale, bias) for y*s+b."""
    s = jnp.sum(stats[:, :, 0, :], axis=(0, 1))
    ss = jnp.sum(stats[:, :, 1, :], axis=(0, 1))
    mean = s / count
    var = jnp.maximum(ss / count - mean * mean, 0.0)   # biased variance
    scale = gamma * jax.lax.rsqrt(var + eps)
    bias = beta - mean * scale
    return scale[None, :], bias[None, :]


# ---------------------------------------------------------------------------
# Parameter packing / init.  Weights are stored in Pallas-ready layout:
#   1x1            -> (1, Cpin, Cpout) bf16
#   3x3 stride 1   -> (9, Cpin, Cpout) bf16
#   3x3 stride 2   -> (4, 4*Cpin, Cpout) bf16   (stride-1 2x2 conv over
#                                                space-to-depth input)
# Channels are zero-padded to multiples of 128; gamma/beta padded with zeros
# so padded channels stay identically zero through every block.
# ---------------------------------------------------------------------------
def _pack_1x1(w, cpin, cpout):
    cin, cout = w.shape
    wp = jnp.pad(w, ((0, cpin - cin), (0, cpout - cout)))
    return wp[None].astype(jnp.bfloat16)


def _pad_w3(w, cpin, cpout):
    return jnp.pad(w, ((0, 0), (0, 0),
                       (0, cpin - w.shape[2]), (0, cpout - w.shape[3])))


def _pack_3x3_s1(w, cpin, cpout):
    return _pad_w3(w, cpin, cpout).reshape(9, cpin, cpout).astype(jnp.bfloat16)


def _pack_3x3_s2(w, cpin, cpout):
    wp = _pad_w3(w, cpin, cpout)                        # (3,3,Cpin,Cpout)
    w4 = jnp.zeros((2, 2, 2, 2, cpin, cpout), jnp.float32)
    for ky in range(2):
        for kx in range(2):
            for py in range(2):
                for px in range(2):
                    dy, dx = 2 * ky + py, 2 * kx + px
                    if dy <= 2 and dx <= 2:
                        w4 = w4.at[ky, kx, py, px].set(wp[dy, dx])
    return w4.reshape(4, 4 * cpin, cpout).astype(jnp.bfloat16)


def _pad_vec(v, cp):
    return jnp.pad(v.astype(jnp.float32), (0, cp - v.shape[0]))


def _init_basic_block(key, cin, cout, stride):
    cpin, cpout = _round_up(cin), _round_up(cout)
    k1, k2, k3 = jax.random.split(key, 3)
    w1 = jax.random.normal(k1, (cin, cout), jnp.float32) / math.sqrt(cin)
    w2 = jax.random.normal(k2, (3, 3, cout, cout), jnp.float32) / math.sqrt(9.0 * cout)
    p = {
        "w1": _pack_1x1(w1, cpin, cpout),
        "g1": _pad_vec(jnp.ones((cout,)), cpout),
        "b1": _pad_vec(jnp.zeros((cout,)), cpout),
        "w2": (_pack_3x3_s1(w2, cpout, cpout) if stride == 1
               else _pack_3x3_s2(w2, cpout, cpout)),
        "g2": _pad_vec(jnp.ones((cout,)), cpout),
        "b2": _pad_vec(jnp.zeros((cout,)), cpout),
    }
    if stride != 1 or cin != cout:
        if stride != 1:   # 3x3, stride 2, pad 1 shortcut
            wd = jax.random.normal(k3, (3, 3, cin, cout), jnp.float32) / math.sqrt(9.0 * cin)
            p["wd"] = _pack_3x3_s2(wd, cpin, cpout)
        else:             # 1x1 shortcut
            wd = jax.random.normal(k3, (cin, cout), jnp.float32) / math.sqrt(cin)
            p["wd"] = _pack_1x1(wd, cpin, cpout)
        p["gd"] = _pad_vec(jnp.ones((cout,)), cpout)
        p["bd"] = _pad_vec(jnp.zeros((cout,)), cpout)
    return p


def init_block2d(key, in_channels, out_channels):
    kr, kd = jax.random.split(key)
    return {
        "resnet": _init_basic_block(kr, in_channels, out_channels, stride=1),
        "downsampler": _init_basic_block(kd, out_channels, out_channels, stride=2),
    }


# ---------------------------------------------------------------------------
# Forward passes.
# ---------------------------------------------------------------------------
def basic_block_forward(x, p, stride):
    """x: (N, H, W, Cp_in) float32, channel-padded (pad lanes are zero).
    Returns (N, Ho, Wo, Cp_out) float32."""
    n, h, w, cpin = x.shape
    cpout = p["w1"].shape[-1]
    x_bf = x.astype(jnp.bfloat16)
    count1 = n * h * w

    # conv1 (1x1) -> BN1 stats -> fused BN+ReLU (h1 kept bf16 for the next MXU).
    y1, st1 = conv_bn_stats(x_bf, p["w1"], 1, 1)
    s1, b1 = _fold_bn(st1, p["g1"], p["b1"], count1)
    h1 = bn_act(y1.reshape(count1, cpout), s1, b1, out_dtype=jnp.bfloat16)
    h1 = h1.reshape(n, h, w, cpout)

    if stride == 1:
        ho, wo = h, w
    else:
        assert h % 2 == 0 and w % 2 == 0
        ho, wo = h // 2, w // 2
    count2 = n * ho * wo

    # conv2 (3x3, stride) -> BN2 stats.
    if stride == 1:
        x2 = jnp.pad(h1, ((0, 0), (1, 1), (1, 1), (0, 0)))
        y2, st2 = conv_bn_stats(x2, p["w2"], 3, 3)
    else:
        x2 = _space_to_depth2(jnp.pad(h1, ((0, 0), (1, 1), (1, 1), (0, 0))))
        y2, st2 = conv_bn_stats(x2, p["w2"], 2, 2)
    s2, b2 = _fold_bn(st2, p["g2"], p["b2"], count2)

    # Shortcut path (conv + BN, or identity).
    if "wd" in p:
        if stride == 1:
            yd, std = conv_bn_stats(x_bf, p["wd"], 1, 1)
        else:
            xd = _space_to_depth2(jnp.pad(x_bf, ((0, 0), (1, 1), (1, 1), (0, 0))))
            yd, std = conv_bn_stats(xd, p["wd"], 2, 2)
        sd, bd = _fold_bn(std, p["gd"], p["bd"], count2)
        resid = yd.reshape(count2, cpout)
    else:
        resid = x.reshape(count2, cpout)          # identity residual (f32)
        sd = jnp.ones((1, cpout), jnp.float32)
        bd = jnp.zeros((1, cpout), jnp.float32)

    # Fused: BN2(y2) + BN_d(shortcut) + ReLU in one tiled pass.
    out = bn_act(y2.reshape(count2, cpout), s2, b2 + bd,
                 residual=resid, scale_res=sd, out_dtype=jnp.float32)
    return out.reshape(n, ho, wo, cpout)


def block2d_forward(hidden_states_nchw, params, temb=None, *, out_channels):
    # temb is accepted for API parity; the reference BasicBlock ignores it.
    x = jnp.transpose(hidden_states_nchw, (0, 2, 3, 1)).astype(jnp.float32)
    cpin = params["resnet"]["w1"].shape[1]
    x_p = _pad_channels(x, cpin)

    h_p = basic_block_forward(x_p, params["resnet"], stride=1)        # resnets[0]
    hd_p = basic_block_forward(h_p, params["downsampler"], stride=2)  # downsamplers[0]

    h = jnp.transpose(h_p[..., :out_channels], (0, 3, 1, 2))
    hd = jnp.transpose(hd_p[..., :out_channels], (0, 3, 1, 2))
    output_states = (h, hd)
    return hd, output_states


# ---------------------------------------------------------------------------
if __name__ == "__main__":
    N, C_IN, C_OUT, H, W = 2, 8, 16, 16, 16
    TEMB = 32  # unused by the forward pass

    key = jax.random.PRNGKey(0)
    k_x, k_p, k_t = jax.random.split(key, 3)
    x = jax.random.normal(k_x, (N, C_IN, H, W), jnp.float32)   # NCHW like PyTorch
    temb = jax.random.normal(k_t, (N, TEMB), jnp.float32)
    params = init_block2d(k_p, C_IN, C_OUT)

    fwd = jax.jit(functools.partial(block2d_forward, out_channels=C_OUT))
    hidden, output_states = fwd(x, params, temb)
    hidden = jax.block_until_ready(hidden)
    output_states = jax.block_until_ready(output_states)

    assert hidden.shape == (N, C_OUT, H // 2, W // 2)
    assert output_states[0].shape == (N, C_OUT, H, W)
    assert output_states[1].shape == (N, C_OUT, H // 2, W // 2)
    assert bool(jnp.all(jnp.isfinite(hidden)))
    assert bool(jnp.all(jnp.isfinite(output_states[0])))
    print("KERNEL_OK")
</pallas_src>

<mosaic_0001>
module attributes {stable_mosaic.version = 11 : i64} {
  func.func @_conv_bn_stats_kernel(%arg0: i32, %arg1: i32, %arg2: memref<1x16x16x128xbf16, #tpu.memory_space<vmem>>, %arg3: memref<1x128x128xbf16, #tpu.memory_space<vmem>>, %arg4: memref<1x1x256x128xf32, #tpu.memory_space<vmem>>, %arg5: memref<1x1x2x128xf32, #tpu.memory_space<vmem>>) attributes {dimension_semantics = [#tpu.dimension_semantics<parallel>, #tpu.dimension_semantics<parallel>], iteration_bounds = array<i64: 2, 1>, scalar_prefetch = 0 : i64, scratch_operands = 0 : i64, tpu.core_type = #tpu.core_type<tc>, window_params = [{transform_indices = @transform_0, window_bounds = array<i64: 1, 16, 16, 128>}, {pipeline_mode = #tpu.pipeline_mode<synchronous>, transform_indices = @transform_1, window_bounds = array<i64: 1, 128, 128>}, {transform_indices = @transform_2, window_bounds = array<i64: 1, 1, 256, 128>}, {transform_indices = @transform_3, window_bounds = array<i64: 1, 1, 2, 128>}]} {
    %cst = arith.constant 0.000000e+00 : f32
    %0 = vector.broadcast %cst : f32 to vector<256x128xf32>
    %c0 = arith.constant 0 : index
    %c0_0 = arith.constant 0 : index
    %c0_1 = arith.constant 0 : index
    %c0_2 = arith.constant 0 : index
    %1 = vector.load %arg2[%c0, %c0_0, %c0_1, %c0_2] : memref<1x16x16x128xbf16, #tpu.memory_space<vmem>>, vector<1x16x16x128xbf16>
    %2 = vector.shape_cast %1 : vector<1x16x16x128xbf16> to vector<16x16x128xbf16>
    %3 = vector.shape_cast %2 : vector<16x16x128xbf16> to vector<256x128xbf16>
    %c0_3 = arith.constant 0 : index
    %c0_4 = arith.constant 0 : index
    %c0_5 = arith.constant 0 : index
    %4 = vector.load %arg3[%c0_3, %c0_4, %c0_5] : memref<1x128x128xbf16, #tpu.memory_space<vmem>>, vector<1x128x128xbf16>
    %5 = vector.shape_cast %4 : vector<1x128x128xbf16> to vector<128x128xbf16>
    %cst_6 = arith.constant dense<0.000000e+00> : vector<256x128xf32>
    %6 = tpu.matmul %3, %5, %cst_6 {dimension_numbers = #tpu.dot_dimension_numbers<[1], [0], [0], [1], [0, 0, 1, 1], [], []>} : vector<256x128xbf16>, vector<128x128xbf16>, vector<256x128xf32> -> vector<256x128xf32>
    %7 = arith.addf %0, %6 : vector<256x128xf32>
    %c0_7 = arith.constant 0 : index
    %c0_8 = arith.constant 0 : index
    %c0_9 = arith.constant 0 : index
    %c0_10 = arith.constant 0 : index
    %8 = vector.load %arg4[%c0_7, %c0_8, %c0_9, %c0_10] : memref<1x1x256x128xf32, #tpu.memory_space<vmem>>, vector<1x1x256x128xf32>
    %9 = vector.shape_cast %8 : vector<1x1x256x128xf32> to vector<256x128xf32>
    %10 = vector.shape_cast %7 : vector<256x128xf32> to vector<1x1x256x128xf32>
    tpu.vector_store %arg4[%c0_7, %c0_8, %c0_9, %c0_10], %10 {strides = array<i32>} : memref<1x1x256x128xf32, #tpu.memory_space<vmem>>, vector<1x1x256x128xf32>,
    %cst_11 = arith.constant dense<0.000000e+00> : vector<128xf32>
    %11 = vector.multi_reduction <add>, %7, %cst_11 [0] : vector<256x128xf32> to vector<128xf32>
    %12 = vector.shape_cast %11 : vector<128xf32> to vector<1x128xf32>
    %c0_12 = arith.constant 0 : index
    %c0_13 = arith.constant 0 : index
    %c0_14 = arith.constant 0 : index
    %c0_15 = arith.constant 0 : index
    %13 = vector.load %arg5[%c0_12, %c0_13, %c0_14, %c0_15] : memref<1x1x2x128xf32, #tpu.memory_space<vmem>>, vector<1x1x1x128xf32>
    %14 = vector.shape_cast %13 : vector<1x1x1x128xf32> to vector<1x128xf32>
    %15 = vector.shape_cast %12 : vector<1x128xf32> to vector<1x1x1x128xf32>
    tpu.vector_store %arg5[%c0_12, %c0_13, %c0_14, %c0_15], %15 {strides = array<i32>} : memref<1x1x2x128xf32, #tpu.memory_space<vmem>>, vector<1x1x1x128xf32>,
    %16 = arith.mulf %7, %7 : vector<256x128xf32>
    %cst_16 = arith.constant dense<0.000000e+00> : vector<128xf32>
    %17 = vector.multi_reduction <add>, %16, %cst_16 [0] : vector<256x128xf32> to vector<128xf32>
    %18 = vector.shape_cast %17 : vector<128xf32> to vector<1x128xf32>
    %c0_17 = arith.constant 0 : index
    %c0_18 = arith.constant 0 : index
    %c1 = arith.constant 1 : index
    %c0_19 = arith.constant 0 : index
    %19 = vector.load %arg5[%c0_17, %c0_18, %c1, %c0_19] : memref<1x1x2x128xf32, #tpu.memory_space<vmem>>, vector<1x1x1x128xf32>
    %20 = vector.shape_cast %19 : vector<1x1x1x128xf32> to vector<1x128xf32>
    %21 = vector.shape_cast %18 : vector<1x128xf32> to vector<1x1x1x128xf32>
    tpu.vector_store %arg5[%c0_17, %c0_18, %c1, %c0_19], %21 {strides = array<i32>} : memref<1x1x2x128xf32, #tpu.memory_space<vmem>>, vector<1x1x1x128xf32>,
    return
  }
  func.func @transform_0(%arg0: i32, %arg1: i32) -> (i32, i32, i32, i32) {
    %c0_i32 = arith.constant 0 : i32
    %c0_i32_0 = arith.constant 0 : i32
    %c0_i32_1 = arith.constant 0 : i32
    return %arg0, %arg1, %c0_i32, %c0_i32_0 : i32, i32, i32, i32
  }
  func.func @transform_1(%arg0: i32, %arg1: i32) -> (i32, i32, i32) {
    %c0_i32 = arith.constant 0 : i32
    %c0_i32_0 = arith.constant 0 : i32
    %c0_i32_1 = arith.constant 0 : i32
    %c0_i32_2 = arith.constant 0 : i32
    return %c0_i32, %c0_i32_0, %c0_i32_1 : i32, i32, i32
  }
  func.func @transform_2(%arg0: i32, %arg1: i32) -> (i32, i32, i32, i32) {
    %c0_i32 = arith.constant 0 : i32
    %c0_i32_0 = arith.constant 0 : i32
    %c0_i32_1 = arith.constant 0 : i32
    return %arg0, %arg1, %c0_i32, %c0_i32_0 : i32, i32, i32, i32
  }
  func.func @transform_3(%arg0: i32, %arg1: i32) -> (i32, i32, i32, i32) {
    %c0_i32 = arith.constant 0 : i32
    %c0_i32_0 = arith.constant 0 : i32
    %c0_i32_1 = arith.constant 0 : i32
    return %arg0, %arg1, %c0_i32, %c0_i32_0 : i32, i32, i32, i32
  }
}

module attributes {stable_mosaic.version = 11 : i64} {
  func.func @_bn_act_kernel(%arg0: i32, %arg1: memref<512x128xf32, #tpu.memory_space<vmem>>, %arg2: memref<1x128xf32, #tpu.memory_space<vmem>>, %arg3: memref<1x128xf32, #tpu.memory_space<vmem>>, %arg4: memref<512x128xbf16, #tpu.memory_space<vmem>>) attributes {dimension_semantics = [#tpu.dimension_semantics<parallel>], iteration_bounds = array<i64: 1>, scalar_prefetch = 0 : i64, scratch_operands = 0 : i64, tpu.core_type = #tpu.core_type<tc>, window_params = [{transform_indices = @transform_0, window_bounds = array<i64: 512, 128>}, {pipeline_mode = #tpu.pipeline_mode<synchronous>, transform_indices = @transform_1, window_bounds = array<i64: 1, 128>}, {pipeline_mode = #tpu.pipeline_mode<synchronous>, transform_indices = @transform_2, window_bounds = array<i64: 1, 128>}, {transform_indices = @transform_3, window_bounds = array<i64: 512, 128>}]} {
    %c0 = arith.constant 0 : index
    %c0_0 = arith.constant 0 : index
    %0 = vector.load %arg1[%c0, %c0_0] : memref<512x128xf32, #tpu.memory_space<vmem>>, vector<512x128xf32>
    %c0_1 = arith.constant 0 : index
    %c0_2 = arith.constant 0 : index
    %1 = vector.load %arg2[%c0_1, %c0_2] : memref<1x128xf32, #tpu.memory_space<vmem>>, vector<1x128xf32>
    %2 = vector.broadcast %1 : vector<1x128xf32> to vector<512x128xf32>
    %3 = arith.mulf %0, %2 : vector<512x128xf32>
    %c0_3 = arith.constant 0 : index
    %c0_4 = arith.constant 0 : index
    %4 = vector.load %arg3[%c0_3, %c0_4] : memref<1x128xf32, #tpu.memory_space<vmem>>, vector<1x128xf32>
    %5 = vector.broadcast %4 : vector<1x128xf32> to vector<512x128xf32>
    %6 = arith.addf %3, %5 : vector<512x128xf32>
    %cst = arith.constant 0.000000e+00 : f32
    %7 = vector.broadcast %cst : f32 to vector<512x128xf32>
    %8 = arith.maximumf %6, %7 : vector<512x128xf32>
    %9 = arith.truncf %8 : vector<512x128xf32> to vector<512x128xbf16>
    %c0_5 = arith.constant 0 : index
    %c0_6 = arith.constant 0 : index
    %10 = vector.load %arg4[%c0_5, %c0_6] : memref<512x128xbf16, #tpu.memory_space<vmem>>, vector<512x128xbf16>
    tpu.vector_store %arg4[%c0_5, %c0_6], %9 {strides = array<i32>} : memref<512x128xbf16, #tpu.memory_space<vmem>>, vector<512x128xbf16>,
    return
  }
  func.func @transform_0(%arg0: i32) -> (i32, i32) {
    %c0_i32 = arith.constant 0 : i32
    %c0_i32_0 = arith.constant 0 : i32
    return %arg0, %c0_i32 : i32, i32
  }
  func.func @transform_1(%arg0: i32) -> (i32, i32) {
    %c0_i32 = arith.constant 0 : i32
    %c0_i32_0 = arith.constant 0 : i32
    %c0_i32_1 = arith.constant 0 : i32
    return %c0_i32, %c0_i32_0 : i32, i32
  }
  func.func @transform_2(%arg0: i32) -> (i32, i32) {
    %c0_i32 = arith.constant 0 : i32
    %c0_i32_0 = arith.constant 0 : i32
    %c0_i32_1 = arith.constant 0 : i32
    return %c0_i32, %c0_i32_0 : i32, i32
  }
  func.func @transform_3(%arg0: i32) -> (i32, i32) {
    %c0_i32 = arith.constant 0 : i32
    %c0_i32_0 = arith.constant 0 : i32
    return %arg0, %c0_i32 : i32, i32
  }
}

module attributes {stable_mosaic.version = 11 : i64} {
  func.func @_conv_bn_stats_kernel(%arg0: i32, %arg1: i32, %arg2: memref<1x16x18x128xbf16, #tpu.memory_space<vmem>>, %arg3: memref<1x1x2x18x128xbf16, #tpu.memory_space<vmem>>, %arg4: memref<9x128x128xbf16, #tpu.memory_space<vmem>>, %arg5: memref<1x1x256x128xf32, #tpu.memory_space<vmem>>, %arg6: memref<1x1x2x128xf32, #tpu.memory_space<vmem>>, %arg7: memref<18x18x128xbf16, #tpu.memory_space<vmem>>) attributes {dimension_semantics = [#tpu.dimension_semantics<parallel>, #tpu.dimension_semantics<parallel>], iteration_bounds = array<i64: 2, 1>, scalar_prefetch = 0 : i64, scratch_operands = 1 : i64, tpu.core_type = #tpu.core_type<tc>, window_params = [{transform_indices = @transform_0, window_bounds = array<i64: 1, 16, 18, 128>}, {transform_indices = @transform_1, window_bounds = array<i64: 1, 1, 2, 18, 128>}, {pipeline_mode = #tpu.pipeline_mode<synchronous>, transform_indices = @transform_2, window_bounds = array<i64: 9, 128, 128>}, {transform_indices = @transform_3, window_bounds = array<i64: 1, 1, 256, 128>}, {transform_indices = @transform_4, window_bounds = array<i64: 1, 1, 2, 128>}]} {
    %c0 = arith.constant 0 : index
    %c0_0 = arith.constant 0 : index
    %c0_1 = arith.constant 0 : index
    %c0_2 = arith.constant 0 : index
    %0 = vector.load %arg2[%c0, %c0_0, %c0_1, %c0_2] : memref<1x16x18x128xbf16, #tpu.memory_space<vmem>>, vector<1x16x18x128xbf16>
    %1 = vector.shape_cast %0 : vector<1x16x18x128xbf16> to vector<16x18x128xbf16>
    %c0_3 = arith.constant 0 : index
    %c0_4 = arith.constant 0 : index
    %c0_5 = arith.constant 0 : index
    %2 = vector.load %arg7[%c0_3, %c0_4, %c0_5] : memref<18x18x128xbf16, #tpu.memory_space<vmem>>, vector<16x18x128xbf16>
    tpu.vector_store %arg7[%c0_3, %c0_4, %c0_5], %1 {strides = array<i32>} : memref<18x18x128xbf16, #tpu.memory_space<vmem>>, vector<16x18x128xbf16>,
    %c0_6 = arith.constant 0 : index
    %c0_7 = arith.constant 0 : index
    %c0_8 = arith.constant 0 : index
    %c0_9 = arith.constant 0 : index
    %c0_10 = arith.constant 0 : index
    %3 = vector.load %arg3[%c0_6, %c0_7, %c0_8, %c0_9, %c0_10] : memref<1x1x2x18x128xbf16, #tpu.memory_space<vmem>>, vector<1x1x2x18x128xbf16>
    %4 = vector.shape_cast %3 : vector<1x1x2x18x128xbf16> to vector<2x18x128xbf16>
    %c16 = arith.constant 16 : index
    %c0_11 = arith.constant 0 : index
    %c0_12 = arith.constant 0 : index
    %5 = vector.load %arg7[%c16, %c0_11, %c0_12] : memref<18x18x128xbf16, #tpu.memory_space<vmem>>, vector<2x18x128xbf16>
    tpu.vector_store %arg7[%c16, %c0_11, %c0_12], %4 {strides = array<i32>} : memref<18x18x128xbf16, #tpu.memory_space<vmem>>, vector<2x18x128xbf16>,
    %cst = arith.constant 0.000000e+00 : f32
    %6 = vector.broadcast %cst : f32 to vector<256x128xf32>
    %c0_13 = arith.constant 0 : index
    %c0_14 = arith.constant 0 : index
    %c0_15 = arith.constant 0 : index
    %7 = vector.load %arg7[%c0_13, %c0_14, %c0_15] : memref<18x18x128xbf16, #tpu.memory_space<vmem>>, vector<16x16x128xbf16>
    %8 = vector.shape_cast %7 : vector<16x16x128xbf16> to vector<256x128xbf16>
    %c0_16 = arith.constant 0 : index
    %c0_17 = arith.constant 0 : index
    %c0_18 = arith.constant 0 : index
    %9 = vector.load %arg4[%c0_16, %c0_17, %c0_18] : memref<9x128x128xbf16, #tpu.memory_space<vmem>>, vector<1x128x128xbf16>
    %10 = vector.shape_cast %9 : vector<1x128x128xbf16> to vector<128x128xbf16>
    %cst_19 = arith.constant dense<0.000000e+00> : vector<256x128xf32>
    %11 = tpu.matmul %8, %10, %cst_19 {dimension_numbers = #tpu.dot_dimension_numbers<[1], [0], [0], [1], [0, 0, 1, 1], [], []>} : vector<256x128xbf16>, vector<128x128xbf16>, vector<256x128xf32> -> vector<256x128xf32>
    %12 = arith.addf %6, %11 : vector<256x128xf32>
    %c0_20 = arith.constant 0 : index
    %c1 = arith.constant 1 : index
    %c0_21 = arith.constant 0 : index
    %13 = vector.load %arg7[%c0_20, %c1, %c0_21] : memref<18x18x128xbf16, #tpu.memory_space<vmem>>, vector<16x16x128xbf16>
    %14 = vector.shape_cast %13 : vector<16x16x128xbf16> to vector<256x128xbf16>
    %c1_22 = arith.constant 1 : index
    %c0_23 = arith.constant 0 : index
    %c0_24 = arith.constant 0 : index
    %15 = vector.load %arg4[%c1_22, %c0_23, %c0_24] : memref<9x128x128xbf16, #tpu.memory_space<vmem>>, vector<1x128x128xbf16>
    %16 = vector.shape_cast %15 : vector<1x128x128xbf16> to vector<128x128xbf16>
    %cst_25 = arith.constant dense<0.000000e+00> : vector<256x128xf32>
    %17 = tpu.matmul %14, %16, %cst_25 {dimension_numbers = #tpu.dot_dimension_numbers<[1], [0], [0], [1], [0, 0, 1, 1], [], []>} : vector<256x128xbf16>, vector<128x128xbf16>, vector<256x128xf32> -> vector<256x128xf32>
    %18 = arith.addf %12, %17 : vector<256x128xf32>
    %c0_26 = arith.constant 0 : index
    %c2 = arith.constant 2 : index
    %c0_27 = arith.constant 0 : index
    %19 = vector.load %arg7[%c0_26, %c2, %c0_27] : memref<18x18x128xbf16, #tpu.memory_space<vmem>>, vector<16x16x128xbf16>
    %20 = vector.shape_cast %19 : vector<16x16x128xbf16> to vector<256x128xbf16>
    %c2_28 = arith.constant 2 : index
    %c0_29 = arith.constant 0 : index
    %c0_30 = arith.constant 0 : index
    %21 = vector.load %arg4[%c2_28, %c0_29, %c0_30] : memref<9x128x128xbf16, #tpu.memory_space<vmem>>, vector<1x128x128xbf16>
    %22 = vector.shape_cast %21 : vector<1x128x128xbf16> to vector<128x128xbf16>
    %cst_31 = arith.constant dense<0.000000e+00> : vector<256x128xf32>
    %23 = tpu.matmul %20, %22, %cst_31 {dimension_numbers = #tpu.dot_dimension_numbers<[1], [0], [0], [1], [0, 0, 1, 1], [], []>} : vector<256x128xbf16>, vector<128x128xbf16>, vector<256x128xf32> -> vector<256x128xf32>
    %24 = arith.addf %18, %23 : vector<256x128xf32>
    %c1_32 = arith.constant 1 : index
    %c0_33 = arith.constant 0 : index
    %c0_34 = arith.constant 0 : index
    %25 = vector.load %arg7[%c1_32, %c0_33, %c0_34] : memref<18x18x128xbf16, #tpu.memory_space<vmem>>, vector<16x16x128xbf16>
    %26 = vector.shape_cast %25 : vector<16x16x128xbf16> to vector<256x128xbf16>
    %c3 = arith.constant 3 : index
    %c0_35 = arith.constant 0 : index
    %c0_36 = arith.constant 0 : index
    %27 = vector.load %arg4[%c3, %c0_35, %c0_36] : memref<9x128x128xbf16, #tpu.memory_space<vmem>>, vector<1x128x128xbf16>
    %28 = vector.shape_cast %27 : vector<1x128x128xbf16> to vector<128x128xbf16>
    %cst_37 = arith.constant dense<0.000000e+00> : vector<256x128xf32>
    %29 = tpu.matmul %26, %28, %cst_37 {dimension_numbers = #tpu.dot_dimension_numbers<[1], [0], [0], [1], [0, 0, 1, 1], [], []>} : vector<256x128xbf16>, vector<128x128xbf16>, vector<256x128xf32> -> vector<256x128xf32>
    %30 = arith.addf %24, %29 : vector<256x128xf32>
    %c1_38 = arith.constant 1 : index
    %c1_39 = arith.constant 1 : index
    %c0_40 = arith.constant 0 : index
    %31 = vector.load %arg7[%c1_38, %c1_39, %c0_40] : memref<18x18x128xbf16, #tpu.memory_space<vmem>>, vector<16x16x128xbf16>
    %32 = vector.shape_cast %31 : vector<16x16x128xbf16> to vector<256x128xbf16>
    %c4 = arith.constant 4 : index
    %c0_41 = arith.constant 0 : index
    %c0_42 = arith.constant 0 : index
    %33 = vector.load %arg4[%c4, %c0_41, %c0_42] : memref<9x128x128xbf16, #tpu.memory_space<vmem>>, vector<1x128x128xbf16>
    %34 = vector.shape_cast %33 : vector<1x128x128xbf16> to vector<128x128xbf16>
    %cst_43 = arith.constant dense<0.000000e+00> : vector<256x128xf32>
    %35 = tpu.matmul %32, %34, %cst_43 {dimension_numbers = #tpu.dot_dimension_numbers<[1], [0], [0], [1], [0, 0, 1, 1], [], []>} : vector<256x128xbf16>, vector<128x128xbf16>, vector<256x128xf32> -> vector<256x128xf32>
    %36 = arith.addf %30, %35 : vector<256x128xf32>
    %c1_44 = arith.constant 1 : index
    %c2_45 = arith.constant 2 : index
    %c0_46 = arith.constant 0 : index
    %37 = vector.load %arg7[%c1_44, %c2_45, %c0_46] : memref<18x18x128xbf16, #tpu.memory_space<vmem>>, vector<16x16x128xbf16>
    %38 = vector.shape_cast %37 : vector<16x16x128xbf16> to vector<256x128xbf16>
    %c5 = arith.constant 5 : index
    %c0_47 = arith.constant 0 : index
    %c0_48 = arith.constant 0 : index
    %39 = vector.load %arg4[%c5, %c0_47, %c0_48] : memref<9x128x128xbf16, #tpu.memory_space<vmem>>, vector<1x128x128xbf16>
    %40 = vector.shape_cast %39 : vector<1x128x128xbf16> to vector<128x128xbf16>
    %cst_49 = arith.constant dense<0.000000e+00> : vector<256x128xf32>
    %41 = tpu.matmul %38, %40, %cst_49 {dimension_numbers = #tpu.dot_dimension_numbers<[1], [0], [0], [1], [0, 0, 1, 1], [], []>} : vector<256x128xbf16>, vector<128x128xbf16>, vector<256x128xf32> -> vector<256x128xf32>
    %42 = arith.addf %36, %41 : vector<256x128xf32>
    %c2_50 = arith.constant 2 : index
    %c0_51 = arith.constant 0 : index
    %c0_52 = arith.constant 0 : index
    %43 = vector.load %arg7[%c2_50, %c0_51, %c0_52] : memref<18x18x128xbf16, #tpu.memory_space<vmem>>, vector<16x16x128xbf16>
    %44 = vector.shape_cast %43 : vector<16x16x128xbf16> to vector<256x128xbf16>
    %c6 = arith.constant 6 : index
    %c0_53 = arith.constant 0 : index
    %c0_54 = arith.constant 0 : index
    %45 = vector.load %arg4[%c6, %c0_53, %c0_54] : memref<9x128x128xbf16, #tpu.memory_space<vmem>>, vector<1x128x128xbf16>
    %46 = vector.shape_cast %45 : vector<1x128x128xbf16> to vector<128x128xbf16>
    %cst_55 = arith.constant dense<0.000000e+00> : vector<256x128xf32>
    %47 = tpu.matmul %44, %46, %cst_55 {dimension_numbers = #tpu.dot_dimension_numbers<[1], [0], [0], [1], [0, 0, 1, 1], [], []>} : vector<256x128xbf16>, vector<128x128xbf16>, vector<256x128xf32> -> vector<256x128xf32>
    %48 = arith.addf %42, %47 : vector<256x128xf32>
    %c2_56 = arith.constant 2 : index
    %c1_57 = arith.constant 1 : index
    %c0_58 = arith.constant 0 : index
    %49 = vector.load %arg7[%c2_56, %c1_57, %c0_58] : memref<18x18x128xbf16, #tpu.memory_space<vmem>>, vector<16x16x128xbf16>
    %50 = vector.shape_cast %49 : vector<16x16x128xbf16> to vector<256x128xbf16>
    %c7 = arith.constant 7 : index
    %c0_59 = arith.constant 0 : index
    %c0_60 = arith.constant 0 : index
    %51 = vector.load %arg4[%c7, %c0_59, %c0_60] : memref<9x128x128xbf16, #tpu.memory_space<vmem>>, vector<1x128x128xbf16>
    %52 = vector.shape_cast %51 : vector<1x128x128xbf16> to vector<128x128xbf16>
    %cst_61 = arith.constant dense<0.000000e+00> : vector<256x128xf32>
    %53 = tpu.matmul %50, %52, %cst_61 {dimension_numbers = #tpu.dot_dimension_numbers<[1], [0], [0], [1], [0, 0, 1, 1], [], []>} : vector<256x128xbf16>, vector<128x128xbf16>, vector<256x128xf32> -> vector<256x128xf32>
    %54 = arith.addf %48, %53 : vector<256x128xf32>
    %c2_62 = arith.constant 2 : index
    %c2_63 = arith.constant 2 : index
    %c0_64 = arith.constant 0 : index
    %55 = vector.load %arg7[%c2_62, %c2_63, %c0_64] : memref<18x18x128xbf16, #tpu.memory_space<vmem>>, vector<16x16x128xbf16>
    %56 = vector.shape_cast %55 : vector<16x16x128xbf16> to vector<256x128xbf16>
    %c8 = arith.constant 8 : index
    %c0_65 = arith.constant 0 : index
    %c0_66 = arith.constant 0 : index
    %57 = vector.load %arg4[%c8, %c0_65, %c0_66] : memref<9x128x128xbf16, #tpu.memory_space<vmem>>, vector<1x128x128xbf16>
    %58 = vector.shape_cast %57 : vector<1x128x128xbf16> to vector<128x128xbf16>
    %cst_67 = arith.constant dense<0.000000e+00> : vector<256x128xf32>
    %59 = tpu.matmul %56, %58, %cst_67 {dimension_numbers = #tpu.dot_dimension_numbers<[1], [0], [0], [1], [0, 0, 1, 1], [], []>} : vector<256x128xbf16>, vector<128x128xbf16>, vector<256x128xf32> -> vector<256x128xf32>
    %60 = arith.addf %54, %59 : vector<256x128xf32>
    %c0_68 = arith.constant 0 : index
    %c0_69 = arith.constant 0 : index
    %c0_70 = arith.constant 0 : index
    %c0_71 = arith.constant 0 : index
    %61 = vector.load %arg5[%c0_68, %c0_69, %c0_70, %c0_71] : memref<1x1x256x128xf32, #tpu.memory_space<vmem>>, vector<1x1x256x128xf32>
    %62 = vector.shape_cast %61 : vector<1x1x256x128xf32> to vector<256x128xf32>
    %63 = vector.shape_cast %60 : vector<256x128xf32> to vector<1x1x256x128xf32>
    tpu.vector_store %arg5[%c0_68, %c0_69, %c0_70, %c0_71], %63 {strides = array<i32>} : memref<1x1x256x128xf32, #tpu.memory_space<vmem>>, vector<1x1x256x128xf32>,
    %cst_72 = arith.constant dense<0.000000e+00> : vector<128xf32>
    %64 = vector.multi_reduction <add>, %60, %cst_72 [0] : vector<256x128xf32> to vector<128xf32>
    %65 = vector.shape_cast %64 : vector<128xf32> to vector<1x128xf32>
    %c0_73 = arith.constant 0 : index
    %c0_74 = arith.constant 0 : index
    %c0_75 = arith.constant 0 : index
    %c0_76 = arith.constant 0 : index
    %66 = vector.load %arg6[%c0_73, %c0_74, %c0_75, %c0_76] : memref<1x1x2x128xf32, #tpu.memory_space<vmem>>, vector<1x1x1x128xf32>
    %67 = vector.shape_cast %66 : vector<1x1x1x128xf32> to vector<1x128xf32>
    %68 = vector.shape_cast %65 : vector<1x128xf32> to vector<1x1x1x128xf32>
    tpu.vector_store %arg6[%c0_73, %c0_74, %c0_75, %c0_76], %68 {strides = array<i32>} : memref<1x1x2x128xf32, #tpu.memory_space<vmem>>, vector<1x1x1x128xf32>,
    %69 = arith.mulf %60, %60 : vector<256x128xf32>
    %cst_77 = arith.constant dense<0.000000e+00> : vector<128xf32>
    %70 = vector.multi_reduction <add>, %69, %cst_77 [0] : vector<256x128xf32> to vector<128xf32>
    %71 = vector.shape_cast %70 : vector<128xf32> to vector<1x128xf32>
    %c0_78 = arith.constant 0 : index
    %c0_79 = arith.constant 0 : index
    %c1_80 = arith.constant 1 : index
    %c0_81 = arith.constant 0 : index
    %72 = vector.load %arg6[%c0_78, %c0_79, %c1_80, %c0_81] : memref<1x1x2x128xf32, #tpu.memory_space<vmem>>, vector<1x1x1x128xf32>
    %73 = vector.shape_cast %72 : vector<1x1x1x128xf32> to vector<1x128xf32>
    %74 = vector.shape_cast %71 : vector<1x128xf32> to vector<1x1x1x128xf32>
    tpu.vector_store %arg6[%c0_78, %c0_79, %c1_80, %c0_81], %74 {strides = array<i32>} : memref<1x1x2x128xf32, #tpu.memory_space<vmem>>, vector<1x1x1x128xf32>,
    return
  }
  func.func @transform_0(%arg0: i32, %arg1: i32) -> (i32, i32, i32, i32) {
    %c0_i32 = arith.constant 0 : i32
    %c0_i32_0 = arith.constant 0 : i32
    %c0_i32_1 = arith.constant 0 : i32
    return %arg0, %arg1, %c0_i32, %c0_i32_0 : i32, i32, i32, i32
  }
  func.func @transform_1(%arg0: i32, %arg1: i32) -> (i32, i32, i32, i32, i32) {
    %c0_i32 = arith.constant 0 : i32
    %c0_i32_0 = arith.constant 0 : i32
    %c0_i32_1 = arith.constant 0 : i32
    %c0_i32_2 = arith.constant 0 : i32
    return %arg0, %arg1, %c0_i32, %c0_i32_0, %c0_i32_1 : i32, i32, i32, i32, i32
  }
  func.func @transform_2(%arg0: i32, %arg1: i32) -> (i32, i32, i32) {
    %c0_i32 = arith.constant 0 : i32
    %c0_i32_0 = arith.constant 0 : i32
    %c0_i32_1 = arith.constant 0 : i32
    %c0_i32_2 = arith.constant 0 : i32
    return %c0_i32, %c0_i32_0, %c0_i32_1 : i32, i32, i32
  }
  func.func @transform_3(%arg0: i32, %arg1: i32) -> (i32, i32, i32, i32) {
    %c0_i32 = arith.constant 0 : i32
    %c0_i32_0 = arith.constant 0 : i32
    %c0_i32_1 = arith.constant 0 : i32
    return %arg0, %arg1, %c0_i32, %c0_i32_0 : i32, i32, i32, i32
  }
  func.func @transform_4(%arg0: i32, %arg1: i32) -> (i32, i32, i32, i32) {
    %c0_i32 = arith.constant 0 : i32
    %c0_i32_0 = arith.constant 0 : i32
    %c0_i32_1 = arith.constant 0 : i32
    return %arg0, %arg1, %c0_i32, %c0_i32_0 : i32, i32, i32, i32
  }
}

module attributes {stable_mosaic.version = 11 : i64} {
  func.func @_bn_act_kernel(%arg0: i32, %arg1: memref<512x128xf32, #tpu.memory_space<vmem>>, %arg2: memref<512x128xf32, #tpu.memory_space<vmem>>, %arg3: memref<1x128xf32, #tpu.memory_space<vmem>>, %arg4: memref<1x128xf32, #tpu.memory_space<vmem>>, %arg5: memref<1x128xf32, #tpu.memory_space<vmem>>, %arg6: memref<512x128xf32, #tpu.memory_space<vmem>>) attributes {dimension_semantics = [#tpu.dimension_semantics<parallel>], iteration_bounds = array<i64: 1>, scalar_prefetch = 0 : i64, scratch_operands = 0 : i64, tpu.core_type = #tpu.core_type<tc>, window_params = [{transform_indices = @transform_0, window_bounds = array<i64: 512, 128>}, {transform_indices = @transform_1, window_bounds = array<i64: 512, 128>}, {pipeline_mode = #tpu.pipeline_mode<synchronous>, transform_indices = @transform_2, window_bounds = array<i64: 1, 128>}, {pipeline_mode = #tpu.pipeline_mode<synchronous>, transform_indices = @transform_3, window_bounds = array<i64: 1, 128>}, {pipeline_mode = #tpu.pipeline_mode<synchronous>, transform_indices = @transform_4, window_bounds = array<i64: 1, 128>}, {transform_indices = @transform_5, window_bounds = array<i64: 512, 128>}]} {
    %c0 = arith.constant 0 : index
    %c0_0 = arith.constant 0 : index
    %0 = vector.load %arg1[%c0, %c0_0] : memref<512x128xf32, #tpu.memory_space<vmem>>, vector<512x128xf32>
    %c0_1 = arith.constant 0 : index
    %c0_2 = arith.constant 0 : index
    %1 = vector.load %arg3[%c0_1, %c0_2] : memref<1x128xf32, #tpu.memory_space<vmem>>, vector<1x128xf32>
    %2 = vector.broadcast %1 : vector<1x128xf32> to vector<512x128xf32>
    %3 = arith.mulf %0, %2 : vector<512x128xf32>
    %c0_3 = arith.constant 0 : index
    %c0_4 = arith.constant 0 : index
    %4 = vector.load %arg2[%c0_3, %c0_4] : memref<512x128xf32, #tpu.memory_space<vmem>>, vector<512x128xf32>
    %c0_5 = arith.constant 0 : index
    %c0_6 = arith.constant 0 : index
    %5 = vector.load %arg4[%c0_5, %c0_6] : memref<1x128xf32, #tpu.memory_space<vmem>>, vector<1x128xf32>
    %6 = vector.broadcast %5 : vector<1x128xf32> to vector<512x128xf32>
    %7 = arith.mulf %4, %6 : vector<512x128xf32>
    %8 = arith.addf %3, %7 : vector<512x128xf32>
    %c0_7 = arith.constant 0 : index
    %c0_8 = arith.constant 0 : index
    %9 = vector.load %arg5[%c0_7, %c0_8] : memref<1x128xf32, #tpu.memory_space<vmem>>, vector<1x128xf32>
    %10 = vector.broadcast %9 : vector<1x128xf32> to vector<512x128xf32>
    %11 = arith.addf %8, %10 : vector<512x128xf32>
    %cst = arith.constant 0.000000e+00 : f32
    %12 = vector.broadcast %cst : f32 to vector<512x128xf32>
    %13 = arith.maximumf %11, %12 : vector<512x128xf32>
    %c0_9 = arith.constant 0 : index
    %c0_10 = arith.constant 0 : index
    %14 = vector.load %arg6[%c0_9, %c0_10] : memref<512x128xf32, #tpu.memory_space<vmem>>, vector<512x128xf32>
    tpu.vector_store %arg6[%c0_9, %c0_10], %13 {strides = array<i32>} : memref<512x128xf32, #tpu.memory_space<vmem>>, vector<512x128xf32>,
    return
  }
  func.func @transform_0(%arg0: i32) -> (i32, i32) {
    %c0_i32 = arith.constant 0 : i32
    %c0_i32_0 = arith.constant 0 : i32
    return %arg0, %c0_i32 : i32, i32
  }
  func.func @transform_1(%arg0: i32) -> (i32, i32) {
    %c0_i32 = arith.constant 0 : i32
    %c0_i32_0 = arith.constant 0 : i32
    return %arg0, %c0_i32 : i32, i32
  }
  func.func @transform_2(%arg0: i32) -> (i32, i32) {
    %c0_i32 = arith.constant 0 : i32
    %c0_i32_0 = arith.constant 0 : i32
    %c0_i32_1 = arith.constant 0 : i32
    return %c0_i32, %c0_i32_0 : i32, i32
  }
  func.func @transform_3(%arg0: i32) -> (i32, i32) {
    %c0_i32 = arith.constant 0 : i32
    %c0_i32_0 = arith.constant 0 : i32
    %c0_i32_1 = arith.constant 0 : i32
    return %c0_i32, %c0_i32_0 : i32, i32
  }
  func.func @transform_4(%arg0: i32) -> (i32, i32) {
    %c0_i32 = arith.constant 0 : i32
    %c0_i32_0 = arith.constant 0 : i32
    %c0_i32_1 = arith.constant 0 : i32
    return %c0_i32, %c0_i32_0 : i32, i32
  }
  func.func @transform_5(%arg0: i32) -> (i32, i32) {
    %c0_i32 = arith.constant 0 : i32
    %c0_i32_0 = arith.constant 0 : i32
    return %arg0, %c0_i32 : i32, i32
  }
}

module attributes {stable_mosaic.version = 11 : i64} {
  func.func @_conv_bn_stats_kernel(%arg0: i32, %arg1: i32, %arg2: memref<1x8x9x512xbf16, #tpu.memory_space<vmem>>, %arg3: memref<1x1x1x9x512xbf16, #tpu.memory_space<vmem>>, %arg4: memref<4x512x128xbf16, #tpu.memory_space<vmem>>, %arg5: memref<1x1x64x128xf32, #tpu.memory_space<vmem>>, %arg6: memref<1x1x2x128xf32, #tpu.memory_space<vmem>>, %arg7: memref<9x9x512xbf16, #tpu.memory_space<vmem>>) attributes {dimension_semantics = [#tpu.dimension_semantics<parallel>, #tpu.dimension_semantics<parallel>], iteration_bounds = array<i64: 2, 1>, scalar_prefetch = 0 : i64, scratch_operands = 1 : i64, tpu.core_type = #tpu.core_type<tc>, window_params = [{transform_indices = @transform_0, window_bounds = array<i64: 1, 8, 9, 512>}, {transform_indices = @transform_1, window_bounds = array<i64: 1, 1, 1, 9, 512>}, {pipeline_mode = #tpu.pipeline_mode<synchronous>, transform_indices = @transform_2, window_bounds = array<i64: 4, 512, 128>}, {transform_indices = @transform_3, window_bounds = array<i64: 1, 1, 64, 128>}, {transform_indices = @transform_4, window_bounds = array<i64: 1, 1, 2, 128>}]} {
    %c0 = arith.constant 0 : index
    %c0_0 = arith.constant 0 : index
    %c0_1 = arith.constant 0 : index
    %c0_2 = arith.constant 0 : index
    %0 = vector.load %arg2[%c0, %c0_0, %c0_1, %c0_2] : memref<1x8x9x512xbf16, #tpu.memory_space<vmem>>, vector<1x8x9x512xbf16>
    %1 = vector.shape_cast %0 : vector<1x8x9x512xbf16> to vector<8x9x512xbf16>
    %c0_3 = arith.constant 0 : index
    %c0_4 = arith.constant 0 : index
    %c0_5 = arith.constant 0 : index
    %2 = vector.load %arg7[%c0_3, %c0_4, %c0_5] : memref<9x9x512xbf16, #tpu.memory_space<vmem>>, vector<8x9x512xbf16>
    tpu.vector_store %arg7[%c0_3, %c0_4, %c0_5], %1 {strides = array<i32>} : memref<9x9x512xbf16, #tpu.memory_space<vmem>>, vector<8x9x512xbf16>,
    %c0_6 = arith.constant 0 : index
    %c0_7 = arith.constant 0 : index
    %c0_8 = arith.constant 0 : index
    %c0_9 = arith.constant 0 : index
    %c0_10 = arith.constant 0 : index
    %3 = vector.load %arg3[%c0_6, %c0_7, %c0_8, %c0_9, %c0_10] : memref<1x1x1x9x512xbf16, #tpu.memory_space<vmem>>, vector<1x1x1x9x512xbf16>
    %4 = vector.shape_cast %3 : vector<1x1x1x9x512xbf16> to vector<1x9x512xbf16>
    %c8 = arith.constant 8 : index
    %c0_11 = arith.constant 0 : index
    %c0_12 = arith.constant 0 : index
    %5 = vector.load %arg7[%c8, %c0_11, %c0_12] : memref<9x9x512xbf16, #tpu.memory_space<vmem>>, vector<1x9x512xbf16>
    tpu.vector_store %arg7[%c8, %c0_11, %c0_12], %4 {strides = array<i32>} : memref<9x9x512xbf16, #tpu.memory_space<vmem>>, vector<1x9x512xbf16>,
    %cst = arith.constant 0.000000e+00 : f32
    %6 = vector.broadcast %cst : f32 to vector<64x128xf32>
    %c0_13 = arith.constant 0 : index
    %c0_14 = arith.constant 0 : index
    %c0_15 = arith.constant 0 : index
    %7 = vector.load %arg7[%c0_13, %c0_14, %c0_15] : memref<9x9x512xbf16, #tpu.memory_space<vmem>>, vector<8x8x512xbf16>
    %8 = vector.shape_cast %7 : vector<8x8x512xbf16> to vector<64x512xbf16>
    %c0_16 = arith.constant 0 : index
    %c0_17 = arith.constant 0 : index
    %c0_18 = arith.constant 0 : index
    %9 = vector.load %arg4[%c0_16, %c0_17, %c0_18] : memref<4x512x128xbf16, #tpu.memory_space<vmem>>, vector<1x512x128xbf16>
    %10 = vector.shape_cast %9 : vector<1x512x128xbf16> to vector<512x128xbf16>
    %cst_19 = arith.constant dense<0.000000e+00> : vector<64x128xf32>
    %11 = tpu.matmul %8, %10, %cst_19 {dimension_numbers = #tpu.dot_dimension_numbers<[1], [0], [0], [1], [0, 0, 1, 1], [], []>} : vector<64x512xbf16>, vector<512x128xbf16>, vector<64x128xf32> -> vector<64x128xf32>
    %12 = arith.addf %6, %11 : vector<64x128xf32>
    %c0_20 = arith.constant 0 : index
    %c1 = arith.constant 1 : index
    %c0_21 = arith.constant 0 : index
    %13 = vector.load %arg7[%c0_20, %c1, %c0_21] : memref<9x9x512xbf16, #tpu.memory_space<vmem>>, vector<8x8x512xbf16>
    %14 = vector.shape_cast %13 : vector<8x8x512xbf16> to vector<64x512xbf16>
    %c1_22 = arith.constant 1 : index
    %c0_23 = arith.constant 0 : index
    %c0_24 = arith.constant 0 : index
    %15 = vector.load %arg4[%c1_22, %c0_23, %c0_24] : memref<4x512x128xbf16, #tpu.memory_space<vmem>>, vector<1x512x128xbf16>
    %16 = vector.shape_cast %15 : vector<1x512x128xbf16> to vector<512x128xbf16>
    %cst_25 = arith.constant dense<0.000000e+00> : vector<64x128xf32>
    %17 = tpu.matmul %14, %16, %cst_25 {dimension_numbers = #tpu.dot_dimension_numbers<[1], [0], [0], [1], [0, 0, 1, 1], [], []>} : vector<64x512xbf16>, vector<512x128xbf16>, vector<64x128xf32> -> vector<64x128xf32>
    %18 = arith.addf %12, %17 : vector<64x128xf32>
    %c1_26 = arith.constant 1 : index
    %c0_27 = arith.constant 0 : index
    %c0_28 = arith.constant 0 : index
    %19 = vector.load %arg7[%c1_26, %c0_27, %c0_28] : memref<9x9x512xbf16, #tpu.memory_space<vmem>>, vector<8x8x512xbf16>
    %20 = vector.shape_cast %19 : vector<8x8x512xbf16> to vector<64x512xbf16>
    %c2 = arith.constant 2 : index
    %c0_29 = arith.constant 0 : index
    %c0_30 = arith.constant 0 : index
    %21 = vector.load %arg4[%c2, %c0_29, %c0_30] : memref<4x512x128xbf16, #tpu.memory_space<vmem>>, vector<1x512x128xbf16>
    %22 = vector.shape_cast %21 : vector<1x512x128xbf16> to vector<512x128xbf16>
    %cst_31 = arith.constant dense<0.000000e+00> : vector<64x128xf32>
    %23 = tpu.matmul %20, %22, %cst_31 {dimension_numbers = #tpu.dot_dimension_numbers<[1], [0], [0], [1], [0, 0, 1, 1], [], []>} : vector<64x512xbf16>, vector<512x128xbf16>, vector<64x128xf32> -> vector<64x128xf32>
    %24 = arith.addf %18, %23 : vector<64x128xf32>
    %c1_32 = arith.constant 1 : index
    %c1_33 = arith.constant 1 : index
    %c0_34 = arith.constant 0 : index
    %25 = vector.load %arg7[%c1_32, %c1_33, %c0_34] : memref<9x9x512xbf16, #tpu.memory_space<vmem>>, vector<8x8x512xbf16>
    %26 = vector.shape_cast %25 : vector<8x8x512xbf16> to vector<64x512xbf16>
    %c3 = arith.constant 3 : index
    %c0_35 = arith.constant 0 : index
    %c0_36 = arith.constant 0 : index
    %27 = vector.load %arg4[%c3, %c0_35, %c0_36] : memref<4x512x128xbf16, #tpu.memory_space<vmem>>, vector<1x512x128xbf16>
    %28 = vector.shape_cast %27 : vector<1x512x128xbf16> to vector<512x128xbf16>
    %cst_37 = arith.constant dense<0.000000e+00> : vector<64x128xf32>
    %29 = tpu.matmul %26, %28, %cst_37 {dimension_numbers = #tpu.dot_dimension_numbers<[1], [0], [0], [1], [0, 0, 1, 1], [], []>} : vector<64x512xbf16>, vector<512x128xbf16>, vector<64x128xf32> -> vector<64x128xf32>
    %30 = arith.addf %24, %29 : vector<64x128xf32>
    %c0_38 = arith.constant 0 : index
    %c0_39 = arith.constant 0 : index
    %c0_40 = arith.constant 0 : index
    %c0_41 = arith.constant 0 : index
    %31 = vector.load %arg5[%c0_38, %c0_39, %c0_40, %c0_41] : memref<1x1x64x128xf32, #tpu.memory_space<vmem>>, vector<1x1x64x128xf32>
    %32 = vector.shape_cast %31 : vector<1x1x64x128xf32> to vector<64x128xf32>
    %33 = vector.shape_cast %30 : vector<64x128xf32> to vector<1x1x64x128xf32>
    tpu.vector_store %arg5[%c0_38, %c0_39, %c0_40, %c0_41], %33 {strides = array<i32>} : memref<1x1x64x128xf32, #tpu.memory_space<vmem>>, vector<1x1x64x128xf32>,
    %cst_42 = arith.constant dense<0.000000e+00> : vector<128xf32>
    %34 = vector.multi_reduction <add>, %30, %cst_42 [0] : vector<64x128xf32> to vector<128xf32>
    %35 = vector.shape_cast %34 : vector<128xf32> to vector<1x128xf32>
    %c0_43 = arith.constant 0 : index
    %c0_44 = arith.constant 0 : index
    %c0_45 = arith.constant 0 : index
    %c0_46 = arith.constant 0 : index
    %36 = vector.load %arg6[%c0_43, %c0_44, %c0_45, %c0_46] : memref<1x1x2x128xf32, #tpu.memory_space<vmem>>, vector<1x1x1x128xf32>
    %37 = vector.shape_cast %36 : vector<1x1x1x128xf32> to vector<1x128xf32>
    %38 = vector.shape_cast %35 : vector<1x128xf32> to vector<1x1x1x128xf32>
    tpu.vector_store %arg6[%c0_43, %c0_44, %c0_45, %c0_46], %38 {strides = array<i32>} : memref<1x1x2x128xf32, #tpu.memory_space<vmem>>, vector<1x1x1x128xf32>,
    %39 = arith.mulf %30, %30 : vector<64x128xf32>
    %cst_47 = arith.constant dense<0.000000e+00> : vector<128xf32>
    %40 = vector.multi_reduction <add>, %39, %cst_47 [0] : vector<64x128xf32> to vector<128xf32>
    %41 = vector.shape_cast %40 : vector<128xf32> to vector<1x128xf32>
    %c0_48 = arith.constant 0 : index
    %c0_49 = arith.constant 0 : index
    %c1_50 = arith.constant 1 : index
    %c0_51 = arith.constant 0 : index
    %42 = vector.load %arg6[%c0_48, %c0_49, %c1_50, %c0_51] : memref<1x1x2x128xf32, #tpu.memory_space<vmem>>, vector<1x1x1x128xf32>
    %43 = vector.shape_cast %42 : vector<1x1x1x128xf32> to vector<1x128xf32>
    %44 = vector.shape_cast %41 : vector<1x128xf32> to vector<1x1x1x128xf32>
    tpu.vector_store %arg6[%c0_48, %c0_49, %c1_50, %c0_51], %44 {strides = array<i32>} : memref<1x1x2x128xf32, #tpu.memory_space<vmem>>, vector<1x1x1x128xf32>,
    return
  }
  func.func @transform_0(%arg0: i32, %arg1: i32) -> (i32, i32, i32, i32) {
    %c0_i32 = arith.constant 0 : i32
    %c0_i32_0 = arith.constant 0 : i32
    %c0_i32_1 = arith.constant 0 : i32
    return %arg0, %arg1, %c0_i32, %c0_i32_0 : i32, i32, i32, i32
  }
  func.func @transform_1(%arg0: i32, %arg1: i32) -> (i32, i32, i32, i32, i32) {
    %c0_i32 = arith.constant 0 : i32
    %c0_i32_0 = arith.constant 0 : i32
    %c0_i32_1 = arith.constant 0 : i32
    %c0_i32_2 = arith.constant 0 : i32
    return %arg0, %arg1, %c0_i32, %c0_i32_0, %c0_i32_1 : i32, i32, i32, i32, i32
  }
  func.func @transform_2(%arg0: i32, %arg1: i32) -> (i32, i32, i32) {
    %c0_i32 = arith.constant 0 : i32
    %c0_i32_0 = arith.constant 0 : i32
    %c0_i32_1 = arith.constant 0 : i32
    %c0_i32_2 = arith.constant 0 : i32
    return %c0_i32, %c0_i32_0, %c0_i32_1 : i32, i32, i32
  }
  func.func @transform_3(%arg0: i32, %arg1: i32) -> (i32, i32, i32, i32) {
    %c0_i32 = arith.constant 0 : i32
    %c0_i32_0 = arith.constant 0 : i32
    %c0_i32_1 = arith.constant 0 : i32
    return %arg0, %arg1, %c0_i32, %c0_i32_0 : i32, i32, i32, i32
  }
  func.func @transform_4(%arg0: i32, %arg1: i32) -> (i32, i32, i32, i32) {
    %c0_i32 = arith.constant 0 : i32
    %c0_i32_0 = arith.constant 0 : i32
    %c0_i32_1 = arith.constant 0 : i32
    return %arg0, %arg1, %c0_i32, %c0_i32_0 : i32, i32, i32, i32
  }
}

module attributes {stable_mosaic.version = 11 : i64} {
  func.func @_bn_act_kernel(%arg0: i32, %arg1: memref<128x128xf32, #tpu.memory_space<vmem>>, %arg2: memref<128x128xf32, #tpu.memory_space<vmem>>, %arg3: memref<1x128xf32, #tpu.memory_space<vmem>>, %arg4: memref<1x128xf32, #tpu.memory_space<vmem>>, %arg5: memref<1x128xf32, #tpu.memory_space<vmem>>, %arg6: memref<128x128xf32, #tpu.memory_space<vmem>>) attributes {dimension_semantics = [#tpu.dimension_semantics<parallel>], iteration_bounds = array<i64: 1>, scalar_prefetch = 0 : i64, scratch_operands = 0 : i64, tpu.core_type = #tpu.core_type<tc>, window_params = [{transform_indices = @transform_0, window_bounds = array<i64: 128, 128>}, {transform_indices = @transform_1, window_bounds = array<i64: 128, 128>}, {pipeline_mode = #tpu.pipeline_mode<synchronous>, transform_indices = @transform_2, window_bounds = array<i64: 1, 128>}, {pipeline_mode = #tpu.pipeline_mode<synchronous>, transform_indices = @transform_3, window_bounds = array<i64: 1, 128>}, {pipeline_mode = #tpu.pipeline_mode<synchronous>, transform_indices = @transform_4, window_bounds = array<i64: 1, 128>}, {transform_indices = @transform_5, window_bounds = array<i64: 128, 128>}]} {
    %c0 = arith.constant 0 : index
    %c0_0 = arith.constant 0 : index
    %0 = vector.load %arg1[%c0, %c0_0] : memref<128x128xf32, #tpu.memory_space<vmem>>, vector<128x128xf32>
    %c0_1 = arith.constant 0 : index
    %c0_2 = arith.constant 0 : index
    %1 = vector.load %arg3[%c0_1, %c0_2] : memref<1x128xf32, #tpu.memory_space<vmem>>, vector<1x128xf32>
    %2 = vector.broadcast %1 : vector<1x128xf32> to vector<128x128xf32>
    %3 = arith.mulf %0, %2 : vector<128x128xf32>
    %c0_3 = arith.constant 0 : index
    %c0_4 = arith.constant 0 : index
    %4 = vector.load %arg2[%c0_3, %c0_4] : memref<128x128xf32, #tpu.memory_space<vmem>>, vector<128x128xf32>
    %c0_5 = arith.constant 0 : index
    %c0_6 = arith.constant 0 : index
    %5 = vector.load %arg4[%c0_5, %c0_6] : memref<1x128xf32, #tpu.memory_space<vmem>>, vector<1x128xf32>
    %6 = vector.broadcast %5 : vector<1x128xf32> to vector<128x128xf32>
    %7 = arith.mulf %4, %6 : vector<128x128xf32>
    %8 = arith.addf %3, %7 : vector<128x128xf32>
    %c0_7 = arith.constant 0 : index
    %c0_8 = arith.constant 0 : index
    %9 = vector.load %arg5[%c0_7, %c0_8] : memref<1x128xf32, #tpu.memory_space<vmem>>, vector<1x128xf32>
    %10 = vector.broadcast %9 : vector<1x128xf32> to vector<128x128xf32>
    %11 = arith.addf %8, %10 : vector<128x128xf32>
    %cst = arith.constant 0.000000e+00 : f32
    %12 = vector.broadcast %cst : f32 to vector<128x128xf32>
    %13 = arith.maximumf %11, %12 : vector<128x128xf32>
    %c0_9 = arith.constant 0 : index
    %c0_10 = arith.constant 0 : index
    %14 = vector.load %arg6[%c0_9, %c0_10] : memref<128x128xf32, #tpu.memory_space<vmem>>, vector<128x128xf32>
    tpu.vector_store %arg6[%c0_9, %c0_10], %13 {strides = array<i32>} : memref<128x128xf32, #tpu.memory_space<vmem>>, vector<128x128xf32>,
    return
  }
  func.func @transform_0(%arg0: i32) -> (i32, i32) {
    %c0_i32 = arith.constant 0 : i32
    %c0_i32_0 = arith.constant 0 : i32
    return %arg0, %c0_i32 : i32, i32
  }
  func.func @transform_1(%arg0: i32) -> (i32, i32) {
    %c0_i32 = arith.constant 0 : i32
    %c0_i32_0 = arith.constant 0 : i32
    return %arg0, %c0_i32 : i32, i32
  }
  func.func @transform_2(%arg0: i32) -> (i32, i32) {
    %c0_i32 = arith.constant 0 : i32
    %c0_i32_0 = arith.constant 0 : i32
    %c0_i32_1 = arith.constant 0 : i32
    return %c0_i32, %c0_i32_0 : i32, i32
  }
  func.func @transform_3(%arg0: i32) -> (i32, i32) {
    %c0_i32 = arith.constant 0 : i32
    %c0_i32_0 = arith.constant 0 : i32
    %c0_i32_1 = arith.constant 0 : i32
    return %c0_i32, %c0_i32_0 : i32, i32
  }
  func.func @transform_4(%arg0: i32) -> (i32, i32) {
    %c0_i32 = arith.constant 0 : i32
    %c0_i32_0 = arith.constant 0 : i32
    %c0_i32_1 = arith.constant 0 : i32
    return %c0_i32, %c0_i32_0 : i32, i32
  }
  func.func @transform_5(%arg0: i32) -> (i32, i32) {
    %c0_i32 = arith.constant 0 : i32
    %c0_i32_0 = arith.constant 0 : i32
    return %arg0, %c0_i32 : i32, i32
  }
}

</mosaic_0001>

<bundles_post_ra>
// kernel: block2d_forward.10
= control target key start
LH: loop header
LB: loop body
LE: loop exit
PB: predicated region body
PF: predicated region fallthrough
CT: control target
= control target key end

     0   :  { %s1076_s12 = smov 0   ;;  %s1078_s13 = smov 0   ;;  %s1271_s0 = inlined_call_operand.vmem [shape: bf16[2,16,16,128], index: 0, kind: input, shape index: {}]   ;;  %s1272_s1 = inlined_call_operand.vmem [shape: bf16[1,128,128], index: 1, kind: input, shape index: {}]   ;;  %s1273_s2 = inlined_call_operand.vmem [shape: f32[2,1,256,128], index: 2, kind: output, shape index: {0}]   ;;  %s1274_s3 = inlined_call_operand.vmem [shape: f32[2,1,2,128], index: 3, kind: output, shape index: {1}]  }
   0x1   :  { %s1080_s14 = smov 0  }
   0x2 LB: > { %s26_s15 = sadd.s32 1, %s1050_s13  ;;  %p862_p0 = scmp.ge.s32.totalorder %s1054_s14, 1  ;;  %s1054_s14 = sphi %s1080_s14, %s14_s14   ;;  %s1050_s13 = sphi %s1078_s13, %s1276_s13   ;;  %s1046_s12 = sphi %s1076_s12, %s1275_s12  }
   0x3   : > { %p28_p1 = scmp.ge.s32.totalorder %s26_s15, 2  ;;  %p164_p2 = scmp.lt.s32.totalorder %s1054_s14, 3 }
   0x5   : > { %s1278_s15 = smov (%p28_p1, %s26_s15), 0  ;;  %p165_p3 = pnand %p862_p0, %p164_p2 }
   0x6   : > { %v1008_v0 = vld [vmem:[%s1272_s1] sm:$0xff] (!%p165_p3)   ;;  %p205_p4 = scmp.lt.s32.totalorder (!%p165_p3), %s1046_s12, 1  ;;  %v1009_v1 = vld [vmem:[%s1272_s1 + $0x8] sm:$0xff] (!%p165_p3)   ;;  %v1010_v2 = vld [vmem:[%s1272_s1 + $0x10] sm:$0xff] (!%p165_p3)  }
   0x7   : > { %168 = sbr.rel (%p165_p3) target bundleno = 331 (0x14b), region = 28  ;;  %920 = vmatprep.subr.bf16.mxu0 (!%p165_p3), %v1008_v0  ;;  %968 = vmatprep.subr.bf16.mxu1 (!%p165_p3), %v1008_v0  ;;  %v1011_v3 = vld [vmem:[%s1272_s1 + $0x18] sm:$0xff] (!%p165_p3)   ;;  %v1012_v5 = vld [vmem:[%s1272_s1 + $0x20] sm:$0xff] (!%p165_p3)   ;;  %v1013_v6 = vld [vmem:[%s1272_s1 + $0x28] sm:$0xff] (!%p165_p3)  }
   0x8   : > { %921 = vmatpush3.bf16.msra.mxu0 (!%p165_p3), %v1008_v0  ;;  %976 = vmatpush3.bf16.msra.mxu1 (!%p165_p3), %v1008_v0  ;;  %v1014_v8 = vld [vmem:[%s1272_s1 + $0x30] sm:$0xff] (!%p165_p3)   ;;  %v1015_v9 = vld [vmem:[%s1272_s1 + $0x38] sm:$0xff] (!%p165_p3)  }
   0x9   : > { %922 = vmatprep.subr.bf16.mxu0 (!%p165_p3), %v1009_v1  ;;  %969 = vmatprep.subr.bf16.mxu1 (!%p165_p3), %v1009_v1 }
   0xc   : > { %923 = vmatpush3.bf16.msra.mxu0 (!%p165_p3), %v1009_v1  ;;  %977 = vmatpush3.bf16.msra.mxu1 (!%p165_p3), %v1009_v1 }
   0xd   : > { %924 = vmatprep.subr.bf16.mxu0 (!%p165_p3), %v1010_v2  ;;  %970 = vmatprep.subr.bf16.mxu1 (!%p165_p3), %v1010_v2 }
   0xe   : > { %s1280_s12 = smov (!%p205_p4, %s1046_s12), 1 }
   0xf   : > { %s894_s22 = sshll.u32 %s1280_s12, 7  ;;  %s895_s9 = sshll.u32 %s1280_s12, 8 }
  0x10   : > { %s1109_s25 = scalar_lea.vmem %s1271_s0, %s894_s22  ;;  %925 = vmatpush3.bf16.msra.mxu0 %v1010_v2  ;;  %978 = vmatpush3.bf16.msra.mxu1 %v1010_v2  ;;  %s1146_s16 = scalar_lea.vmem %s1273_s2, %s895_s9 }
  0x11   : > { %v1016_v4 = vld [vmem:[%s1109_s25] sm:$0xff]   ;;  %926 = vmatprep.subr.bf16.mxu0 %v1011_v3  ;;  %971 = vmatprep.subr.bf16.mxu1 %v1011_v3  ;;  %v1017_v10 = vld [vmem:[%s1109_s25 + $0x8] sm:$0xff]   ;;  %v1018_v12 = vld [vmem:[%s1109_s25 + $0x10] sm:$0xff]   ;;  %s867_s17 = sshll.u32 %s1280_s12, 1 }
  0x12   : > { %936 = vmatprep.mubr.bf16.mxu0 %v1016_v4  ;;  %v1024_v7 = vld [vmem:[%s1109_s25 + $0x40] sm:$0xff]   ;;  %v1025_v11 = vld [vmem:[%s1109_s25 + $0x48] sm:$0xff]   ;;  %v1026_v13 = vld [vmem:[%s1109_s25 + $0x50] sm:$0xff]   ;;  %s230_s20 = scalar_lea.vmem %s1274_s3, %s867_s17 }
  0x13   : > { %952 = vmatprep.mubr.bf16.mxu1 %v1024_v7  ;;  %v1019_v14 = vld [vmem:[%s1109_s25 + $0x18] sm:$0xff]   ;;  %v1020_v16 = vld [vmem:[%s1109_s25 + $0x20] sm:$0xff]   ;;  %v1021_v18 = vld [vmem:[%s1109_s25 + $0x28] sm:$0xff]  }
  0x14   : > { %927 = vmatpush3.bf16.msra.mxu0 %v1011_v3  ;;  %979 = vmatpush3.bf16.msra.mxu1 %v1011_v3  ;;  %v1027_v15 = vld [vmem:[%s1109_s25 + $0x58] sm:$0xff]   ;;  %v1028_v17 = vld [vmem:[%s1109_s25 + $0x60] sm:$0xff]   ;;  %v1029_v19 = vld [vmem:[%s1109_s25 + $0x68] sm:$0xff]  }
  0x15   : > { %928 = vmatprep.subr.bf16.mxu0 %v1012_v5  ;;  %972 = vmatprep.subr.bf16.mxu1 %v1012_v5  ;;  %v1022_v20 = vld [vmem:[%s1109_s25 + $0x30] sm:$0xff]   ;;  %v1023_v22 = vld [vmem:[%s1109_s25 + $0x38] sm:$0xff]  }
  0x16   : > { %v1030_v21 = vld [vmem:[%s1109_s25 + $0x70] sm:$0xff]   ;;  %v1031_v23 = vld [vmem:[%s1109_s25 + $0x78] sm:$0xff]  }
  0x18   : > { %929 = vmatpush3.bf16.msra.mxu0 %v1012_v5  ;;  %980 = vmatpush3.bf16.msra.mxu1 %v1012_v5 }
  0x19   : > { %930 = vmatprep.subr.bf16.mxu0 %v1013_v6  ;;  %973 = vmatprep.subr.bf16.mxu1 %v1013_v6 }
  0x1c   : > { %931 = vmatpush3.bf16.msra.mxu0 %v1013_v6  ;;  %981 = vmatpush3.bf16.msra.mxu1 %v1013_v6 }
  0x1d   : > { %932 = vmatprep.subr.bf16.mxu0 %v1014_v8  ;;  %974 = vmatprep.subr.bf16.mxu1 %v1014_v8 }
  0x20   : > { %933 = vmatpush3.bf16.msra.mxu0 %v1014_v8  ;;  %982 = vmatpush3.bf16.msra.mxu1 %v1014_v8 }
  0x21   : > { %934 = vmatprep.subr.bf16.mxu0 %v1015_v9  ;;  %975 = vmatprep.subr.bf16.mxu1 %v1015_v9 }
  0x24   : > { %935 = vmatpush3.bf16.msra.mxu0 %v1015_v9  ;;  %983 = vmatpush3.bf16.msra.mxu1 %v1015_v9 }
  0x27   : > { %937 = vmatmul.mubr.bf16.vlgmr.msra.gmra.mrb[0].mxu0 %v1017_v10  ;;  %953 = vmatmul.mubr.bf16.vlgmr.msra.gmra.mrb[0].mxu1 %v1025_v11 }
  0x28   : > { %940 = vmatprep.mubr.bf16.mxu0 %v1018_v12  ;;  %956 = vmatprep.mubr.bf16.mxu1 %v1026_v13 }
  0x2f   : > { %941 = vmatmul.mubr.bf16.gmra.mrb[4].mxu0 %v1019_v14  ;;  %957 = vmatmul.mubr.bf16.gmra.mrb[4].mxu1 %v1027_v15 }
  0x30   : > { %944 = vmatprep.mubr.bf16.mxu0 %v1020_v16  ;;  %960 = vmatprep.mubr.bf16.mxu1 %v1028_v17 }
  0x37   : > { %945 = vmatmul.mubr.bf16.gmra.mrb[8].mxu0 %v1021_v18  ;;  %961 = vmatmul.mubr.bf16.gmra.mrb[8].mxu1 %v1029_v19 }
  0x38   : > { %948 = vmatprep.mubr.bf16.mxu0 %v1022_v20  ;;  %964 = vmatprep.mubr.bf16.mxu1 %v1030_v21 }
  0x3f   : > { %949 = vmatmul.mubr.bf16.gmra.mrb[12].mxu0 %v1023_v22  ;;  %965 = vmatmul.mubr.bf16.gmra.mrb[12].mxu1 %v1031_v23 }
  0xfa   : > { %v938_v24 = vpop.f32.mrb[0].mxu0  ;;  %v1148_v25 = vpop.f32.mrb[0].mxu1 }
  0xfb   : > { %587 = vst [vmem:[%s1146_s16 + $0x10] sm:$0xff] %v938_v24  ;;  %v458_v26 = vpop.f32.mrb[1].mxu0  ;;  %603 = vst [vmem:[%s1146_s16 + $0x90] sm:$0xff] %v1148_v25  ;;  %v1153_v27 = vpop.f32.mrb[1].mxu1  ;;  %v657_v35 = vmul.f32 %v938_v24, %v938_v24 }
  0xfc   : > { %585 = vst [vmem:[%s1146_s16] sm:$0xff] %v458_v26  ;;  %v939_v28 = vpop.f32.mrb[2].mxu0  ;;  %601 = vst [vmem:[%s1146_s16 + $0x80] sm:$0xff] %v1153_v27  ;;  %v1158_v29 = vpop.f32.mrb[2].mxu1  ;;  %v655_v32 = vmul.f32 %v458_v26, %v458_v26 }
  0xfd   : > { %588 = vst [vmem:[%s1146_s16 + $0x18] sm:$0xff] %v939_v28  ;;  %v461_v30 = vpop.f32.mrb[3].mxu0  ;;  %604 = vst [vmem:[%s1146_s16 + $0x98] sm:$0xff] %v1158_v29  ;;  %v1163_v31 = vpop.f32.mrb[3].mxu1  ;;  %v658_v38 = vmul.f32 %v939_v28, %v939_v28 }
  0xfe   : > { %586 = vst [vmem:[%s1146_s16 + $0x8] sm:$0xff] %v461_v30  ;;  %v617_v33 = vadd.f32 %v461_v30, %v458_v26  ;;  %v656_v34 = vmul.f32 %v461_v30, %v461_v30  ;;  %602 = vst [vmem:[%s1146_s16 + $0x88] sm:$0xff] %v1163_v31 }
 0x100   : > { %v618_v36 = vadd.f32 %v938_v24, %v617_v33  ;;  %v687_v37 = vadd.f32 %v656_v34, %v655_v32 }
 0x102   : > { %v688_v39 = vadd.f32 %v687_v37, %v657_v35  ;;  %v942_v40 = vpop.f32.mrb[4].mxu0  ;;  %v619_v41 = vadd.f32 %v939_v28, %v618_v36  ;;  %v1168_v42 = vpop.f32.mrb[4].mxu1 }
 0x103   : > { %591 = vst [vmem:[%s1146_s16 + $0x30] sm:$0xff] %v942_v40  ;;  %v474_v43 = vpop.f32.mrb[5].mxu0  ;;  %607 = vst [vmem:[%s1146_s16 + $0xb0] sm:$0xff] %v1168_v42  ;;  %v1173_v44 = vpop.f32.mrb[5].mxu1  ;;  %v661_v55 = vmul.f32 %v942_v40, %v942_v40 }
 0x104   : > { %589 = vst [vmem:[%s1146_s16 + $0x20] sm:$0xff] %v474_v43  ;;  %v620_v45 = vadd.f32 %v619_v41, %v474_v43  ;;  %v659_v46 = vmul.f32 %v474_v43, %v474_v43  ;;  %v689_v47 = vadd.f32 %v688_v39, %v658_v38  ;;  %v943_v48 = vpop.f32.mrb[6].mxu0  ;;  %605 = vst [vmem:[%s1146_s16 + $0xa0] sm:$0xff] %v1173_v44  ;;  %v1178_v49 = vpop.f32.mrb[6].mxu1 }
 0x105   : > { %592 = vst [vmem:[%s1146_s16 + $0x38] sm:$0xff] %v943_v48  ;;  %v477_v50 = vpop.f32.mrb[7].mxu0  ;;  %608 = vst [vmem:[%s1146_s16 + $0xb8] sm:$0xff] %v1178_v49  ;;  %v1183_v51 = vpop.f32.mrb[7].mxu1  ;;  %v662_v58 = vmul.f32 %v943_v48, %v943_v48  ;;  %v671_v41 = vmul.f32 %v1153_v27, %v1153_v27 }
 0x106   : > { %v690_v52 = vadd.f32 %v689_v47, %v659_v46  ;;  %590 = vst [vmem:[%s1146_s16 + $0x28] sm:$0xff] %v477_v50  ;;  %v621_v53 = vadd.f32 %v620_v45, %v477_v50  ;;  %v660_v54 = vmul.f32 %v477_v50, %v477_v50  ;;  %606 = vst [vmem:[%s1146_s16 + $0xa8] sm:$0xff] %v1183_v51 }
 0x107   : > { %v673_v50 = vmul.f32 %v1148_v25, %v1148_v25 }
 0x108   : > { %v622_v56 = vadd.f32 %v942_v40, %v621_v53  ;;  %v691_v57 = vadd.f32 %v690_v52, %v660_v54  ;;  %v674_v54 = vmul.f32 %v1158_v29, %v1158_v29 }
 0x10a   : > { %v692_v59 = vadd.f32 %v691_v57, %v661_v55  ;;  %v946_v60 = vpop.f32.mrb[8].mxu0  ;;  %v623_v61 = vadd.f32 %v943_v48, %v622_v56  ;;  %v1188_v62 = vpop.f32.mrb[8].mxu1  ;;  %v672_v48 = vmul.f32 %v1163_v31, %v1163_v31 }
 0x10b   : > { %595 = vst [vmem:[%s1146_s16 + $0x50] sm:$0xff] %v946_v60  ;;  %v490_v63 = vpop.f32.mrb[9].mxu0  ;;  %611 = vst [vmem:[%s1146_s16 + $0xd0] sm:$0xff] %v1188_v62  ;;  %v1193_v0 = vpop.f32.mrb[9].mxu1  ;;  %v665_v11 = vmul.f32 %v946_v60, %v946_v60 }
 0x10c   : > { %593 = vst [vmem:[%s1146_s16 + $0x40] sm:$0xff] %v490_v63  ;;  %v624_v1 = vadd.f32 %v623_v61, %v490_v63  ;;  %v663_v2 = vmul.f32 %v490_v63, %v490_v63  ;;  %v693_v3 = vadd.f32 %v692_v59, %v662_v58  ;;  %v947_v4 = vpop.f32.mrb[10].mxu0  ;;  %609 = vst [vmem:[%s1146_s16 + $0xc0] sm:$0xff] %v1193_v0  ;;  %v1198_v5 = vpop.f32.mrb[10].mxu1 }
 0x10d   : > { %596 = vst [vmem:[%s1146_s16 + $0x58] sm:$0xff] %v947_v4  ;;  %v493_v6 = vpop.f32.mrb[11].mxu0  ;;  %612 = vst [vmem:[%s1146_s16 + $0xd8] sm:$0xff] %v1198_v5  ;;  %v1203_v7 = vpop.f32.mrb[11].mxu1  ;;  %v666_v14 = vmul.f32 %v947_v4, %v947_v4 }
 0x10e   : > { %v694_v8 = vadd.f32 %v693_v3, %v663_v2  ;;  %594 = vst [vmem:[%s1146_s16 + $0x48] sm:$0xff] %v493_v6  ;;  %v625_v9 = vadd.f32 %v624_v1, %v493_v6  ;;  %v664_v10 = vmul.f32 %v493_v6, %v493_v6  ;;  %610 = vst [vmem:[%s1146_s16 + $0xc8] sm:$0xff] %v1203_v7 }
 0x110   : > { %v626_v12 = vadd.f32 %v946_v60, %v625_v9  ;;  %v695_v13 = vadd.f32 %v694_v8, %v664_v10  ;;  %v676_v60 = vmul.f32 %v1183_v51, %v1183_v51  ;;  %v680_v8 = vmul.f32 %v1203_v7, %v1203_v7 }
 0x112   : > { %v696_v15 = vadd.f32 %v695_v13, %v665_v11  ;;  %v950_v16 = vpop.f32.mrb[12].mxu0  ;;  %v627_v17 = vadd.f32 %v947_v4, %v626_v12  ;;  %v1208_v18 = vpop.f32.mrb[12].mxu1 }
 0x113   : > { %599 = vst [vmem:[%s1146_s16 + $0x70] sm:$0xff] %v950_v16  ;;  %v506_v19 = vpop.f32.mrb[13].mxu0  ;;  %615 = vst [vmem:[%s1146_s16 + $0xf0] sm:$0xff] %v1208_v18  ;;  %v570_v20 = vpop.f32.mrb[13].mxu1  ;;  %v669_v35 = vmul.f32 %v950_v16, %v950_v16 }
 0x114   : > { %597 = vst [vmem:[%s1146_s16 + $0x60] sm:$0xff] %v506_v19  ;;  %v628_v21 = vadd.f32 %v627_v17, %v506_v19  ;;  %v667_v22 = vmul.f32 %v506_v19, %v506_v19  ;;  %v697_v23 = vadd.f32 %v696_v15, %v666_v14  ;;  %v951_v24 = vpop.f32.mrb[14].mxu0  ;;  %613 = vst [vmem:[%s1146_s16 + $0xe0] sm:$0xff] %v570_v20  ;;  %v967_v26 = vpop.f32.mrb[14].mxu1 }
 0x115   : > { %600 = vst [vmem:[%s1146_s16 + $0x78] sm:$0xff] %v951_v24  ;;  %v509_v28 = vpop.f32.mrb[15].mxu0  ;;  %616 = vst [vmem:[%s1146_s16 + $0xf8] sm:$0xff] %v967_v26  ;;  %v573_v30 = vpop.f32.mrb[15].mxu1  ;;  %v670_v38 = vmul.f32 %v951_v24, %v951_v24 }
 0x116   : > { %v698_v32 = vadd.f32 %v697_v23, %v667_v22  ;;  %598 = vst [vmem:[%s1146_s16 + $0x68] sm:$0xff] %v509_v28  ;;  %v629_v33 = vadd.f32 %v628_v21, %v509_v28  ;;  %v668_v34 = vmul.f32 %v509_v28, %v509_v28  ;;  %614 = vst [vmem:[%s1146_s16 + $0xe8] sm:$0xff] %v573_v30 }
 0x117   : > { %v684_v17 = vmul.f32 %v573_v30, %v573_v30  ;;  %v686_v21 = vmul.f32 %v967_v26, %v967_v26 }
 0x118   : > { %v630_v36 = vadd.f32 %v950_v16, %v629_v33  ;;  %v699_v37 = vadd.f32 %v698_v32, %v668_v34 }
 0x11a   : > { %v700_v39 = vadd.f32 %v699_v37, %v669_v35  ;;  %v631_v40 = vadd.f32 %v951_v24, %v630_v36 }
 0x11c   : > { %v632_v43 = vadd.f32 %v631_v40, %v1153_v27  ;;  %v701_v45 = vadd.f32 %v700_v39, %v670_v38  ;;  %v675_v27 = vmul.f32 %v1173_v44, %v1173_v44 }
 0x11e   : > { %v702_v46 = vadd.f32 %v701_v45, %v671_v41  ;;  %v633_v47 = vadd.f32 %v632_v43, %v1163_v31 }
 0x120   : > { %v634_v52 = vadd.f32 %v1148_v25, %v633_v47  ;;  %v703_v53 = vadd.f32 %v702_v46, %v672_v48  ;;  %v677_v25 = vmul.f32 %v1168_v42, %v1168_v42 }
 0x122   : > { %v704_v55 = vadd.f32 %v703_v53, %v673_v50  ;;  %v635_v56 = vadd.f32 %v1158_v29, %v634_v52  ;;  %v678_v29 = vmul.f32 %v1178_v49, %v1178_v49 }
 0x124   : > { %v636_v57 = vadd.f32 %v635_v56, %v1173_v44  ;;  %v705_v58 = vadd.f32 %v704_v55, %v674_v54  ;;  %v679_v44 = vmul.f32 %v1193_v0, %v1193_v0 }
 0x126   : > { %v706_v59 = vadd.f32 %v705_v58, %v675_v27  ;;  %v637_v31 = vadd.f32 %v636_v57, %v1183_v51 }
 0x128   : > { %v638_v61 = vadd.f32 %v1168_v42, %v637_v31  ;;  %v707_v63 = vadd.f32 %v706_v59, %v676_v60  ;;  %v681_v42 = vmul.f32 %v1188_v62, %v1188_v62 }
 0x12a   : > { %v708_v1 = vadd.f32 %v707_v63, %v677_v25  ;;  %v639_v2 = vadd.f32 %v1178_v49, %v638_v61  ;;  %v682_v49 = vmul.f32 %v1198_v5, %v1198_v5 }
 0x12c   : > { %v640_v3 = vadd.f32 %v639_v2, %v1193_v0  ;;  %v709_v4 = vadd.f32 %v708_v1, %v678_v29  ;;  %v683_v0 = vmul.f32 %v570_v20, %v570_v20 }
 0x12e   : > { %v710_v6 = vadd.f32 %v709_v4, %v679_v44  ;;  %v641_v51 = vadd.f32 %v640_v3, %v1203_v7  ;;  %v685_v7 = vmul.f32 %v1208_v18, %v1208_v18 }
 0x130   : > { %v642_v9 = vadd.f32 %v1188_v62, %v641_v51  ;;  %v711_v10 = vadd.f32 %v710_v6, %v680_v8 }
 0x132   : > { %v712_v11 = vadd.f32 %v711_v10, %v681_v42  ;;  %v643_v12 = vadd.f32 %v1198_v5, %v642_v9 }
 0x134   : > { %v644_v13 = vadd.f32 %v643_v12, %v570_v20  ;;  %v713_v14 = vadd.f32 %v712_v11, %v682_v49 }
 0x136   : > { %v714_v15 = vadd.f32 %v713_v14, %v683_v0  ;;  %v645_v16 = vadd.f32 %v644_v13, %v573_v30 }
 0x138   : > { %v646_v19 = vadd.f32 %v1208_v18, %v645_v16  ;;  %v715_v62 = vadd.f32 %v714_v15, %v684_v17 }
 0x13a   : > { %v647_v22 = vadd.f32 %v967_v26, %v646_v19  ;;  %v716_v23 = vadd.f32 %v715_v62, %v685_v7 }
 0x13c   : > { %v648_v24 = vrot.slane %v647_v22, 4  ;;  %v717_v28 = vadd.f32 %v716_v23, %v686_v21 }
 0x13e   : > { %v649_v32 = vadd.f32 %v648_v24, %v647_v22  ;;  %v718_v5 = vrot.slane %v717_v28, 4 }
 0x140   : > { %v650_v33 = vrot.slane %v649_v32, 2  ;;  %v719_v20 = vadd.f32 %v718_v5, %v717_v28 }
 0x142   : > { %v651_v34 = vadd.f32 %v650_v33, %v649_v32  ;;  %v720_v35 = vrot.slane %v719_v20, 2 }
 0x144   : > { %v652_v36 = vrot.slane %v651_v34, 1  ;;  %v721_v30 = vadd.f32 %v720_v35, %v719_v20 }
 0x146   : > { %v653_v18 = vadd.f32 %v652_v36, %v651_v34  ;;  %v722_v37 = vrot.slane %v721_v30, 1 }
 0x148   : > { %654 = vst [vmem:[%s230_s20] sm:$0x1] %v653_v18  ;;  %v723_v26 = vadd.f32 %v722_v37, %v721_v30 }
 0x14a   : > { %724 = vst [vmem:[%s230_s20 + $0x1] sm:$0x1] %v723_v26 }
 0x14b PF: > { %s14_s14 = sadd.s32 1, %s1054_s14   ;;  %s1275_s12 = smov %s1050_s13 }
 0x14c   : > { %p11_p5 = scmp.ge.s32.totalorder %s14_s14, 4   ;;  %s1276_s13 = smov %s1278_s15 }
 0x14e   :  { %13 = sbr.rel (!%p11_p5) target bundleno = 2 (0x2), region = 70 }

// kernel: block2d_forward.11
= control target key start
LH: loop header
LB: loop body
LE: loop exit
PB: predicated region body
PF: predicated region fallthrough
CT: control target
= control target key end

     0   :  { %s1375_s0 = inlined_call_operand.vmem [shape: f32[512,128], index: 0, kind: input, shape index: {}]   ;;  %s1376_s1 = inlined_call_operand.vmem [shape: f32[1,128], index: 1, kind: input, shape index: {}]   ;;  %s1377_s2 = inlined_call_operand.vmem [shape: f32[1,128], index: 2, kind: input, shape index: {}]   ;;  %s1378_s3 = inlined_call_operand.vmem [shape: bf16[512,128], index: 3, kind: output, shape index: {}]  }
   0x1   :  { %v14_v0 = vld [vmem:[%s1375_s0] sm:$0xff]  ;;  %v15_v1 = vld [vmem:[%s1375_s0 + $0x8] sm:$0xff]  ;;  %v16_v6 = vld [vmem:[%s1375_s0 + $0x10] sm:$0xff] }
   0x2   :  { %v958_v2 = vld [vmem:[%s1376_s1] ss:$0 sm:$0xff]  ;;  %v17_v7 = vld [vmem:[%s1375_s0 + $0x18] sm:$0xff]  ;;  %v19_v11 = vld [vmem:[%s1375_s0 + $0x28] sm:$0xff] }
   0x3   :  { %v85_v3 = vmul.f32 %v958_v2, %v14_v0  ;;  %v86_v4 = vmul.f32 %v958_v2, %v15_v1  ;;  %v965_v5 = vld [vmem:[%s1377_s2] ss:$0 sm:$0xff]  ;;  %v87_v8 = vmul.f32 %v958_v2, %v16_v6  ;;  %v88_v9 = vmul.f32 %v958_v2, %v17_v7  ;;  %v20_v12 = vld [vmem:[%s1375_s0 + $0x30] sm:$0xff]  ;;  %v21_v17 = vld [vmem:[%s1375_s0 + $0x38] sm:$0xff] }
   0x4   :  { %v18_v10 = vld [vmem:[%s1375_s0 + $0x20] sm:$0xff]  ;;  %v90_v16 = vmul.f32 %v958_v2, %v19_v11  ;;  %v91_v20 = vmul.f32 %v958_v2, %v20_v12  ;;  %v92_v21 = vmul.f32 %v958_v2, %v21_v17  ;;  %v23_v27 = vld [vmem:[%s1375_s0 + $0x48] sm:$0xff]  ;;  %v24_v32 = vld [vmem:[%s1375_s0 + $0x50] sm:$0xff] }
   0x5   :  { %v156_v13 = vadd.f32 %v965_v5, %v85_v3  ;;  %v157_v14 = vadd.f32 %v965_v5, %v86_v4  ;;  %v89_v15 = vmul.f32 %v958_v2, %v18_v10  ;;  %v158_v18 = vadd.f32 %v965_v5, %v87_v8  ;;  %v22_v22 = vld [vmem:[%s1375_s0 + $0x40] sm:$0xff]  ;;  %v25_v33 = vld [vmem:[%s1375_s0 + $0x58] sm:$0xff]  ;;  %v27_v39 = vld [vmem:[%s1375_s0 + $0x68] sm:$0xff] }
   0x6   :  { %v159_v19 = vadd.f32 %v965_v5, %v88_v9  ;;  %v161_v26 = vadd.f32 %v965_v5, %v90_v16  ;;  %v162_v30 = vadd.f32 %v965_v5, %v91_v20  ;;  %v163_v31 = vadd.f32 %v965_v5, %v92_v21  ;;  %v26_v38 = vld [vmem:[%s1375_s0 + $0x60] sm:$0xff]  ;;  %v28_v44 = vld [vmem:[%s1375_s0 + $0x70] sm:$0xff]  ;;  %v29_v49 = vld [vmem:[%s1375_s0 + $0x78] sm:$0xff] }
   0x7   :  { %v220_v23 = vmax.f32 %v156_v13, 0.0  ;;  %v221_v24 = vmax.f32 %v157_v14, 0.0  ;;  %v160_v25 = vadd.f32 %v965_v5, %v89_v15  ;;  %v222_v28 = vmax.f32 %v158_v18, 0.0  ;;  %v30_v54 = vld [vmem:[%s1375_s0 + $0x80] sm:$0xff]  ;;  %v31_v63 = vld [vmem:[%s1375_s0 + $0x88] sm:$0xff]  ;;  %v32_v6 = vld [vmem:[%s1375_s0 + $0x90] sm:$0xff] }
   0x8   :  { %v223_v29 = vmax.f32 %v159_v19, 0.0  ;;  %v225_v36 = vmax.f32 %v161_v26, 0.0  ;;  %v93_v37 = vmul.f32 %v958_v2, %v22_v22  ;;  %v226_v41 = vmax.f32 %v162_v30, 0.0  ;;  %v33_v7 = vld [vmem:[%s1375_s0 + $0x98] sm:$0xff]  ;;  %v34_v12 = vld [vmem:[%s1375_s0 + $0xa0] sm:$0xff]  ;;  %v35_v13 = vld [vmem:[%s1375_s0 + $0xa8] sm:$0xff] }
   0x9   :  { %v741_v34 = vpack.c.bf16 %v221_v24, %v220_v23  ;;  %v224_v35 = vmax.f32 %v160_v25, 0.0  ;;  %v227_v42 = vmax.f32 %v163_v31, 0.0  ;;  %v94_v43 = vmul.f32 %v958_v2, %v23_v27  ;;  %v36_v18 = vld [vmem:[%s1375_s0 + $0xb0] sm:$0xff]  ;;  %v37_v23 = vld [vmem:[%s1375_s0 + $0xb8] sm:$0xff] }
   0xa   :  { %v746_v40 = vpack.c.bf16 %v223_v29, %v222_v28  ;;  %v164_v46 = vadd.f32 %v965_v5, %v93_v37  ;;  %v95_v47 = vmul.f32 %v958_v2, %v24_v32  ;;  %v96_v48 = vmul.f32 %v958_v2, %v25_v33  ;;  %v38_v28 = vld [vmem:[%s1375_s0 + $0xc0] sm:$0xff]  ;;  %v39_v37 = vld [vmem:[%s1375_s0 + $0xc8] sm:$0xff] }
   0xb   :  { %742 = vst [vmem:[%s1378_s3] sm:$0xff] %v741_v34   ;;  %v751_v45 = vpack.c.bf16 %v225_v36, %v224_v35  ;;  %v756_v50 = vpack.c.bf16 %v227_v42, %v226_v41  ;;  %v165_v51 = vadd.f32 %v965_v5, %v94_v43  ;;  %v97_v52 = vmul.f32 %v958_v2, %v26_v38  ;;  %v40_v42 = vld [vmem:[%s1375_s0 + $0xd0] sm:$0xff]  ;;  %v41_v43 = vld [vmem:[%s1375_s0 + $0xd8] sm:$0xff] }
   0xc   :  { %898 = vst [vmem:[%s1378_s3 + $0x8] sm:$0xff] %v746_v40   ;;  %v98_v53 = vmul.f32 %v958_v2, %v27_v39  ;;  %v228_v55 = vmax.f32 %v164_v46, 0.0  ;;  %v166_v56 = vadd.f32 %v965_v5, %v95_v47  ;;  %v167_v57 = vadd.f32 %v965_v5, %v96_v48  ;;  %v42_v48 = vld [vmem:[%s1375_s0 + $0xe0] sm:$0xff] }
   0xd   :  { %899 = vst [vmem:[%s1378_s3 + $0x10] sm:$0xff] %v751_v45   ;;  %v99_v58 = vmul.f32 %v958_v2, %v28_v44  ;;  %900 = vst [vmem:[%s1378_s3 + $0x18] sm:$0xff] %v756_v50   ;;  %v229_v59 = vmax.f32 %v165_v51, 0.0  ;;  %v168_v60 = vadd.f32 %v965_v5, %v97_v52  ;;  %v100_v62 = vmul.f32 %v958_v2, %v29_v49  ;;  %v43_v49 = vld [vmem:[%s1375_s0 + $0xe8] sm:$0xff] }
   0xe   :  { %v169_v61 = vadd.f32 %v965_v5, %v98_v53  ;;  %v230_v0 = vmax.f32 %v166_v56, 0.0  ;;  %v231_v1 = vmax.f32 %v167_v57, 0.0  ;;  %v101_v4 = vmul.f32 %v958_v2, %v30_v54  ;;  %v44_v54 = vld [vmem:[%s1375_s0 + $0xf0] sm:$0xff] }
   0xf   :  { %v170_v3 = vadd.f32 %v965_v5, %v99_v58  ;;  %v761_v8 = vpack.c.bf16 %v229_v59, %v228_v55  ;;  %v232_v9 = vmax.f32 %v168_v60, 0.0  ;;  %v171_v11 = vadd.f32 %v965_v5, %v100_v62  ;;  %v45_v59 = vld [vmem:[%s1375_s0 + $0xf8] sm:$0xff] }
  0x10   :  { %v233_v10 = vmax.f32 %v169_v61, 0.0  ;;  %v766_v14 = vpack.c.bf16 %v231_v1, %v230_v0  ;;  %v102_v16 = vmul.f32 %v958_v2, %v31_v63  ;;  %v172_v17 = vadd.f32 %v965_v5, %v101_v4  ;;  %v46_v0 = vld [vmem:[%s1375_s0 + $0x100] sm:$0xff] }
  0x11   :  { %v234_v15 = vmax.f32 %v170_v3, 0.0  ;;  %901 = vst [vmem:[%s1378_s3 + $0x20] sm:$0xff] %v761_v8   ;;  %v235_v20 = vmax.f32 %v171_v11, 0.0  ;;  %v103_v21 = vmul.f32 %v958_v2, %v32_v6  ;;  %v104_v22 = vmul.f32 %v958_v2, %v33_v7  ;;  %v47_v11 = vld [vmem:[%s1375_s0 + $0x108] sm:$0xff] }
  0x12   :  { %v771_v19 = vpack.c.bf16 %v233_v10, %v232_v9  ;;  %902 = vst [vmem:[%s1378_s3 + $0x28] sm:$0xff] %v766_v14   ;;  %v173_v24 = vadd.f32 %v965_v5, %v102_v16  ;;  %v236_v25 = vmax.f32 %v172_v17, 0.0  ;;  %v105_v26 = vmul.f32 %v958_v2, %v34_v12  ;;  %v48_v16 = vld [vmem:[%s1375_s0 + $0x110] sm:$0xff]  ;;  %v49_v17 = vld [vmem:[%s1375_s0 + $0x118] sm:$0xff] }
  0x13   :  { %v106_v27 = vmul.f32 %v958_v2, %v35_v13  ;;  %v776_v29 = vpack.c.bf16 %v235_v20, %v234_v15  ;;  %v174_v30 = vadd.f32 %v965_v5, %v103_v21  ;;  %v175_v31 = vadd.f32 %v965_v5, %v104_v22  ;;  %v50_v22 = vld [vmem:[%s1375_s0 + $0x120] sm:$0xff] }
  0x14   :  { %903 = vst [vmem:[%s1378_s3 + $0x30] sm:$0xff] %v771_v19   ;;  %v107_v32 = vmul.f32 %v958_v2, %v36_v18  ;;  %v237_v33 = vmax.f32 %v173_v24, 0.0  ;;  %v176_v34 = vadd.f32 %v965_v5, %v105_v26  ;;  %v108_v36 = vmul.f32 %v958_v2, %v37_v23  ;;  %v51_v23 = vld [vmem:[%s1375_s0 + $0x128] sm:$0xff] }
  0x15   :  { %v177_v35 = vadd.f32 %v965_v5, %v106_v27  ;;  %904 = vst [vmem:[%s1378_s3 + $0x38] sm:$0xff] %v776_v29   ;;  %v238_v38 = vmax.f32 %v174_v30, 0.0  ;;  %v239_v39 = vmax.f32 %v175_v31, 0.0  ;;  %v109_v41 = vmul.f32 %v958_v2, %v38_v28  ;;  %v52_v28 = vld [vmem:[%s1375_s0 + $0x130] sm:$0xff] }
  0x16   :  { %v178_v40 = vadd.f32 %v965_v5, %v107_v32  ;;  %v781_v44 = vpack.c.bf16 %v237_v33, %v236_v25  ;;  %v240_v45 = vmax.f32 %v176_v34, 0.0  ;;  %v179_v47 = vadd.f32 %v965_v5, %v108_v36  ;;  %v53_v33 = vld [vmem:[%s1375_s0 + $0x138] sm:$0xff] }
  0x17   :  { %v241_v46 = vmax.f32 %v177_v35, 0.0  ;;  %v786_v50 = vpack.c.bf16 %v239_v39, %v238_v38  ;;  %v110_v52 = vmul.f32 %v958_v2, %v39_v37  ;;  %v180_v53 = vadd.f32 %v965_v5, %v109_v41  ;;  %v54_v38 = vld [vmem:[%s1375_s0 + $0x140] sm:$0xff] }
  0x18   :  { %v242_v51 = vmax.f32 %v178_v40, 0.0  ;;  %905 = vst [vmem:[%s1378_s3 + $0x40] sm:$0xff] %v781_v44   ;;  %v243_v56 = vmax.f32 %v179_v47, 0.0  ;;  %v111_v57 = vmul.f32 %v958_v2, %v40_v42  ;;  %v112_v58 = vmul.f32 %v958_v2, %v41_v43  ;;  %v55_v47 = vld [vmem:[%s1375_s0 + $0x148] sm:$0xff] }
  0x19   :  { %v791_v55 = vpack.c.bf16 %v241_v46, %v240_v45  ;;  %906 = vst [vmem:[%s1378_s3 + $0x48] sm:$0xff] %v786_v50   ;;  %v181_v60 = vadd.f32 %v965_v5, %v110_v52  ;;  %v244_v61 = vmax.f32 %v180_v53, 0.0  ;;  %v113_v62 = vmul.f32 %v958_v2, %v42_v48  ;;  %v56_v52 = vld [vmem:[%s1375_s0 + $0x150] sm:$0xff]  ;;  %v57_v53 = vld [vmem:[%s1375_s0 + $0x158] sm:$0xff] }
  0x1a   :  { %v114_v63 = vmul.f32 %v958_v2, %v43_v49  ;;  %v796_v1 = vpack.c.bf16 %v243_v56, %v242_v51  ;;  %v182_v3 = vadd.f32 %v965_v5, %v111_v57  ;;  %v183_v4 = vadd.f32 %v965_v5, %v112_v58  ;;  %v58_v58 = vld [vmem:[%s1375_s0 + $0x160] sm:$0xff] }
  0x1b   :  { %907 = vst [vmem:[%s1378_s3 + $0x50] sm:$0xff] %v791_v55   ;;  %v115_v6 = vmul.f32 %v958_v2, %v44_v54  ;;  %v245_v7 = vmax.f32 %v181_v60, 0.0  ;;  %v184_v8 = vadd.f32 %v965_v5, %v113_v62  ;;  %v116_v10 = vmul.f32 %v958_v2, %v45_v59  ;;  %v59_v59 = vld [vmem:[%s1375_s0 + $0x168] sm:$0xff] }
  0x1c   :  { %v185_v9 = vadd.f32 %v965_v5, %v114_v63  ;;  %908 = vst [vmem:[%s1378_s3 + $0x58] sm:$0xff] %v796_v1   ;;  %v246_v12 = vmax.f32 %v182_v3, 0.0  ;;  %v247_v13 = vmax.f32 %v183_v4, 0.0  ;;  %v117_v15 = vmul.f32 %v958_v2, %v46_v0  ;;  %v60_v0 = vld [vmem:[%s1375_s0 + $0x170] sm:$0xff] }
  0x1d   :  { %v186_v14 = vadd.f32 %v965_v5, %v115_v6  ;;  %v801_v18 = vpack.c.bf16 %v245_v7, %v244_v61  ;;  %v248_v19 = vmax.f32 %v184_v8, 0.0  ;;  %v187_v21 = vadd.f32 %v965_v5, %v116_v10  ;;  %v61_v7 = vld [vmem:[%s1375_s0 + $0x178] sm:$0xff] }
  0x1e   :  { %v249_v20 = vmax.f32 %v185_v9, 0.0  ;;  %v806_v24 = vpack.c.bf16 %v247_v13, %v246_v12  ;;  %v118_v26 = vmul.f32 %v958_v2, %v47_v11  ;;  %v188_v27 = vadd.f32 %v965_v5, %v117_v15  ;;  %v62_v12 = vld [vmem:[%s1375_s0 + $0x180] sm:$0xff] }
  0x1f   :  { %v250_v25 = vmax.f32 %v186_v14, 0.0  ;;  %909 = vst [vmem:[%s1378_s3 + $0x60] sm:$0xff] %v801_v18   ;;  %v251_v30 = vmax.f32 %v187_v21, 0.0  ;;  %v119_v31 = vmul.f32 %v958_v2, %v48_v16  ;;  %v120_v32 = vmul.f32 %v958_v2, %v49_v17  ;;  %v63_v21 = vld [vmem:[%s1375_s0 + $0x188] sm:$0xff] }
  0x20   :  { %v811_v29 = vpack.c.bf16 %v249_v20, %v248_v19  ;;  %910 = vst [vmem:[%s1378_s3 + $0x68] sm:$0xff] %v806_v24   ;;  %v189_v34 = vadd.f32 %v965_v5, %v118_v26  ;;  %v252_v35 = vmax.f32 %v188_v27, 0.0  ;;  %v121_v36 = vmul.f32 %v958_v2, %v50_v22  ;;  %v64_v26 = vld [vmem:[%s1375_s0 + $0x190] sm:$0xff]  ;;  %v65_v27 = vld [vmem:[%s1375_s0 + $0x198] sm:$0xff] }
  0x21   :  { %v122_v37 = vmul.f32 %v958_v2, %v51_v23  ;;  %v816_v39 = vpack.c.bf16 %v251_v30, %v250_v25  ;;  %v190_v40 = vadd.f32 %v965_v5, %v119_v31  ;;  %v191_v41 = vadd.f32 %v965_v5, %v120_v32  ;;  %v66_v32 = vld [vmem:[%s1375_s0 + $0x1a0] sm:$0xff] }
  0x22   :  { %911 = vst [vmem:[%s1378_s3 + $0x70] sm:$0xff] %v811_v29   ;;  %v123_v42 = vmul.f32 %v958_v2, %v52_v28  ;;  %v253_v43 = vmax.f32 %v189_v34, 0.0  ;;  %v192_v44 = vadd.f32 %v965_v5, %v121_v36  ;;  %v124_v46 = vmul.f32 %v958_v2, %v53_v33  ;;  %v67_v33 = vld [vmem:[%s1375_s0 + $0x1a8] sm:$0xff] }
  0x23   :  { %v193_v45 = vadd.f32 %v965_v5, %v122_v37  ;;  %912 = vst [vmem:[%s1378_s3 + $0x78] sm:$0xff] %v816_v39   ;;  %v254_v48 = vmax.f32 %v190_v40, 0.0  ;;  %v255_v49 = vmax.f32 %v191_v41, 0.0  ;;  %v125_v51 = vmul.f32 %v958_v2, %v54_v38  ;;  %v68_v38 = vld [vmem:[%s1375_s0 + $0x1b0] sm:$0xff] }
  0x24   :  { %v194_v50 = vadd.f32 %v965_v5, %v123_v42  ;;  %v821_v54 = vpack.c.bf16 %v253_v43, %v252_v35  ;;  %v256_v55 = vmax.f32 %v192_v44, 0.0  ;;  %v195_v57 = vadd.f32 %v965_v5, %v124_v46  ;;  %v69_v43 = vld [vmem:[%s1375_s0 + $0x1b8] sm:$0xff] }
  0x25   :  { %v257_v56 = vmax.f32 %v193_v45, 0.0  ;;  %v826_v60 = vpack.c.bf16 %v255_v49, %v254_v48  ;;  %v126_v62 = vmul.f32 %v958_v2, %v55_v47  ;;  %v196_v63 = vadd.f32 %v965_v5, %v125_v51  ;;  %v70_v48 = vld [vmem:[%s1375_s0 + $0x1c0] sm:$0xff] }
  0x26   :  { %v258_v61 = vmax.f32 %v194_v50, 0.0  ;;  %913 = vst [vmem:[%s1378_s3 + $0x80] sm:$0xff] %v821_v54   ;;  %v259_v3 = vmax.f32 %v195_v57, 0.0  ;;  %v127_v4 = vmul.f32 %v958_v2, %v56_v52  ;;  %v128_v6 = vmul.f32 %v958_v2, %v57_v53  ;;  %v71_v57 = vld [vmem:[%s1375_s0 + $0x1c8] sm:$0xff] }
  0x27   :  { %v831_v1 = vpack.c.bf16 %v257_v56, %v256_v55  ;;  %914 = vst [vmem:[%s1378_s3 + $0x88] sm:$0xff] %v826_v60   ;;  %v197_v8 = vadd.f32 %v965_v5, %v126_v62  ;;  %v260_v9 = vmax.f32 %v196_v63, 0.0  ;;  %v129_v10 = vmul.f32 %v958_v2, %v58_v58  ;;  %v72_v62 = vld [vmem:[%s1375_s0 + $0x1d0] sm:$0xff]  ;;  %v73_v63 = vld [vmem:[%s1375_s0 + $0x1d8] sm:$0xff] }
  0x28   :  { %v130_v11 = vmul.f32 %v958_v2, %v59_v59  ;;  %v836_v13 = vpack.c.bf16 %v259_v3, %v258_v61  ;;  %v198_v14 = vadd.f32 %v965_v5, %v127_v4  ;;  %v199_v15 = vadd.f32 %v965_v5, %v128_v6  ;;  %v74_v6 = vld [vmem:[%s1375_s0 + $0x1e0] sm:$0xff] }
  0x29   :  { %915 = vst [vmem:[%s1378_s3 + $0x90] sm:$0xff] %v831_v1   ;;  %v131_v16 = vmul.f32 %v958_v2, %v60_v0  ;;  %v261_v17 = vmax.f32 %v197_v8, 0.0  ;;  %v200_v18 = vadd.f32 %v965_v5, %v129_v10  ;;  %v132_v20 = vmul.f32 %v958_v2, %v61_v7  ;;  %v75_v7 = vld [vmem:[%s1375_s0 + $0x1e8] sm:$0xff] }
  0x2a   :  { %v201_v19 = vadd.f32 %v965_v5, %v130_v11  ;;  %916 = vst [vmem:[%s1378_s3 + $0x98] sm:$0xff] %v836_v13   ;;  %v262_v22 = vmax.f32 %v198_v14, 0.0  ;;  %v263_v23 = vmax.f32 %v199_v15, 0.0  ;;  %v133_v25 = vmul.f32 %v958_v2, %v62_v12  ;;  %v76_v12 = vld [vmem:[%s1375_s0 + $0x1f0] sm:$0xff] }
  0x2b   :  { %v202_v24 = vadd.f32 %v965_v5, %v131_v16  ;;  %v841_v28 = vpack.c.bf16 %v261_v17, %v260_v9  ;;  %v264_v29 = vmax.f32 %v200_v18, 0.0  ;;  %v203_v31 = vadd.f32 %v965_v5, %v132_v20  ;;  %v77_v17 = vld [vmem:[%s1375_s0 + $0x1f8] sm:$0xff] }
  0x2c   :  { %v265_v30 = vmax.f32 %v201_v19, 0.0  ;;  %v846_v34 = vpack.c.bf16 %v263_v23, %v262_v22  ;;  %v134_v36 = vmul.f32 %v958_v2, %v63_v21  ;;  %v204_v37 = vadd.f32 %v965_v5, %v133_v25 }
  0x2d   :  { %v266_v35 = vmax.f32 %v202_v24, 0.0  ;;  %917 = vst [vmem:[%s1378_s3 + $0xa0] sm:$0xff] %v841_v28   ;;  %v267_v40 = vmax.f32 %v203_v31, 0.0  ;;  %v135_v41 = vmul.f32 %v958_v2, %v64_v26  ;;  %v136_v42 = vmul.f32 %v958_v2, %v65_v27 }
  0x2e   :  { %v851_v39 = vpack.c.bf16 %v265_v30, %v264_v29  ;;  %918 = vst [vmem:[%s1378_s3 + $0xa8] sm:$0xff] %v846_v34   ;;  %v205_v44 = vadd.f32 %v965_v5, %v134_v36  ;;  %v268_v45 = vmax.f32 %v204_v37, 0.0  ;;  %v137_v46 = vmul.f32 %v958_v2, %v66_v32 }
  0x2f   :  { %v138_v47 = vmul.f32 %v958_v2, %v67_v33  ;;  %v856_v49 = vpack.c.bf16 %v267_v40, %v266_v35  ;;  %v206_v50 = vadd.f32 %v965_v5, %v135_v41  ;;  %v207_v51 = vadd.f32 %v965_v5, %v136_v42 }
  0x30   :  { %919 = vst [vmem:[%s1378_s3 + $0xb0] sm:$0xff] %v851_v39   ;;  %v139_v52 = vmul.f32 %v958_v2, %v68_v38  ;;  %v269_v53 = vmax.f32 %v205_v44, 0.0  ;;  %v208_v54 = vadd.f32 %v965_v5, %v137_v46  ;;  %v140_v56 = vmul.f32 %v958_v2, %v69_v43 }
  0x31   :  { %v209_v55 = vadd.f32 %v965_v5, %v138_v47  ;;  %920 = vst [vmem:[%s1378_s3 + $0xb8] sm:$0xff] %v856_v49   ;;  %v270_v58 = vmax.f32 %v206_v50, 0.0  ;;  %v271_v59 = vmax.f32 %v207_v51, 0.0  ;;  %v141_v61 = vmul.f32 %v958_v2, %v70_v48 }
  0x32   :  { %v210_v60 = vadd.f32 %v965_v5, %v139_v52  ;;  %v861_v0 = vpack.c.bf16 %v269_v53, %v268_v45  ;;  %v272_v1 = vmax.f32 %v208_v54, 0.0  ;;  %v211_v4 = vadd.f32 %v965_v5, %v140_v56 }
  0x33   :  { %v273_v3 = vmax.f32 %v209_v55, 0.0  ;;  %v866_v8 = vpack.c.bf16 %v271_v59, %v270_v58  ;;  %v142_v10 = vmul.f32 %v958_v2, %v71_v57  ;;  %v212_v11 = vadd.f32 %v965_v5, %v141_v61 }
  0x34   :  { %v274_v9 = vmax.f32 %v210_v60, 0.0  ;;  %921 = vst [vmem:[%s1378_s3 + $0xc0] sm:$0xff] %v861_v0   ;;  %v275_v14 = vmax.f32 %v211_v4, 0.0  ;;  %v143_v15 = vmul.f32 %v958_v2, %v72_v62  ;;  %v144_v16 = vmul.f32 %v958_v2, %v73_v63 }
  0x35   :  { %v871_v13 = vpack.c.bf16 %v273_v3, %v272_v1  ;;  %922 = vst [vmem:[%s1378_s3 + $0xc8] sm:$0xff] %v866_v8   ;;  %v213_v18 = vadd.f32 %v965_v5, %v142_v10  ;;  %v276_v19 = vmax.f32 %v212_v11, 0.0  ;;  %v145_v20 = vmul.f32 %v958_v2, %v74_v6 }
  0x36   :  { %v146_v21 = vmul.f32 %v958_v2, %v75_v7  ;;  %v876_v22 = vpack.c.bf16 %v275_v14, %v274_v9  ;;  %v214_v23 = vadd.f32 %v965_v5, %v143_v15  ;;  %v215_v24 = vadd.f32 %v965_v5, %v144_v16 }
  0x37   :  { %923 = vst [vmem:[%s1378_s3 + $0xd0] sm:$0xff] %v871_v13   ;;  %v147_v25 = vmul.f32 %v958_v2, %v76_v12  ;;  %v277_v26 = vmax.f32 %v213_v18, 0.0  ;;  %v216_v27 = vadd.f32 %v965_v5, %v145_v20  ;;  %v148_v29 = vmul.f32 %v958_v2, %v77_v17 }
  0x38   :  { %v217_v28 = vadd.f32 %v965_v5, %v146_v21  ;;  %924 = vst [vmem:[%s1378_s3 + $0xd8] sm:$0xff] %v876_v22   ;;  %v278_v30 = vmax.f32 %v214_v23, 0.0  ;;  %v279_v31 = vmax.f32 %v215_v24, 0.0 }
  0x39   :  { %v218_v32 = vadd.f32 %v965_v5, %v147_v25  ;;  %v881_v33 = vpack.c.bf16 %v277_v26, %v276_v19  ;;  %v280_v34 = vmax.f32 %v216_v27, 0.0  ;;  %v219_v36 = vadd.f32 %v965_v5, %v148_v29 }
  0x3a   :  { %v281_v35 = vmax.f32 %v217_v28, 0.0  ;;  %v886_v37 = vpack.c.bf16 %v279_v31, %v278_v30 }
  0x3b   :  { %v282_v38 = vmax.f32 %v218_v32, 0.0  ;;  %925 = vst [vmem:[%s1378_s3 + $0xe0] sm:$0xff] %v881_v33   ;;  %v283_v39 = vmax.f32 %v219_v36, 0.0 }
  0x3c   :  { %v891_v2 = vpack.c.bf16 %v281_v35, %v280_v34  ;;  %926 = vst [vmem:[%s1378_s3 + $0xe8] sm:$0xff] %v886_v37  }
  0x3d   :  { %v896_v40 = vpack.c.bf16 %v283_v39, %v282_v38 }
  0x3e   :  { %927 = vst [vmem:[%s1378_s3 + $0xf0] sm:$0xff] %v891_v2  }
  0x3f   :  { %928 = vst [vmem:[%s1378_s3 + $0xf8] sm:$0xff] %v896_v40  }

// kernel: block2d_forward.14
= control target key start
LH: loop header
LB: loop body
LE: loop exit
PB: predicated region body
PF: predicated region fallthrough
CT: control target
= control target key end

     0   :  { %s1373_s0 = inlined_call_operand.vmem [shape: f32[512,128], index: 0, kind: input, shape index: {}]   ;;  %s1374_s1 = inlined_call_operand.vmem [shape: f32[512,128], index: 1, kind: input, shape index: {}]   ;;  %s1375_s2 = inlined_call_operand.vmem [shape: f32[1,128], index: 2, kind: input, shape index: {}]   ;;  %s1376_s3 = inlined_call_operand.vmem [shape: f32[1,128], index: 3, kind: input, shape index: {}]   ;;  %s1377_s4 = inlined_call_operand.vmem [shape: f32[1,128], index: 4, kind: input, shape index: {}]   ;;  %s1378_s5 = inlined_call_operand.vmem [shape: f32[512,128], index: 5, kind: output, shape index: {}]  }
   0x1   :  { %v20_v0 = vld [vmem:[%s1373_s0] sm:$0xff]  ;;  %v21_v6 = vld [vmem:[%s1373_s0 + $0x8] sm:$0xff]  ;;  %v22_v10 = vld [vmem:[%s1373_s0 + $0x10] sm:$0xff] }
   0x2   :  { %v596_v1 = vld [vmem:[%s1375_s2] ss:$0 sm:$0xff]  ;;  %v156_v9 = vld [vmem:[%s1374_s1 + $0x8] sm:$0xff]  ;;  %v157_v11 = vld [vmem:[%s1374_s1 + $0x10] sm:$0xff] }
   0x3   :  { %v155_v2 = vld [vmem:[%s1374_s1] sm:$0xff]  ;;  %v91_v3 = vmul.f32 %v596_v1, %v20_v0  ;;  %v92_v8 = vmul.f32 %v596_v1, %v21_v6  ;;  %v93_v13 = vmul.f32 %v596_v1, %v22_v10  ;;  %v23_v15 = vld [vmem:[%s1373_s0 + $0x18] sm:$0xff]  ;;  %v25_v23 = vld [vmem:[%s1373_s0 + $0x28] sm:$0xff] }
   0x4   :  { %v605_v4 = vld [vmem:[%s1376_s3] ss:$0 sm:$0xff]  ;;  %v158_v16 = vld [vmem:[%s1374_s1 + $0x18] sm:$0xff]  ;;  %v94_v19 = vmul.f32 %v596_v1, %v23_v15  ;;  %v160_v24 = vld [vmem:[%s1374_s1 + $0x28] sm:$0xff]  ;;  %v96_v28 = vmul.f32 %v596_v1, %v25_v23 }
   0x5   :  { %v610_v5 = vld [vmem:[%s1377_s4] ss:$0 sm:$0xff]  ;;  %v226_v7 = vmul.f32 %v605_v4, %v155_v2  ;;  %v227_v12 = vmul.f32 %v605_v4, %v156_v9  ;;  %v228_v14 = vmul.f32 %v605_v4, %v157_v11  ;;  %v229_v20 = vmul.f32 %v605_v4, %v158_v16  ;;  %v26_v29 = vld [vmem:[%s1373_s0 + $0x30] sm:$0xff]  ;;  %v27_v31 = vld [vmem:[%s1373_s0 + $0x38] sm:$0xff] }
   0x6   :  { %v24_v17 = vld [vmem:[%s1373_s0 + $0x20] sm:$0xff]  ;;  %v161_v30 = vld [vmem:[%s1374_s1 + $0x30] sm:$0xff]  ;;  %v231_v34 = vmul.f32 %v605_v4, %v160_v24  ;;  %v97_v35 = vmul.f32 %v596_v1, %v26_v29  ;;  %v162_v40 = vld [vmem:[%s1374_s1 + $0x38] sm:$0xff]  ;;  %v98_v45 = vmul.f32 %v596_v1, %v27_v31 }
   0x7   :  { %v290_v18 = vadd.f32 %v226_v7, %v91_v3  ;;  %v95_v21 = vmul.f32 %v596_v1, %v24_v17  ;;  %v159_v22 = vld [vmem:[%s1374_s1 + $0x20] sm:$0xff]  ;;  %v291_v25 = vadd.f32 %v227_v12, %v92_v8  ;;  %v292_v26 = vadd.f32 %v228_v14, %v93_v13  ;;  %v29_v47 = vld [vmem:[%s1373_s0 + $0x48] sm:$0xff]  ;;  %v30_v53 = vld [vmem:[%s1373_s0 + $0x50] sm:$0xff] }
   0x8   :  { %v230_v27 = vmul.f32 %v605_v4, %v159_v22  ;;  %v293_v33 = vadd.f32 %v229_v20, %v94_v19  ;;  %v232_v39 = vmul.f32 %v605_v4, %v161_v30  ;;  %v28_v41 = vld [vmem:[%s1373_s0 + $0x40] sm:$0xff]  ;;  %v295_v44 = vadd.f32 %v231_v34, %v96_v28  ;;  %v164_v52 = vld [vmem:[%s1374_s1 + $0x48] sm:$0xff]  ;;  %v165_v58 = vld [vmem:[%s1374_s1 + $0x50] sm:$0xff] }
   0x9   :  { %v361_v32 = vadd.f32 %v610_v5, %v290_v18  ;;  %v362_v36 = vadd.f32 %v610_v5, %v291_v25  ;;  %v363_v37 = vadd.f32 %v610_v5, %v292_v26  ;;  %v163_v46 = vld [vmem:[%s1374_s1 + $0x40] sm:$0xff]  ;;  %v233_v56 = vmul.f32 %v605_v4, %v162_v40  ;;  %v31_v59 = vld [vmem:[%s1373_s0 + $0x58] sm:$0xff]  ;;  %v33_v10 = vld [vmem:[%s1373_s0 + $0x68] sm:$0xff] }
   0xa   :  { %v294_v38 = vadd.f32 %v230_v27, %v95_v21  ;;  %v364_v43 = vadd.f32 %v610_v5, %v293_v33  ;;  %v296_v51 = vadd.f32 %v232_v39, %v97_v35  ;;  %v366_v55 = vadd.f32 %v610_v5, %v295_v44  ;;  %v166_v0 = vld [vmem:[%s1374_s1 + $0x58] sm:$0xff]  ;;  %v32_v2 = vld [vmem:[%s1373_s0 + $0x60] sm:$0xff]  ;;  %v168_v15 = vld [vmem:[%s1374_s1 + $0x68] sm:$0xff] }
   0xb   :  { %v425_v42 = vmax.f32 %v361_v32, 0.0  ;;  %v426_v48 = vmax.f32 %v362_v36, 0.0  ;;  %v427_v49 = vmax.f32 %v363_v37, 0.0  ;;  %v99_v57 = vmul.f32 %v596_v1, %v28_v41  ;;  %v167_v9 = vld [vmem:[%s1374_s1 + $0x60] sm:$0xff]  ;;  %v34_v20 = vld [vmem:[%s1373_s0 + $0x70] sm:$0xff]  ;;  %v35_v30 = vld [vmem:[%s1373_s0 + $0x78] sm:$0xff] }
   0xc   :  { %v365_v50 = vadd.f32 %v610_v5, %v294_v38  ;;  %v428_v54 = vmax.f32 %v364_v43, 0.0  ;;  %v367_v61 = vadd.f32 %v610_v5, %v296_v51  ;;  %v234_v62 = vmul.f32 %v605_v4, %v163_v46  ;;  %v169_v25 = vld [vmem:[%s1374_s1 + $0x70] sm:$0xff]  ;;  %v170_v31 = vld [vmem:[%s1374_s1 + $0x78] sm:$0xff]  ;;  %v36_v36 = vld [vmem:[%s1373_s0 + $0x80] sm:$0xff] }
   0xd   :  { %489 = vst [vmem:[%s1378_s5] sm:$0xff] %v425_v42  ;;  %490 = vst [vmem:[%s1378_s5 + $0x8] sm:$0xff] %v426_v48  ;;  %v100_v63 = vmul.f32 %v596_v1, %v29_v47  ;;  %v430_v3 = vmax.f32 %v366_v55, 0.0  ;;  %v297_v6 = vadd.f32 %v233_v56, %v98_v45  ;;  %v235_v7 = vmul.f32 %v605_v4, %v164_v52  ;;  %v171_v41 = vld [vmem:[%s1374_s1 + $0x80] sm:$0xff]  ;;  %v37_v42 = vld [vmem:[%s1373_s0 + $0x88] sm:$0xff] }
   0xe   :  { %491 = vst [vmem:[%s1378_s5 + $0x10] sm:$0xff] %v427_v49  ;;  %v429_v60 = vmax.f32 %v365_v50, 0.0  ;;  %492 = vst [vmem:[%s1378_s5 + $0x18] sm:$0xff] %v428_v54  ;;  %v101_v8 = vmul.f32 %v596_v1, %v30_v53  ;;  %v431_v11 = vmax.f32 %v367_v61, 0.0  ;;  %v298_v12 = vadd.f32 %v234_v62, %v99_v57  ;;  %v172_v47 = vld [vmem:[%s1374_s1 + $0x88] sm:$0xff]  ;;  %v38_v48 = vld [vmem:[%s1373_s0 + $0x90] sm:$0xff] }
   0xf   :  { %v236_v13 = vmul.f32 %v605_v4, %v165_v58  ;;  %v102_v14 = vmul.f32 %v596_v1, %v31_v59  ;;  %494 = vst [vmem:[%s1378_s5 + $0x28] sm:$0xff] %v430_v3  ;;  %v368_v16 = vadd.f32 %v610_v5, %v297_v6  ;;  %v299_v17 = vadd.f32 %v235_v7, %v100_v63  ;;  %v173_v53 = vld [vmem:[%s1374_s1 + $0x90] sm:$0xff]  ;;  %v39_v54 = vld [vmem:[%s1373_s0 + $0x98] sm:$0xff] }
  0x10   :  { %493 = vst [vmem:[%s1378_s5 + $0x20] sm:$0xff] %v429_v60  ;;  %v237_v18 = vmul.f32 %v605_v4, %v166_v0  ;;  %v103_v19 = vmul.f32 %v596_v1, %v32_v2  ;;  %495 = vst [vmem:[%s1378_s5 + $0x30] sm:$0xff] %v431_v11  ;;  %v369_v21 = vadd.f32 %v610_v5, %v298_v12  ;;  %v174_v59 = vld [vmem:[%s1374_s1 + $0x98] sm:$0xff]  ;;  %v40_v60 = vld [vmem:[%s1373_s0 + $0xa0] sm:$0xff] }
  0x11   :  { %v300_v22 = vadd.f32 %v236_v13, %v101_v8  ;;  %v238_v23 = vmul.f32 %v605_v4, %v167_v9  ;;  %v104_v24 = vmul.f32 %v596_v1, %v33_v10  ;;  %v432_v26 = vmax.f32 %v368_v16, 0.0  ;;  %v175_v2 = vld [vmem:[%s1374_s1 + $0xa0] sm:$0xff]  ;;  %v41_v9 = vld [vmem:[%s1373_s0 + $0xa8] sm:$0xff] }
  0x12   :  { %v370_v27 = vadd.f32 %v610_v5, %v299_v17  ;;  %v301_v28 = vadd.f32 %v237_v18, %v102_v14  ;;  %v239_v29 = vmul.f32 %v605_v4, %v168_v15  ;;  %v433_v32 = vmax.f32 %v369_v21, 0.0  ;;  %v176_v10 = vld [vmem:[%s1374_s1 + $0xa8] sm:$0xff]  ;;  %v42_v15 = vld [vmem:[%s1373_s0 + $0xb0] sm:$0xff] }
  0x13   :  { %v371_v33 = vadd.f32 %v610_v5, %v300_v22  ;;  %v302_v34 = vadd.f32 %v238_v23, %v103_v19  ;;  %v105_v35 = vmul.f32 %v596_v1, %v34_v20  ;;  %496 = vst [vmem:[%s1378_s5 + $0x38] sm:$0xff] %v432_v26  ;;  %v240_v40 = vmul.f32 %v605_v4, %v169_v25  ;;  %v177_v20 = vld [vmem:[%s1374_s1 + $0xb0] sm:$0xff]  ;;  %v43_v25 = vld [vmem:[%s1373_s0 + $0xb8] sm:$0xff] }
  0x14   :  { %v434_v37 = vmax.f32 %v370_v27, 0.0  ;;  %v372_v38 = vadd.f32 %v610_v5, %v301_v28  ;;  %v303_v39 = vadd.f32 %v239_v29, %v104_v24  ;;  %497 = vst [vmem:[%s1378_s5 + $0x40] sm:$0xff] %v433_v32  ;;  %v106_v45 = vmul.f32 %v596_v1, %v35_v30  ;;  %v178_v26 = vld [vmem:[%s1374_s1 + $0xb8] sm:$0xff] }
  0x15   :  { %v435_v43 = vmax.f32 %v371_v33, 0.0  ;;  %v373_v44 = vadd.f32 %v610_v5, %v302_v34  ;;  %v241_v46 = vmul.f32 %v605_v4, %v170_v31  ;;  %v304_v51 = vadd.f32 %v240_v40, %v105_v35  ;;  %v44_v31 = vld [vmem:[%s1373_s0 + $0xc0] sm:$0xff] }
  0x16   :  { %498 = vst [vmem:[%s1378_s5 + $0x48] sm:$0xff] %v434_v37  ;;  %v436_v49 = vmax.f32 %v372_v38, 0.0  ;;  %v374_v50 = vadd.f32 %v610_v5, %v303_v39  ;;  %v107_v52 = vmul.f32 %v596_v1, %v36_v36  ;;  %v242_v57 = vmul.f32 %v605_v4, %v171_v41  ;;  %v179_v36 = vld [vmem:[%s1374_s1 + $0xc0] sm:$0xff]  ;;  %v45_v37 = vld [vmem:[%s1373_s0 + $0xc8] sm:$0xff] }
  0x17   :  { %499 = vst [vmem:[%s1378_s5 + $0x50] sm:$0xff] %v435_v43  ;;  %v437_v55 = vmax.f32 %v373_v44, 0.0  ;;  %v305_v56 = vadd.f32 %v241_v46, %v106_v45  ;;  %v108_v58 = vmul.f32 %v596_v1, %v37_v42  ;;  %v375_v62 = vadd.f32 %v610_v5, %v304_v51  ;;  %v180_v42 = vld [vmem:[%s1374_s1 + $0xc8] sm:$0xff]  ;;  %v46_v43 = vld [vmem:[%s1373_s0 + $0xd0] sm:$0xff] }
  0x18   :  { %500 = vst [vmem:[%s1378_s5 + $0x58] sm:$0xff] %v436_v49  ;;  %v438_v61 = vmax.f32 %v374_v50, 0.0  ;;  %v243_v63 = vmul.f32 %v605_v4, %v172_v47  ;;  %v109_v0 = vmul.f32 %v596_v1, %v38_v48  ;;  %v306_v6 = vadd.f32 %v242_v57, %v107_v52  ;;  %v181_v48 = vld [vmem:[%s1374_s1 + $0xd0] sm:$0xff]  ;;  %v47_v49 = vld [vmem:[%s1373_s0 + $0xd8] sm:$0xff] }
  0x19   :  { %501 = vst [vmem:[%s1378_s5 + $0x60] sm:$0xff] %v437_v55  ;;  %v376_v3 = vadd.f32 %v610_v5, %v305_v56  ;;  %v244_v7 = vmul.f32 %v605_v4, %v173_v53  ;;  %v110_v8 = vmul.f32 %v596_v1, %v39_v54  ;;  %v439_v11 = vmax.f32 %v375_v62, 0.0  ;;  %v182_v54 = vld [vmem:[%s1374_s1 + $0xd8] sm:$0xff]  ;;  %v48_v55 = vld [vmem:[%s1373_s0 + $0xe0] sm:$0xff] }
  0x1a   :  { %502 = vst [vmem:[%s1378_s5 + $0x68] sm:$0xff] %v438_v61  ;;  %v307_v12 = vadd.f32 %v243_v63, %v108_v58  ;;  %v245_v13 = vmul.f32 %v605_v4, %v174_v59  ;;  %v111_v14 = vmul.f32 %v596_v1, %v40_v60  ;;  %v377_v17 = vadd.f32 %v610_v5, %v306_v6  ;;  %v183_v60 = vld [vmem:[%s1374_s1 + $0xe0] sm:$0xff] }
  0x1b   :  { %v440_v16 = vmax.f32 %v376_v3, 0.0  ;;  %v308_v18 = vadd.f32 %v244_v7, %v109_v0  ;;  %v246_v19 = vmul.f32 %v605_v4, %v175_v2  ;;  %503 = vst [vmem:[%s1378_s5 + $0x70] sm:$0xff] %v439_v11  ;;  %v112_v23 = vmul.f32 %v596_v1, %v41_v9  ;;  %v49_v2 = vld [vmem:[%s1373_s0 + $0xe8] sm:$0xff] }
  0x1c   :  { %v378_v21 = vadd.f32 %v610_v5, %v307_v12  ;;  %v309_v22 = vadd.f32 %v245_v13, %v110_v8  ;;  %v247_v24 = vmul.f32 %v605_v4, %v176_v10  ;;  %v441_v27 = vmax.f32 %v377_v17, 0.0  ;;  %v184_v3 = vld [vmem:[%s1374_s1 + $0xe8] sm:$0xff]  ;;  %v50_v10 = vld [vmem:[%s1373_s0 + $0xf0] sm:$0xff] }
  0x1d   :  { %504 = vst [vmem:[%s1378_s5 + $0x78] sm:$0xff] %v440_v16  ;;  %v379_v28 = vadd.f32 %v610_v5, %v308_v18  ;;  %v310_v29 = vadd.f32 %v246_v19, %v111_v14  ;;  %v113_v30 = vmul.f32 %v596_v1, %v42_v15  ;;  %v248_v35 = vmul.f32 %v605_v4, %v177_v20  ;;  %v185_v15 = vld [vmem:[%s1374_s1 + $0xf0] sm:$0xff]  ;;  %v51_v20 = vld [vmem:[%s1373_s0 + $0xf8] sm:$0xff] }
  0x1e   :  { %v442_v32 = vmax.f32 %v378_v21, 0.0  ;;  %v380_v33 = vadd.f32 %v610_v5, %v309_v22  ;;  %v311_v34 = vadd.f32 %v247_v24, %v112_v23  ;;  %505 = vst [vmem:[%s1378_s5 + $0x80] sm:$0xff] %v441_v27  ;;  %v114_v40 = vmul.f32 %v596_v1, %v43_v25  ;;  %v186_v21 = vld [vmem:[%s1374_s1 + $0xf8] sm:$0xff] }
  0x1f   :  { %v443_v38 = vmax.f32 %v379_v28, 0.0  ;;  %v381_v39 = vadd.f32 %v610_v5, %v310_v29  ;;  %v249_v41 = vmul.f32 %v605_v4, %v178_v26  ;;  %v312_v46 = vadd.f32 %v248_v35, %v113_v30  ;;  %v52_v26 = vld [vmem:[%s1373_s0 + $0x100] sm:$0xff] }
  0x20   :  { %506 = vst [vmem:[%s1378_s5 + $0x88] sm:$0xff] %v442_v32  ;;  %v444_v44 = vmax.f32 %v380_v33, 0.0  ;;  %v382_v45 = vadd.f32 %v610_v5, %v311_v34  ;;  %v115_v47 = vmul.f32 %v596_v1, %v44_v31  ;;  %v250_v52 = vmul.f32 %v605_v4, %v179_v36  ;;  %v187_v31 = vld [vmem:[%s1374_s1 + $0x100] sm:$0xff]  ;;  %v53_v32 = vld [vmem:[%s1373_s0 + $0x108] sm:$0xff] }
  0x21   :  { %507 = vst [vmem:[%s1378_s5 + $0x90] sm:$0xff] %v443_v38  ;;  %v445_v50 = vmax.f32 %v381_v39, 0.0  ;;  %v313_v51 = vadd.f32 %v249_v41, %v114_v40  ;;  %v116_v53 = vmul.f32 %v596_v1, %v45_v37  ;;  %v383_v57 = vadd.f32 %v610_v5, %v312_v46  ;;  %v188_v37 = vld [vmem:[%s1374_s1 + $0x108] sm:$0xff]  ;;  %v54_v38 = vld [vmem:[%s1373_s0 + $0x110] sm:$0xff] }
  0x22   :  { %508 = vst [vmem:[%s1378_s5 + $0x98] sm:$0xff] %v444_v44  ;;  %v446_v56 = vmax.f32 %v382_v45, 0.0  ;;  %v251_v58 = vmul.f32 %v605_v4, %v180_v42  ;;  %v117_v59 = vmul.f32 %v596_v1, %v46_v43  ;;  %v314_v62 = vadd.f32 %v250_v52, %v115_v47  ;;  %v189_v43 = vld [vmem:[%s1374_s1 + $0x110] sm:$0xff]  ;;  %v55_v44 = vld [vmem:[%s1373_s0 + $0x118] sm:$0xff] }
  0x23   :  { %509 = vst [vmem:[%s1378_s5 + $0xa0] sm:$0xff] %v445_v50  ;;  %v384_v61 = vadd.f32 %v610_v5, %v313_v51  ;;  %v252_v63 = vmul.f32 %v605_v4, %v181_v48  ;;  %v118_v0 = vmul.f32 %v596_v1, %v47_v49  ;;  %v447_v6 = vmax.f32 %v383_v57, 0.0  ;;  %v190_v49 = vld [vmem:[%s1374_s1 + $0x118] sm:$0xff]  ;;  %v56_v50 = vld [vmem:[%s1373_s0 + $0x120] sm:$0xff] }
  0x24   :  { %510 = vst [vmem:[%s1378_s5 + $0xa8] sm:$0xff] %v446_v56  ;;  %v315_v7 = vadd.f32 %v251_v58, %v116_v53  ;;  %v253_v8 = vmul.f32 %v605_v4, %v182_v54  ;;  %v119_v9 = vmul.f32 %v596_v1, %v48_v55  ;;  %v385_v12 = vadd.f32 %v610_v5, %v314_v62  ;;  %v191_v55 = vld [vmem:[%s1374_s1 + $0x120] sm:$0xff] }
  0x25   :  { %v448_v11 = vmax.f32 %v384_v61, 0.0  ;;  %v316_v13 = vadd.f32 %v252_v63, %v117_v59  ;;  %v254_v14 = vmul.f32 %v605_v4, %v183_v60  ;;  %511 = vst [vmem:[%s1378_s5 + $0xb0] sm:$0xff] %v447_v6  ;;  %v120_v18 = vmul.f32 %v596_v1, %v49_v2  ;;  %v57_v60 = vld [vmem:[%s1373_s0 + $0x128] sm:$0xff] }
  0x26   :  { %v386_v16 = vadd.f32 %v610_v5, %v315_v7  ;;  %v317_v17 = vadd.f32 %v253_v8, %v118_v0  ;;  %v255_v19 = vmul.f32 %v605_v4, %v184_v3  ;;  %v449_v22 = vmax.f32 %v385_v12, 0.0  ;;  %v192_v61 = vld [vmem:[%s1374_s1 + $0x128] sm:$0xff]  ;;  %v58_v3 = vld [vmem:[%s1373_s0 + $0x130] sm:$0xff] }
  0x27   :  { %512 = vst [vmem:[%s1378_s5 + $0xb8] sm:$0xff] %v448_v11  ;;  %v387_v23 = vadd.f32 %v610_v5, %v316_v13  ;;  %v318_v24 = vadd.f32 %v254_v14, %v119_v9  ;;  %v121_v25 = vmul.f32 %v596_v1, %v50_v10  ;;  %v256_v30 = vmul.f32 %v605_v4, %v185_v15  ;;  %v193_v10 = vld [vmem:[%s1374_s1 + $0x130] sm:$0xff]  ;;  %v59_v15 = vld [vmem:[%s1373_s0 + $0x138] sm:$0xff] }
  0x28   :  { %v450_v27 = vmax.f32 %v386_v16, 0.0  ;;  %v388_v28 = vadd.f32 %v610_v5, %v317_v17  ;;  %v319_v29 = vadd.f32 %v255_v19, %v120_v18  ;;  %513 = vst [vmem:[%s1378_s5 + $0xc0] sm:$0xff] %v449_v22  ;;  %v122_v35 = vmul.f32 %v596_v1, %v51_v20  ;;  %v194_v16 = vld [vmem:[%s1374_s1 + $0x138] sm:$0xff] }
  0x29   :  { %v451_v33 = vmax.f32 %v387_v23, 0.0  ;;  %v389_v34 = vadd.f32 %v610_v5, %v318_v24  ;;  %v257_v36 = vmul.f32 %v605_v4, %v186_v21  ;;  %v320_v41 = vadd.f32 %v256_v30, %v121_v25  ;;  %v60_v21 = vld [vmem:[%s1373_s0 + $0x140] sm:$0xff] }
  0x2a   :  { %514 = vst [vmem:[%s1378_s5 + $0xc8] sm:$0xff] %v450_v27  ;;  %v452_v39 = vmax.f32 %v388_v28, 0.0  ;;  %v390_v40 = vadd.f32 %v610_v5, %v319_v29  ;;  %v123_v42 = vmul.f32 %v596_v1, %v52_v26  ;;  %v258_v47 = vmul.f32 %v605_v4, %v187_v31  ;;  %v195_v26 = vld [vmem:[%s1374_s1 + $0x140] sm:$0xff]  ;;  %v61_v27 = vld [vmem:[%s1373_s0 + $0x148] sm:$0xff] }
  0x2b   :  { %515 = vst [vmem:[%s1378_s5 + $0xd0] sm:$0xff] %v451_v33  ;;  %v453_v45 = vmax.f32 %v389_v34, 0.0  ;;  %v321_v46 = vadd.f32 %v257_v36, %v122_v35  ;;  %v124_v48 = vmul.f32 %v596_v1, %v53_v32  ;;  %v391_v52 = vadd.f32 %v610_v5, %v320_v41  ;;  %v196_v32 = vld [vmem:[%s1374_s1 + $0x148] sm:$0xff]  ;;  %v62_v33 = vld [vmem:[%s1373_s0 + $0x150] sm:$0xff] }
  0x2c   :  { %516 = vst [vmem:[%s1378_s5 + $0xd8] sm:$0xff] %v452_v39  ;;  %v454_v51 = vmax.f32 %v390_v40, 0.0  ;;  %v259_v53 = vmul.f32 %v605_v4, %v188_v37  ;;  %v125_v54 = vmul.f32 %v596_v1, %v54_v38  ;;  %v322_v57 = vadd.f32 %v258_v47, %v123_v42  ;;  %v197_v38 = vld [vmem:[%s1374_s1 + $0x150] sm:$0xff]  ;;  %v63_v39 = vld [vmem:[%s1373_s0 + $0x158] sm:$0xff] }
  0x2d   :  { %517 = vst [vmem:[%s1378_s5 + $0xe0] sm:$0xff] %v453_v45  ;;  %v392_v56 = vadd.f32 %v610_v5, %v321_v46  ;;  %v260_v58 = vmul.f32 %v605_v4, %v189_v43  ;;  %v126_v59 = vmul.f32 %v596_v1, %v55_v44  ;;  %v455_v62 = vmax.f32 %v391_v52, 0.0  ;;  %v198_v44 = vld [vmem:[%s1374_s1 + $0x158] sm:$0xff]  ;;  %v64_v45 = vld [vmem:[%s1373_s0 + $0x160] sm:$0xff] }
  0x2e   :  { %518 = vst [vmem:[%s1378_s5 + $0xe8] sm:$0xff] %v454_v51  ;;  %v323_v63 = vadd.f32 %v259_v53, %v124_v48  ;;  %v261_v0 = vmul.f32 %v605_v4, %v190_v49  ;;  %v127_v2 = vmul.f32 %v596_v1, %v56_v50  ;;  %v393_v7 = vadd.f32 %v610_v5, %v322_v57  ;;  %v199_v50 = vld [vmem:[%s1374_s1 + $0x160] sm:$0xff] }
  0x2f   :  { %v456_v6 = vmax.f32 %v392_v56, 0.0  ;;  %v324_v8 = vadd.f32 %v260_v58, %v125_v54  ;;  %v262_v9 = vmul.f32 %v605_v4, %v191_v55  ;;  %519 = vst [vmem:[%s1378_s5 + $0xf0] sm:$0xff] %v455_v62  ;;  %v128_v13 = vmul.f32 %v596_v1, %v57_v60  ;;  %v65_v55 = vld [vmem:[%s1373_s0 + $0x168] sm:$0xff] }
  0x30   :  { %v394_v11 = vadd.f32 %v610_v5, %v323_v63  ;;  %v325_v12 = vadd.f32 %v261_v0, %v126_v59  ;;  %v263_v14 = vmul.f32 %v605_v4, %v192_v61  ;;  %v457_v17 = vmax.f32 %v393_v7, 0.0  ;;  %v200_v56 = vld [vmem:[%s1374_s1 + $0x168] sm:$0xff]  ;;  %v66_v61 = vld [vmem:[%s1373_s0 + $0x170] sm:$0xff] }
  0x31   :  { %520 = vst [vmem:[%s1378_s5 + $0xf8] sm:$0xff] %v456_v6  ;;  %v395_v18 = vadd.f32 %v610_v5, %v324_v8  ;;  %v326_v19 = vadd.f32 %v262_v9, %v127_v2  ;;  %v129_v20 = vmul.f32 %v596_v1, %v58_v3  ;;  %v264_v25 = vmul.f32 %v605_v4, %v193_v10  ;;  %v201_v3 = vld [vmem:[%s1374_s1 + $0x170] sm:$0xff]  ;;  %v67_v10 = vld [vmem:[%s1373_s0 + $0x178] sm:$0xff] }
  0x32   :  { %v458_v22 = vmax.f32 %v394_v11, 0.0  ;;  %v396_v23 = vadd.f32 %v610_v5, %v325_v12  ;;  %v327_v24 = vadd.f32 %v263_v14, %v128_v13  ;;  %521 = vst [vmem:[%s1378_s5 + $0x100] sm:$0xff] %v457_v17  ;;  %v130_v30 = vmul.f32 %v596_v1, %v59_v15  ;;  %v202_v11 = vld [vmem:[%s1374_s1 + $0x178] sm:$0xff] }
  0x33   :  { %v459_v28 = vmax.f32 %v395_v18, 0.0  ;;  %v397_v29 = vadd.f32 %v610_v5, %v326_v19  ;;  %v265_v31 = vmul.f32 %v605_v4, %v194_v16  ;;  %v328_v36 = vadd.f32 %v264_v25, %v129_v20  ;;  %v68_v16 = vld [vmem:[%s1373_s0 + $0x180] sm:$0xff] }
  0x34   :  { %522 = vst [vmem:[%s1378_s5 + $0x108] sm:$0xff] %v458_v22  ;;  %v460_v34 = vmax.f32 %v396_v23, 0.0  ;;  %v398_v35 = vadd.f32 %v610_v5, %v327_v24  ;;  %v131_v37 = vmul.f32 %v596_v1, %v60_v21  ;;  %v266_v42 = vmul.f32 %v605_v4, %v195_v26  ;;  %v203_v21 = vld [vmem:[%s1374_s1 + $0x180] sm:$0xff]  ;;  %v69_v22 = vld [vmem:[%s1373_s0 + $0x188] sm:$0xff] }
  0x35   :  { %523 = vst [vmem:[%s1378_s5 + $0x110] sm:$0xff] %v459_v28  ;;  %v461_v40 = vmax.f32 %v397_v29, 0.0  ;;  %v329_v41 = vadd.f32 %v265_v31, %v130_v30  ;;  %v132_v43 = vmul.f32 %v596_v1, %v61_v27  ;;  %v399_v47 = vadd.f32 %v610_v5, %v328_v36  ;;  %v204_v27 = vld [vmem:[%s1374_s1 + $0x188] sm:$0xff]  ;;  %v70_v28 = vld [vmem:[%s1373_s0 + $0x190] sm:$0xff] }
  0x36   :  { %524 = vst [vmem:[%s1378_s5 + $0x118] sm:$0xff] %v460_v34  ;;  %v462_v46 = vmax.f32 %v398_v35, 0.0  ;;  %v267_v48 = vmul.f32 %v605_v4, %v196_v32  ;;  %v133_v49 = vmul.f32 %v596_v1, %v62_v33  ;;  %v330_v52 = vadd.f32 %v266_v42, %v131_v37  ;;  %v205_v33 = vld [vmem:[%s1374_s1 + $0x190] sm:$0xff]  ;;  %v71_v34 = vld [vmem:[%s1373_s0 + $0x198] sm:$0xff] }
  0x37   :  { %525 = vst [vmem:[%s1378_s5 + $0x120] sm:$0xff] %v461_v40  ;;  %v400_v51 = vadd.f32 %v610_v5, %v329_v41  ;;  %v268_v53 = vmul.f32 %v605_v4, %v197_v38  ;;  %v134_v54 = vmul.f32 %v596_v1, %v63_v39  ;;  %v463_v57 = vmax.f32 %v399_v47, 0.0  ;;  %v206_v39 = vld [vmem:[%s1374_s1 + $0x198] sm:$0xff]  ;;  %v72_v40 = vld [vmem:[%s1373_s0 + $0x1a0] sm:$0xff] }
  0x38   :  { %526 = vst [vmem:[%s1378_s5 + $0x128] sm:$0xff] %v462_v46  ;;  %v331_v58 = vadd.f32 %v267_v48, %v132_v43  ;;  %v269_v59 = vmul.f32 %v605_v4, %v198_v44  ;;  %v135_v60 = vmul.f32 %v596_v1, %v64_v45  ;;  %v401_v63 = vadd.f32 %v610_v5, %v330_v52  ;;  %v207_v45 = vld [vmem:[%s1374_s1 + $0x1a0] sm:$0xff] }
  0x39   :  { %v464_v62 = vmax.f32 %v400_v51, 0.0  ;;  %v332_v0 = vadd.f32 %v268_v53, %v133_v49  ;;  %v270_v2 = vmul.f32 %v605_v4, %v199_v50  ;;  %527 = vst [vmem:[%s1378_s5 + $0x130] sm:$0xff] %v463_v57  ;;  %v136_v8 = vmul.f32 %v596_v1, %v65_v55  ;;  %v73_v50 = vld [vmem:[%s1373_s0 + $0x1a8] sm:$0xff] }
  0x3a   :  { %v402_v6 = vadd.f32 %v610_v5, %v331_v58  ;;  %v333_v7 = vadd.f32 %v269_v59, %v134_v54  ;;  %v271_v9 = vmul.f32 %v605_v4, %v200_v56  ;;  %v465_v12 = vmax.f32 %v401_v63, 0.0  ;;  %v208_v51 = vld [vmem:[%s1374_s1 + $0x1a8] sm:$0xff]  ;;  %v74_v56 = vld [vmem:[%s1373_s0 + $0x1b0] sm:$0xff] }
  0x3b   :  { %528 = vst [vmem:[%s1378_s5 + $0x138] sm:$0xff] %v464_v62  ;;  %v403_v13 = vadd.f32 %v610_v5, %v332_v0  ;;  %v334_v14 = vadd.f32 %v270_v2, %v135_v60  ;;  %v137_v15 = vmul.f32 %v596_v1, %v66_v61  ;;  %v272_v20 = vmul.f32 %v605_v4, %v201_v3  ;;  %v209_v61 = vld [vmem:[%s1374_s1 + $0x1b0] sm:$0xff]  ;;  %v75_v3 = vld [vmem:[%s1373_s0 + $0x1b8] sm:$0xff] }
  0x3c   :  { %v466_v17 = vmax.f32 %v402_v6, 0.0  ;;  %v404_v18 = vadd.f32 %v610_v5, %v333_v7  ;;  %v335_v19 = vadd.f32 %v271_v9, %v136_v8  ;;  %529 = vst [vmem:[%s1378_s5 + $0x140] sm:$0xff] %v465_v12  ;;  %v138_v25 = vmul.f32 %v596_v1, %v67_v10  ;;  %v210_v6 = vld [vmem:[%s1374_s1 + $0x1b8] sm:$0xff] }
  0x3d   :  { %v467_v23 = vmax.f32 %v403_v13, 0.0  ;;  %v405_v24 = vadd.f32 %v610_v5, %v334_v14  ;;  %v273_v26 = vmul.f32 %v605_v4, %v202_v11  ;;  %v336_v31 = vadd.f32 %v272_v20, %v137_v15  ;;  %v76_v11 = vld [vmem:[%s1373_s0 + $0x1c0] sm:$0xff] }
  0x3e   :  { %530 = vst [vmem:[%s1378_s5 + $0x148] sm:$0xff] %v466_v17  ;;  %v468_v29 = vmax.f32 %v404_v18, 0.0  ;;  %v406_v30 = vadd.f32 %v610_v5, %v335_v19  ;;  %v139_v32 = vmul.f32 %v596_v1, %v68_v16  ;;  %v274_v37 = vmul.f32 %v605_v4, %v203_v21  ;;  %v211_v16 = vld [vmem:[%s1374_s1 + $0x1c0] sm:$0xff]  ;;  %v77_v17 = vld [vmem:[%s1373_s0 + $0x1c8] sm:$0xff] }
  0x3f   :  { %531 = vst [vmem:[%s1378_s5 + $0x150] sm:$0xff] %v467_v23  ;;  %v469_v35 = vmax.f32 %v405_v24, 0.0  ;;  %v337_v36 = vadd.f32 %v273_v26, %v138_v25  ;;  %v140_v38 = vmul.f32 %v596_v1, %v69_v22  ;;  %v407_v42 = vadd.f32 %v610_v5, %v336_v31  ;;  %v212_v22 = vld [vmem:[%s1374_s1 + $0x1c8] sm:$0xff]  ;;  %v78_v23 = vld [vmem:[%s1373_s0 + $0x1d0] sm:$0xff] }
  0x40   :  { %532 = vst [vmem:[%s1378_s5 + $0x158] sm:$0xff] %v468_v29  ;;  %v470_v41 = vmax.f32 %v406_v30, 0.0  ;;  %v275_v43 = vmul.f32 %v605_v4, %v204_v27  ;;  %v141_v44 = vmul.f32 %v596_v1, %v70_v28  ;;  %v338_v47 = vadd.f32 %v274_v37, %v139_v32  ;;  %v213_v28 = vld [vmem:[%s1374_s1 + $0x1d0] sm:$0xff]  ;;  %v79_v29 = vld [vmem:[%s1373_s0 + $0x1d8] sm:$0xff] }
  0x41   :  { %533 = vst [vmem:[%s1378_s5 + $0x160] sm:$0xff] %v469_v35  ;;  %v408_v46 = vadd.f32 %v610_v5, %v337_v36  ;;  %v276_v48 = vmul.f32 %v605_v4, %v205_v33  ;;  %v142_v49 = vmul.f32 %v596_v1, %v71_v34  ;;  %v471_v52 = vmax.f32 %v407_v42, 0.0  ;;  %v214_v34 = vld [vmem:[%s1374_s1 + $0x1d8] sm:$0xff]  ;;  %v80_v35 = vld [vmem:[%s1373_s0 + $0x1e0] sm:$0xff] }
  0x42   :  { %534 = vst [vmem:[%s1378_s5 + $0x168] sm:$0xff] %v470_v41  ;;  %v339_v53 = vadd.f32 %v275_v43, %v140_v38  ;;  %v277_v54 = vmul.f32 %v605_v4, %v206_v39  ;;  %v143_v55 = vmul.f32 %v596_v1, %v72_v40  ;;  %v409_v58 = vadd.f32 %v610_v5, %v338_v47  ;;  %v215_v40 = vld [vmem:[%s1374_s1 + $0x1e0] sm:$0xff] }
  0x43   :  { %v472_v57 = vmax.f32 %v408_v46, 0.0  ;;  %v340_v59 = vadd.f32 %v276_v48, %v141_v44  ;;  %v278_v60 = vmul.f32 %v605_v4, %v207_v45  ;;  %535 = vst [vmem:[%s1378_s5 + $0x170] sm:$0xff] %v471_v52  ;;  %v144_v0 = vmul.f32 %v596_v1, %v73_v50  ;;  %v81_v45 = vld [vmem:[%s1373_s0 + $0x1e8] sm:$0xff] }
  0x44   :  { %v410_v62 = vadd.f32 %v610_v5, %v339_v53  ;;  %v341_v63 = vadd.f32 %v277_v54, %v142_v49  ;;  %v279_v2 = vmul.f32 %v605_v4, %v208_v51  ;;  %v473_v7 = vmax.f32 %v409_v58, 0.0  ;;  %v216_v46 = vld [vmem:[%s1374_s1 + $0x1e8] sm:$0xff]  ;;  %v82_v51 = vld [vmem:[%s1373_s0 + $0x1f0] sm:$0xff] }
  0x45   :  { %536 = vst [vmem:[%s1378_s5 + $0x178] sm:$0xff] %v472_v57  ;;  %v411_v8 = vadd.f32 %v610_v5, %v340_v59  ;;  %v342_v9 = vadd.f32 %v278_v60, %v143_v55  ;;  %v145_v10 = vmul.f32 %v596_v1, %v74_v56  ;;  %v280_v15 = vmul.f32 %v605_v4, %v209_v61  ;;  %v217_v56 = vld [vmem:[%s1374_s1 + $0x1f0] sm:$0xff]  ;;  %v83_v61 = vld [vmem:[%s1373_s0 + $0x1f8] sm:$0xff] }
  0x46   :  { %v474_v12 = vmax.f32 %v410_v62, 0.0  ;;  %v412_v13 = vadd.f32 %v610_v5, %v341_v63  ;;  %v343_v14 = vadd.f32 %v279_v2, %v144_v0  ;;  %537 = vst [vmem:[%s1378_s5 + $0x180] sm:$0xff] %v473_v7  ;;  %v146_v20 = vmul.f32 %v596_v1, %v75_v3  ;;  %v218_v62 = vld [vmem:[%s1374_s1 + $0x1f8] sm:$0xff] }
  0x47   :  { %v475_v18 = vmax.f32 %v411_v8, 0.0  ;;  %v413_v19 = vadd.f32 %v610_v5, %v342_v9  ;;  %v281_v21 = vmul.f32 %v605_v4, %v210_v6  ;;  %v344_v26 = vadd.f32 %v280_v15, %v145_v10 }
  0x48   :  { %538 = vst [vmem:[%s1378_s5 + $0x188] sm:$0xff] %v474_v12  ;;  %v476_v24 = vmax.f32 %v412_v13, 0.0  ;;  %v414_v25 = vadd.f32 %v610_v5, %v343_v14  ;;  %v147_v27 = vmul.f32 %v596_v1, %v76_v11  ;;  %v282_v32 = vmul.f32 %v605_v4, %v211_v16 }
  0x49   :  { %539 = vst [vmem:[%s1378_s5 + $0x190] sm:$0xff] %v475_v18  ;;  %v477_v30 = vmax.f32 %v413_v19, 0.0  ;;  %v345_v31 = vadd.f32 %v281_v21, %v146_v20  ;;  %v148_v33 = vmul.f32 %v596_v1, %v77_v17  ;;  %v415_v37 = vadd.f32 %v610_v5, %v344_v26 }
  0x4a   :  { %540 = vst [vmem:[%s1378_s5 + $0x198] sm:$0xff] %v476_v24  ;;  %v478_v36 = vmax.f32 %v414_v25, 0.0  ;;  %v283_v38 = vmul.f32 %v605_v4, %v212_v22  ;;  %v149_v39 = vmul.f32 %v596_v1, %v78_v23  ;;  %v346_v42 = vadd.f32 %v282_v32, %v147_v27 }
  0x4b   :  { %541 = vst [vmem:[%s1378_s5 + $0x1a0] sm:$0xff] %v477_v30  ;;  %v416_v41 = vadd.f32 %v610_v5, %v345_v31  ;;  %v284_v43 = vmul.f32 %v605_v4, %v213_v28  ;;  %v150_v44 = vmul.f32 %v596_v1, %v79_v29  ;;  %v479_v47 = vmax.f32 %v415_v37, 0.0 }
  0x4c   :  { %542 = vst [vmem:[%s1378_s5 + $0x1a8] sm:$0xff] %v478_v36  ;;  %v347_v48 = vadd.f32 %v283_v38, %v148_v33  ;;  %v285_v49 = vmul.f32 %v605_v4, %v214_v34  ;;  %v151_v50 = vmul.f32 %v596_v1, %v80_v35  ;;  %v417_v53 = vadd.f32 %v610_v5, %v346_v42 }
  0x4d   :  { %v480_v52 = vmax.f32 %v416_v41, 0.0  ;;  %v348_v54 = vadd.f32 %v284_v43, %v149_v39  ;;  %v286_v55 = vmul.f32 %v605_v4, %v215_v40  ;;  %543 = vst [vmem:[%s1378_s5 + $0x1b0] sm:$0xff] %v479_v47  ;;  %v152_v59 = vmul.f32 %v596_v1, %v81_v45 }
  0x4e   :  { %v418_v57 = vadd.f32 %v610_v5, %v347_v48  ;;  %v349_v58 = vadd.f32 %v285_v49, %v150_v44  ;;  %v287_v60 = vmul.f32 %v605_v4, %v216_v46  ;;  %v481_v63 = vmax.f32 %v417_v53, 0.0 }
  0x4f   :  { %544 = vst [vmem:[%s1378_s5 + $0x1b8] sm:$0xff] %v480_v52  ;;  %v419_v0 = vadd.f32 %v610_v5, %v348_v54  ;;  %v350_v2 = vadd.f32 %v286_v55, %v151_v50  ;;  %v153_v3 = vmul.f32 %v596_v1, %v82_v51  ;;  %v288_v9 = vmul.f32 %v605_v4, %v217_v56 }
  0x50   :  { %v482_v6 = vmax.f32 %v418_v57, 0.0  ;;  %v420_v7 = vadd.f32 %v610_v5, %v349_v58  ;;  %v351_v8 = vadd.f32 %v287_v60, %v152_v59  ;;  %545 = vst [vmem:[%s1378_s5 + $0x1c0] sm:$0xff] %v481_v63  ;;  %v154_v12 = vmul.f32 %v596_v1, %v83_v61 }
  0x51   :  { %v483_v10 = vmax.f32 %v419_v0, 0.0  ;;  %v421_v11 = vadd.f32 %v610_v5, %v350_v2  ;;  %v289_v13 = vmul.f32 %v605_v4, %v218_v62  ;;  %v352_v16 = vadd.f32 %v288_v9, %v153_v3 }
  0x52   :  { %546 = vst [vmem:[%s1378_s5 + $0x1c8] sm:$0xff] %v482_v6  ;;  %v484_v14 = vmax.f32 %v420_v7, 0.0  ;;  %v422_v15 = vadd.f32 %v610_v5, %v351_v8 }
  0x53   :  { %547 = vst [vmem:[%s1378_s5 + $0x1d0] sm:$0xff] %v483_v10  ;;  %v485_v17 = vmax.f32 %v421_v11, 0.0  ;;  %v353_v18 = vadd.f32 %v289_v13, %v154_v12  ;;  %v423_v4 = vadd.f32 %v610_v5, %v352_v16 }
  0x54   :  { %548 = vst [vmem:[%s1378_s5 + $0x1d8] sm:$0xff] %v484_v14  ;;  %v486_v1 = vmax.f32 %v422_v15, 0.0 }
  0x55   :  { %549 = vst [vmem:[%s1378_s5 + $0x1e0] sm:$0xff] %v485_v17  ;;  %v424_v19 = vadd.f32 %v610_v5, %v353_v18  ;;  %v487_v20 = vmax.f32 %v423_v4, 0.0 }
  0x56   :  { %550 = vst [vmem:[%s1378_s5 + $0x1e8] sm:$0xff] %v486_v1 }
  0x57   :  { %v488_v21 = vmax.f32 %v424_v19, 0.0  ;;  %551 = vst [vmem:[%s1378_s5 + $0x1f0] sm:$0xff] %v487_v20 }
  0x59   :  { %552 = vst [vmem:[%s1378_s5 + $0x1f8] sm:$0xff] %v488_v21 }

// kernel: block2d_forward.19
= control target key start
LH: loop header
LB: loop body
LE: loop exit
PB: predicated region body
PF: predicated region fallthrough
CT: control target
= control target key end

     0   :  { %s413_s0 = inlined_call_operand.vmem [shape: f32[128,128], index: 0, kind: input, shape index: {}]   ;;  %s414_s1 = inlined_call_operand.vmem [shape: f32[128,128], index: 1, kind: input, shape index: {}]   ;;  %s415_s2 = inlined_call_operand.vmem [shape: f32[1,128], index: 2, kind: input, shape index: {}]   ;;  %s416_s3 = inlined_call_operand.vmem [shape: f32[1,128], index: 3, kind: input, shape index: {}]   ;;  %s417_s4 = inlined_call_operand.vmem [shape: f32[1,128], index: 4, kind: input, shape index: {}]   ;;  %s418_s5 = inlined_call_operand.vmem [shape: f32[128,128], index: 5, kind: output, shape index: {}]  }
   0x1   :  { %v20_v0 = vld [vmem:[%s413_s0] sm:$0xff]  ;;  %v21_v6 = vld [vmem:[%s413_s0 + $0x8] sm:$0xff]  ;;  %v22_v10 = vld [vmem:[%s413_s0 + $0x10] sm:$0xff] }
   0x2   :  { %v212_v1 = vld [vmem:[%s415_s2] ss:$0 sm:$0xff]  ;;  %v60_v9 = vld [vmem:[%s414_s1 + $0x8] sm:$0xff]  ;;  %v61_v11 = vld [vmem:[%s414_s1 + $0x10] sm:$0xff] }
   0x3   :  { %v59_v2 = vld [vmem:[%s414_s1] sm:$0xff]  ;;  %v43_v3 = vmul.f32 %v212_v1, %v20_v0  ;;  %v44_v8 = vmul.f32 %v212_v1, %v21_v6  ;;  %v45_v13 = vmul.f32 %v212_v1, %v22_v10  ;;  %v23_v15 = vld [vmem:[%s413_s0 + $0x18] sm:$0xff]  ;;  %v25_v23 = vld [vmem:[%s413_s0 + $0x28] sm:$0xff] }
   0x4   :  { %v221_v4 = vld [vmem:[%s416_s3] ss:$0 sm:$0xff]  ;;  %v62_v16 = vld [vmem:[%s414_s1 + $0x18] sm:$0xff]  ;;  %v46_v19 = vmul.f32 %v212_v1, %v23_v15  ;;  %v64_v24 = vld [vmem:[%s414_s1 + $0x28] sm:$0xff]  ;;  %v48_v28 = vmul.f32 %v212_v1, %v25_v23 }
   0x5   :  { %v226_v5 = vld [vmem:[%s417_s4] ss:$0 sm:$0xff]  ;;  %v82_v7 = vmul.f32 %v221_v4, %v59_v2  ;;  %v83_v12 = vmul.f32 %v221_v4, %v60_v9  ;;  %v84_v14 = vmul.f32 %v221_v4, %v61_v11  ;;  %v85_v20 = vmul.f32 %v221_v4, %v62_v16  ;;  %v26_v29 = vld [vmem:[%s413_s0 + $0x30] sm:$0xff]  ;;  %v27_v31 = vld [vmem:[%s413_s0 + $0x38] sm:$0xff] }
   0x6   :  { %v24_v17 = vld [vmem:[%s413_s0 + $0x20] sm:$0xff]  ;;  %v65_v30 = vld [vmem:[%s414_s1 + $0x30] sm:$0xff]  ;;  %v87_v34 = vmul.f32 %v221_v4, %v64_v24  ;;  %v49_v35 = vmul.f32 %v212_v1, %v26_v29  ;;  %v66_v40 = vld [vmem:[%s414_s1 + $0x38] sm:$0xff]  ;;  %v50_v45 = vmul.f32 %v212_v1, %v27_v31 }
   0x7   :  { %v98_v18 = vadd.f32 %v82_v7, %v43_v3  ;;  %v47_v21 = vmul.f32 %v212_v1, %v24_v17  ;;  %v63_v22 = vld [vmem:[%s414_s1 + $0x20] sm:$0xff]  ;;  %v99_v25 = vadd.f32 %v83_v12, %v44_v8  ;;  %v100_v26 = vadd.f32 %v84_v14, %v45_v13  ;;  %v29_v47 = vld [vmem:[%s413_s0 + $0x48] sm:$0xff]  ;;  %v30_v53 = vld [vmem:[%s413_s0 + $0x50] sm:$0xff] }
   0x8   :  { %v86_v27 = vmul.f32 %v221_v4, %v63_v22  ;;  %v101_v33 = vadd.f32 %v85_v20, %v46_v19  ;;  %v88_v39 = vmul.f32 %v221_v4, %v65_v30  ;;  %v28_v41 = vld [vmem:[%s413_s0 + $0x40] sm:$0xff]  ;;  %v103_v44 = vadd.f32 %v87_v34, %v48_v28  ;;  %v68_v52 = vld [vmem:[%s414_s1 + $0x48] sm:$0xff]  ;;  %v69_v58 = vld [vmem:[%s414_s1 + $0x50] sm:$0xff] }
   0x9   :  { %v121_v32 = vadd.f32 %v226_v5, %v98_v18  ;;  %v122_v36 = vadd.f32 %v226_v5, %v99_v25  ;;  %v123_v37 = vadd.f32 %v226_v5, %v100_v26  ;;  %v67_v46 = vld [vmem:[%s414_s1 + $0x40] sm:$0xff]  ;;  %v89_v56 = vmul.f32 %v221_v4, %v66_v40  ;;  %v31_v59 = vld [vmem:[%s413_s0 + $0x58] sm:$0xff]  ;;  %v33_v10 = vld [vmem:[%s413_s0 + $0x68] sm:$0xff] }
   0xa   :  { %v102_v38 = vadd.f32 %v86_v27, %v47_v21  ;;  %v124_v43 = vadd.f32 %v226_v5, %v101_v33  ;;  %v104_v51 = vadd.f32 %v88_v39, %v49_v35  ;;  %v126_v55 = vadd.f32 %v226_v5, %v103_v44  ;;  %v70_v0 = vld [vmem:[%s414_s1 + $0x58] sm:$0xff]  ;;  %v32_v2 = vld [vmem:[%s413_s0 + $0x60] sm:$0xff]  ;;  %v72_v15 = vld [vmem:[%s414_s1 + $0x68] sm:$0xff] }
   0xb   :  { %v137_v42 = vmax.f32 %v121_v32, 0.0  ;;  %v138_v48 = vmax.f32 %v122_v36, 0.0  ;;  %v139_v49 = vmax.f32 %v123_v37, 0.0  ;;  %v51_v57 = vmul.f32 %v212_v1, %v28_v41  ;;  %v71_v9 = vld [vmem:[%s414_s1 + $0x60] sm:$0xff]  ;;  %v34_v20 = vld [vmem:[%s413_s0 + $0x70] sm:$0xff]  ;;  %v35_v30 = vld [vmem:[%s413_s0 + $0x78] sm:$0xff] }
   0xc   :  { %v125_v50 = vadd.f32 %v226_v5, %v102_v38  ;;  %v140_v54 = vmax.f32 %v124_v43, 0.0  ;;  %v127_v61 = vadd.f32 %v226_v5, %v104_v51  ;;  %v90_v62 = vmul.f32 %v221_v4, %v67_v46  ;;  %v73_v25 = vld [vmem:[%s414_s1 + $0x70] sm:$0xff]  ;;  %v74_v31 = vld [vmem:[%s414_s1 + $0x78] sm:$0xff] }
   0xd   :  { %153 = vst [vmem:[%s418_s5] sm:$0xff] %v137_v42  ;;  %154 = vst [vmem:[%s418_s5 + $0x8] sm:$0xff] %v138_v48  ;;  %v52_v63 = vmul.f32 %v212_v1, %v29_v47  ;;  %v142_v3 = vmax.f32 %v126_v55, 0.0  ;;  %v105_v6 = vadd.f32 %v89_v56, %v50_v45  ;;  %v91_v7 = vmul.f32 %v221_v4, %v68_v52 }
   0xe   :  { %155 = vst [vmem:[%s418_s5 + $0x10] sm:$0xff] %v139_v49  ;;  %v141_v60 = vmax.f32 %v125_v50, 0.0  ;;  %156 = vst [vmem:[%s418_s5 + $0x18] sm:$0xff] %v140_v54  ;;  %v53_v8 = vmul.f32 %v212_v1, %v30_v53  ;;  %v143_v11 = vmax.f32 %v127_v61, 0.0  ;;  %v106_v12 = vadd.f32 %v90_v62, %v51_v57 }
   0xf   :  { %v92_v13 = vmul.f32 %v221_v4, %v69_v58  ;;  %v54_v14 = vmul.f32 %v212_v1, %v31_v59  ;;  %158 = vst [vmem:[%s418_s5 + $0x28] sm:$0xff] %v142_v3  ;;  %v128_v16 = vadd.f32 %v226_v5, %v105_v6  ;;  %v107_v17 = vadd.f32 %v91_v7, %v52_v63 }
  0x10   :  { %157 = vst [vmem:[%s418_s5 + $0x20] sm:$0xff] %v141_v60  ;;  %v93_v18 = vmul.f32 %v221_v4, %v70_v0  ;;  %v55_v19 = vmul.f32 %v212_v1, %v32_v2  ;;  %159 = vst [vmem:[%s418_s5 + $0x30] sm:$0xff] %v143_v11  ;;  %v129_v21 = vadd.f32 %v226_v5, %v106_v12 }
  0x11   :  { %v108_v22 = vadd.f32 %v92_v13, %v53_v8  ;;  %v94_v23 = vmul.f32 %v221_v4, %v71_v9  ;;  %v56_v24 = vmul.f32 %v212_v1, %v33_v10  ;;  %v144_v26 = vmax.f32 %v128_v16, 0.0 }
  0x12   :  { %v130_v27 = vadd.f32 %v226_v5, %v107_v17  ;;  %v109_v28 = vadd.f32 %v93_v18, %v54_v14  ;;  %v95_v29 = vmul.f32 %v221_v4, %v72_v15  ;;  %v145_v32 = vmax.f32 %v129_v21, 0.0 }
  0x13   :  { %v131_v33 = vadd.f32 %v226_v5, %v108_v22  ;;  %v110_v34 = vadd.f32 %v94_v23, %v55_v19  ;;  %v57_v35 = vmul.f32 %v212_v1, %v34_v20  ;;  %160 = vst [vmem:[%s418_s5 + $0x38] sm:$0xff] %v144_v26  ;;  %v96_v39 = vmul.f32 %v221_v4, %v73_v25 }
  0x14   :  { %v146_v36 = vmax.f32 %v130_v27, 0.0  ;;  %v132_v37 = vadd.f32 %v226_v5, %v109_v28  ;;  %v111_v38 = vadd.f32 %v95_v29, %v56_v24  ;;  %161 = vst [vmem:[%s418_s5 + $0x40] sm:$0xff] %v145_v32  ;;  %v58_v42 = vmul.f32 %v212_v1, %v35_v30 }
  0x15   :  { %v147_v40 = vmax.f32 %v131_v33, 0.0  ;;  %v133_v41 = vadd.f32 %v226_v5, %v110_v34  ;;  %v97_v43 = vmul.f32 %v221_v4, %v74_v31  ;;  %v112_v46 = vadd.f32 %v96_v39, %v57_v35 }
  0x16   :  { %162 = vst [vmem:[%s418_s5 + $0x48] sm:$0xff] %v146_v36  ;;  %v148_v44 = vmax.f32 %v132_v37, 0.0  ;;  %v134_v45 = vadd.f32 %v226_v5, %v111_v38 }
  0x17   :  { %163 = vst [vmem:[%s418_s5 + $0x50] sm:$0xff] %v147_v40  ;;  %v149_v47 = vmax.f32 %v133_v41, 0.0  ;;  %v113_v48 = vadd.f32 %v97_v43, %v58_v42  ;;  %v135_v4 = vadd.f32 %v226_v5, %v112_v46 }
  0x18   :  { %164 = vst [vmem:[%s418_s5 + $0x58] sm:$0xff] %v148_v44  ;;  %v150_v1 = vmax.f32 %v134_v45, 0.0 }
  0x19   :  { %165 = vst [vmem:[%s418_s5 + $0x60] sm:$0xff] %v149_v47  ;;  %v136_v49 = vadd.f32 %v226_v5, %v113_v48  ;;  %v151_v50 = vmax.f32 %v135_v4, 0.0 }
  0x1a   :  { %166 = vst [vmem:[%s418_s5 + $0x68] sm:$0xff] %v150_v1 }
  0x1b   :  { %v152_v51 = vmax.f32 %v136_v49, 0.0  ;;  %167 = vst [vmem:[%s418_s5 + $0x70] sm:$0xff] %v151_v50 }
  0x1d   :  { %168 = vst [vmem:[%s418_s5 + $0x78] sm:$0xff] %v152_v51 }

// kernel: block2d_forward.12
= control target key start
LH: loop header
LB: loop body
LE: loop exit
PB: predicated region body
PF: predicated region fallthrough
CT: control target
= control target key end

     0   :  { %s7120_s15 = smov 0   ;;  %s7122_s16 = smov 0   ;;  %s8793_s0 = inlined_call_operand.vmem [shape: bf16[2,18,18,128], index: 0, kind: input, shape index: {}]   ;;  %s8794_s1 = inlined_call_operand.vmem [shape: bf16[2,1,2,18,128], index: 1, kind: input, shape index: {}]   ;;  %s8795_s2 = inlined_call_operand.vmem [shape: bf16[9,128,128], index: 2, kind: input, shape index: {}]   ;;  %s8796_s3 = inlined_call_operand.vmem [shape: f32[2,1,256,128], index: 3, kind: output, shape index: {0}]   ;;  %s8797_s4 = inlined_call_operand.vmem [shape: f32[2,1,2,128], index: 4, kind: output, shape index: {1}]  }
   0x1   :  { %s7124_s17 = smov 0  }
   0x2 LB: > { %s27_s18 = sadd.s32 1, %s7089_s16  ;;  %p5534_p0 = scmp.ge.s32.totalorder %s7093_s17, 1  ;;  %s7093_s17 = sphi %s7124_s17, %s15_s17   ;;  %s7089_s16 = sphi %s7122_s16, %s8878_s16   ;;  %s7085_s15 = sphi %s7120_s15, %s8877_s15  }
   0x3   : > { %p29_p1 = scmp.ge.s32.totalorder %s27_s18, 2  ;;  %p215_p2 = scmp.lt.s32.totalorder %s7093_s17, 3 }
   0x5   : > { %s8880_s18 = smov (%p29_p1, %s27_s18), 0  ;;  %p216_p3 = pnand %p5534_p0, %p215_p2 }
   0x7   : > { %219 = sbr.rel (%p216_p3) target bundleno = 612 (0x264), region = 32 }
   0xe   : > { %v6881_v0 = vld [vmem:[%s8795_s2 + $0x40] sm:$0xff]   ;;  %p277_p4 = scmp.lt.s32.totalorder %s7085_s15, 1  ;;  %v6883_v2 = vld [vmem:[%s8795_s2 + $0x48] sm:$0xff]   ;;  %v6885_v4 = vld [vmem:[%s8795_s2 + $0x50] sm:$0xff]   ;;  %vm491_vm0 = vsmask.f32 3328 }
   0xf   : > { %v6882_v1 = vld [vmem:[%s8795_s2 + $0x100] sm:$0xff]   ;;  %6151 = vmatprep.subr.bf16.mxu1 %v6881_v0  ;;  %v6884_v3 = vld [vmem:[%s8795_s2 + $0x108] sm:$0xff]   ;;  %v6886_v5 = vld [vmem:[%s8795_s2 + $0x110] sm:$0xff]   ;;  %vm492_vm1 = vsmask.f32 7440  ;;  %vm1521_vm3 = vcmask 1042432  }
  0x10   : > { %6343 = vmatprep.subr.bf16.mxu0 %v6882_v1  ;;  %6152 = vmatpush3.bf16.msra.mxu1 %v6881_v0  ;;  %s8882_s15 = smov (!%p277_p4, %s7085_s15), 1  ;;  %v6887_v6 = vld [vmem:[%s8795_s2 + $0x58] sm:$0xff]   ;;  %v6889_v8 = vld [vmem:[%s8795_s2 + $0x60] sm:$0xff]   ;;  %v6891_v10 = vld [vmem:[%s8795_s2 + $0x68] sm:$0xff]   ;;  %vm1522_vm4 = vcmask 1046532  }
  0x11   : > { %6344 = vmatpush3.bf16.msra.mxu0 %v6882_v1  ;;  %6153 = vmatprep.subr.bf16.mxu1 %v6883_v2  ;;  %v6888_v7 = vld [vmem:[%s8795_s2 + $0x118] sm:$0xff]   ;;  %s6855_s9 = smul.u32 216, %s8882_s15  ;;  %v6890_v9 = vld [vmem:[%s8795_s2 + $0x120] sm:$0xff]   ;;  %v6892_v14 = vld [vmem:[%s8795_s2 + $0x128] sm:$0xff]   ;;  %s5934_s10 = sshll.u32 %s8882_s15, 8 }
  0x12   : > { %6345 = vmatprep.subr.bf16.mxu0 %v6884_v3  ;;  %v6893_v18 = vld [vmem:[%s8795_s2 + $0x70] sm:$0xff]   ;;  %v6895_v21 = vld [vmem:[%s8795_s2 + $0x78] sm:$0xff]   ;;  %v7212_v45 = vld [vmem:[%s8795_s2] sm:$0xff]   ;;  %s6856_s29 = smul.u32 24, %s8882_s15  ;;  %s8741_s13 = scalar_lea.vmem %s8796_s3, %s5934_s10 }
  0x13   : > { %s7174_s20 = scalar_lea.vmem %s8793_s0, %s6855_s9  ;;  %v6894_v19 = vld [vmem:[%s8795_s2 + $0x130] sm:$0xff]   ;;  %v6896_v23 = vld [vmem:[%s8795_s2 + $0x138] sm:$0xff]   ;;  %v7217_v46 = vld [vmem:[%s8795_s2 + $0x140] sm:$0xff]   ;;  %s5539_s14 = sshll.u32 %s8882_s15, 1 }
  0x14   : > { %6154 = vmatpush3.bf16.msra.mxu1 %v6883_v2  ;;  %v318_v11 = vld [vmem:[%s7174_s20] sm:$0xff]   ;;  %v320_v12 = vld [vmem:[%s7174_s20 + $0x8] sm:$0x1]  ;;  %v321_v13 = vld [vmem:[%s7174_s20 + $0xc] sm:$0xff]   ;;  %s316_s22 = scalar_lea.vmem %s8797_s4, %s5539_s14 }
  0x15   : > { %6346 = vmatpush3.bf16.msra.mxu0 %v6884_v3  ;;  %6155 = vmatprep.subr.bf16.mxu1 %v6885_v4  ;;  %366 = vst [vmem:[#allocation2] sm:$0xff] %v318_v11   ;;  %368 = vst [vmem:[#allocation2 + $0x8] sm:$0x1] %v320_v12  ;;  %v323_v15 = vld [vmem:[%s7174_s20 + $0x14] sm:$0x1]  ;;  %v324_v16 = vld [vmem:[%s7174_s20 + $0x18] sm:$0xff]  }
  0x16   : > { %6347 = vmatprep.subr.bf16.mxu0 %v6886_v5  ;;  %369 = vst [vmem:[#allocation2 + $0xc] sm:$0xff] %v321_v13   ;;  %371 = vst [vmem:[#allocation2 + $0x14] sm:$0x1] %v323_v15  ;;  %v326_v17 = vld [vmem:[%s7174_s20 + $0x20] sm:$0x1]  ;;  %v327_v20 = vld [vmem:[%s7174_s20 + $0x24] sm:$0xff]  }
  0x17   : > { %372 = vst [vmem:[#allocation2 + $0x18] sm:$0xff] %v324_v16   ;;  %374 = vst [vmem:[#allocation2 + $0x20] sm:$0x1] %v326_v17  ;;  %v329_v22 = vld [vmem:[%s7174_s20 + $0x2c] sm:$0x1]  ;;  %v330_v24 = vld [vmem:[%s7174_s20 + $0x30] sm:$0xff]  }
  0x18   : > { %6156 = vmatpush3.bf16.msra.mxu1 %v6885_v4  ;;  %375 = vst [vmem:[#allocation2 + $0x24] sm:$0xff] %v327_v20   ;;  %377 = vst [vmem:[#allocation2 + $0x2c] sm:$0x1] %v329_v22  ;;  %v332_v25 = vld [vmem:[%s7174_s20 + $0x38] sm:$0x1]  ;;  %v333_v11 = vld [vmem:[%s7174_s20 + $0x3c] sm:$0xff]  }
  0x19   : > { %6348 = vmatpush3.bf16.msra.mxu0 %v6886_v5  ;;  %6157 = vmatprep.subr.bf16.mxu1 %v6887_v6  ;;  %378 = vst [vmem:[#allocation2 + $0x30] sm:$0xff] %v330_v24   ;;  %380 = vst [vmem:[#allocation2 + $0x38] sm:$0x1] %v332_v25 }
  0x1a   : > { %6349 = vmatprep.subr.bf16.mxu0 %v6888_v7  ;;  %vm7223_vm2 = vmor %vm491_vm0, %vm492_vm1  ;;  %381 = vst [vmem:[#allocation2 + $0x3c] sm:$0xff] %v333_v11  }
  0x1b   : > { %vm7433_vm5 = vmor %vm1521_vm3, %vm1522_vm4 }
  0x1c   : > { %6158 = vmatpush3.bf16.msra.mxu1 %v6887_v6  ;;  %v427_v26 = vld [vmem:[#allocation2] sm:$0xf]  ;;  %v428_v27 = vld [vmem:[#allocation2 + $0x4] sm:$0xf]  ;;  %v475_v28 = vld [vmem:[#allocation2 + $0x8] sm:$0x1] }
  0x1d   : > { %6350 = vmatpush3.bf16.msra.mxu0 %v6888_v7  ;;  %6159 = vmatprep.subr.bf16.mxu1 %v6889_v8  ;;  %v495_v29 = vshrl.u32 %v427_v26, 16  ;;  %v498_v30 = vshll.u32 %v427_v26, 16  ;;  %v504_v31 = vshll.u32 %v428_v27, 16  ;;  %v508_v32 = vshrl.u32 %v428_v27, 16  ;;  %v2345_v33 = vld [vmem:[#allocation2 + $0xc] sm:$0xf] }
  0x1e   : > { %6351 = vmatprep.subr.bf16.mxu0 %v6890_v9  ;;  %v514_v34 = vshll.u32 %v475_v28, 16  ;;  %v7204_v35 = vld [vmem:[#allocation2 + $0x10] sm:$0xf]  ;;  %v7206_v36 = vld [vmem:[#allocation2 + $0x14] sm:$0x1]  ;;  %v2394_v42 = vshrl.u32 %v2345_v33, 16 }
  0x1f   : > { %v497_v37 = vrot.slane %v495_v29, 4  ;;  %v500_v38 = vrot.slane %v498_v30, 5  ;;  %v506_v39 = vrot.slane %v504_v31, 5  ;;  %v510_v40 = vrot.slane %v508_v32, 4  ;;  %v429_v51 = vld [vmem:[#allocation2 + $0xc] sm:$0xf] }
  0x20   : > { %6160 = vmatpush3.bf16.msra.mxu1 %v6889_v8  ;;  %v516_v41 = vrot.slane %v514_v34, 5  ;;  %v2397_v43 = vshll.u32 %v2345_v33, 16  ;;  %v2403_v44 = vshll.u32 %v7204_v35, 16  ;;  %v2407_v49 = vshrl.u32 %v7204_v35, 16  ;;  %v430_v52 = vld [vmem:[#allocation2 + $0x10] sm:$0xf] }
  0x21   : > { %6352 = vmatpush3.bf16.msra.mxu0 %v6890_v9  ;;  %6161 = vmatprep.subr.bf16.mxu1 %v6891_v10  ;;  %v501_v47 = vor.u32 %v500_v38, %v497_v37  ;;  %v511_v48 = vor.u32 %v510_v40, %v506_v39  ;;  %v2413_v50 = vshll.u32 %v7206_v36, 16  ;;  %v2396_v54 = vrot.slane %v2394_v42, 4  ;;  %v476_v62 = vld [vmem:[#allocation2 + $0x14] sm:$0x1]  ;;  %v2348_v6 = vld [vmem:[#allocation2 + $0x18] sm:$0xf] }
  0x22   : > { %6353 = vmatprep.subr.bf16.mxu0 %v6892_v14  ;;  %v2399_v55 = vrot.slane %v2397_v43, 5  ;;  %v2405_v56 = vrot.slane %v2403_v44, 5  ;;  %v2409_v59 = vrot.slane %v2407_v49, 4  ;;  %v519_v63 = vshrl.u32 %v429_v51, 16  ;;  %v7234_v16 = vld [vmem:[#allocation2 + $0x1c] sm:$0xf] }
  0x23   : > { %v502_v57 = vrot.slane %v501_v47, 4  ;;  %v512_v58 = vrot.slane %v511_v48, 4  ;;  %v2415_v60 = vrot.slane %v2413_v50, 5  ;;  %v522_v0 = vshll.u32 %v429_v51, 16  ;;  %v7239_v20 = vld [vmem:[#allocation2 + $0x20] sm:$0x1] }
  0x24   : > { %6162 = vmatpush3.bf16.msra.mxu1 %v6891_v10  ;;  %v2400_v61 = vor.u32 %v2399_v55, %v2396_v54  ;;  %v528_v1 = vshll.u32 %v430_v52, 16  ;;  %v2410_v4 = vor.u32 %v2409_v59, %v2405_v56  ;;  %v532_v5 = vshrl.u32 %v430_v52, 16  ;;  %v431_v26 = vld [vmem:[#allocation2 + $0x18] sm:$0xf]  ;;  %v432_v31 = vld [vmem:[#allocation2 + $0x1c] sm:$0xf] }
  0x25   : > { %6354 = vmatpush3.bf16.msra.mxu0 %v6892_v14  ;;  %6163 = vmatprep.subr.bf16.mxu1 %v6893_v18  ;;  %v507_v2 = vsel %vm7223_vm2, %v502_v57, %v506_v39  ;;  %v517_v3 = vsel %vm7223_vm2, %v512_v58, %v516_v41  ;;  %v521_v9 = vrot.slane %v519_v63, 4  ;;  %v524_v10 = vrot.slane %v522_v0, 5  ;;  %v477_v38 = vld [vmem:[#allocation2 + $0x20] sm:$0x1]  ;;  %v2351_v43 = vld [vmem:[#allocation2 + $0x24] sm:$0xf] }
  0x26   : > { %6355 = vmatprep.subr.bf16.mxu0 %v6894_v19  ;;  %v5556_v7 = vcombine.low %v507_v2, %v517_v3  ;;  %v2401_v8 = vrot.slane %v2400_v61, 4  ;;  %v2411_v12 = vrot.slane %v2410_v4, 4  ;;  %v530_v13 = vrot.slane %v528_v1, 5  ;;  %v336_v44 = vld [vmem:[%s7174_s20 + $0x48] sm:$0xff]  }
  0x27   : > { %v534_v14 = vrot.slane %v532_v5, 4  ;;  %v538_v15 = vshll.u32 %v476_v62, 16  ;;  %v2421_v25 = vshll.u32 %v2348_v6, 16  ;;  %v2427_v30 = vshll.u32 %v7234_v16, 16  ;;  %384 = vst [vmem:[#allocation2 + $0x48] sm:$0xff] %v336_v44  }
  0x28   : > { %6164 = vmatpush3.bf16.msra.mxu1 %v6893_v18  ;;  %6167 = vmatprep.mubr.bf16.mxu1 %v5556_v7  ;;  %v2406_v17 = vsel %vm7223_vm2, %v2401_v8, %v2405_v56  ;;  %v3168_v18 = vrot.slane %v7206_v36, 5  ;;  %v2416_v22 = vsel %vm7223_vm2, %v2411_v12, %v2415_v60  ;;  %v2431_v34 = vshrl.u32 %v7234_v16, 16  ;;  %v6900_v56 = vld [vmem:[%s8795_s2 + $0x8] sm:$0xff]   ;;  %v339_v7 = vld [vmem:[%s7174_s20 + $0x54] sm:$0xff]  }
  0x29   : > { %6356 = vmatpush3.bf16.msra.mxu0 %v6894_v19  ;;  %6165 = vmatprep.subr.bf16.mxu1 %v6895_v21  ;;  %v525_v19 = vor.u32 %v524_v10, %v521_v9  ;;  %v540_v24 = vrot.slane %v538_v15, 5  ;;  %v5716_v27 = vcombine.low %v2406_v17, %v2416_v22  ;;  %v2423_v33 = vrot.slane %v2421_v25, 5  ;;  %v7260_v0 = vld [vmem:[#allocation2 + $0x28] sm:$0xf]  ;;  %387 = vst [vmem:[#allocation2 + $0x54] sm:$0xff] %v339_v7  }
  0x2a   : > { %6357 = vmatprep.subr.bf16.mxu0 %v6896_v23  ;;  %v2437_v37 = vshll.u32 %v7239_v20, 16  ;;  %v2429_v40 = vrot.slane %v2427_v30, 5  ;;  %v3172_v41 = vrot.slane %v7234_v16, 5  ;;  %v3175_v42 = vrot.slane %v7239_v20, 5  ;;  %v6899_v8 = vld [vmem:[%s8795_s2 + $0x148] sm:$0xff]  }
  0x2b   : > { %v526_v28 = vrot.slane %v525_v19, 4  ;;  %6359 = vmatprep.mubr.bf16.mxu0 %v5716_v27  ;;  %v2433_v49 = vrot.slane %v2431_v34, 4  ;;  %v543_v54 = vshrl.u32 %v431_v26, 16  ;;  %v546_v55 = vshll.u32 %v431_v26, 16  ;;  %v335_v22 = vld [vmem:[%s7174_s20 + $0x44] sm:$0x1] }
  0x2c   : > { %6166 = vmatpush3.bf16.msra.mxu1 %v6895_v21  ;;  %v2418_v21 = vshrl.u32 %v2348_v6, 16  ;;  %v2439_v50 = vrot.slane %v2437_v37, 5  ;;  %v7255_v52 = vrot.slane %v3172_v41, 4  ;;  %v552_v59 = vshll.u32 %v432_v31, 16  ;;  %v7265_v6 = vld [vmem:[#allocation2 + $0x2c] sm:$0x1] }
  0x2d   : > { %6358 = vmatpush3.bf16.msra.mxu0 %v6896_v23  ;;  %6199 = vmatprep.subr.bf16.mxu1 %v7212_v45  ;;  %v535_v23 = vor.u32 %v534_v14, %v530_v13  ;;  %v531_v39 = vsel %vm7223_vm2, %v526_v28, %v530_v13  ;;  %v2434_v58 = vor.u32 %v2433_v49, %v2429_v40  ;;  %v556_v60 = vshrl.u32 %v432_v31, 16  ;;  %v433_v13 = vld [vmem:[#allocation2 + $0x24] sm:$0xf]  ;;  %v478_v27 = vld [vmem:[#allocation2 + $0x2c] sm:$0x1] }
  0x2e   : > { %6391 = vmatprep.subr.bf16.mxu0 %v7217_v46  ;;  %v2420_v29 = vrot.slane %v2418_v21, 4  ;;  %v545_v61 = vrot.slane %v543_v54, 4  ;;  %v548_v62 = vrot.slane %v546_v55, 5  ;;  %v562_v63 = vshll.u32 %v477_v38, 16  ;;  %v434_v21 = vld [vmem:[#allocation2 + $0x28] sm:$0xf] }
  0x2f   : > { %v536_v32 = vrot.slane %v535_v23, 4  ;;  %v2442_v1 = vshrl.u32 %v2351_v43, 16  ;;  %v2435_v3 = vrot.slane %v2434_v58, 4  ;;  %v554_v4 = vrot.slane %v552_v59, 5  ;;  %383 = vst [vmem:[#allocation2 + $0x44] sm:$0x1] %v335_v22 }
  0x30   : > { %v2424_v48 = vor.u32 %v2423_v33, %v2420_v29  ;;  %v558_v5 = vrot.slane %v556_v60, 4  ;;  %v549_v9 = vor.u32 %v548_v62, %v545_v61  ;;  %v564_v10 = vrot.slane %v562_v63, 5  ;;  %v342_v28 = vld [vmem:[%s7174_s20 + $0x60] sm:$0xff]   ;;  %v2354_v33 = vld [vmem:[#allocation2 + $0x30] sm:$0xf] }
  0x31   : > { %v541_v47 = vsel %vm7223_vm2, %v536_v32, %v540_v24  ;;  %v2444_v11 = vrot.slane %v2442_v1, 4  ;;  %v2445_v12 = vshll.u32 %v2351_v43, 16  ;;  %v2440_v14 = vsel %vm7223_vm2, %v2435_v3, %v2439_v50  ;;  %390 = vst [vmem:[#allocation2 + $0x60] sm:$0xff] %v342_v28   ;;  %v6906_v43 = vld [vmem:[%s8795_s2 + $0x18] sm:$0xff]   ;;  %v338_v50 = vld [vmem:[%s7174_s20 + $0x50] sm:$0x1] }
  0x32   : > { %v5557_v51 = vcombine.low %v531_v39, %v541_v47  ;;  %v2425_v57 = vrot.slane %v2424_v48, 4  ;;  %v559_v15 = vor.u32 %v558_v5, %v554_v4  ;;  %v2451_v17 = vshll.u32 %v7260_v0, 16  ;;  %v6901_v58 = vld [vmem:[%s8795_s2 + $0x150] sm:$0xff]   ;;  %386 = vst [vmem:[#allocation2 + $0x50] sm:$0x1] %v338_v50 }
  0x33   : > { %v2455_v19 = vshrl.u32 %v7260_v0, 16  ;;  %v550_v24 = vrot.slane %v549_v9, 4  ;;  %v2447_v25 = vrot.slane %v2445_v12, 5  ;;  %v2461_v26 = vshll.u32 %v7265_v6, 16  ;;  %v435_v62 = vld [vmem:[#allocation2 + $0x30] sm:$0xf] }
  0x34   : > { %6168 = vmatmul.mubr.bf16.vlgmr.msra.gmra.mrb[0].mxu1 %v5557_v51  ;;  %v2430_v2 = vsel %vm7223_vm2, %v2425_v57, %v2429_v40  ;;  %v560_v29 = vrot.slane %v559_v15, 4  ;;  %v2453_v30 = vrot.slane %v2451_v17, 5  ;;  %v567_v32 = vshrl.u32 %v433_v13, 16  ;;  %v7283_v40 = vld [vmem:[#allocation2 + $0x34] sm:$0xf] }
  0x35   : > { %6200 = vmatpush3.bf16.msra.mxu1 %v7212_v45  ;;  %v6903_v45 = vld [vmem:[%s8795_s2 + $0x10] sm:$0xff]   ;;  %v5717_v23 = vcombine.low %v2430_v2, %v2440_v14  ;;  %v2457_v31 = vrot.slane %v2455_v19, 4  ;;  %v555_v34 = vsel %vm7223_vm2, %v550_v24, %v554_v4  ;;  %v2448_v37 = vor.u32 %v2447_v25, %v2444_v11  ;;  %v7292_v57 = vld [vmem:[#allocation2 + $0x38] sm:$0x1]  ;;  %v3101_v16 = vld [vmem:[#allocation2 + $0x24] sm:$0xe] }
  0x36   : > { %6201 = vmatprep.subr.bf16.mxu1 %v6900_v56  ;;  %v2463_v38 = vrot.slane %v2461_v26, 5  ;;  %v570_v39 = vshll.u32 %v433_v13, 16  ;;  %v565_v44 = vsel %vm7223_vm2, %v560_v29, %v564_v10  ;;  %v569_v48 = vrot.slane %v567_v32, 4  ;;  %v6902_v10 = vld [vmem:[%s8795_s2 + $0x158] sm:$0xff]   ;;  %v436_v14 = vld [vmem:[#allocation2 + $0x34] sm:$0xf] }
  0x37   : > { %6360 = vmatmul.mubr.bf16.vlgmr.msra.gmra.mrb[0].mxu0 %v5717_v23  ;;  %v2458_v47 = vor.u32 %v2457_v31, %v2453_v30  ;;  %v576_v49 = vshll.u32 %v434_v21, 16  ;;  %v5558_v51 = vcombine.low %v555_v34, %v565_v44  ;;  %v2449_v54 = vrot.slane %v2448_v37, 4  ;;  %v479_v24 = vld [vmem:[#allocation2 + $0x38] sm:$0x1]  ;;  %v6904_v26 = vld [vmem:[%s8795_s2 + $0x160] sm:$0xff]  }
  0x38   : > { %6392 = vmatpush3.bf16.msra.mxu0 %v7217_v46  ;;  %v572_v55 = vrot.slane %v570_v39, 5  ;;  %v586_v60 = vshll.u32 %v478_v27, 16  ;;  %v2466_v61 = vshrl.u32 %v2354_v33, 16  ;;  %v2469_v3 = vshll.u32 %v2354_v33, 16  ;;  %v2357_v31 = vld [vmem:[#allocation2 + $0x3c] sm:$0xf] }
  0x39   : > { %6202 = vmatpush3.bf16.msra.mxu1 %v6900_v56  ;;  %6393 = vmatprep.subr.bf16.mxu0 %v6899_v8  ;;  %v580_v56 = vshrl.u32 %v434_v21, 16  ;;  %v2459_v46 = vrot.slane %v2458_v47, 4  ;;  %v578_v59 = vrot.slane %v576_v49, 5  ;;  %v2454_v63 = vsel %vm7223_vm2, %v2449_v54, %v2453_v30  ;;  %v345_v39 = vld [vmem:[%s7174_s20 + $0x6c] sm:$0xff]   ;;  %v341_v49 = vld [vmem:[%s7174_s20 + $0x5c] sm:$0x1] }
  0x3a   : > { %6203 = vmatprep.subr.bf16.mxu1 %v6903_v45  ;;  %6171 = vmatprep.mubr.bf16.mxu1 %v5558_v51  ;;  %v573_v1 = vor.u32 %v572_v55, %v569_v48  ;;  %v588_v5 = vrot.slane %v586_v60, 5  ;;  %v2468_v7 = vrot.slane %v2466_v61, 4  ;;  %v2475_v9 = vshll.u32 %v7283_v40, 16  ;;  %393 = vst [vmem:[#allocation2 + $0x6c] sm:$0xff] %v345_v39   ;;  %v7320_v55 = vld [vmem:[#allocation2 + $0x44] sm:$0x1] }
  0x3b   : > { %v582_v2 = vrot.slane %v580_v56, 4  ;;  %v2464_v4 = vsel %vm7223_vm2, %v2459_v46, %v2463_v38  ;;  %v2485_v17 = vshll.u32 %v7292_v57, 16  ;;  %v591_v19 = vshrl.u32 %v435_v62, 16  ;;  %v7314_v38 = vld [vmem:[#allocation2 + $0x40] sm:$0xf]  ;;  %v6905_v46 = vld [vmem:[%s8795_s2 + $0x168] sm:$0xff]  }
  0x3c   : > { %6394 = vmatpush3.bf16.msra.mxu0 %v6899_v8  ;;  %v5718_v11 = vcombine.low %v2454_v63, %v2464_v4  ;;  %v574_v12 = vrot.slane %v573_v1, 4  ;;  %v2477_v15 = vrot.slane %v2475_v9, 5  ;;  %v2479_v8 = vshrl.u32 %v7283_v40, 16  ;;  %389 = vst [vmem:[#allocation2 + $0x5c] sm:$0x1] %v341_v49 }
  0x3d   : > { %6204 = vmatpush3.bf16.msra.mxu1 %v6903_v45  ;;  %v583_v13 = vor.u32 %v582_v2, %v578_v59  ;;  %v2471_v45 = vrot.slane %v2469_v3, 5  ;;  %6395 = vmatprep.subr.bf16.mxu0 %v6901_v58  ;;  %v594_v25 = vshll.u32 %v435_v62, 16  ;;  %v2487_v28 = vrot.slane %v2485_v17, 5  ;;  %v438_v63 = vld [vmem:[#allocation2 + $0x40] sm:$0xf]  ;;  %v6907_v17 = vld [vmem:[%s8795_s2 + $0x170] sm:$0xff]  }
  0x3e   : > { %6205 = vmatprep.subr.bf16.mxu1 %v6906_v43  ;;  %6363 = vmatprep.mubr.bf16.mxu0 %v5718_v11  ;;  %v579_v21 = vsel %vm7223_vm2, %v574_v12, %v578_v59  ;;  %v2481_v27 = vrot.slane %v2479_v8, 4  ;;  %v593_v29 = vrot.slane %v591_v19, 4  ;;  %v600_v30 = vshll.u32 %v436_v14, 16  ;;  %v344_v8 = vld [vmem:[%s7174_s20 + $0x68] sm:$0x1] }
  0x3f   : > { %v584_v22 = vrot.slane %v583_v13, 4  ;;  %v2472_v23 = vor.u32 %v2471_v45, %v2468_v7  ;;  %v596_v34 = vrot.slane %v594_v25, 5  ;;  %v604_v37 = vshrl.u32 %v436_v14, 16  ;;  %392 = vst [vmem:[#allocation2 + $0x68] sm:$0x1] %v344_v8  ;;  %v348_v25 = vld [vmem:[%s7174_s20 + $0x78] sm:$0xff]  }
  0x40   : > { %6396 = vmatpush3.bf16.msra.mxu0 %v6901_v58  ;;  %v2482_v44 = vor.u32 %v2481_v27, %v2477_v15  ;;  %v602_v47 = vrot.slane %v600_v30, 5  ;;  %v610_v48 = vshll.u32 %v479_v24, 16  ;;  %v2490_v56 = vshrl.u32 %v2357_v31, 16  ;;  %v437_v58 = vld [vmem:[#allocation2 + $0x3c] sm:$0xf]  ;;  %396 = vst [vmem:[#allocation2 + $0x78] sm:$0xff] %v348_v25  }
  0x41   : > { %6206 = vmatpush3.bf16.msra.mxu1 %v6906_v43  ;;  %v589_v32 = vsel %vm7223_vm2, %v584_v22, %v588_v5  ;;  %v2473_v33 = vrot.slane %v2472_v23, 4  ;;  %6397 = vmatprep.subr.bf16.mxu0 %v6902_v10  ;;  %v597_v51 = vor.u32 %v596_v34, %v593_v29  ;;  %v606_v54 = vrot.slane %v604_v37, 4  ;;  %v6909_v5 = vld [vmem:[%s8795_s2 + $0x20] sm:$0xff]   ;;  %v7342_v37 = vld [vmem:[#allocation2 + $0x4c] sm:$0xf] }
  0x42   : > { %v5559_v43 = vcombine.low %v579_v21, %v589_v32  ;;  %v2483_v59 = vrot.slane %v2482_v44, 4  ;;  %v612_v60 = vrot.slane %v610_v48, 5  ;;  %v2493_v61 = vshll.u32 %v2357_v31, 16  ;;  %6207 = vmatprep.subr.bf16.mxu1 %v6909_v5  ;;  %v480_v22 = vld [vmem:[#allocation2 + $0x44] sm:$0x1] }
  0x43   : > { %v2478_v50 = vsel %vm7223_vm2, %v2473_v33, %v2477_v15  ;;  %v2499_v62 = vshll.u32 %v7314_v38, 16  ;;  %v598_v1 = vrot.slane %v597_v51, 4  ;;  %v607_v2 = vor.u32 %v606_v54, %v602_v47  ;;  %v2360_v15 = vld [vmem:[#allocation2 + $0x48] sm:$0xf]  ;;  %v7345_v48 = vld [vmem:[#allocation2 + $0x50] sm:$0x1] }
  0x44   : > { %6172 = vmatmul.mubr.bf16.gmra.mrb[4].mxu1 %v5559_v43  ;;  %6398 = vmatpush3.bf16.msra.mxu0 %v6902_v10  ;;  %v2492_v3 = vrot.slane %v2490_v56, 4  ;;  %v2503_v4 = vshrl.u32 %v7314_v38, 16  ;;  %v2488_v7 = vsel %vm7223_vm2, %v2483_v59, %v2487_v28  ;;  %v2495_v9 = vrot.slane %v2493_v61, 5  ;;  %v439_v61 = vld [vmem:[#allocation2 + $0x48] sm:$0xf] }
  0x45   : > { %6399 = vmatprep.subr.bf16.mxu0 %v6904_v26  ;;  %v2501_v10 = vrot.slane %v2499_v62, 5  ;;  %v2509_v11 = vshll.u32 %v7320_v55, 16  ;;  %v5719_v12 = vcombine.low %v2478_v50, %v2488_v7  ;;  %v603_v13 = vsel %vm7223_vm2, %v598_v1, %v602_v47  ;;  %6208 = vmatpush3.bf16.msra.mxu1 %v6909_v5  ;;  %v6908_v62 = vld [vmem:[%s8795_s2 + $0x178] sm:$0xff]  }
  0x46   : > { %v608_v45 = vrot.slane %v607_v2, 4  ;;  %v2505_v14 = vrot.slane %v2503_v4, 4  ;;  %v2496_v19 = vor.u32 %v2495_v9, %v2492_v3  ;;  %v615_v23 = vshrl.u32 %v437_v58, 16  ;;  %v440_v4 = vld [vmem:[#allocation2 + $0x4c] sm:$0xf] }
  0x47   : > { %v2511_v21 = vrot.slane %v2509_v11, 5  ;;  %v618_v24 = vshll.u32 %v437_v58, 16  ;;  %6364 = vmatmul.mubr.bf16.gmra.mrb[4].mxu0 %v5719_v12  ;;  %v624_v29 = vshll.u32 %v438_v63, 16  ;;  %v628_v30 = vshrl.u32 %v438_v63, 16 }
  0x48   : > { %6400 = vmatpush3.bf16.msra.mxu0 %v6904_v26  ;;  %v613_v27 = vsel %vm7223_vm2, %v608_v45, %v612_v60  ;;  %v2506_v28 = vor.u32 %v2505_v14, %v2501_v10  ;;  %v2497_v32 = vrot.slane %v2496_v19, 4  ;;  %v617_v33 = vrot.slane %v615_v23, 4  ;;  %v351_v26 = vld [vmem:[%s7174_s20 + $0x84] sm:$0xff]   ;;  %v2363_v23 = vld [vmem:[#allocation2 + $0x54] sm:$0xf] }
  0x49   : > { %6401 = vmatprep.subr.bf16.mxu0 %v6905_v46  ;;  %v5560_v31 = vcombine.low %v603_v13, %v613_v27  ;;  %v620_v34 = vrot.slane %v618_v24, 5  ;;  %v626_v43 = vrot.slane %v624_v29, 5  ;;  %v630_v44 = vrot.slane %v628_v30, 4  ;;  %399 = vst [vmem:[#allocation2 + $0x84] sm:$0xff] %v351_v26   ;;  %v481_v13 = vld [vmem:[#allocation2 + $0x50] sm:$0x1] }
  0x4a   : > { %v2507_v39 = vrot.slane %v2506_v28, 4  ;;  %v634_v47 = vshll.u32 %v480_v22, 16  ;;  %v2502_v49 = vsel %vm7223_vm2, %v2497_v32, %v2501_v10  ;;  %v2514_v51 = vshrl.u32 %v2360_v15, 16  ;;  %v7368_v24 = vld [vmem:[%s8795_s2 + $0x180] sm:$0xff]   ;;  %v7370_v29 = vld [vmem:[#allocation2 + $0x58] sm:$0xf] }
  0x4b   : > { %6175 = vmatprep.mubr.bf16.mxu1 %v5560_v31  ;;  %v621_v50 = vor.u32 %v620_v34, %v617_v33  ;;  %v2517_v54 = vshll.u32 %v2360_v15, 16  ;;  %v631_v58 = vor.u32 %v630_v44, %v626_v43  ;;  %v2523_v60 = vshll.u32 %v7342_v37, 16  ;;  %v347_v15 = vld [vmem:[%s7174_s20 + $0x74] sm:$0x1]  ;;  %v357_v26 = vld [vmem:[%s7174_s20 + $0x9c] sm:$0xff]  }
  0x4c   : > { %6402 = vmatpush3.bf16.msra.mxu0 %v6905_v46  ;;  %v2512_v56 = vsel %vm7223_vm2, %v2507_v39, %v2511_v21  ;;  %v636_v59 = vrot.slane %v634_v47, 5  ;;  %v2516_v2 = vrot.slane %v2514_v51, 4  ;;  %v6911_v46 = vld [vmem:[%s8795_s2 + $0x28] sm:$0xff]   ;;  %v2527_v9 = vshrl.u32 %v7342_v37, 16  ;;  %395 = vst [vmem:[#allocation2 + $0x74] sm:$0x1] %v347_v15 }
  0x4d   : > { %6403 = vmatprep.subr.bf16.mxu0 %v6907_v17  ;;  %v5720_v63 = vcombine.low %v2502_v49, %v2512_v56  ;;  %v622_v1 = vrot.slane %v621_v50, 4  ;;  %v2519_v3 = vrot.slane %v2517_v54, 5  ;;  %v632_v5 = vrot.slane %v631_v58, 4  ;;  %6209 = vmatprep.subr.bf16.mxu1 %v6911_v46  ;;  %v354_v30 = vld [vmem:[%s7174_s20 + $0x90] sm:$0xff]   ;;  %v7376_v44 = vld [vmem:[#allocation2 + $0x5c] sm:$0x1] }
  0x4e   : > { %v2525_v7 = vrot.slane %v2523_v60, 5  ;;  %v2533_v10 = vshll.u32 %v7345_v48, 16  ;;  %v639_v45 = vshrl.u32 %v439_v61, 16  ;;  %v642_v14 = vshll.u32 %v439_v61, 16  ;;  %6210 = vmatpush3.bf16.msra.mxu1 %v6911_v46  ;;  %402 = vst [vmem:[#allocation2 + $0x90] sm:$0xff] %v354_v30   ;;  %405 = vst [vmem:[#allocation2 + $0x9c] sm:$0xff] %v357_v26  }
  0x4f   : > { %6367 = vmatprep.mubr.bf16.mxu0 %v5720_v63  ;;  %v627_v11 = vsel %vm7223_vm2, %v622_v1, %v626_v43  ;;  %v2520_v12 = vor.u32 %v2519_v3, %v2516_v2  ;;  %v637_v8 = vsel %vm7223_vm2, %v632_v5, %v636_v59  ;;  %v2529_v19 = vrot.slane %v2527_v9, 4  ;;  %v441_v50 = vld [vmem:[#allocation2 + $0x54] sm:$0xf]  ;;  %v350_v46 = vld [vmem:[%s7174_s20 + $0x80] sm:$0x1] }
  0x50   : > { %6404 = vmatpush3.bf16.msra.mxu0 %v6907_v17  ;;  %v2535_v21 = vrot.slane %v2533_v10, 5  ;;  %v648_v22 = vshll.u32 %v440_v4, 16  ;;  %v5561_v25 = vcombine.low %v627_v11, %v637_v8  ;;  %v641_v27 = vrot.slane %v639_v45, 4  ;;  %v482_v11 = vld [vmem:[#allocation2 + $0x5c] sm:$0x1] }
  0x51   : > { %6405 = vmatprep.subr.bf16.mxu0 %v6908_v62  ;;  %v2521_v17 = vrot.slane %v2520_v12, 4  ;;  %v644_v28 = vrot.slane %v642_v14, 5  ;;  %v2530_v31 = vor.u32 %v2529_v19, %v2525_v7  ;;  %v652_v33 = vshrl.u32 %v440_v4, 16  ;;  %v442_v4 = vld [vmem:[#allocation2 + $0x58] sm:$0xf]  ;;  %v6913_v12 = vld [vmem:[%s8795_s2 + $0x30] sm:$0xff]  }
  0x52   : > { %v650_v32 = vrot.slane %v648_v22, 5  ;;  %v658_v34 = vshll.u32 %v481_v13, 16  ;;  %6176 = vmatmul.mubr.bf16.gmra.mrb[8].mxu1 %v5561_v25  ;;  %v2538_v47 = vshrl.u32 %v2363_v23, 16  ;;  %v2541_v49 = vshll.u32 %v2363_v23, 16  ;;  %398 = vst [vmem:[#allocation2 + $0x80] sm:$0x1] %v350_v46  ;;  %6211 = vmatprep.subr.bf16.mxu1 %v6913_v12 }
  0x53   : > { %v2526_v39 = vsel %vm7223_vm2, %v2521_v17, %v2525_v7  ;;  %v645_v43 = vor.u32 %v644_v28, %v641_v27  ;;  %v2531_v51 = vrot.slane %v2530_v31, 4  ;;  %v654_v54 = vrot.slane %v652_v33, 4  ;;  %v2366_v8 = vld [vmem:[#allocation2 + $0x60] sm:$0xf]  ;;  %v353_v25 = vld [vmem:[%s7174_s20 + $0x8c] sm:$0x1]  ;;  %6212 = vmatpush3.bf16.msra.mxu1 %v6913_v12 }
  0x54   : > { %6406 = vmatpush3.bf16.msra.mxu0 %v6908_v62  ;;  %v660_v56 = vrot.slane %v658_v34, 5  ;;  %v2547_v58 = vshll.u32 %v7370_v29, 16  ;;  %v2540_v60 = vrot.slane %v2538_v47, 4  ;;  %v2543_v61 = vrot.slane %v2541_v49, 5  ;;  %v7393_v31 = vld [vmem:[#allocation2 + $0x64] sm:$0xf] }
  0x55   : > { %6439 = vmatprep.subr.bf16.mxu0 %v7368_v24  ;;  %v646_v59 = vrot.slane %v645_v43, 4  ;;  %v2551_v63 = vshrl.u32 %v7370_v29, 16  ;;  %v2536_v1 = vsel %vm7223_vm2, %v2531_v51, %v2535_v21  ;;  %v655_v2 = vor.u32 %v654_v54, %v650_v32  ;;  %401 = vst [vmem:[#allocation2 + $0x8c] sm:$0x1] %v353_v25  ;;  %v7398_v43 = vld [vmem:[#allocation2 + $0x68] sm:$0x1] }
  0x56   : > { %v2549_v3 = vrot.slane %v2547_v58, 5  ;;  %v2557_v62 = vshll.u32 %v7376_v44, 16  ;;  %v5721_v5 = vcombine.low %v2526_v39, %v2536_v1  ;;  %v2544_v9 = vor.u32 %v2543_v61, %v2540_v60  ;;  %v363_v54 = vld [vmem:[%s7174_s20 + $0xb4] sm:$0xff]   ;;  %v7405_v61 = vld [vmem:[#allocation2 + $0x60] sm:$0xf] }
  0x57   : > { %v651_v7 = vsel %vm7223_vm2, %v646_v59, %v650_v32  ;;  %v2553_v10 = vrot.slane %v2551_v63, 4  ;;  %v656_v13 = vrot.slane %v655_v2, 4  ;;  %v663_v14 = vshrl.u32 %v441_v50, 16  ;;  %v360_v32 = vld [vmem:[%s7174_s20 + $0xa8] sm:$0xff]   ;;  %411 = vst [vmem:[#allocation2 + $0xb4] sm:$0xff] %v363_v54   ;;  %v6915_v63 = vld [vmem:[%s8795_s2 + $0x38] sm:$0xff]  }
  0x58   : > { %v2559_v45 = vrot.slane %v2557_v62, 5  ;;  %v666_v15 = vshll.u32 %v441_v50, 16  ;;  %6368 = vmatmul.mubr.bf16.gmra.mrb[8].mxu0 %v5721_v5  ;;  %v2545_v19 = vrot.slane %v2544_v9, 4  ;;  %v672_v22 = vshll.u32 %v442_v4, 16  ;;  %408 = vst [vmem:[#allocation2 + $0xa8] sm:$0xff] %v360_v32   ;;  %6213 = vmatprep.subr.bf16.mxu1 %v6915_v63 }
  0x59   : > { %v2554_v21 = vor.u32 %v2553_v10, %v2549_v3  ;;  %v676_v23 = vshrl.u32 %v442_v4, 16  ;;  %v661_v17 = vsel %vm7223_vm2, %v656_v13, %v660_v56  ;;  %v665_v27 = vrot.slane %v663_v14, 4  ;;  %v7410_v4 = vld [vmem:[#allocation2 + $0x64] sm:$0xf]  ;;  %6214 = vmatpush3.bf16.msra.mxu1 %v6915_v63  ;;  %v484_v63 = vld [vmem:[#allocation2 + $0x74] sm:$0x1] }
  0x5a   : > { %v668_v28 = vrot.slane %v666_v15, 5  ;;  %v682_v30 = vshll.u32 %v482_v11, 16  ;;  %v5562_v33 = vcombine.low %v651_v7, %v661_v17  ;;  %v2550_v34 = vsel %vm7223_vm2, %v2545_v19, %v2549_v3  ;;  %v483_v19 = vld [vmem:[#allocation2 + $0x68] sm:$0x1] }
  0x5b   : > { %v2555_v26 = vrot.slane %v2554_v21, 4  ;;  %v674_v39 = vrot.slane %v672_v22, 5  ;;  %v678_v49 = vrot.slane %v676_v23, 4  ;;  %v2562_v51 = vshrl.u32 %v2366_v8, 16  ;;  %v3099_v22 = vld [vmem:[#allocation2 + $0xc] sm:$0xe] }
  0x5c   : > { %v669_v47 = vor.u32 %v668_v28, %v665_v27  ;;  %v684_v50 = vrot.slane %v682_v30, 5  ;;  %6179 = vmatprep.mubr.bf16.mxu1 %v5562_v33  ;;  %v2565_v58 = vshll.u32 %v2366_v8, 16  ;;  %v2571_v59 = vshll.u32 %v7393_v31, 16  ;;  %v7422_v28 = vld [vmem:[#allocation2 + $0x6c] sm:$0xf]  ;;  %v7427_v30 = vld [vmem:[%s8795_s2 + $0x80] sm:$0xff]  }
  0x5d   : > { %v2560_v56 = vsel %vm7223_vm2, %v2555_v26, %v2559_v45  ;;  %v2575_v60 = vshrl.u32 %v7393_v31, 16  ;;  %v679_v3 = vor.u32 %v678_v49, %v674_v39  ;;  %v2564_v62 = vrot.slane %v2562_v51, 4  ;;  %v356_v45 = vld [vmem:[%s7174_s20 + $0x98] sm:$0x1]  ;;  %6247 = vmatprep.subr.bf16.mxu1 %v7427_v30 }
  0x5e   : > { %v5722_v1 = vcombine.low %v2550_v34, %v2560_v56  ;;  %v670_v2 = vrot.slane %v669_v47, 4  ;;  %v2567_v46 = vrot.slane %v2565_v58, 5  ;;  %v2573_v5 = vrot.slane %v2571_v59, 5  ;;  %404 = vst [vmem:[#allocation2 + $0x98] sm:$0x1] %v356_v45 }
  0x5f   : > { %v2577_v7 = vrot.slane %v2575_v60, 4  ;;  %v2581_v9 = vshll.u32 %v7398_v43, 16  ;;  %v680_v11 = vrot.slane %v679_v3, 4  ;;  %v687_v12 = vshrl.u32 %v7405_v61, 16  ;;  %v359_v56 = vld [vmem:[%s7174_s20 + $0xa4] sm:$0x1] }
  0x60   : > { %6371 = vmatprep.mubr.bf16.mxu0 %v5722_v1  ;;  %v675_v10 = vsel %vm7223_vm2, %v670_v2, %v674_v39  ;;  %v690_v13 = vshll.u32 %v7405_v61, 16  ;;  %v2568_v14 = vor.u32 %v2567_v46, %v2564_v62  ;;  %v696_v21 = vshll.u32 %v7410_v4, 16  ;;  %v7429_v39 = vld [vmem:[#allocation2 + $0x70] sm:$0xf]  ;;  %v3100_v2 = vld [vmem:[#allocation2 + $0x18] sm:$0xe] }
  0x61   : > { %v2578_v15 = vor.u32 %v2577_v7, %v2573_v5  ;;  %v2583_v8 = vrot.slane %v2581_v9, 5  ;;  %v685_v23 = vsel %vm7223_vm2, %v680_v11, %v684_v50  ;;  %v689_v25 = vrot.slane %v687_v12, 4  ;;  %407 = vst [vmem:[#allocation2 + $0xa4] sm:$0x1] %v359_v56  ;;  %v7448_v12 = vld [vmem:[#allocation2 + $0x78] sm:$0xf] }
  0x62   : > { %v692_v17 = vrot.slane %v690_v13, 5  ;;  %v700_v27 = vshrl.u32 %v7410_v4, 16  ;;  %v5563_v32 = vcombine.low %v675_v10, %v685_v23  ;;  %v2569_v33 = vrot.slane %v2568_v14, 4 }
  0x63   : > { %v2579_v34 = vrot.slane %v2578_v15, 4  ;;  %v698_v26 = vrot.slane %v696_v21, 5  ;;  %v706_v50 = vshll.u32 %v483_v19, 16  ;;  %v5740_v54 = vrot.slane %v3099_v22, 9  ;;  %v7454_v15 = vld [vmem:[#allocation2 + $0x7c] sm:$0xf] }
  0x64   : > { %v693_v47 = vor.u32 %v692_v17, %v689_v25  ;;  %v702_v49 = vrot.slane %v700_v27, 4  ;;  %6180 = vmatmul.mubr.bf16.gmra.mrb[12].mxu1 %v5563_v32  ;;  %v2574_v58 = vsel %vm7223_vm2, %v2569_v33, %v2573_v5  ;;  %v3165_v60 = vrot.slane %v7204_v35, 5  ;;  %v362_v32 = vld [vmem:[%s7174_s20 + $0xb0] sm:$0x1] }
  0x65   : > { %v2584_v59 = vsel %vm7223_vm2, %v2579_v34, %v2583_v8  ;;  %v711_v1 = vshrl.u32 %v7422_v28, 16  ;;  %v708_v7 = vrot.slane %v706_v50, 5  ;;  %v714_v5 = vshll.u32 %v7422_v28, 16  ;;  %410 = vst [vmem:[#allocation2 + $0xb0] sm:$0x1] %v362_v32 }
  0x66   : > { %v5723_v3 = vcombine.low %v2574_v58, %v2584_v59  ;;  %v694_v62 = vrot.slane %v693_v47, 4  ;;  %v703_v46 = vor.u32 %v702_v49, %v698_v26  ;;  %v3166_v9 = vsel %vm7433_vm5, %v5740_v54, %v3165_v60 }
  0x67   : > { %v3167_v10 = vrot.slane %v3165_v60, 4  ;;  %v713_v11 = vrot.slane %v711_v1, 4  ;;  %v720_v45 = vshll.u32 %v7429_v39, 16  ;;  %v724_v14 = vshrl.u32 %v7429_v39, 16  ;;  %v365_v60 = vld [vmem:[%s7174_s20 + $0xbc] sm:$0x1]  ;;  %s7490_s20 = scalar_lea.vmem %s8794_s1, %s6856_s29 }
  0x68   : > { %6372 = vmatmul.mubr.bf16.gmra.mrb[12].mxu0 %v5723_v3  ;;  %v699_v35 = vsel %vm7223_vm2, %v694_v62, %v698_v26  ;;  %v704_v13 = vrot.slane %v703_v46, 4  ;;  %v716_v19 = vrot.slane %v714_v5, 5  ;;  %v730_v21 = vshll.u32 %v484_v63, 16  ;;  %413 = vst [vmem:[#allocation2 + $0xbc] sm:$0x1] %v365_v60 }
  0x69   : > { %v3169_v8 = vsel %vm7433_vm5, %v3167_v10, %v3168_v18  ;;  %v5741_v22 = vrot.slane %v3100_v2, 9  ;;  %v722_v17 = vrot.slane %v720_v45, 5  ;;  %v726_v27 = vrot.slane %v724_v14, 4  ;;  %v485_v18 = vld [vmem:[#allocation2 + $0x80] sm:$0x1] }
  0x6a   : > { %v709_v23 = vsel %vm7223_vm2, %v704_v13, %v708_v7  ;;  %v5772_v25 = vcombine.low %v3166_v9, %v3169_v8  ;;  %v717_v34 = vor.u32 %v716_v19, %v713_v11  ;;  %v732_v26 = vrot.slane %v730_v21, 5  ;;  %v7481_v2 = vld [vmem:[#allocation2 + $0x84] sm:$0xf]  ;;  %v7485_v9 = vld [vmem:[#allocation2 + $0x88] sm:$0xf]  ;;  %v6914_v13 = vld [vmem:[%s8795_s2 + $0x190] sm:$0xff]  }
  0x6b   : > { %v5564_v33 = vcombine.low %v699_v35, %v709_v23  ;;  %v3173_v36 = vsel %vm7433_vm5, %v5741_v22, %v3172_v41  ;;  %v727_v47 = vor.u32 %v726_v27, %v722_v17  ;;  %v3176_v49 = vsel %vm7433_vm5, %v7255_v52, %v3175_v42  ;;  %v6912_v41 = vld [vmem:[%s8795_s2 + $0x188] sm:$0xff]   ;;  %v414_v27 = vld [vmem:[%s7490_s20] sm:$0xff]  }
  0x6c   : > { %6407 = vmatprep.mubr.bf16.mxu0 %v5772_v25  ;;  %v735_v50 = vshrl.u32 %v7448_v12, 16  ;;  %v738_v54 = vshll.u32 %v7448_v12, 16  ;;  %v718_v56 = vrot.slane %v717_v34, 4  ;;  %v5773_v58 = vcombine.low %v3173_v36, %v3176_v49  ;;  %v486_v19 = vld [vmem:[#allocation2 + $0x8c] sm:$0x1]  ;;  %421 = vst [vmem:[#allocation2 + $0xc0] sm:$0xff] %v414_v27  }
  0x6d   : > { %6183 = vmatprep.mubr.bf16.mxu1 %v5564_v33  ;;  %v744_v59 = vshll.u32 %v7454_v15, 16  ;;  %v748_v20 = vshrl.u32 %v7454_v15, 16  ;;  %v728_v63 = vrot.slane %v727_v47, 4  ;;  %v754_v1 = vshll.u32 %v485_v18, 16  ;;  %v7511_v47 = vld [vmem:[#allocation2 + $0x90] sm:$0xf] }
  0x6e   : > { %v737_v42 = vrot.slane %v735_v50, 4  ;;  %v740_v52 = vrot.slane %v738_v54, 5  ;;  %v723_v3 = vsel %vm7223_vm2, %v718_v56, %v722_v17  ;;  %v5742_v7 = vrot.slane %v3101_v16, 9  ;;  %v3102_v17 = vld [vmem:[#allocation2 + $0x30] sm:$0xe] }
  0x6f   : > { %v746_v62 = vrot.slane %v744_v59, 5  ;;  %v750_v46 = vrot.slane %v748_v20, 4  ;;  %v733_v10 = vsel %vm7223_vm2, %v728_v63, %v732_v26  ;;  %v756_v5 = vrot.slane %v754_v1, 5  ;;  %v7515_v56 = vld [vmem:[#allocation2 + $0x94] sm:$0xf] }
  0x70   : > { %6408 = vmatmul.mubr.bf16.vlgmr.msra.gmra.mrb[0].mxu0 %v5773_v58  ;;  %v741_v11 = vor.u32 %v740_v52, %v737_v42  ;;  %v3179_v35 = vrot.slane %v7260_v0, 5  ;;  %v5565_v45 = vcombine.low %v723_v3, %v733_v10  ;;  %v3182_v8 = vrot.slane %v7265_v6, 5  ;;  %v6916_v58 = vld [vmem:[%s8795_s2 + $0x198] sm:$0xff]  }
  0x71   : > { %6440 = vmatpush3.bf16.msra.mxu0 %v7368_v24  ;;  %v751_v14 = vor.u32 %v750_v46, %v746_v62  ;;  %v759_v21 = vshrl.u32 %v7481_v2, 16  ;;  %v762_v0 = vshll.u32 %v7481_v2, 16  ;;  %v768_v24 = vshll.u32 %v7485_v9, 16  ;;  %v487_v46 = vld [vmem:[#allocation2 + $0x98] sm:$0x1] }
  0x72   : > { %v742_v22 = vrot.slane %v741_v11, 4  ;;  %v3180_v23 = vsel %vm7433_vm5, %v5742_v7, %v3179_v35  ;;  %v3181_v25 = vrot.slane %v3179_v35, 4  ;;  %6441 = vmatprep.subr.bf16.mxu0 %v6912_v41  ;;  %6184 = vmatmul.mubr.bf16.gmra.mrb[16].mxu1 %v5565_v45  ;;  %v772_v6 = vshrl.u32 %v7485_v9, 16 }
  0x73   : > { %v752_v32 = vrot.slane %v751_v14, 4  ;;  %v761_v33 = vrot.slane %v759_v21, 4  ;;  %v764_v36 = vrot.slane %v762_v0, 5  ;;  %v778_v18 = vshll.u32 %v486_v19, 16  ;;  %v7528_v14 = vld [vmem:[#allocation2 + $0x9c] sm:$0xf] }
  0x74   : > { %v747_v34 = vsel %vm7223_vm2, %v742_v22, %v746_v62  ;;  %v3183_v26 = vsel %vm7433_vm5, %v3181_v25, %v3182_v8  ;;  %v770_v54 = vrot.slane %v768_v24, 5  ;;  %v774_v16 = vrot.slane %v772_v6, 4  ;;  %v6920_v22 = vld [vmem:[%s8795_s2 + $0x1a0] sm:$0xff]   ;;  %v6924_v6 = vld [vmem:[%s8795_s2 + $0x1a8] sm:$0xff]  }
  0x75   : > { %v757_v49 = vsel %vm7223_vm2, %v752_v32, %v756_v5  ;;  %v5774_v50 = vcombine.low %v3180_v23, %v3183_v26  ;;  %6442 = vmatpush3.bf16.msra.mxu0 %v6912_v41  ;;  %v765_v20 = vor.u32 %v764_v36, %v761_v33  ;;  %v780_v60 = vrot.slane %v778_v18, 5  ;;  %v3103_v41 = vld [vmem:[#allocation2 + $0x3c] sm:$0xe] }
  0x76   : > { %v5566_v59 = vcombine.low %v747_v34, %v757_v49  ;;  %v5743_v63 = vrot.slane %v3102_v17, 9  ;;  %6443 = vmatprep.subr.bf16.mxu0 %v6914_v13  ;;  %v775_v42 = vor.u32 %v774_v16, %v770_v54  ;;  %v3186_v52 = vrot.slane %v7283_v40, 5 }
  0x77   : > { %6411 = vmatprep.mubr.bf16.mxu0 %v5774_v50  ;;  %v3189_v1 = vrot.slane %v7292_v57, 5  ;;  %v783_v3 = vshrl.u32 %v7511_v47, 16  ;;  %v766_v62 = vrot.slane %v765_v20, 4  ;;  %v786_v7 = vshll.u32 %v7511_v47, 16 }
  0x78   : > { %6187 = vmatprep.mubr.bf16.mxu1 %v5566_v59  ;;  %v792_v10 = vshll.u32 %v7515_v56, 16  ;;  %v796_v11 = vshrl.u32 %v7515_v56, 16  ;;  %v776_v5 = vrot.slane %v775_v42, 4  ;;  %v3187_v35 = vsel %vm7433_vm5, %v5743_v63, %v3186_v52 }
  0x79   : > { %v3188_v45 = vrot.slane %v3186_v52, 4  ;;  %v785_v40 = vrot.slane %v783_v3, 4  ;;  %6444 = vmatpush3.bf16.msra.mxu0 %v6914_v13  ;;  %v771_v57 = vsel %vm7223_vm2, %v766_v62, %v770_v54  ;;  %v788_v8 = vrot.slane %v786_v7, 5  ;;  %v7539_v13 = vld [vmem:[#allocation2 + $0xa0] sm:$0xf] }
  0x7a   : > { %v794_v19 = vrot.slane %v792_v10, 5  ;;  %v798_v21 = vrot.slane %v796_v11, 4  ;;  %6445 = vmatprep.subr.bf16.mxu0 %v6916_v58  ;;  %v781_v23 = vsel %vm7223_vm2, %v776_v5, %v780_v60  ;;  %v802_v0 = vshll.u32 %v487_v46, 16  ;;  %v488_v54 = vld [vmem:[#allocation2 + $0xa4] sm:$0x1]  ;;  %v6928_v10 = vld [vmem:[%s8795_s2 + $0x1b0] sm:$0xff]  }
  0x7b   : > { %v3190_v25 = vsel %vm7433_vm5, %v3188_v45, %v3189_v1  ;;  %v5744_v17 = vrot.slane %v3103_v41, 9  ;;  %v5567_v27 = vcombine.low %v771_v57, %v781_v23  ;;  %v789_v33 = vor.u32 %v788_v8, %v785_v40  ;;  %v7556_v3 = vld [vmem:[#allocation2 + $0xa8] sm:$0xf]  ;;  %v7564_v40 = vld [vmem:[#allocation2 + $0xac] sm:$0xf] }
  0x7c   : > { %v5775_v32 = vcombine.low %v3187_v35, %v3190_v25  ;;  %v799_v24 = vor.u32 %v798_v21, %v794_v19  ;;  %v804_v34 = vrot.slane %v802_v0, 5  ;;  %v3193_v26 = vrot.slane %v7314_v38, 5  ;;  %v489_v57 = vld [vmem:[#allocation2 + $0xb0] sm:$0x1]  ;;  %v3105_v23 = vld [vmem:[#allocation2 + $0x54] sm:$0xe] }
  0x7d   : > { %v3196_v36 = vrot.slane %v7320_v55, 5  ;;  %v807_v18 = vshrl.u32 %v7528_v14, 16  ;;  %6446 = vmatpush3.bf16.msra.mxu0 %v6916_v58  ;;  %6188 = vmatmul.mubr.bf16.gmra.mrb[20].mxu1 %v5567_v27  ;;  %v790_v49 = vrot.slane %v789_v33, 4  ;;  %v810_v16 = vshll.u32 %v7528_v14, 16  ;;  %v3104_v55 = vld [vmem:[#allocation2 + $0x48] sm:$0xe] }
  0x7e   : > { %6412 = vmatmul.mubr.bf16.gmra.mrb[4].mxu0 %v5775_v32  ;;  %v800_v50 = vrot.slane %v799_v24, 4  ;;  %v816_v59 = vshll.u32 %v7539_v13, 16  ;;  %v3194_v20 = vsel %vm7433_vm5, %v5744_v17, %v3193_v26  ;;  %v3195_v60 = vrot.slane %v3193_v26, 4  ;;  %6447 = vmatprep.subr.bf16.mxu0 %v6920_v22 }
  0x7f   : > { %v809_v63 = vrot.slane %v807_v18, 4  ;;  %v820_v38 = vshrl.u32 %v7539_v13, 16  ;;  %v795_v58 = vsel %vm7223_vm2, %v790_v49, %v794_v19  ;;  %v812_v52 = vrot.slane %v810_v16, 5  ;;  %v7579_v49 = vld [vmem:[#allocation2 + $0xb8] sm:$0xf] }
  0x80   : > { %v805_v42 = vsel %vm7223_vm2, %v800_v50, %v804_v34  ;;  %v818_v1 = vrot.slane %v816_v59, 5  ;;  %v3197_v62 = vsel %vm7433_vm5, %v3195_v60, %v3196_v36  ;;  %v826_v7 = vshll.u32 %v488_v54, 16  ;;  %v7573_v34 = vld [vmem:[#allocation2 + $0xb4] sm:$0xf]  ;;  %v6932_v50 = vld [vmem:[%s8795_s2 + $0x1b8] sm:$0xff]  }
  0x81   : > { %v5568_v41 = vcombine.low %v795_v58, %v805_v42  ;;  %v822_v46 = vrot.slane %v820_v38, 4  ;;  %6448 = vmatpush3.bf16.msra.mxu0 %v6920_v22  ;;  %v5776_v11 = vcombine.low %v3194_v20, %v3197_v62  ;;  %v813_v5 = vor.u32 %v812_v52, %v809_v63 }
  0x82   : > { %v5745_v35 = vrot.slane %v3104_v55, 9  ;;  %v3200_v45 = vrot.slane %v7342_v37, 5  ;;  %6449 = vmatprep.subr.bf16.mxu0 %v6924_v6  ;;  %v828_v19 = vrot.slane %v826_v7, 5  ;;  %v3203_v21 = vrot.slane %v7345_v48, 5  ;;  %v3106_v55 = vld [vmem:[#allocation2 + $0x60] sm:$0xe] }
  0x83   : > { %6191 = vmatprep.mubr.bf16.mxu1 %v5568_v41  ;;  %v823_v8 = vor.u32 %v822_v46, %v818_v1  ;;  %v831_v22 = vshrl.u32 %v7556_v3, 16  ;;  %6415 = vmatprep.mubr.bf16.mxu0 %v5776_v11  ;;  %v814_v25 = vrot.slane %v813_v5, 4  ;;  %v834_v37 = vshll.u32 %v7556_v3, 16  ;;  %v3107_v5 = vld [vmem:[#allocation2 + $0x6c] sm:$0xe] }
  0x84   : > { %v3201_v0 = vsel %vm7433_vm5, %v5745_v35, %v3200_v45  ;;  %v3202_v17 = vrot.slane %v3200_v45, 4  ;;  %v840_v33 = vshll.u32 %v7564_v40, 16  ;;  %v844_v24 = vshrl.u32 %v7564_v40, 16 }
  0x85   : > { %v824_v27 = vrot.slane %v823_v8, 4  ;;  %v833_v32 = vrot.slane %v831_v22, 4  ;;  %6450 = vmatpush3.bf16.msra.mxu0 %v6924_v6  ;;  %v819_v48 = vsel %vm7223_vm2, %v814_v25, %v818_v1  ;;  %v836_v36 = vrot.slane %v834_v37, 5  ;;  %v490_v1 = vld [vmem:[#allocation2 + $0xbc] sm:$0x1] }
  0x86   : > { %v3204_v26 = vsel %vm7433_vm5, %v3202_v17, %v3203_v21  ;;  %v850_v18 = vshll.u32 %v489_v57, 16  ;;  %6451 = vmatprep.subr.bf16.mxu0 %v6928_v10  ;;  %v842_v6 = vrot.slane %v840_v33, 5  ;;  %v846_v59 = vrot.slane %v844_v24, 4  ;;  %v7597_v57 = vld [vmem:[%s8795_s2 + $0x1c0] sm:$0xff]   ;;  %v2370_v37 = vld [vmem:[#allocation2 + $0x70] sm:$0xf] }
  0x87   : > { %v829_v54 = vsel %vm7223_vm2, %v824_v27, %v828_v19  ;;  %v5777_v16 = vcombine.low %v3201_v0, %v3204_v26  ;;  %v837_v60 = vor.u32 %v836_v36, %v833_v32  ;;  %v5746_v38 = vrot.slane %v3105_v23, 9  ;;  %v416_v23 = vld [vmem:[%s7490_s20 + $0x8] sm:$0x1]  ;;  %v2371_v27 = vld [vmem:[#allocation2 + $0x74] sm:$0x1] }
  0x88   : > { %v5569_v20 = vcombine.low %v819_v48, %v829_v54  ;;  %v852_v63 = vrot.slane %v850_v18, 5  ;;  %v847_v58 = vor.u32 %v846_v59, %v842_v6  ;;  %v3207_v42 = vrot.slane %v7370_v29, 5  ;;  %423 = vst [vmem:[#allocation2 + $0xc8] sm:$0x1] %v416_v23  ;;  %v3110_v23 = vld [vmem:[#allocation2 + $0x90] sm:$0xe] }
  0x89   : > { %6416 = vmatmul.mubr.bf16.gmra.mrb[8].mxu0 %v5777_v16  ;;  %v3210_v52 = vrot.slane %v7376_v44, 5  ;;  %v855_v41 = vshrl.u32 %v7573_v34, 16  ;;  %v838_v62 = vrot.slane %v837_v60, 4  ;;  %v858_v46 = vshll.u32 %v7573_v34, 16  ;;  %v3108_v16 = vld [vmem:[#allocation2 + $0x78] sm:$0xe] }
  0x8a   : > { %6192 = vmatmul.mubr.bf16.gmra.mrb[24].mxu1 %v5569_v20  ;;  %v864_v7 = vshll.u32 %v7579_v49, 16  ;;  %v868_v11 = vshrl.u32 %v7579_v49, 16  ;;  %6452 = vmatpush3.bf16.msra.mxu0 %v6928_v10  ;;  %v848_v35 = vrot.slane %v847_v58, 4  ;;  %v3208_v29 = vsel %vm7433_vm5, %v5746_v38, %v3207_v42  ;;  %v7611_v38 = vld [vmem:[#allocation2 + $0x80] sm:$0x1] }
  0x8b   : > { %v3209_v45 = vrot.slane %v3207_v42, 4  ;;  %v857_v44 = vrot.slane %v855_v41, 4  ;;  %6453 = vmatprep.subr.bf16.mxu0 %v6932_v50  ;;  %v843_v8 = vsel %vm7223_vm2, %v838_v62, %v842_v6  ;;  %v860_v19 = vrot.slane %v858_v46, 5  ;;  %v2376_v42 = vld [vmem:[#allocation2 + $0x88] sm:$0xf] }
  0x8c   : > { %v866_v21 = vrot.slane %v864_v7, 5  ;;  %v870_v22 = vrot.slane %v868_v11, 4  ;;  %v853_v10 = vsel %vm7223_vm2, %v848_v35, %v852_v63  ;;  %v874_v0 = vshll.u32 %v490_v1, 16  ;;  %v7609_v63 = vld [vmem:[#allocation2 + $0x7c] sm:$0xf] }
  0x8d   : > { %v3211_v25 = vsel %vm7433_vm5, %v3209_v45, %v3210_v52  ;;  %v5747_v17 = vrot.slane %v3106_v55, 9  ;;  %v5570_v32 = vcombine.low %v843_v8, %v853_v10  ;;  %v861_v24 = vor.u32 %v860_v19, %v857_v44  ;;  %v7001_v55 = vld [vmem:[#allocation2] sm:$0xf]  ;;  %v2377_v46 = vld [vmem:[#allocation2 + $0x8c] sm:$0x1] }
  0x8e   : > { %v5778_v33 = vcombine.low %v3208_v29, %v3211_v25  ;;  %v871_v48 = vor.u32 %v870_v22, %v866_v21  ;;  %6454 = vmatpush3.bf16.msra.mxu0 %v6932_v50  ;;  %v876_v26 = vrot.slane %v874_v0, 5  ;;  %v3214_v36 = vrot.slane %v7393_v31, 5  ;;  %v2379_v44 = vld [vmem:[#allocation2 + $0x94] sm:$0xf]  ;;  %v2380_v22 = vld [vmem:[#allocation2 + $0x98] sm:$0x1] }
  0x8f   : > { %v3217_v18 = vrot.slane %v7398_v43, 5  ;;  %v5748_v54 = vrot.slane %v3107_v5, 9  ;;  %6487 = vmatprep.subr.bf16.mxu0 %v7597_v57  ;;  %6195 = vmatprep.mubr.bf16.mxu1 %v5570_v32  ;;  %v862_v6 = vrot.slane %v861_v24, 4  ;;  %v3221_v20 = vrot.slane %v2370_v37, 5  ;;  %v7615_v43 = vld [vmem:[#allocation2 + $0x4] sm:$0xf] }
  0x90   : > { %6419 = vmatprep.mubr.bf16.mxu0 %v5778_v33  ;;  %v872_v59 = vrot.slane %v871_v48, 4  ;;  %v3224_v60 = vrot.slane %v2371_v27, 5  ;;  %v3215_v50 = vsel %vm7433_vm5, %v5747_v17, %v3214_v36  ;;  %v3216_v31 = vrot.slane %v3214_v36, 4  ;;  %v3109_v5 = vld [vmem:[#allocation2 + $0x84] sm:$0xe] }
  0x91   : > { %v5580_v58 = vcombine.low %v7001_v55, %v7615_v43  ;;  %v867_v52 = vsel %vm7223_vm2, %v862_v6, %v866_v21  ;;  %v3222_v41 = vsel %vm7433_vm5, %v5748_v54, %v3221_v20  ;;  %v3223_v62 = vrot.slane %v3221_v20, 4  ;;  %v2382_v0 = vld [vmem:[#allocation2 + $0xa0] sm:$0xf]  ;;  %v2383_v32 = vld [vmem:[#allocation2 + $0xa4] sm:$0x1]  ;;  %v6923_v20 = vld [vmem:[%s8795_s2 + $0x88] sm:$0xff]  }
  0x92   : > { %v877_v1 = vsel %vm7223_vm2, %v872_v59, %v876_v26  ;;  %v3218_v11 = vsel %vm7433_vm5, %v3216_v31, %v3217_v18  ;;  %v5749_v45 = vrot.slane %v3108_v16, 9  ;;  %v3228_v19 = vrot.slane %v7609_v63, 5  ;;  %v7003_v48 = vld [vmem:[#allocation2 + $0xc] sm:$0xf]  ;;  %v7634_v26 = vld [vmem:[#allocation2 + $0x10] sm:$0xf] }
  0x93   : > { %v5571_v7 = vcombine.low %v867_v52, %v877_v1  ;;  %v5779_v35 = vcombine.low %v3215_v50, %v3218_v11  ;;  %v3225_v29 = vsel %vm7433_vm5, %v3223_v62, %v3224_v60  ;;  %v3231_v21 = vrot.slane %v7611_v38, 5  ;;  %v3111_v16 = vld [vmem:[#allocation2 + $0x9c] sm:$0xe]  ;;  %v2385_v31 = vld [vmem:[#allocation2 + $0xac] sm:$0xf] }
  0x94   : > { %v5780_v8 = vcombine.low %v3222_v41, %v3225_v29  ;;  %v5750_v10 = vrot.slane %v3109_v5, 9  ;;  %v3235_v25 = vrot.slane %v2376_v42, 5  ;;  %v3229_v17 = vsel %vm7433_vm5, %v5749_v45, %v3228_v19  ;;  %v7005_v55 = vld [vmem:[#allocation2 + $0x18] sm:$0xf]  ;;  %v2386_v5 = vld [vmem:[#allocation2 + $0xb0] sm:$0x1] }
  0x95   : > { %6196 = vmatmul.mubr.bf16.gmra.mrb[28].mxu1 %v5571_v7  ;;  %6420 = vmatmul.mubr.bf16.gmra.mrb[12].mxu0 %v5779_v35  ;;  %v3230_v37 = vrot.slane %v3228_v19, 4  ;;  %v3238_v27 = vrot.slane %v2377_v46, 5  ;;  %v5581_v36 = vcombine.low %v7003_v48, %v7634_v26  ;;  %v3242_v54 = vrot.slane %v2379_v44, 5  ;;  %v2388_v7 = vld [vmem:[#allocation2 + $0xb8] sm:$0xf]  ;;  %v6927_v44 = vld [vmem:[%s8795_s2 + $0x90] sm:$0xff]  }
  0x96   : > { %6215 = vmatprep.mubr.bf16.mxu1 %v5580_v58  ;;  %6423 = vmatprep.mubr.bf16.mxu0 %v5780_v8  ;;  %v3236_v33 = vsel %vm7433_vm5, %v5750_v10, %v3235_v25  ;;  %v3237_v24 = vrot.slane %v3235_v25, 4  ;;  %v5751_v60 = vrot.slane %v3110_v23, 9  ;;  %v3245_v50 = vrot.slane %v2380_v22, 5  ;;  %v7644_v58 = vld [vmem:[#allocation2 + $0x1c] sm:$0xf] }
  0x97   : > { %v3232_v18 = vsel %vm7433_vm5, %v3230_v37, %v3231_v21  ;;  %v5582_v42 = vcombine.low %v7005_v55, %v7644_v58  ;;  %v3244_v1 = vrot.slane %v3242_v54, 4  ;;  %v3249_v41 = vrot.slane %v2382_v0, 5  ;;  %v3112_v35 = vld [vmem:[#allocation2 + $0xa8] sm:$0xe]  ;;  %v3113_v19 = vld [vmem:[#allocation2 + $0xb4] sm:$0xe] }
  0x98   : > { %v5781_v6 = vcombine.low %v3229_v17, %v3232_v18  ;;  %v3239_v59 = vsel %vm7433_vm5, %v3237_v24, %v3238_v27  ;;  %v5752_v62 = vrot.slane %v3111_v16, 9  ;;  %v3252_v46 = vrot.slane %v2383_v32, 5  ;;  %v7007_v23 = vld [vmem:[#allocation2 + $0x24] sm:$0xf]  ;;  %v7659_v10 = vld [vmem:[#allocation2 + $0x28] sm:$0xf] }
  0x99   : > { %v5782_v52 = vcombine.low %v3236_v33, %v3239_v59  ;;  %v3251_v11 = vrot.slane %v3249_v41, 4  ;;  %v3243_v29 = vsel %vm7433_vm5, %v5751_v60, %v3242_v54  ;;  %v3246_v45 = vsel %vm7433_vm5, %v3244_v1, %v3245_v50  ;;  %v2389_v0 = vld [vmem:[#allocation2 + $0xbc] sm:$0x1]  ;;  %v7009_v37 = vld [vmem:[#allocation2 + $0x30] sm:$0xf]  ;;  %v6936_v55 = vld [vmem:[%s8795_s2 + $0xa0] sm:$0xff]  }
  0x9a   : > { %v3256_v8 = vrot.slane %v2385_v31, 5  ;;  %v3250_v21 = vsel %vm7433_vm5, %v5752_v62, %v3249_v41  ;;  %v3263_v22 = vrot.slane %v2388_v7, 5  ;;  %v5583_v25 = vcombine.low %v7007_v23, %v7659_v10  ;;  %v7662_v27 = vld [vmem:[#allocation2 + $0x34] sm:$0xf]  ;;  %v6931_v48 = vld [vmem:[%s8795_s2 + $0x98] sm:$0xff]  }
  0x9b   : > { %v5783_v17 = vcombine.low %v3243_v29, %v3246_v45  ;;  %v5584_v32 = vcombine.low %v7009_v37, %v7662_v27  ;;  %v5753_v33 = vrot.slane %v3112_v35, 9  ;;  %v3259_v24 = vrot.slane %v2386_v5, 5  ;;  %v3114_v50 = vld [vmem:[#allocation2 + $0xc0] sm:$0xe]  ;;  %v2392_v1 = vld [vmem:[#allocation2 + $0xc8] sm:$0x1] }
  0x9c   : > { %v3258_v54 = vrot.slane %v3256_v8, 4  ;;  %v5754_v16 = vrot.slane %v3113_v19, 9  ;;  %v3266_v59 = vrot.slane %v2389_v0, 5  ;;  %v7011_v41 = vld [vmem:[#allocation2 + $0x3c] sm:$0xf]  ;;  %v5755_v29 = vrot.slane %v3114_v50, 9 }
  0x9d   : > { %6216 = vmatmul.mubr.bf16.vlgmr.msra.gmra.mrb[0].mxu1 %v5581_v36  ;;  %6424 = vmatmul.mubr.bf16.gmra.mrb[16].mxu0 %v5781_v6  ;;  %v2391_v36 = vld [vmem:[#allocation2 + $0xc4] sm:$0xf]  ;;  %v3265_v6 = vrot.slane %v3263_v22, 4  ;;  %v7679_v62 = vld [vmem:[#allocation2 + $0x40] sm:$0xf]  ;;  %v6942_v19 = vld [vmem:[%s8795_s2 + $0xa8] sm:$0xff]   ;;  %v5588_v37 = vcombine.low %v7405_v61, %v7410_v4 }
  0x9e   : > { %6248 = vmatpush3.bf16.msra.mxu1 %v7427_v30  ;;  %6219 = vmatprep.mubr.bf16.mxu1 %v5582_v42  ;;  %v3253_v30 = vsel %vm7433_vm5, %v3251_v11, %v3252_v46  ;;  %v3260_v60 = vsel %vm7433_vm5, %v3258_v54, %v3259_v24  ;;  %v3270_v31 = vrot.slane %v2391_v36, 5  ;;  %v3264_v42 = vsel %vm7433_vm5, %v5754_v16, %v3263_v22  ;;  %v7013_v11 = vld [vmem:[#allocation2 + $0x48] sm:$0xf]  ;;  %v7682_v5 = vld [vmem:[#allocation2 + $0x4c] sm:$0xf]  ;;  %v6948_v22 = vld [vmem:[%s8795_s2 + $0xb0] sm:$0xff]  }
  0x9f   : > { %6427 = vmatprep.mubr.bf16.mxu0 %v5782_v52  ;;  %6249 = vmatprep.subr.bf16.mxu1 %v6923_v20  ;;  %v5784_v18 = vcombine.low %v3250_v21, %v3253_v30  ;;  %v3267_v52 = vsel %vm7433_vm5, %v3265_v6, %v3266_v59  ;;  %v5585_v46 = vcombine.low %v7011_v41, %v7679_v62  ;;  %v7015_v23 = vld [vmem:[#allocation2 + $0x54] sm:$0xf]  ;;  %v6934_v24 = vld [vmem:[#allocation2 + $0x18] sm:$0xff]   ;;  %v417_v36 = vld [vmem:[%s7490_s20 + $0xc] sm:$0xff]   ;;  %v1526_v16 = vrot.slane %v7615_v43, 5 }
  0xa0   : > { %v5586_v35 = vcombine.low %v7013_v11, %v7682_v5  ;;  %v5786_v45 = vcombine.low %v3264_v42, %v3267_v52  ;;  %v3271_v21 = vsel %vm7433_vm5, %v5755_v29, %v3270_v31  ;;  %424 = vst [vmem:[#allocation2 + $0xcc] sm:$0xff] %v417_v36   ;;  %v7714_v4 = vld [vmem:[%s8795_s2 + $0xc0] sm:$0xff]   ;;  %v1474_v6 = vld [vmem:[#allocation2 + $0xc] sm:$0xe]  ;;  %v7017_v59 = vld [vmem:[#allocation2 + $0x8] sm:$0x1]  ;;  %v5590_v41 = vcombine.low %v7448_v12, %v7454_v15 }
  0xa1   : > { %v1540_v42 = vrot.slane %v7644_v58, 5  ;;  %v1476_v43 = vld [vmem:[#allocation2 + $0x24] sm:$0xe]  ;;  %v5605_v11 = vrot.slane %v1474_v6, 9  ;;  %v7019_v12 = vld [vmem:[#allocation2 + $0x20] sm:$0x1] }
  0xa2   : > { %6250 = vmatpush3.bf16.msra.mxu1 %v6923_v20  ;;  %v3257_v20 = vsel %vm7433_vm5, %v5753_v33, %v3256_v8  ;;  %v3273_v8 = vrot.slane %v2392_v1, 5  ;;  %v2623_v33 = vshrl.u32 %v7609_v63, 16  ;;  %v6937_v1 = vld [vmem:[#allocation2 + $0x24] sm:$0xff]   ;;  %v1543_v15 = vrot.slane %v7019_v12, 5  ;;  %v3985_v6 = vld [vmem:[#allocation2 + $0x1c] sm:$0xf] }
  0xa3   : > { %6251 = vmatprep.subr.bf16.mxu1 %v6927_v44  ;;  %v5785_v7 = vcombine.low %v3257_v20, %v3260_v60  ;;  %v1529_v20 = vrot.slane %v7017_v59, 5  ;;  %v7018_v60 = vld [vmem:[#allocation2 + $0x14] sm:$0x1] }
  0xa4   : > { %v7709_v61 = vrot.slane %v2623_v33, 4  ;;  %v1536_v50 = vrot.slane %v7018_v60, 5  ;;  %v3984_v33 = vld [vmem:[#allocation2 + $0x18] sm:$0xf] }
  0xa5   : > { %6220 = vmatmul.mubr.bf16.gmra.mrb[4].mxu1 %v5583_v25  ;;  %6428 = vmatmul.mubr.bf16.gmra.mrb[20].mxu0 %v5783_v17  ;;  %v7695_v25 = vld [vmem:[#allocation2 + $0x58] sm:$0xf] }
  0xa6   : > { %6223 = vmatprep.mubr.bf16.mxu1 %v5584_v32  ;;  %6431 = vmatprep.mubr.bf16.mxu0 %v5784_v18  ;;  %v5587_v0 = vcombine.low %v7015_v23, %v7695_v25  ;;  %v2619_v32 = vshll.u32 %v7609_v63, 16  ;;  %v2629_v18 = vshll.u32 %v7611_v38, 16  ;;  %8821 = vst [vmem:[#allocation4_spill] sm:$0xff] %v7709_v61  ;;  %v1473_v63 = vld [vmem:[#allocation2] sm:$0xe]  ;;  %v1533_v38 = vrot.slane %v7634_v26, 5 }
  0xa7   : > { %6252 = vmatpush3.bf16.msra.mxu1 %v6927_v44  ;;  %v3272_v44 = vrot.slane %v3270_v31, 4  ;;  %v5589_v31 = vcombine.low %v7422_v28, %v7429_v39  ;;  %v6944_v28 = vld [vmem:[%s8795_s2 + $0x1c8] sm:$0xff]   ;;  %v1528_v39 = vrot.slane %v1526_v16, 4  ;;  %v1561_v23 = vrot.slane %v7679_v62, 5  ;;  %v7026_v26 = vld [vmem:[#allocation2 + $0x70] sm:$0xf] }
  0xa8   : > { %6253 = vmatprep.subr.bf16.mxu1 %v6931_v48  ;;  %v7707_v54 = vrot.slane %v2619_v32, 5  ;;  %v7721_v52 = vrot.slane %v2629_v18, 5  ;;  %v1535_v58 = vrot.slane %v1533_v38, 4  ;;  %v1568_v32 = vrot.slane %v7682_v5, 5  ;;  %v7021_v18 = vld [vmem:[#allocation2 + $0x38] sm:$0x1] }
  0xa9   : > { %v3274_v30 = vsel %vm7433_vm5, %v3272_v44, %v3273_v8  ;;  %v5592_v44 = vcombine.low %v7511_v47, %v7515_v56  ;;  %v1542_v8 = vrot.slane %v1540_v42, 4  ;;  %v7020_v56 = vld [vmem:[#allocation2 + $0x2c] sm:$0x1]  ;;  %v1563_v60 = vrot.slane %v1561_v23, 4 }
  0xaa   : > { %v5787_v17 = vcombine.low %v3271_v21, %v3274_v30  ;;  %8820 = vst [vmem:[#allocation3_spill] sm:$0xff] %v7707_v54  ;;  %8822 = vst [vmem:[#allocation5_spill] sm:$0xff] %v7721_v52  ;;  %v5594_v21 = vcombine.low %v7556_v3, %v7564_v40  ;;  %v1477_v30 = vld [vmem:[#allocation2 + $0x30] sm:$0xe]  ;;  %v7760_v62 = vsel %vm7433_vm5, %v1535_v58, %v1536_v50  ;;  %v7022_v50 = vld [vmem:[#allocation2 + $0x44] sm:$0x1] }
  0xab   : > { %6254 = vmatpush3.bf16.msra.mxu1 %v6931_v48  ;;  %v6954_v48 = vld [vmem:[%s8795_s2 + $0xb8] sm:$0xff]   ;;  %v5608_v36 = vrot.slane %v1477_v30, 9  ;;  %v1564_v5 = vrot.slane %v7022_v50, 5  ;;  %v7807_v30 = vld [vmem:[#allocation2 + $0x54] sm:$0xe] }
  0xac   : > { %6255 = vmatprep.subr.bf16.mxu1 %v6936_v55 }
  0xad   : > { %6224 = vmatmul.mubr.bf16.gmra.mrb[8].mxu1 %v5585_v46  ;;  %6432 = vmatmul.mubr.bf16.gmra.mrb[24].mxu0 %v5785_v7  ;;  %v6940_v46 = vld [vmem:[#allocation2 + $0x30] sm:$0xff]   ;;  %v5604_v7 = vrot.slane %v1473_v63, 9  ;;  %v1557_v63 = vrot.slane %v7021_v18, 5 }
  0xae   : > { %6227 = vmatprep.mubr.bf16.mxu1 %v5586_v35  ;;  %6435 = vmatprep.mubr.bf16.mxu0 %v5786_v45  ;;  %v1547_v35 = vrot.slane %v7659_v10, 5  ;;  %v5591_v45 = vcombine.low %v7481_v2, %v7485_v9  ;;  %v5607_v10 = vrot.slane %v1476_v43, 9  ;;  %v7749_v9 = vsel %vm7433_vm5, %v5605_v11, %v1533_v38  ;;  %v6943_v38 = vld [vmem:[#allocation2 + $0x3c] sm:$0xff]  }
  0xaf   : > { %6256 = vmatpush3.bf16.msra.mxu1 %v6936_v55  ;;  %v1475_v55 = vld [vmem:[#allocation2 + $0x18] sm:$0xe]  ;;  %v7745_v2 = vsel %vm7433_vm5, %v5604_v7, %v1526_v16  ;;  %v1479_v16 = vld [vmem:[#allocation2 + $0x48] sm:$0xe]  ;;  %v4033_v43 = vshrl.u32 %v3984_v33, 16  ;;  %v1570_v11 = vrot.slane %v1568_v32, 4 }
  0xb0   : > { %6257 = vmatprep.subr.bf16.mxu1 %v6942_v19  ;;  %v5606_v29 = vrot.slane %v1475_v55, 9  ;;  %v1549_v47 = vrot.slane %v1547_v35, 4  ;;  %v6956_v55 = vld [vmem:[%s8795_s2 + $0x1d8] sm:$0xff]   ;;  %v5610_v7 = vrot.slane %v1479_v16, 9 }
  0xb1   : > { %v6949_v16 = vld [vmem:[#allocation2 + $0x54] sm:$0xff]  }
  0xb3   : > { %6258 = vmatpush3.bf16.msra.mxu1 %v6942_v19  ;;  %v5593_v19 = vcombine.low %v7528_v14, %v7539_v13 }
  0xb4   : > { %6259 = vmatprep.subr.bf16.mxu1 %v6948_v22 }
  0xb5   : > { %6228 = vmatmul.mubr.bf16.gmra.mrb[12].mxu1 %v5587_v0  ;;  %6436 = vmatmul.mubr.bf16.gmra.mrb[28].mxu0 %v5787_v17  ;;  %v1550_v0 = vrot.slane %v7020_v56, 5  ;;  %v1478_v17 = vld [vmem:[#allocation2 + $0x3c] sm:$0xe] }
  0xb6   : > { %6231 = vmatprep.mubr.bf16.mxu1 %v5588_v37  ;;  %6455 = vmatprep.mubr.bf16.mxu0 %v6934_v24  ;;  %v7764_v37 = vsel %vm7433_vm5, %v5606_v29, %v1540_v42  ;;  %v7769_v24 = vsel %vm7433_vm5, %v1542_v8, %v1543_v15  ;;  %v5637_v29 = vcombine.low %v7749_v9, %v7760_v62  ;;  %v6960_v15 = vld [vmem:[%s8795_s2 + $0x1e0] sm:$0xff]  }
  0xb7   : > { %6260 = vmatpush3.bf16.msra.mxu1 %v6948_v22  ;;  %v1554_v22 = vrot.slane %v7662_v27, 5  ;;  %v6950_v27 = vld [vmem:[%s8795_s2 + $0x1d0] sm:$0xff]   ;;  %v7780_v42 = vsel %vm7433_vm5, %v1549_v47, %v1550_v0  ;;  %v4035_v0 = vrot.slane %v4033_v43, 4 }
  0xb8   : > { %6261 = vmatprep.subr.bf16.mxu1 %v6954_v48  ;;  %v3990_v43 = vld [vmem:[#allocation2 + $0x30] sm:$0xf] }
  0xb9   : > { %v1556_v59 = vrot.slane %v1554_v22, 4  ;;  %v7790_v12 = vsel %vm7433_vm5, %v5608_v36, %v1554_v22  ;;  %v3986_v22 = vld [vmem:[#allocation2 + $0x20] sm:$0x1]  ;;  %v4084_v47 = vshll.u32 %v3990_v43, 16 }
  0xbb   : > { %6262 = vmatpush3.bf16.msra.mxu1 %v6954_v48  ;;  %v7773_v48 = vsel %vm7433_vm5, %v5607_v10, %v1547_v35  ;;  %v4042_v35 = vshll.u32 %v3985_v6, 16  ;;  %v7805_v10 = vsel %vm7433_vm5, %v1563_v60, %v1564_v5  ;;  %v1481_v60 = vld [vmem:[#allocation2 + $0x60] sm:$0xe]  ;;  %v5611_v5 = vrot.slane %v7807_v30, 9  ;;  %v6964_v30 = vld [vmem:[%s8795_s2 + $0x1e8] sm:$0xff]  }
  0xbc   : > { %6295 = vmatprep.subr.bf16.mxu1 %v7714_v4 }
  0xbd   : > { %6232 = vmatmul.mubr.bf16.gmra.mrb[16].mxu1 %v5589_v31  ;;  %6456 = vmatmul.mubr.bf16.vlgmr.msra.gmra.mrb[0].mxu0 %v6937_v1  ;;  %v6946_v31 = vld [vmem:[#allocation2 + $0x48] sm:$0xff]   ;;  %v7023_v1 = vld [vmem:[#allocation2 + $0x50] sm:$0x1]  ;;  %v7822_v18 = vrot.slane %v4042_v35, 5 }
  0xbe   : > { %6235 = vmatprep.mubr.bf16.mxu1 %v5590_v41  ;;  %6488 = vmatpush3.bf16.msra.mxu0 %v7597_v57  ;;  %v7756_v57 = vsel %vm7433_vm5, %v1528_v39, %v1529_v20  ;;  %v5609_v20 = vrot.slane %v1478_v17, 9  ;;  %v1571_v41 = vrot.slane %v7023_v1, 5  ;;  %v4046_v39 = vshrl.u32 %v3985_v6, 16  ;;  %v3987_v17 = vld [vmem:[#allocation2 + $0x24] sm:$0xf] }
  0xbf   : > { %6459 = vmatprep.mubr.bf16.mxu0 %v6940_v46  ;;  %6489 = vmatprep.subr.bf16.mxu0 %v6944_v28  ;;  %v4036_v46 = vshll.u32 %v3984_v33, 16  ;;  %v5636_v58 = vcombine.low %v7745_v2, %v7756_v57  ;;  %v7816_v33 = vsel %vm7433_vm5, %v5610_v7, %v1568_v32  ;;  %v7025_v32 = vld [vmem:[#allocation2 + $0x64] sm:$0xf]  ;;  %v4057_v1 = vshrl.u32 %v3987_v17, 16  ;;  %v1482_v35 = vld [vmem:[#allocation2 + $0x6c] sm:$0xe] }
  0xc0   : > { %v7801_v8 = vsel %vm7433_vm5, %v5609_v20, %v1561_v23  ;;  %v7820_v36 = vsel %vm7433_vm5, %v1570_v11, %v1571_v41  ;;  %v1582_v50 = vrot.slane %v7025_v32, 5  ;;  %v4060_v41 = vshll.u32 %v3987_v17, 16  ;;  %v7027_v6 = vld [vmem:[#allocation2 + $0x68] sm:$0x1]  ;;  %v7910_v2 = vld [vmem:[%s8795_s2 + $0x200] sm:$0xff]  }
  0xc1   : > { %v4038_v23 = vrot.slane %v4036_v46, 5  ;;  %v6952_v46 = vld [vmem:[#allocation2 + $0x60] sm:$0xff]   ;;  %v1585_v56 = vrot.slane %v7027_v6, 5  ;;  %v8832_v61 = vcombine.low %v7801_v8, %v7805_v10  ;;  %v7038_v10 = vld [vmem:[#allocation2 + $0xb0] sm:$0x1] }
  0xc2   : > { %6490 = vmatpush3.bf16.msra.mxu0 %v6944_v28  ;;  %v5595_v28 = vcombine.low %v7573_v34, %v7579_v49  ;;  %v1584_v7 = vrot.slane %v1582_v50, 4  ;;  %v7030_v49 = vld [vmem:[#allocation2 + $0x80] sm:$0x1] }
  0xc3   : > { %6491 = vmatprep.subr.bf16.mxu0 %v6950_v27  ;;  %v4039_v32 = vor.u32 %v4038_v23, %v4035_v0  ;;  %v5613_v23 = vrot.slane %v1482_v35, 9  ;;  %v6955_v35 = vld [vmem:[#allocation2 + $0x6c] sm:$0xff]  }
  0xc5   : > { %6236 = vmatmul.mubr.bf16.gmra.mrb[20].mxu1 %v5591_v45  ;;  %6460 = vmatmul.mubr.bf16.gmra.mrb[4].mxu0 %v6943_v38  ;;  %v7797_v45 = vsel %vm7433_vm5, %v1556_v59, %v1557_v63  ;;  %v3988_v63 = vld [vmem:[#allocation2 + $0x28] sm:$0xf]  ;;  %v7024_v59 = vld [vmem:[#allocation2 + $0x5c] sm:$0x1]  ;;  %v3991_v38 = vld [vmem:[#allocation2 + $0x34] sm:$0xf] }
  0xc6   : > { %6239 = vmatprep.mubr.bf16.mxu1 %v5592_v44  ;;  %v1575_v44 = vrot.slane %v7695_v25, 5  ;;  %6463 = vmatprep.mubr.bf16.mxu0 %v6946_v31  ;;  %v1578_v20 = vrot.slane %v7024_v59, 5  ;;  %v4052_v31 = vshll.u32 %v3986_v22, 16  ;;  %v4070_v59 = vshrl.u32 %v3988_v63, 16 }
  0xc7   : > { %6492 = vmatpush3.bf16.msra.mxu0 %v6950_v27  ;;  %v4048_v27 = vrot.slane %v4046_v39, 4  ;;  %v4066_v39 = vshll.u32 %v3988_v63, 16  ;;  %v5612_v22 = vrot.slane %v1481_v60, 9  ;;  %v4081_v63 = vshrl.u32 %v3990_v43, 16  ;;  %v3989_v60 = vld [vmem:[#allocation2 + $0x2c] sm:$0x1] }
  0xc8   : > { %6493 = vmatprep.subr.bf16.mxu0 %v6956_v55  ;;  %v1577_v11 = vrot.slane %v1575_v44, 4  ;;  %v7843_v0 = vrot.slane %v4052_v31, 5  ;;  %v4072_v13 = vrot.slane %v4070_v59, 4  ;;  %v4094_v6 = vshrl.u32 %v3991_v38, 16  ;;  %v7028_v31 = vld [vmem:[#allocation2 + $0x74] sm:$0x1] }
  0xc9   : > { %v4049_v17 = vor.u32 %v4048_v27, %v7822_v18  ;;  %v4059_v27 = vrot.slane %v4057_v1, 4  ;;  %v7845_v14 = vrot.slane %v4066_v39, 5  ;;  %v7850_v3 = vrot.slane %v4039_v32, 4 }
  0xca   : > { %v1592_v1 = vrot.slane %v7028_v31, 5  ;;  %v4083_v43 = vrot.slane %v4081_v63, 4  ;;  %v7866_v39 = vsel %vm7433_vm5, %v5612_v22, %v1582_v50  ;;  %v7870_v59 = vsel %vm7433_vm5, %v1584_v7, %v1585_v56  ;;  %v6972_v50 = vld [vmem:[%s8795_s2 + $0x1f8] sm:$0xff]  }
  0xcb   : > { %6494 = vmatpush3.bf16.msra.mxu0 %v6956_v55  ;;  %v1589_v55 = vrot.slane %v7026_v26, 5  ;;  %v4062_v26 = vrot.slane %v4060_v41, 5  ;;  %v7852_v40 = vrot.slane %v4049_v17, 4  ;;  %v3992_v41 = vld [vmem:[#allocation2 + $0x38] sm:$0x1]  ;;  %v4076_v32 = vshll.u32 %v3989_v60, 16 }
  0xcc   : > { %6495 = vmatprep.subr.bf16.mxu0 %v6960_v15  ;;  %v7029_v17 = vld [vmem:[#allocation2 + $0x7c] sm:$0xf]  ;;  %v4096_v31 = vrot.slane %v4094_v6, 4  ;;  %v4045_v56 = vsel %vm7223_vm2, %v7850_v3, %v7822_v18  ;;  %v4100_v22 = vshll.u32 %v3992_v41, 16  ;;  %v1484_v18 = vld [vmem:[#allocation2 + $0x84] sm:$0xe] }
  0xcd   : > { %6240 = vmatmul.mubr.bf16.gmra.mrb[24].mxu1 %v5593_v19  ;;  %6464 = vmatmul.mubr.bf16.gmra.mrb[8].mxu0 %v6949_v16  ;;  %v4090_v19 = vshll.u32 %v3991_v38, 16  ;;  %v6968_v16 = vld [vmem:[%s8795_s2 + $0x1f0] sm:$0xff]   ;;  %v7862_v38 = vsel %vm7433_vm5, %v1577_v11, %v1578_v20  ;;  %v4063_v25 = vor.u32 %v4062_v26, %v4059_v27  ;;  %v4073_v20 = vor.u32 %v4072_v13, %v7845_v14  ;;  %v1483_v11 = vld [vmem:[#allocation2 + $0x78] sm:$0xe]  ;;  %v3994_v60 = vld [vmem:[#allocation2 + $0x40] sm:$0xf] }
  0xce   : > { %6243 = vmatprep.mubr.bf16.mxu1 %v5594_v21  ;;  %6467 = vmatprep.mubr.bf16.mxu0 %v6952_v46  ;;  %v1591_v21 = vrot.slane %v1589_v55, 4  ;;  %v4086_v46 = vrot.slane %v4084_v47, 5  ;;  %v1596_v63 = vrot.slane %v7029_v17, 5  ;;  %v7884_v7 = vsel %vm7433_vm5, %v5613_v23, %v1589_v55 }
  0xcf   : > { %6496 = vmatpush3.bf16.msra.mxu0 %v6960_v15  ;;  %v7858_v15 = vsel %vm7433_vm5, %v5611_v5, %v1575_v44  ;;  %v3993_v44 = vld [vmem:[#allocation2 + $0x3c] sm:$0xf]  ;;  %v7873_v47 = vrot.slane %v4090_v19, 5  ;;  %v4055_v27 = vsel %vm7223_vm2, %v7852_v40, %v7843_v0  ;;  %v7900_v23 = vrot.slane %v4063_v25, 4  ;;  %v7031_v40 = vld [vmem:[#allocation2 + $0x88] sm:$0xf] }
  0xd0   : > { %6497 = vmatprep.subr.bf16.mxu0 %v6964_v30  ;;  %v6957_v5 = vld [vmem:[#allocation2 + $0x78] sm:$0xff]   ;;  %v4087_v26 = vor.u32 %v4086_v46, %v4083_v43  ;;  %v4105_v13 = vshrl.u32 %v3993_v44, 16  ;;  %v4108_v55 = vshll.u32 %v3993_v44, 16  ;;  %v7902_v19 = vrot.slane %v4076_v32, 5  ;;  %v3995_v32 = vld [vmem:[#allocation2 + $0x44] sm:$0x1] }
  0xd1   : > { %v5614_v34 = vrot.slane %v1483_v11, 9  ;;  %v7904_v0 = vrot.slane %v4073_v20, 4  ;;  %v1598_v6 = vrot.slane %v1596_v63, 4  ;;  %v4097_v3 = vor.u32 %v4096_v31, %v7873_v47  ;;  %v8031_v31 = vld [vmem:[#allocation2 + $0x5c] sm:$0x1] }
  0xd2   : > { %v7912_v57 = vrot.slane %v4100_v22, 5  ;;  %v4114_v41 = vshll.u32 %v3994_v60, 16  ;;  %v4118_v43 = vshrl.u32 %v3994_v60, 16  ;;  %v7914_v46 = vrot.slane %v4087_v26, 4  ;;  %v3996_v22 = vld [vmem:[#allocation2 + $0x48] sm:$0xf] }
  0xd3   : > { %6498 = vmatpush3.bf16.msra.mxu0 %v6964_v30  ;;  %v7888_v30 = vsel %vm7433_vm5, %v1591_v21, %v1592_v1  ;;  %v1603_v21 = vrot.slane %v7031_v40, 5  ;;  %v6959_v1 = vld [vmem:[#allocation2 + $0x84] sm:$0xff]   ;;  %v4107_v44 = vrot.slane %v4105_v13, 4  ;;  %v7920_v17 = vcombine.low %v4045_v56, %v4055_v27  ;;  %8830 = vst [vmem:[#allocation10_spill] sm:$0xff] %v8031_v31 }
  0xd4   : > { %6499 = vmatprep.subr.bf16.mxu0 %v6968_v16  ;;  %v7926_v26 = vsel %vm7433_vm5, %v5614_v34, %v1596_v63  ;;  %v4098_v60 = vrot.slane %v4097_v3, 4  ;;  %v6962_v56 = vld [vmem:[%s8795_s2 + $0xc8] sm:$0xff]   ;;  %v7942_v63 = vrot.slane %v4114_v41, 5  ;;  %v4120_v27 = vrot.slane %v4118_v43, 4  ;;  %v7033_v3 = vld [vmem:[#allocation2 + $0x94] sm:$0xf] }
  0xd5   : > { %6244 = vmatmul.mubr.bf16.gmra.mrb[28].mxu1 %v5595_v28  ;;  %6468 = vmatmul.mubr.bf16.gmra.mrb[12].mxu0 %v6955_v35  ;;  %v1599_v28 = vrot.slane %v7030_v49, 5  ;;  %v7032_v35 = vld [vmem:[#allocation2 + $0x8c] sm:$0x1]  ;;  %v1605_v13 = vrot.slane %v1603_v21, 4  ;;  %v4124_v34 = vshll.u32 %v3995_v32, 16  ;;  %v4079_v49 = vsel %vm7223_vm2, %v7904_v0, %v7902_v19  ;;  %v6963_v41 = vld [vmem:[#allocation2 + $0x9c] sm:$0xff]  }
  0xd6   : > { %6263 = vmatprep.mubr.bf16.mxu1 %v5636_v58  ;;  %6471 = vmatprep.mubr.bf16.mxu0 %v6957_v5  ;;  %v5615_v58 = vrot.slane %v1484_v18, 9  ;;  %v1606_v25 = vrot.slane %v7032_v35, 5  ;;  %v4110_v5 = vrot.slane %v4108_v55, 5  ;;  %v7932_v55 = vld [vmem:[#allocation2 + $0x4c] sm:$0xf]  ;;  %v1610_v40 = vrot.slane %v7033_v3, 5 }
  0xd7   : > { %6500 = vmatpush3.bf16.msra.mxu0 %v6968_v16  ;;  %v6961_v16 = vld [vmem:[#allocation2 + $0x90] sm:$0xff]   ;;  %v7930_v18 = vsel %vm7433_vm5, %v1598_v6, %v1599_v28  ;;  %8823 = vst [vmem:[#allocation6_spill] sm:$0xff] %v7932_v55  ;;  %v4138_v19 = vshll.u32 %v7932_v55, 16  ;;  %v8824_v0 = vcombine.low %v7764_v37, %v7769_v24  ;;  %v4121_v37 = vor.u32 %v4120_v27, %v7942_v63  ;;  %v7980_v35 = vld [vmem:[#allocation2 + $0x58] sm:$0xf] }
  0xd8   : > { %6501 = vmatprep.subr.bf16.mxu0 %v6972_v50  ;;  %v4111_v28 = vor.u32 %v4110_v5, %v4107_v44  ;;  %v1485_v6 = vld [vmem:[#allocation2 + $0x90] sm:$0xe]  ;;  %v7959_v62 = vsel %vm7433_vm5, %v5615_v58, %v1603_v21  ;;  %v7974_v21 = vsel %vm7433_vm5, %v1605_v13, %v1606_v25  ;;  %v3999_v58 = vld [vmem:[#allocation2 + $0x54] sm:$0xf]  ;;  %v7977_v24 = vrot.slane %v4124_v34, 5  ;;  %8825 = vst [vmem:[#allocation7_spill] sm:$0xff] %v7980_v35 }
  0xd9   : > { %v5616_v43 = vrot.slane %v1485_v6, 9  ;;  %v7984_v44 = vld [vmem:[#allocation2 + $0x50] sm:$0x1]  ;;  %v6965_v5 = vld [vmem:[#allocation2 + $0xa8] sm:$0xff]   ;;  %v7993_v13 = vrot.slane %v4138_v19, 5  ;;  %v4153_v27 = vshrl.u32 %v3999_v58, 16 }
  0xda   : > { %8826 = vst [vmem:[#allocation8_spill] sm:$0xff] %v7984_v44  ;;  %v4156_v34 = vshll.u32 %v3999_v58, 16  ;;  %v7999_v3 = vld [vmem:[#allocation2 + $0x9c] sm:$0xe]  ;;  %v8828_v58 = vcombine.low %v7773_v48, %v7780_v42  ;;  %v6973_v48 = vld [vmem:[%s8795_s2 + $0xe0] sm:$0xff]  }
  0xdb   : > { %6502 = vmatpush3.bf16.msra.mxu0 %v6972_v50  ;;  %v4069_v50 = vsel %vm7223_vm2, %v7900_v23, %v7845_v14  ;;  %v4129_v14 = vshrl.u32 %v3996_v22, 16  ;;  %v6966_v23 = vld [vmem:[%s8795_s2 + $0xd0] sm:$0xff]   ;;  %v4155_v42 = vrot.slane %v4153_v27, 4  ;;  %v8052_v20 = vld [vmem:[#allocation2 + $0x68] sm:$0x1] }
  0xdc   : > { %6535 = vmatprep.subr.bf16.mxu0 %v7910_v2  ;;  %8831 = vst [vmem:[#allocation11_spill] sm:$0xff] %v8052_v20 }
  0xdd   : > { %6264 = vmatmul.mubr.bf16.vlgmr.msra.gmra.mrb[0].mxu1 %v5637_v29  ;;  %6472 = vmatmul.mubr.bf16.gmra.mrb[16].mxu0 %v6959_v1  ;;  %v4132_v29 = vshll.u32 %v3996_v22, 16  ;;  %v4103_v1 = vsel %vm7223_vm2, %v4098_v60, %v7912_v57  ;;  %v7034_v57 = vld [vmem:[#allocation2 + $0x98] sm:$0x1]  ;;  %v7986_v25 = vrot.slane %v4129_v14, 4  ;;  %v4166_v14 = vshrl.u32 %v7980_v35, 16 }
  0xde   : > { %6296 = vmatpush3.bf16.msra.mxu1 %v7714_v4  ;;  %6267 = vmatprep.mubr.bf16.mxu1 %v8824_v0  ;;  %v4093_v4 = vsel %vm7223_vm2, %v7914_v46, %v7873_v47  ;;  %v7982_v47 = vrot.slane %v4111_v28, 4  ;;  %v1612_v46 = vrot.slane %v1610_v40, 4  ;;  %v1613_v32 = vrot.slane %v7034_v57, 5  ;;  %v6970_v22 = vld [vmem:[%s8795_s2 + $0xd8] sm:$0xff]   ;;  %v4002_v0 = vld [vmem:[#allocation2 + $0x60] sm:$0xf] }
  0xdf   : > { %6475 = vmatprep.mubr.bf16.mxu0 %v6961_v16  ;;  %6297 = vmatprep.subr.bf16.mxu1 %v6962_v56  ;;  %v4142_v16 = vshrl.u32 %v7932_v55, 16  ;;  %v7991_v60 = vrot.slane %v4132_v29, 5  ;;  %v7995_v28 = vcombine.low %v4069_v50, %v4079_v49  ;;  %v8003_v57 = vcombine.low %v4093_v4, %v4103_v1  ;;  %v8010_v49 = vld [vmem:[#allocation2 + $0x64] sm:$0xf]  ;;  %v7035_v1 = vld [vmem:[#allocation2 + $0xa0] sm:$0xf] }
  0xe0   : > { %v8007_v29 = vsel %vm7433_vm5, %v5616_v43, %v1610_v40  ;;  %v4148_v50 = vshll.u32 %v7984_v44, 16  ;;  %8827 = vst [vmem:[#allocation9_spill] sm:$0xff] %v8010_v49  ;;  %v8019_v4 = vrot.slane %v4121_v37, 4  ;;  %v8023_v40 = vsel %vm7433_vm5, %v1612_v46, %v1613_v32  ;;  %v8226_v55 = vld [vmem:[#allocation2 + $0x98] sm:$0x1] }
  0xe1   : > { %v4144_v19 = vrot.slane %v4142_v16, 4  ;;  %v1617_v43 = vrot.slane %v7035_v1, 5  ;;  %v8829_v16 = vcombine.low %v7790_v12, %v7797_v45  ;;  %v4177_v9 = vshrl.u32 %v4002_v0, 16  ;;  %v6967_v45 = vld [vmem:[#allocation2 + $0xb4] sm:$0xff]  }
  0xe2   : > { %6298 = vmatpush3.bf16.msra.mxu1 %v6962_v56  ;;  %v4162_v56 = vshll.u32 %v7980_v35, 16  ;;  %v4180_v37 = vshll.u32 %v4002_v0, 16  ;;  %v4168_v32 = vrot.slane %v4166_v14, 4  ;;  %v4190_v12 = vshrl.u32 %v8010_v49, 16  ;;  %v8058_v14 = vld [vmem:[#allocation2 + $0xac] sm:$0xf] }
  0xe3   : > { %6299 = vmatprep.subr.bf16.mxu1 %v6966_v23  ;;  %v4135_v1 = vor.u32 %v7991_v60, %v7986_v25  ;;  %v4145_v27 = vor.u32 %v4144_v19, %v7993_v13  ;;  %v1619_v0 = vrot.slane %v1617_v43, 4  ;;  %v4005_v25 = vld [vmem:[#allocation2 + $0x6c] sm:$0xf]  ;;  %v6969_v60 = vld [vmem:[#allocation2 + $0xc0] sm:$0xff]   ;;  %v8841_v35 = vcombine.low %v7866_v39, %v7870_v59 }
  0xe4   : > { %v8033_v46 = vrot.slane %v4162_v56, 5  ;;  %v4127_v56 = vsel %vm7223_vm2, %v8019_v4, %v7977_v24  ;;  %v4182_v6 = vrot.slane %v4180_v37, 5  ;;  %v6975_v24 = vld [vmem:[%s8795_s2 + $0xe8] sm:$0xff]   ;;  %v4204_v37 = vshll.u32 %v4005_v25, 16 }
  0xe5   : > { %6268 = vmatmul.mubr.bf16.gmra.mrb[4].mxu1 %v8828_v58  ;;  %6476 = vmatmul.mubr.bf16.gmra.mrb[20].mxu0 %v6963_v41  ;;  %v4158_v58 = vrot.slane %v4156_v34, 5  ;;  %v4186_v41 = vshll.u32 %v8010_v49, 16  ;;  %v8040_v34 = vrot.slane %v4148_v50, 5  ;;  %v4172_v50 = vshll.u32 %v8031_v31, 16 }
  0xe6   : > { %6271 = vmatprep.mubr.bf16.mxu1 %v8829_v16  ;;  %6479 = vmatprep.mubr.bf16.mxu0 %v6965_v5  ;;  %v8043_v5 = vld [vmem:[#allocation2 + $0xa8] sm:$0xe]  ;;  %v7036_v16 = vld [vmem:[#allocation2 + $0xa4] sm:$0x1]  ;;  %v4169_v4 = vor.u32 %v4168_v32, %v8033_v46  ;;  %v8065_v54 = vrot.slane %v4145_v27, 4 }
  0xe7   : > { %6300 = vmatpush3.bf16.msra.mxu1 %v6966_v23  ;;  %v5617_v23 = vrot.slane %v7999_v3, 9  ;;  %v1620_v11 = vrot.slane %v7036_v16, 5  ;;  %v4159_v19 = vor.u32 %v4158_v58, %v4155_v42  ;;  %v4179_v3 = vrot.slane %v4177_v9, 4  ;;  %v8067_v9 = vld [vmem:[#allocation2 + $0xb4] sm:$0xe] }
  0xe8   : > { %6301 = vmatprep.subr.bf16.mxu1 %v6970_v22  ;;  %v8801_v16 = vrot.slane %v8058_v14, 5  ;;  %v8061_v52 = vrot.slane %v4186_v41, 5  ;;  %v4192_v42 = vrot.slane %v4190_v12, 4  ;;  %v8063_v58 = vrot.slane %v4135_v1, 4  ;;  %v8082_v27 = vld [vmem:[#allocation2 + $0x70] sm:$0xf] }
  0xe9   : > { %v8074_v32 = vsel %vm7433_vm5, %v5617_v23, %v1617_v43  ;;  %v8078_v41 = vsel %vm7433_vm5, %v1619_v0, %v1620_v11  ;;  %v5618_v12 = vrot.slane %v8043_v5, 9  ;;  %v4196_v1 = vshll.u32 %v8052_v20, 16  ;;  %8833 = vst [vmem:[#allocation12_spill] sm:$0xff] %v8082_v27  ;;  %v6977_v11 = vld [vmem:[%s8795_s2 + $0xf0] sm:$0xff]  }
  0xea   : > { %v8089_v8 = vrot.slane %v4172_v50, 5  ;;  %v1627_v43 = vrot.slane %v7038_v10, 5  ;;  %v4183_v23 = vor.u32 %v4182_v6, %v4179_v3  ;;  %v8094_v5 = vrot.slane %v4169_v4, 4  ;;  %v6971_v6 = vld [vmem:[#allocation2 + $0xcc] sm:$0xff]  }
  0xeb   : > { %6302 = vmatpush3.bf16.msra.mxu1 %v6970_v22  ;;  %v4201_v22 = vshrl.u32 %v4005_v25, 16  ;;  %v8834_v25 = vcombine.low %v7816_v33, %v7820_v36  ;;  %v4193_v33 = vor.u32 %v4192_v42, %v8061_v52  ;;  %v8099_v36 = vld [vmem:[#allocation2 + $0xb8] sm:$0xf]  ;;  %v4141_v50 = vsel %vm7223_vm2, %v8063_v58, %v7993_v13  ;;  %v8130_v58 = vld [vmem:[#allocation2 + $0xbc] sm:$0x1] }
  0xec   : > { %6303 = vmatprep.subr.bf16.mxu1 %v6973_v48  ;;  %v4206_v4 = vrot.slane %v4204_v37, 5  ;;  %v4008_v42 = vld [vmem:[#allocation2 + $0x78] sm:$0xf]  ;;  %v8117_v10 = vrot.slane %v4196_v1, 5  ;;  %v4210_v0 = vshll.u32 %v8082_v27, 16 }
  0xed   : > { %6272 = vmatmul.mubr.bf16.gmra.mrb[8].mxu1 %v8832_v61  ;;  %6480 = vmatmul.mubr.bf16.gmra.mrb[24].mxu0 %v6967_v45  ;;  %v8087_v61 = vrot.slane %v4159_v19, 4  ;;  %v1626_v45 = vrot.slane %v8801_v16, 4  ;;  %v8102_v19 = vld [vmem:[#allocation2 + $0x74] sm:$0x1]  ;;  %v4203_v3 = vrot.slane %v4201_v22, 4  ;;  %v8133_v1 = vrot.slane %v4193_v33, 4 }
  0xee   : > { %6275 = vmatprep.mubr.bf16.mxu1 %v8834_v25  ;;  %6483 = vmatprep.mubr.bf16.mxu0 %v6969_v60  ;;  %8835 = vst [vmem:[#allocation13_spill] sm:$0xff] %v8102_v19  ;;  %v8115_v25 = vld [vmem:[#allocation2 + $0x7c] sm:$0xf]  ;;  %v4011_v37 = vld [vmem:[#allocation2 + $0x84] sm:$0xf]  ;;  %v4228_v22 = vshll.u32 %v4008_v42, 16 }
  0xef   : > { %6304 = vmatpush3.bf16.msra.mxu1 %v6973_v48  ;;  %v8836_v48 = vsel %vm7223_vm2, %v7982_v47, %v7942_v63  ;;  %8837 = vst [vmem:[#allocation14_spill] sm:$0xff] %v8115_v25  ;;  %v4214_v63 = vshrl.u32 %v8082_v27, 16  ;;  %v4151_v47 = vsel %vm7223_vm2, %v8065_v54, %v8040_v34  ;;  %v4220_v27 = vshll.u32 %v8102_v19, 16  ;;  %v8140_v34 = vld [vmem:[#allocation2 + $0x88] sm:$0xf] }
  0xf0   : > { %6305 = vmatprep.subr.bf16.mxu1 %v6975_v24  ;;  %v8109_v60 = vcombine.low %v8836_v48, %v4127_v56  ;;  %v8128_v56 = vrot.slane %v4183_v23, 4  ;;  %v8838_v48 = vrot.slane %v8099_v36, 5  ;;  %v4225_v54 = vshrl.u32 %v4008_v42, 16  ;;  %8839 = vst [vmem:[#allocation15_spill] sm:$0xff] %v8140_v34  ;;  %v6979_v23 = vld [vmem:[%s8795_s2 + $0xf8] sm:$0xff]  }
  0xf1   : > { %v4207_v13 = vor.u32 %v4206_v4, %v4203_v3  ;;  %v4238_v33 = vshrl.u32 %v8115_v25, 16  ;;  %v8150_v20 = vrot.slane %v4210_v0, 5  ;;  %v4216_v19 = vrot.slane %v4214_v63, 4 }
  0xf2   : > { %v8137_v16 = vrot.slane %v8838_v48, 4  ;;  %v8840_v48 = vcombine.low %v7858_v15, %v7862_v38  ;;  %v4249_v49 = vshrl.u32 %v4011_v37, 16  ;;  %v4252_v31 = vshll.u32 %v4011_v37, 16  ;;  %v8193_v37 = vld [vmem:[#allocation2 + $0xa0] sm:$0xf] }
  0xf3   : > { %6306 = vmatpush3.bf16.msra.mxu1 %v6975_v24  ;;  %v4234_v24 = vshll.u32 %v8115_v25, 16  ;;  %v8155_v3 = vcombine.low %v4141_v50, %v4151_v47  ;;  %v8842_v4 = vrot.slane %v8058_v14, 5  ;;  %v4258_v15 = vshll.u32 %v8140_v34, 16  ;;  %v8182_v47 = vld [vmem:[#allocation2 + $0x94] sm:$0xf]  ;;  %8844 = vst [vmem:[#allocation17_spill] sm:$0xff] %v8193_v37 }
  0xf4   : > { %6307 = vmatprep.subr.bf16.mxu1 %v6977_v11  ;;  %v4262_v38 = vshrl.u32 %v8140_v34, 16  ;;  %v8172_v59 = vsel %vm7433_vm5, %v1626_v45, %v1627_v43  ;;  %v4227_v14 = vrot.slane %v4225_v54, 4  ;;  %v8176_v0 = vrot.slane %v4207_v13, 4  ;;  %8843 = vst [vmem:[#allocation16_spill] sm:$0xff] %v8182_v47  ;;  %v4017_v13 = vld [vmem:[#allocation2 + $0x9c] sm:$0xf] }
  0xf5   : > { %6276 = vmatmul.mubr.bf16.gmra.mrb[12].mxu1 %v8840_v48  ;;  %6484 = vmatmul.mubr.bf16.gmra.mrb[28].mxu0 %v6971_v6  ;;  %v8161_v42 = vsel %vm7433_vm5, %v5618_v12, %v8842_v4  ;;  %v4014_v12 = vld [vmem:[#allocation2 + $0x90] sm:$0xf]  ;;  %v8178_v6 = vld [vmem:[#allocation2 + $0x80] sm:$0x1]  ;;  %v8180_v50 = vrot.slane %v4234_v24, 5  ;;  %v4240_v63 = vrot.slane %v4238_v33, 4 }
  0xf6   : > { %6279 = vmatprep.mubr.bf16.mxu1 %v8841_v35  ;;  %6503 = vmatprep.mubr.bf16.mxu0 %v7920_v17  ;;  %v8174_v35 = vrot.slane %v4220_v27, 5  ;;  %v4230_v17 = vrot.slane %v4228_v22, 5  ;;  %v4217_v27 = vor.u32 %v4216_v19, %v8150_v20  ;;  %v8191_v45 = vrot.slane %v4252_v31, 5  ;;  %v6976_v22 = vld [vmem:[%s8795_s2 + $0x208] sm:$0xff]   ;;  %v419_v34 = vld [vmem:[%s7490_s20 + $0x14] sm:$0x1] }
  0xf7   : > { %6308 = vmatpush3.bf16.msra.mxu1 %v6977_v11  ;;  %v8189_v11 = vrot.slane %v4249_v49, 4  ;;  %v8198_v54 = vld [vmem:[#allocation2 + $0x8c] sm:$0x1]  ;;  %v8200_v24 = vrot.slane %v4258_v15, 5  ;;  %v4264_v33 = vrot.slane %v4262_v38, 4  ;;  %v4273_v48 = vshrl.u32 %v4014_v12, 16 }
  0xf8   : > { %6309 = vmatprep.subr.bf16.mxu1 %v6979_v23  ;;  %8845 = vst [vmem:[#allocation18_spill] sm:$0xff] %v8198_v54  ;;  %v4276_v4 = vshll.u32 %v4014_v12, 16  ;;  %v4282_v19 = vshll.u32 %v8182_v47, 16  ;;  %v4286_v39 = vshrl.u32 %v8182_v47, 16  ;;  %v8213_v15 = vld [vmem:[%s8795_s2 + $0x100] sm:$0xff]   ;;  %v4297_v38 = vshrl.u32 %v4017_v13, 16 }
  0xf9   : > { %8846 = vst [vmem:[#allocation19_spill] sm:$0xff] %v8213_v15  ;;  %v4300_v12 = vshll.u32 %v4017_v13, 16  ;;  %v4306_v49 = vshll.u32 %v8193_v37, 16  ;;  %v4310_v43 = vshrl.u32 %v8193_v37, 16  ;;  %v8222_v31 = vrot.slane %v4217_v27, 4 }
  0xfa   : > { %v4231_v47 = vor.u32 %v4230_v17, %v4227_v14  ;;  %v4244_v25 = vshll.u32 %v8178_v6, 16  ;;  %v4268_v44 = vshll.u32 %v8198_v54, 16  ;;  %426 = vst [vmem:[#allocation2 + $0xd4] sm:$0x1] %v419_v34  ;;  %v8848_v13 = vcombine.low %v7926_v26, %v7930_v18  ;;  %v8240_v34 = vld [vmem:[#allocation2 + $0xa4] sm:$0x1] }
  0xfb   : > { %6310 = vmatpush3.bf16.msra.mxu1 %v6979_v23  ;;  %v8847_v23 = vcombine.low %v7884_v7, %v7888_v30  ;;  %v6978_v7 = vld [vmem:[%s8795_s2 + $0x210] sm:$0xff]   ;;  %v4199_v30 = vsel %vm7223_vm2, %v8133_v1, %v8117_v10  ;;  %v4241_v14 = vor.u32 %v4240_v63, %v8180_v50  ;;  %v4275_v17 = vrot.slane %v4273_v48, 4 }
  0xfc   : > { %6583 = vmatprep.subr.bf16.mxu1 %v8213_v15  ;;  %v4020_v15 = vld [vmem:[#allocation2 + $0xa8] sm:$0xf]  ;;  %v4278_v27 = vrot.slane %v4276_v4, 5  ;;  %v4255_v26 = vor.u32 %v8191_v45, %v8189_v11  ;;  %v4265_v18 = vor.u32 %v4264_v33, %v8200_v24  ;;  %v4288_v10 = vrot.slane %v4286_v39, 4 }
  0xfd   : > { %6280 = vmatmul.mubr.bf16.gmra.mrb[16].mxu1 %v8847_v23  ;;  %6504 = vmatmul.mubr.bf16.vlgmr.msra.gmra.mrb[0].mxu0 %v7995_v28  ;;  %v8242_v28 = vld [vmem:[#allocation2 + $0xac] sm:$0xf]  ;;  %v8249_v23 = vrot.slane %v4282_v19, 5  ;;  %v4299_v1 = vrot.slane %v4297_v38, 4  ;;  %v4302_v63 = vrot.slane %v4300_v12, 5  ;;  %v8251_v48 = vrot.slane %v4306_v49, 5 }
  0xfe   : > { %6283 = vmatprep.mubr.bf16.mxu1 %v8848_v13  ;;  %6536 = vmatpush3.bf16.msra.mxu0 %v7910_v2  ;;  %v4312_v4 = vrot.slane %v4310_v43, 4  ;;  %v8253_v13 = vrot.slane %v4231_v47, 4  ;;  %v8255_v37 = vrot.slane %v4244_v25, 5  ;;  %v4321_v2 = vshrl.u32 %v4020_v15, 16  ;;  %v6980_v25 = vld [vmem:[%s8795_s2 + $0x218] sm:$0xff]  }
  0xff   : > { %6507 = vmatprep.mubr.bf16.mxu0 %v8003_v57  ;;  %6537 = vmatprep.subr.bf16.mxu0 %v6976_v22  ;;  %v4324_v57 = vshll.u32 %v4020_v15, 16  ;;  %v8257_v54 = vrot.slane %v4241_v14, 4  ;;  %v8259_v11 = vrot.slane %v4268_v44, 5  ;;  %v4279_v45 = vor.u32 %v4278_v27, %v4275_v17  ;;  %v8270_v12 = vld [vmem:[#allocation2 + $0xb0] sm:$0x1] }
 0x100   : > { %v4292_v33 = vshll.u32 %v8226_v55, 16  ;;  %v4289_v39 = vor.u32 %v4288_v10, %v8249_v23  ;;  %v4316_v49 = vshll.u32 %v8240_v34, 16  ;;  %v4330_v43 = vshll.u32 %v8242_v28, 16 }
 0x101   : > { %v4334_v47 = vshrl.u32 %v8242_v28, 16  ;;  %v4256_v19 = vrot.slane %v4255_v26, 4  ;;  %v4266_v44 = vrot.slane %v4265_v18, 4  ;;  %v4303_v15 = vor.u32 %v4302_v63, %v4299_v1  ;;  %v4023_v1 = vld [vmem:[#allocation2 + $0xb4] sm:$0xf] }
 0x102   : > { %6538 = vmatpush3.bf16.msra.mxu0 %v6976_v22  ;;  %v4313_v38 = vor.u32 %v4312_v4, %v8251_v48  ;;  %v8849_v22 = vcombine.low %v7959_v62, %v7974_v21  ;;  %v8850_v14 = vsel %vm7223_vm2, %v8094_v5, %v8089_v8  ;;  %v8851_v17 = vsel %vm7223_vm2, %v8087_v61, %v8033_v46 }
 0x103   : > { %6539 = vmatprep.subr.bf16.mxu0 %v6978_v7  ;;  %v5857_v27 = vcombine.low %v8851_v17, %v8850_v14  ;;  %v8852_v26 = vrot.slane %v8099_v36, 5  ;;  %v8853_v18 = vrot.slane %v8067_v9, 9  ;;  %v4323_v62 = vrot.slane %v4321_v2, 4  ;;  %v6983_v36 = vld [vmem:[%s8795_s2 + $0x220] sm:$0xff]  }
 0x104   : > { %v4326_v21 = vrot.slane %v4324_v57, 5  ;;  %v8854_v8 = vcombine.low %v8007_v29, %v8023_v40  ;;  %v8855_v46 = vsel %vm7223_vm2, %v8128_v56, %v8061_v52  ;;  %v8856_v9 = vrot.slane %v8130_v58, 5  ;;  %v8312_v40 = vld [vmem:[#allocation2 + $0xb8] sm:$0xf] }
 0x105   : > { %6284 = vmatmul.mubr.bf16.gmra.mrb[20].mxu1 %v8849_v22  ;;  %v8291_v10 = vsel %vm7433_vm5, %v8853_v18, %v8852_v26  ;;  %6508 = vmatmul.mubr.bf16.gmra.mrb[4].mxu0 %v8109_v60  ;;  %v5858_v61 = vcombine.low %v8855_v46, %v4199_v30  ;;  %v4280_v60 = vrot.slane %v4279_v45, 4  ;;  %v4294_v29 = vrot.slane %v4292_v33, 5  ;;  %v6989_v26 = vld [vmem:[%s8795_s2 + $0x230] sm:$0xff]   ;;  %v8860_v46 = vld [vmem:[#allocation8_spill] sm:$0xff] }
 0x106   : > { %6287 = vmatprep.mubr.bf16.mxu1 %v8854_v8  ;;  %v8307_v5 = vsel %vm7433_vm5, %v8137_v16, %v8856_v9  ;;  %6511 = vmatprep.mubr.bf16.mxu0 %v8155_v3  ;;  %v4290_v52 = vrot.slane %v4289_v39, 4  ;;  %v4318_v56 = vrot.slane %v4316_v49, 5  ;;  %v8315_v30 = vrot.slane %v4330_v43, 5  ;;  %v8361_v43 = vld [vmem:[#allocation2 + $0xc0] sm:$0xf] }
 0x107   : > { %6540 = vmatpush3.bf16.msra.mxu0 %v6978_v7  ;;  %v4336_v58 = vrot.slane %v4334_v47, 4  ;;  %v4304_v63 = vrot.slane %v4303_v15, 4  ;;  %v4314_v16 = vrot.slane %v4313_v38, 4  ;;  %v4340_v4 = vshll.u32 %v8270_v12, 16  ;;  %v8371_v15 = vld [vmem:[#allocation2 + $0xc4] sm:$0xf] }
 0x108   : > { %6541 = vmatprep.subr.bf16.mxu0 %v6980_v25  ;;  %v4345_v2 = vshrl.u32 %v4023_v1, 16  ;;  %v4213_v57 = vsel %vm7223_vm2, %v8176_v0, %v8150_v20  ;;  %v4223_v3 = vsel %vm7223_vm2, %v8222_v31, %v8174_v35  ;;  %v4237_v7 = vsel %vm7223_vm2, %v8253_v13, %v8180_v50  ;;  %v4742_v38 = vld [vmem:[#allocation2 + $0x48] sm:$0xe]  ;;  %v4743_v18 = vld [vmem:[#allocation2 + $0x54] sm:$0xe] }
 0x109   : > { %v4327_v45 = vor.u32 %v4326_v21, %v4323_v62  ;;  %v4247_v33 = vsel %vm7223_vm2, %v8257_v54, %v8255_v37  ;;  %v4261_v20 = vsel %vm7223_vm2, %v4256_v19, %v8200_v24  ;;  %v4348_v0 = vshll.u32 %v4023_v1, 16  ;;  %v6986_v37 = vld [vmem:[%s8795_s2 + $0x228] sm:$0xff]   ;;  %v8350_v24 = vld [vmem:[#allocation2 + $0xbc] sm:$0x1]  ;;  %v8859_v1 = vld [vmem:[#allocation6_spill] sm:$0xff] }
 0x10a   : > { %v4354_v39 = vshll.u32 %v8312_v40, 16  ;;  %v4271_v35 = vsel %vm7223_vm2, %v4266_v44, %v8259_v11  ;;  %v4285_v50 = vsel %vm7223_vm2, %v4280_v60, %v8249_v23  ;;  %v4295_v31 = vsel %vm7223_vm2, %v4290_v52, %v4294_v29  ;;  %v8861_v29 = vld [vmem:[#allocation7_spill] sm:$0xff] }
 0x10b   : > { %6542 = vmatpush3.bf16.msra.mxu0 %v6980_v25  ;;  %v4337_v54 = vor.u32 %v4336_v58, %v8315_v30  ;;  %v4309_v13 = vsel %vm7223_vm2, %v4304_v63, %v8251_v48  ;;  %v4319_v11 = vsel %vm7223_vm2, %v4314_v16, %v4318_v56  ;;  %v8357_v23 = vrot.slane %v4340_v4, 5  ;;  %v4745_v56 = vld [vmem:[#allocation2 + $0x6c] sm:$0xe] }
 0x10c   : > { %6543 = vmatprep.subr.bf16.mxu0 %v6983_v36  ;;  %v8359_v49 = vrot.slane %v4345_v2, 4  ;;  %v8857_v47 = vcombine.low %v8074_v32, %v8078_v41  ;;  %v5651_v25 = vcombine.low %v8291_v10, %v8307_v5  ;;  %v5859_v19 = vcombine.low %v4213_v57, %v4223_v3  ;;  %v4744_v5 = vld [vmem:[#allocation2 + $0x60] sm:$0xe]  ;;  %v6981_v58 = vld [vmem:[#allocation2 + $0xc] sm:$0xff]  }
 0x10d   : > { %v8368_v44 = vrot.slane %v4327_v45, 4  ;;  %v4358_v48 = vshrl.u32 %v8312_v40, 16  ;;  %6512 = vmatmul.mubr.bf16.gmra.mrb[8].mxu0 %v5857_v27  ;;  %v8858_v22 = vcombine.low %v8161_v42, %v8172_v59  ;;  %v5860_v14 = vcombine.low %v4237_v7, %v4247_v33  ;;  %v8862_v2 = vld [vmem:[#allocation10_spill] sm:$0xff]  ;;  %v8863_v33 = vld [vmem:[#allocation9_spill] sm:$0xff] }
 0x10e   : > { %6288 = vmatmul.mubr.bf16.gmra.mrb[24].mxu1 %v8857_v47  ;;  %v8376_v17 = vcombine.low %v4261_v20, %v4271_v35  ;;  %v8378_v32 = vrot.slane %v4348_v0, 5  ;;  %v8380_v41 = vrot.slane %v4354_v39, 5  ;;  %6515 = vmatprep.mubr.bf16.mxu0 %v5858_v61  ;;  %v8385_v10 = vcombine.low %v4285_v50, %v4295_v31  ;;  %v6992_v0 = vld [vmem:[%s8795_s2 + $0x238] sm:$0xff]  }
 0x10f   : > { %6291 = vmatprep.mubr.bf16.mxu1 %v8858_v22  ;;  %6544 = vmatpush3.bf16.msra.mxu0 %v6983_v36  ;;  %v8387_v27 = vcombine.low %v4309_v13, %v4319_v11  ;;  %v8389_v42 = vrot.slane %v4337_v54, 4  ;;  %v4364_v59 = vshll.u32 %v8350_v24, 16  ;;  %v4369_v62 = vshrl.u32 %v8361_v43, 16  ;;  %v8864_v35 = vld [vmem:[#allocation11_spill] sm:$0xff]  ;;  %v8866_v22 = vld [vmem:[#allocation13_spill] sm:$0xff] }
 0x110   : > { %6545 = vmatprep.subr.bf16.mxu0 %v6986_v37  ;;  %v5880_v21 = vrot.slane %v4742_v38, 9  ;;  %v4832_v8 = vrot.slane %v8859_v1, 5  ;;  %v4835_v9 = vrot.slane %v8860_v46, 5  ;;  %v8395_v60 = vrot.slane %v4358_v48, 4  ;;  %v8868_v1 = vld [vmem:[#allocation3_spill] sm:$0xff] }
 0x111   : > { %v4372_v61 = vshll.u32 %v8361_v43, 16  ;;  %v5881_v36 = vrot.slane %v4743_v18, 9  ;;  %v4839_v52 = vrot.slane %v8861_v29, 5  ;;  %v4378_v63 = vshll.u32 %v8371_v15, 16 }
 0x112   : > { %v8402_v16 = vsel %vm7433_vm5, %v5880_v21, %v4832_v8  ;;  %v4834_v4 = vrot.slane %v4832_v8, 4  ;;  %v4842_v57 = vrot.slane %v8862_v2, 5  ;;  %v5882_v45 = vrot.slane %v4744_v5, 9  ;;  %v8867_v21 = vld [vmem:[#allocation4_spill] sm:$0xff] }
 0x113   : > { %6546 = vmatpush3.bf16.msra.mxu0 %v6986_v37  ;;  %v8407_v3 = vsel %vm7433_vm5, %v5881_v36, %v4839_v52  ;;  %v4841_v7 = vrot.slane %v4839_v52, 4  ;;  %v4846_v20 = vrot.slane %v8863_v33, 5  ;;  %v4849_v50 = vrot.slane %v8864_v35, 5  ;;  %v8865_v37 = vld [vmem:[#allocation12_spill] sm:$0xff]  ;;  %v4746_v36 = vld [vmem:[#allocation2 + $0x78] sm:$0xe] }
 0x114   : > { %6547 = vmatprep.subr.bf16.mxu0 %v6989_v26  ;;  %v8415_v39 = vsel %vm7433_vm5, %v4834_v4, %v4835_v9  ;;  %v5883_v31 = vrot.slane %v4745_v56, 9  ;;  %v4853_v54 = vrot.slane %v8865_v37, 5  ;;  %v4856_v18 = vrot.slane %v8866_v22, 5  ;;  %v4029_v52 = vld [vmem:[#allocation2 + $0xcc] sm:$0xf]  ;;  %v8872_v22 = vld [vmem:[#allocation19_spill] sm:$0xff] }
 0x115   : > { %v5912_v13 = vcombine.low %v8402_v16, %v8415_v39  ;;  %v8423_v11 = vsel %vm7433_vm5, %v4841_v7, %v4842_v57  ;;  %v8427_v43 = vsel %vm7433_vm5, %v5882_v45, %v4846_v20  ;;  %v4848_v47 = vrot.slane %v4846_v20, 4  ;;  %6516 = vmatmul.mubr.bf16.gmra.mrb[12].mxu0 %v5859_v19  ;;  %v8870_v7 = vld [vmem:[#allocation14_spill] sm:$0xff]  ;;  %v4747_v33 = vld [vmem:[#allocation2 + $0x84] sm:$0xe] }
 0x116   : > { %6292 = vmatmul.mubr.bf16.gmra.mrb[28].mxu1 %v5651_v25  ;;  %v5913_v48 = vcombine.low %v8407_v3, %v8423_v11  ;;  %v8433_v25 = vsel %vm7433_vm5, %v5883_v31, %v4853_v54  ;;  %v4855_v38 = vrot.slane %v4853_v54, 4  ;;  %v8869_v8 = vor.u32 %v8867_v21, %v8868_v1  ;;  %6519 = vmatprep.mubr.bf16.mxu0 %v5860_v14  ;;  %v8471_v20 = vld [vmem:[#allocation2 + $0xd0] sm:$0xf]  ;;  %v8482_v54 = vld [vmem:[#allocation2 + $0xc8] sm:$0x1] }
 0x117   : > { %6311 = vmatprep.mubr.bf16.mxu1 %v6981_v58  ;;  %v4333_v19 = vsel %vm7223_vm2, %v8368_v44, %v8315_v30  ;;  %v4351_v9 = vor.u32 %v8378_v32, %v8359_v49  ;;  %6548 = vmatpush3.bf16.msra.mxu0 %v6989_v26  ;;  %v8449_v5 = vsel %vm7433_vm5, %v4848_v47, %v4849_v50  ;;  %v4382_v14 = vshrl.u32 %v8371_v15, 16  ;;  %v2372_v44 = vld [vmem:[#allocation2 + $0x78] sm:$0xf] }
 0x118   : > { %v8439_v46 = vrot.slane %v8869_v8, 4  ;;  %v4343_v29 = vsel %vm7223_vm2, %v8389_v42, %v8357_v23  ;;  %6549 = vmatprep.subr.bf16.mxu0 %v6992_v0  ;;  %v5914_v30 = vcombine.low %v8427_v43, %v8449_v5  ;;  %v8460_v49 = vsel %vm7433_vm5, %v4855_v38, %v4856_v18  ;;  %v6982_v32 = vld [vmem:[#allocation2 + $0x18] sm:$0xff]   ;;  %v6984_v42 = vld [vmem:[#allocation2 + $0x24] sm:$0xff]  }
 0x119   : > { %v8462_v26 = vrot.slane %v4364_v59, 5  ;;  %v4371_v56 = vrot.slane %v4369_v62, 4  ;;  %v4374_v58 = vrot.slane %v4372_v61, 5  ;;  %v5915_v23 = vcombine.low %v8433_v25, %v8460_v49  ;;  %v8873_v8 = vld [vmem:[#allocation15_spill] sm:$0xff] }
 0x11a   : > { %v4361_v4 = vor.u32 %v8395_v60, %v8380_v41  ;;  %v8468_v2 = vrot.slane %v4378_v63, 5  ;;  %v5884_v57 = vrot.slane %v4746_v36, 9  ;;  %v4860_v45 = vrot.slane %v8870_v7, 5  ;;  %v8871_v63 = vld [vmem:[#allocation5_spill] sm:$0xff] }
 0x11b   : > { %v4393_v35 = vshrl.u32 %v4029_v52, 16  ;;  %6550 = vmatpush3.bf16.msra.mxu0 %v6992_v0  ;;  %v4863_v59 = vrot.slane %v8178_v6, 5  ;;  %v2610_v62 = vshrl.u32 %v2372_v44, 16  ;;  %v2613_v61 = vshll.u32 %v2372_v44, 16 }
 0x11c   : > { %v4384_v50 = vrot.slane %v4382_v14, 4  ;;  %v8476_v31 = vsel %vm7433_vm5, %v5884_v57, %v4860_v45  ;;  %v4862_v60 = vrot.slane %v4860_v45, 4  ;;  %v2632_v37 = vsel %vm7223_vm2, %v8439_v46, %v8871_v63  ;;  %v8874_v46 = vld [vmem:[#allocation18_spill] sm:$0xff]  ;;  %v7042_v57 = vld [vmem:[%s8795_s2 + $0x108] sm:$0xff]  }
 0x11d   : > { %v4396_v47 = vshll.u32 %v4029_v52, 16  ;;  %v2612_v0 = vrot.slane %v2610_v62, 4  ;;  %v2615_v38 = vrot.slane %v2613_v61, 5  ;;  %v5885_v6 = vrot.slane %v4747_v33, 9  ;;  %6520 = vmatmul.mubr.bf16.gmra.mrb[16].mxu0 %v8376_v17 }
 0x11e   : > { %6312 = vmatmul.mubr.bf16.vlgmr.msra.gmra.mrb[0].mxu1 %v6982_v32  ;;  %v4402_v18 = vshll.u32 %v8471_v20, 16  ;;  %v8489_v21 = vsel %vm7433_vm5, %v4862_v60, %v4863_v59  ;;  %v4867_v36 = vrot.slane %v8873_v8, 5  ;;  %v4870_v14 = vrot.slane %v8874_v46, 5  ;;  %6523 = vmatprep.mubr.bf16.mxu0 %v8385_v10  ;;  %v6987_v60 = vld [vmem:[#allocation2 + $0x3c] sm:$0xff]  }
 0x11f   : > { %6591 = vmatpush3.bf16.msra.mxu1 %v8872_v22  ;;  %6315 = vmatprep.mubr.bf16.mxu1 %v6984_v42  ;;  %v4375_v52 = vor.u32 %v4374_v58, %v4371_v56  ;;  %v4406_v44 = vshrl.u32 %v8471_v20, 16  ;;  %v5916_v17 = vcombine.low %v8476_v31, %v8489_v21  ;;  %v2616_v32 = vor.u32 %v2615_v38, %v2612_v0  ;;  %v4748_v56 = vld [vmem:[#allocation2 + $0x90] sm:$0xe]  ;;  %v8515_v22 = vld [vmem:[#allocation2 + $0xd4] sm:$0x1] }
 0x120   : > { %6584 = vmatprep.subr.bf16.mxu1 %v7042_v57  ;;  %v4385_v7 = vor.u32 %v4384_v50, %v8468_v2  ;;  %v4388_v45 = vshll.u32 %v8482_v54, 16  ;;  %v8504_v42 = vsel %vm7433_vm5, %v5885_v6, %v4867_v36  ;;  %v4869_v10 = vrot.slane %v4867_v36, 4  ;;  %v6985_v58 = vld [vmem:[#allocation2 + $0x30] sm:$0xff]   ;;  %v8875_v36 = vld [vmem:[#allocation16_spill] sm:$0xff] }
 0x121   : > { %v5864_v33 = vcombine.low %v4333_v19, %v4343_v29  ;;  %v4352_v59 = vrot.slane %v4351_v9, 4  ;;  %v4362_v62 = vrot.slane %v4361_v4, 4  ;;  %v2617_v61 = vrot.slane %v2616_v32, 4  ;;  %v7043_v6 = vld [vmem:[%s8795_s2 + $0x110] sm:$0xff]   ;;  %v2390_v31 = vld [vmem:[#allocation2 + $0xc0] sm:$0xf] }
 0x122   : > { %v4395_v63 = vrot.slane %v4393_v35, 4  ;;  %v4398_v0 = vrot.slane %v4396_v47, 5  ;;  %v8506_v38 = vrot.slane %v4402_v18, 5  ;;  %v8510_v50 = vsel %vm7433_vm5, %v4869_v10, %v4870_v14  ;;  %v7045_v10 = vld [vmem:[#allocation2 + $0x1c] sm:$0xf] }
 0x123   : > { %6592 = vmatpush3.bf16.msra.mxu1 %v7042_v57  ;;  %v4408_v19 = vrot.slane %v4406_v44, 4  ;;  %v2622_v9 = vsel %vm7223_vm2, %v2617_v61, %v8868_v1  ;;  %v5917_v29 = vcombine.low %v8504_v42, %v8510_v50  ;;  %v5886_v4 = vrot.slane %v4748_v56, 9  ;;  %v6990_v61 = vld [vmem:[#allocation2 + $0x54] sm:$0xff]  }
 0x124   : > { %6585 = vmatprep.subr.bf16.mxu1 %v7043_v6  ;;  %v4376_v35 = vrot.slane %v4375_v52, 4  ;;  %v4386_v47 = vrot.slane %v4385_v7, 4  ;;  %v4390_v18 = vrot.slane %v4388_v45, 5  ;;  %v8522_v8 = vcombine.low %v2622_v9, %v2632_v37  ;;  %v4749_v37 = vld [vmem:[#allocation2 + $0x9c] sm:$0xe] }
 0x125   : > { %v4874_v46 = vrot.slane %v8875_v36, 5  ;;  %v4877_v14 = vrot.slane %v8226_v55, 5  ;;  %6524 = vmatmul.mubr.bf16.gmra.mrb[20].mxu0 %v8387_v27  ;;  %v4357_v1 = vsel %vm7223_vm2, %v4352_v59, %v8380_v41  ;;  %v4367_v52 = vsel %vm7223_vm2, %v4362_v62, %v8462_v26  ;;  %v4738_v55 = vld [vmem:[#allocation2 + $0x18] sm:$0xe] }
 0x126   : > { %6316 = vmatmul.mubr.bf16.gmra.mrb[4].mxu1 %v6985_v58  ;;  %v4412_v44 = vshll.u32 %v8515_v22, 16  ;;  %6527 = vmatprep.mubr.bf16.mxu0 %v5864_v33  ;;  %v4399_v32 = vor.u32 %v4398_v0, %v4395_v63  ;;  %v4409_v57 = vor.u32 %v4408_v19, %v8506_v38  ;;  %v4381_v41 = vsel %vm7223_vm2, %v4376_v35, %v8468_v2  ;;  %v7044_v45 = vld [vmem:[%s8795_s2 + $0x118] sm:$0xff]   ;;  %v6988_v58 = vld [vmem:[#allocation2 + $0x48] sm:$0xff]  }
 0x127   : > { %6319 = vmatprep.mubr.bf16.mxu1 %v6987_v60  ;;  %6593 = vmatpush3.bf16.msra.mxu1 %v7043_v6  ;;  %v8537_v27 = vsel %vm7433_vm5, %v5886_v4, %v4874_v46  ;;  %v4876_v7 = vrot.slane %v4874_v46, 4  ;;  %v4391_v26 = vsel %vm7223_vm2, %v4386_v47, %v4390_v18  ;;  %v4804_v56 = vrot.slane %v7045_v10, 5  ;;  %v8876_v0 = vld [vmem:[#allocation17_spill] sm:$0xff]  ;;  %v7046_v18 = vld [vmem:[#allocation2 + $0x20] sm:$0x1] }
 0x128   : > { %6586 = vmatprep.subr.bf16.mxu1 %v7044_v45  ;;  %v5865_v33 = vcombine.low %v4357_v1, %v4367_v52  ;;  %v5887_v62 = vrot.slane %v4749_v37, 9  ;;  %v4414_v60 = vrot.slane %v4412_v44, 5  ;;  %v5876_v2 = vrot.slane %v4738_v55, 9  ;;  %v7047_v46 = vld [vmem:[%s8795_s2 + $0x120] sm:$0xff]   ;;  %v4750_v52 = vld [vmem:[#allocation2 + $0xa8] sm:$0xe] }
 0x129   : > { %v8549_v59 = vsel %vm7433_vm5, %v4876_v7, %v4877_v14  ;;  %v4881_v6 = vrot.slane %v8876_v0, 5  ;;  %v5866_v19 = vcombine.low %v4381_v41, %v4391_v26  ;;  %v4400_v9 = vrot.slane %v4399_v32, 4  ;;  %v4739_v26 = vld [vmem:[#allocation2 + $0x24] sm:$0xe] }
 0x12a   : > { %v5918_v63 = vcombine.low %v8537_v27, %v8549_v59  ;;  %v4410_v4 = vrot.slane %v4409_v57, 4  ;;  %v4884_v35 = vrot.slane %v8240_v34, 5  ;;  %v4806_v47 = vrot.slane %v4804_v56, 4  ;;  %v7048_v57 = vld [vmem:[#allocation2 + $0x28] sm:$0xf] }
 0x12b   : > { %6594 = vmatpush3.bf16.msra.mxu1 %v7044_v45  ;;  %v4807_v36 = vrot.slane %v7046_v18, 5  ;;  %v8560_v14 = vsel %vm7433_vm5, %v5887_v62, %v4881_v6  ;;  %v4883_v1 = vrot.slane %v4881_v6, 4  ;;  %v4805_v34 = vsel %vm7433_vm5, %v5876_v2, %v4804_v56  ;;  %v7049_v45 = vld [vmem:[#allocation2 + $0x34] sm:$0xf]  ;;  %v7050_v56 = vld [vmem:[%s8795_s2 + $0x128] sm:$0xff]  }
 0x12c   : > { %6587 = vmatprep.subr.bf16.mxu1 %v7047_v46  ;;  %v4405_v37 = vsel %vm7223_vm2, %v4400_v9, %v8506_v38  ;;  %v4415_v32 = vsel %vm7223_vm2, %v4410_v4, %v4414_v60  ;;  %v4811_v55 = vrot.slane %v7048_v57, 5  ;;  %v4818_v10 = vrot.slane %v7049_v45, 5  ;;  %v4740_v62 = vld [vmem:[#allocation2 + $0x30] sm:$0xe]  ;;  %v4751_v18 = vld [vmem:[#allocation2 + $0xb4] sm:$0xe] }
 0x12d   : > { %6528 = vmatmul.mubr.bf16.gmra.mrb[24].mxu0 %v5865_v33  ;;  %v8566_v44 = vsel %vm7433_vm5, %v4883_v1, %v4884_v35  ;;  %v4808_v41 = vsel %vm7433_vm5, %v4806_v47, %v4807_v36  ;;  %v5888_v38 = vrot.slane %v4750_v52, 9  ;;  %v6991_v33 = vld [vmem:[#allocation2 + $0x60] sm:$0xff]   ;;  %v5867_v60 = vcombine.low %v4405_v37, %v4415_v32  ;;  %v6993_v2 = vld [vmem:[#allocation2 + $0x6c] sm:$0xff]   ;;  %v4741_v37 = vld [vmem:[#allocation2 + $0x3c] sm:$0xe] }
 0x12e   : > { %6320 = vmatmul.mubr.bf16.gmra.mrb[8].mxu1 %v6988_v58  ;;  %6531 = vmatprep.mubr.bf16.mxu0 %v5866_v19  ;;  %v5919_v7 = vcombine.low %v8560_v14, %v8566_v44  ;;  %v4888_v58 = vrot.slane %v8242_v28, 5  ;;  %v5908_v19 = vcombine.low %v4805_v34, %v4808_v41  ;;  %v5877_v9 = vrot.slane %v4739_v26, 9  ;;  %v7051_v35 = vld [vmem:[#allocation2 + $0x2c] sm:$0x1]  ;;  %v7054_v32 = vld [vmem:[#allocation2 + $0x40] sm:$0xf] }
 0x12f   : > { %6323 = vmatprep.mubr.bf16.mxu1 %v6990_v61  ;;  %6595 = vmatpush3.bf16.msra.mxu1 %v7047_v46  ;;  %v4891_v61 = vrot.slane %v8270_v12, 5  ;;  %v4813_v4 = vrot.slane %v4811_v55, 4  ;;  %v4814_v47 = vrot.slane %v7051_v35, 5  ;;  %v5878_v36 = vrot.slane %v4740_v62, 9  ;;  %v7052_v46 = vld [vmem:[#allocation2 + $0x38] sm:$0x1] }
 0x130   : > { %6588 = vmatprep.subr.bf16.mxu1 %v7050_v56  ;;  %v8584_v0 = vsel %vm7433_vm5, %v5888_v38, %v4888_v58  ;;  %v4890_v6 = vrot.slane %v4888_v58, 4  ;;  %v4820_v28 = vrot.slane %v4818_v10, 4  ;;  %v4821_v1 = vrot.slane %v7052_v46, 5  ;;  %v7053_v12 = vld [vmem:[%s8795_s2 + $0x130] sm:$0xff]   ;;  %v2369_v62 = vld [vmem:[#allocation2 + $0x6c] sm:$0xf] }
 0x131   : > { %v4825_v57 = vrot.slane %v7054_v32, 5  ;;  %v5889_v41 = vrot.slane %v4751_v18, 9  ;;  %v4895_v26 = vrot.slane %v8312_v40, 5  ;;  %v4812_v45 = vsel %vm7433_vm5, %v5877_v9, %v4811_v55  ;;  %v7055_v40 = vld [vmem:[%s8795_s2 + $0x138] sm:$0xff]   ;;  %v7056_v9 = vld [vmem:[#allocation2 + $0x44] sm:$0x1] }
 0x132   : > { %v8591_v52 = vsel %vm7433_vm5, %v4890_v6, %v4891_v61  ;;  %v4898_v38 = vrot.slane %v8350_v24, 5  ;;  %v4819_v58 = vsel %vm7433_vm5, %v5878_v36, %v4818_v10  ;;  %v4752_v24 = vld [vmem:[#allocation2 + $0xc0] sm:$0xe]  ;;  %v2586_v18 = vshrl.u32 %v2369_v62, 16  ;;  %v7057_v46 = vld [vmem:[#allocation2 + $0x70] sm:$0xf] }
 0x133   : > { %6596 = vmatpush3.bf16.msra.mxu1 %v7050_v56  ;;  %v5920_v34 = vcombine.low %v8584_v0, %v8591_v52  ;;  %v4815_v56 = vsel %vm7433_vm5, %v4813_v4, %v4814_v47  ;;  %v8610_v55 = vsel %vm7433_vm5, %v5889_v41, %v4895_v26  ;;  %v4897_v61 = vrot.slane %v4895_v26, 4 }
 0x134   : > { %6589 = vmatprep.subr.bf16.mxu1 %v7053_v12  ;;  %v5909_v6 = vcombine.low %v4812_v45, %v4815_v56  ;;  %v4827_v10 = vrot.slane %v4825_v57, 4  ;;  %v4828_v4 = vrot.slane %v7056_v9, 5  ;;  %v2589_v36 = vshll.u32 %v2369_v62, 16  ;;  %v4753_v56 = vld [vmem:[#allocation2 + $0xcc] sm:$0xe]  ;;  %v6996_v62 = vld [vmem:[#allocation2 + $0x90] sm:$0xff]  }
 0x135   : > { %6532 = vmatmul.mubr.bf16.gmra.mrb[28].mxu0 %v5867_v60  ;;  %v6994_v60 = vld [vmem:[#allocation2 + $0x78] sm:$0xff]   ;;  %v8614_v35 = vsel %vm7433_vm5, %v4897_v61, %v4898_v38  ;;  %v4902_v32 = vrot.slane %v8371_v15, 5  ;;  %v4905_v41 = vrot.slane %v8482_v54, 5  ;;  %v2588_v38 = vrot.slane %v2586_v18, 4 }
 0x136   : > { %6324 = vmatmul.mubr.bf16.gmra.mrb[12].mxu1 %v6991_v33  ;;  %6551 = vmatprep.mubr.bf16.mxu0 %v5908_v19  ;;  %v4822_v33 = vsel %vm7433_vm5, %v4820_v28, %v4821_v1  ;;  %v6995_v19 = vld [vmem:[#allocation2 + $0x84] sm:$0xff]   ;;  %v5921_v28 = vcombine.low %v8610_v55, %v8614_v35  ;;  %v2595_v1 = vshll.u32 %v7057_v46, 16  ;;  %v4829_v45 = vsel %vm7433_vm5, %v4827_v10, %v4828_v4 }
 0x137   : > { %6327 = vmatprep.mubr.bf16.mxu1 %v6993_v2  ;;  %6597 = vmatpush3.bf16.msra.mxu1 %v7053_v12  ;;  %v5879_v2 = vrot.slane %v4741_v37, 9  ;;  %v5910_v47 = vcombine.low %v4819_v58, %v4822_v33  ;;  %v2599_v12 = vshrl.u32 %v7057_v46, 16  ;;  %v5890_v37 = vrot.slane %v4752_v24, 9  ;;  %v2375_v24 = vld [vmem:[#allocation2 + $0x84] sm:$0xf] }
 0x138   : > { %6590 = vmatprep.subr.bf16.mxu1 %v7055_v40  ;;  %v2591_v58 = vrot.slane %v2589_v36, 5  ;;  %v8628_v15 = vrot.slane %v2595_v1, 5  ;;  %v4909_v10 = vrot.slane %v8471_v20, 5  ;;  %v4912_v9 = vrot.slane %v8515_v22, 5  ;;  %v2378_v22 = vld [vmem:[#allocation2 + $0x90] sm:$0xf] }
 0x139   : > { %v4826_v26 = vsel %vm7433_vm5, %v5879_v2, %v4825_v57  ;;  %v8626_v33 = vsel %vm7433_vm5, %v5890_v37, %v4902_v32  ;;  %v2601_v54 = vrot.slane %v2599_v12, 4  ;;  %v5891_v57 = vrot.slane %v4753_v56, 9  ;;  %v6997_v2 = vld [vmem:[#allocation2 + $0x9c] sm:$0xff]   ;;  %v7059_v37 = vld [vmem:[#allocation2 + $0x88] sm:$0xf] }
 0x13a   : > { %v2634_v36 = vshrl.u32 %v2375_v24, 16  ;;  %v2637_v46 = vshll.u32 %v2375_v24, 16  ;;  %v4911_v12 = vrot.slane %v4909_v10, 4  ;;  %v2658_v39 = vshrl.u32 %v2378_v22, 16 }
 0x13b   : > { %6598 = vmatpush3.bf16.msra.mxu1 %v7055_v40  ;;  %v4904_v40 = vrot.slane %v4902_v32, 4  ;;  %v2602_v4 = vor.u32 %v2601_v54, %v8628_v15  ;;  %v8641_v1 = vsel %vm7433_vm5, %v5891_v57, %v4909_v10  ;;  %v2643_v32 = vshll.u32 %v7059_v37, 16  ;;  %v6999_v57 = vld [vmem:[#allocation2 + $0xb4] sm:$0xff]  }
 0x13c   : > { %v2639_v54 = vrot.slane %v2637_v46, 5 }
 0x13d   : > { %6552 = vmatmul.mubr.bf16.vlgmr.msra.gmra.mrb[0].mxu0 %v5909_v6  ;;  %v8632_v61 = vsel %vm7433_vm5, %v4904_v40, %v4905_v41  ;;  %v2647_v41 = vshrl.u32 %v7059_v37, 16  ;;  %v2636_v40 = vrot.slane %v2634_v36, 4  ;;  %v7062_v36 = vld [vmem:[#allocation2 + $0xa0] sm:$0xf] }
 0x13e   : > { %6328 = vmatmul.mubr.bf16.gmra.mrb[16].mxu1 %v6994_v60  ;;  %6555 = vmatprep.mubr.bf16.mxu0 %v5910_v47  ;;  %v5911_v60 = vcombine.low %v4826_v26, %v4829_v45  ;;  %v5922_v6 = vcombine.low %v8626_v33, %v8632_v61  ;;  %v7058_v47 = vld [vmem:[#allocation2 + $0x74] sm:$0x1]  ;;  %v8648_v26 = vsel %vm7433_vm5, %v4911_v12, %v4912_v9  ;;  %v6998_v45 = vld [vmem:[#allocation2 + $0xa8] sm:$0xff]   ;;  %v2691_v46 = vshll.u32 %v7062_v36, 16 }
 0x13f   : > { %6331 = vmatprep.mubr.bf16.mxu1 %v6995_v19  ;;  %v2592_v19 = vor.u32 %v2591_v58, %v2588_v38  ;;  %v2605_v18 = vshll.u32 %v7058_v47, 16  ;;  %v5923_v56 = vcombine.low %v8641_v1, %v8648_v26  ;;  %v2603_v38 = vrot.slane %v2602_v4, 4  ;;  %v7061_v47 = vld [vmem:[#allocation2 + $0x8c] sm:$0x1] }
 0x140   : > { %v2649_v16 = vrot.slane %v2647_v41, 4  ;;  %v2695_v12 = vshrl.u32 %v7062_v36, 16  ;;  %v8668_v3 = vrot.slane %v2691_v46, 5 }
 0x141   : > { %v2593_v20 = vrot.slane %v2592_v19, 4  ;;  %v2607_v58 = vrot.slane %v2605_v18, 5  ;;  %v2653_v18 = vshll.u32 %v7061_v47, 16 }
 0x142   : > { %v2697_v11 = vrot.slane %v2695_v12, 4 }
 0x143   : > { %v2598_v51 = vsel %vm7223_vm2, %v2593_v20, %v8628_v15  ;;  %v2608_v4 = vsel %vm7223_vm2, %v2603_v38, %v2607_v58  ;;  %v2640_v15 = vor.u32 %v2639_v54, %v2636_v40  ;;  %v7000_v58 = vld [vmem:[#allocation2 + $0xc0] sm:$0xff]  }
 0x145   : > { %6556 = vmatmul.mubr.bf16.gmra.mrb[4].mxu0 %v5911_v60  ;;  %v8652_v60 = vrot.slane %v2643_v32, 5  ;;  %v2660_v32 = vrot.slane %v2658_v39, 4  ;;  %v2641_v40 = vrot.slane %v2640_v15, 4 }
 0x146   : > { %6332 = vmatmul.mubr.bf16.gmra.mrb[20].mxu1 %v6996_v62  ;;  %6559 = vmatprep.mubr.bf16.mxu0 %v5912_v13  ;;  %v2381_v62 = vld [vmem:[#allocation2 + $0x9c] sm:$0xf]  ;;  %v2661_v13 = vshll.u32 %v2378_v22, 16 }
 0x147   : > { %6335 = vmatprep.mubr.bf16.mxu1 %v6997_v2  ;;  %v7060_v2 = vld [vmem:[#allocation2 + $0x94] sm:$0xf]  ;;  %v2682_v10 = vshrl.u32 %v2381_v62, 16  ;;  %v2685_v9 = vshll.u32 %v2381_v62, 16  ;;  %v2650_v37 = vor.u32 %v2649_v16, %v8652_v60  ;;  %v5724_v62 = vcombine.low %v2598_v51, %v2608_v4  ;;  %v7063_v16 = vld [vmem:[#allocation2 + $0x98] sm:$0x1] }
 0x148   : > { %v2667_v24 = vshll.u32 %v7060_v2, 16  ;;  %v2671_v19 = vshrl.u32 %v7060_v2, 16  ;;  %v2663_v41 = vrot.slane %v2661_v13, 5  ;;  %v2655_v2 = vrot.slane %v2653_v18, 5 }
 0x149   : > { %v2687_v38 = vrot.slane %v2685_v9, 5  ;;  %v2651_v54 = vrot.slane %v2650_v37, 4  ;;  %v2677_v39 = vshll.u32 %v7063_v16, 16  ;;  %v2698_v51 = vor.u32 %v2697_v11, %v8668_v3  ;;  %v7065_v9 = vld [vmem:[#allocation2 + $0xac] sm:$0xf] }
 0x14a   : > { %v8666_v20 = vrot.slane %v2667_v24, 5  ;;  %v2673_v22 = vrot.slane %v2671_v19, 4  ;;  %v2387_v19 = vld [vmem:[#allocation2 + $0xb4] sm:$0xf]  ;;  %v2715_v4 = vshll.u32 %v7065_v9, 16  ;;  %v2719_v47 = vshrl.u32 %v7065_v9, 16 }
 0x14b   : > { %v2646_v18 = vsel %vm7223_vm2, %v2641_v40, %v8652_v60  ;;  %v2656_v36 = vsel %vm7223_vm2, %v2651_v54, %v2655_v2  ;;  %v2679_v12 = vrot.slane %v2677_v39, 5  ;;  %v2730_v15 = vshrl.u32 %v2387_v19, 16 }
 0x14c   : > { %v2674_v43 = vor.u32 %v2673_v22, %v8666_v20  ;;  %v2733_v37 = vshll.u32 %v2387_v19, 16  ;;  %v5726_v2 = vcombine.low %v2646_v18, %v2656_v36 }
 0x14d   : > { %6560 = vmatmul.mubr.bf16.gmra.mrb[8].mxu0 %v5913_v48  ;;  %v2384_v48 = vld [vmem:[#allocation2 + $0xa8] sm:$0xf]  ;;  %v2732_v11 = vrot.slane %v2730_v15, 4 }
 0x14e   : > { %6336 = vmatmul.mubr.bf16.gmra.mrb[24].mxu1 %v6998_v45  ;;  %6563 = vmatprep.mubr.bf16.mxu0 %v5914_v30  ;;  %v2684_v45 = vrot.slane %v2682_v10, 4  ;;  %v7064_v30 = vld [vmem:[#allocation2 + $0xa4] sm:$0x1]  ;;  %v2706_v24 = vshrl.u32 %v2384_v48, 16  ;;  %v2709_v10 = vshll.u32 %v2384_v48, 16  ;;  %v2675_v49 = vrot.slane %v2674_v43, 4 }
 0x14f   : > { %6339 = vmatprep.mubr.bf16.mxu1 %v6999_v57  ;;  %v2664_v57 = vor.u32 %v2663_v41, %v2660_v32  ;;  %v2701_v13 = vshll.u32 %v7064_v30, 16  ;;  %v7066_v32 = vld [vmem:[#allocation2 + $0xb8] sm:$0xf]  ;;  %v2735_v48 = vrot.slane %v2733_v37, 5 }
 0x150   : > { %v2688_v5 = vor.u32 %v2687_v38, %v2684_v45  ;;  %v2739_v41 = vshll.u32 %v7066_v32, 16  ;;  %v2743_v25 = vshrl.u32 %v7066_v32, 16  ;;  %v2708_v45 = vrot.slane %v2706_v24, 4  ;;  %v7068_v24 = vld [vmem:[#allocation2 + $0xc4] sm:$0xf] }
 0x151   : > { %v2665_v46 = vrot.slane %v2664_v57, 4  ;;  %v2703_v22 = vrot.slane %v2701_v13, 5  ;;  %v2699_v38 = vrot.slane %v2698_v51, 4  ;;  %v2711_v60 = vrot.slane %v2709_v10, 5  ;;  %v7067_v57 = vld [vmem:[#allocation2 + $0xb0] sm:$0x1] }
 0x152   : > { %v2741_v40 = vrot.slane %v2739_v41, 5  ;;  %v2745_v54 = vrot.slane %v2743_v25, 4  ;;  %v2725_v16 = vshll.u32 %v7067_v57, 16  ;;  %v2757_v13 = vshll.u32 %v2390_v31, 16  ;;  %v7069_v10 = vld [vmem:[#allocation2 + $0xbc] sm:$0x1] }
 0x153   : > { %v2670_v21 = vsel %vm7223_vm2, %v2665_v46, %v8666_v20  ;;  %v2704_v43 = vsel %vm7223_vm2, %v2699_v38, %v2703_v22  ;;  %v2754_v20 = vshrl.u32 %v2390_v31, 16  ;;  %v2763_v19 = vshll.u32 %v7068_v24, 16  ;;  %v7070_v25 = vld [vmem:[#allocation2 + $0xc8] sm:$0x1] }
 0x154   : > { %v2767_v51 = vshrl.u32 %v7068_v24, 16  ;;  %v2749_v9 = vshll.u32 %v7069_v10, 16  ;;  %v2727_v42 = vrot.slane %v2725_v16, 5 }
 0x155   : > { %6564 = vmatmul.mubr.bf16.gmra.mrb[12].mxu0 %v5915_v23  ;;  %v2689_v23 = vrot.slane %v2688_v5, 4  ;;  %v2712_v5 = vor.u32 %v2711_v60, %v2708_v45  ;;  %v2756_v50 = vrot.slane %v2754_v20, 4  ;;  %v2765_v46 = vrot.slane %v2763_v19, 5 }
 0x156   : > { %6340 = vmatmul.mubr.bf16.gmra.mrb[28].mxu1 %v7000_v58  ;;  %6567 = vmatprep.mubr.bf16.mxu0 %v5916_v17  ;;  %v2717_v58 = vrot.slane %v2715_v4, 5  ;;  %v2680_v17 = vsel %vm7223_vm2, %v2675_v49, %v2679_v12  ;;  %v2769_v12 = vrot.slane %v2767_v51, 4  ;;  %v2751_v32 = vrot.slane %v2749_v9, 5 }
 0x157   : > { %6375 = vmatprep.mubr.bf16.mxu1 %v5724_v62  ;;  %v2721_v62 = vrot.slane %v2719_v47, 4  ;;  %v2694_v39 = vsel %vm7223_vm2, %v2689_v23, %v8668_v3  ;;  %v2746_v3 = vor.u32 %v2745_v54, %v2741_v40  ;;  %v5727_v4 = vcombine.low %v2670_v21, %v2680_v17 }
 0x158   : > { %v5728_v47 = vcombine.low %v2694_v39, %v2704_v43  ;;  %v2713_v18 = vrot.slane %v2712_v5, 4  ;;  %v2770_v41 = vor.u32 %v2769_v12, %v2765_v46  ;;  %v2773_v49 = vshll.u32 %v7070_v25, 16 }
 0x159   : > { %v2722_v30 = vor.u32 %v2721_v62, %v2717_v58  ;;  %v2747_v37 = vrot.slane %v2746_v3, 4 }
 0x15a   : > { %v2718_v27 = vsel %vm7223_vm2, %v2713_v18, %v2717_v58  ;;  %v2771_v45 = vrot.slane %v2770_v41, 4  ;;  %v2775_v38 = vrot.slane %v2773_v49, 5 }
 0x15b   : > { %v2723_v36 = vrot.slane %v2722_v30, 4  ;;  %v2752_v22 = vsel %vm7223_vm2, %v2747_v37, %v2751_v32 }
 0x15c   : > { %v2776_v52 = vsel %vm7223_vm2, %v2771_v45, %v2775_v38 }
 0x15d   : > { %6568 = vmatmul.mubr.bf16.gmra.mrb[16].mxu0 %v5917_v29  ;;  %v2759_v29 = vrot.slane %v2757_v13, 5  ;;  %v2728_v59 = vsel %vm7223_vm2, %v2723_v36, %v2727_v42 }
 0x15e   : > { %6376 = vmatmul.mubr.bf16.vlgmr.msra.gmra.mrb[16].mxu1 %v8522_v8  ;;  %6571 = vmatprep.mubr.bf16.mxu0 %v5918_v63  ;;  %v2736_v8 = vor.u32 %v2735_v48, %v2732_v11  ;;  %v5729_v14 = vcombine.low %v2718_v27, %v2728_v59 }
 0x15f   : > { %6379 = vmatprep.mubr.bf16.mxu1 %v5726_v2  ;;  %v2760_v63 = vor.u32 %v2759_v29, %v2756_v50 }
 0x160   : > { %v2737_v15 = vrot.slane %v2736_v8, 4 }
 0x162   : > { %v2742_v23 = vsel %vm7223_vm2, %v2737_v15, %v2741_v40 }
 0x163   : > { %v5730_v44 = vcombine.low %v2742_v23, %v2752_v22 }
 0x165   : > { %6572 = vmatmul.mubr.bf16.gmra.mrb[20].mxu0 %v5919_v7  ;;  %v2761_v7 = vrot.slane %v2760_v63, 4 }
 0x166   : > { %6380 = vmatmul.mubr.bf16.gmra.mrb[20].mxu1 %v5727_v4  ;;  %6575 = vmatprep.mubr.bf16.mxu0 %v5920_v34 }
 0x167   : > { %6383 = vmatprep.mubr.bf16.mxu1 %v5728_v47  ;;  %v2766_v0 = vsel %vm7223_vm2, %v2761_v7, %v2765_v46 }
 0x168   : > { %v5731_v34 = vcombine.low %v2766_v0, %v2776_v52 }
 0x16d   : > { %6576 = vmatmul.mubr.bf16.gmra.mrb[24].mxu0 %v5921_v28 }
 0x16e   : > { %6384 = vmatmul.mubr.bf16.gmra.mrb[24].mxu1 %v5729_v14  ;;  %6579 = vmatprep.mubr.bf16.mxu0 %v5922_v6 }
 0x16f   : > { %6387 = vmatprep.mubr.bf16.mxu1 %v5730_v44 }
 0x175   : > { %6580 = vmatmul.mubr.bf16.gmra.mrb[28].mxu0 %v5923_v56 }
 0x176   : > { %6388 = vmatmul.mubr.bf16.gmra.mrb[28].mxu1 %v5731_v34 }
 0x1f1   : > { %v6313_v60 = vpop.f32.mrb[0].mxu1 }
 0x1f2   : > { %v2186_v55 = vpop.f32.mrb[1].mxu1 }
 0x1f3   : > { %v6314_v35 = vpop.f32.mrb[2].mxu1 }
 0x1f4   : > { %v2189_v28 = vpop.f32.mrb[3].mxu1 }
 0x1f9   : > { %v6317_v58 = vpop.f32.mrb[4].mxu1 }
 0x1fa   : > { %v2202_v62 = vpop.f32.mrb[5].mxu1 }
 0x1fb   : > { %v6318_v2 = vpop.f32.mrb[6].mxu1 }
 0x1fc   : > { %v2205_v53 = vpop.f32.mrb[7].mxu1 }
 0x201   : > { %v6321_v11 = vpop.f32.mrb[8].mxu1 }
 0x202   : > { %v2218_v48 = vpop.f32.mrb[9].mxu1 }
 0x203   : > { %v6322_v40 = vpop.f32.mrb[10].mxu1 }
 0x204   : > { %v8727_v33 = vpop.f32.mrb[11].mxu1 }
 0x209   : > { %v8729_v61 = vpop.f32.mrb[12].mxu1 }
 0x20a   : > { %v8731_v6 = vpop.f32.mrb[13].mxu1 }
 0x20b   : > { %v8733_v1 = vpop.f32.mrb[14].mxu1 }
 0x20c   : > { %v8735_v26 = vpop.f32.mrb[15].mxu1 }
 0x210   : > { %v6553_v56 = vpop.f32.mrb[0].mxu0 }
 0x211   : > { %v6599_v54 = vadd.f32 %v6553_v56, %v6313_v60  ;;  %v5077_v31 = vpop.f32.mrb[1].mxu0 }
 0x212   : > { %v6600_v21 = vadd.f32 %v5077_v31, %v2186_v55  ;;  %v6554_v17 = vpop.f32.mrb[2].mxu0 }
 0x213   : > { %5238 = vst [vmem:[%s8741_s13 + $0x10] sm:$0xff] %v6599_v54  ;;  %v6601_v57 = vadd.f32 %v6554_v17, %v6314_v35  ;;  %v5080_v16 = vpop.f32.mrb[3].mxu0  ;;  %v5308_v20 = vmul.f32 %v6599_v54, %v6599_v54 }
 0x214   : > { %5236 = vst [vmem:[%s8741_s13] sm:$0xff] %v6600_v21  ;;  %v6602_v39 = vadd.f32 %v5080_v16, %v2189_v28  ;;  %v5306_v43 = vmul.f32 %v6600_v21, %v6600_v21 }
 0x215   : > { %5239 = vst [vmem:[%s8741_s13 + $0x18] sm:$0xff] %v6601_v57  ;;  %v5309_v3 = vmul.f32 %v6601_v57, %v6601_v57 }
 0x216   : > { %5237 = vst [vmem:[%s8741_s13 + $0x8] sm:$0xff] %v6602_v39  ;;  %v5268_v5 = vadd.f32 %v6602_v39, %v6600_v21  ;;  %v5307_v30 = vmul.f32 %v6602_v39, %v6602_v39 }
 0x218   : > { %v5269_v13 = vadd.f32 %v6599_v54, %v5268_v5  ;;  %v5338_v24 = vadd.f32 %v5307_v30, %v5306_v43  ;;  %v6557_v19 = vpop.f32.mrb[4].mxu0 }
 0x219   : > { %v6603_v51 = vadd.f32 %v6557_v19, %v6317_v58  ;;  %v5093_v8 = vpop.f32.mrb[5].mxu0 }
 0x21a   : > { %v5339_v10 = vadd.f32 %v5338_v24, %v5308_v20  ;;  %v6604_v9 = vadd.f32 %v5093_v8, %v2202_v62  ;;  %v5270_v4 = vadd.f32 %v6601_v57, %v5269_v13  ;;  %v6558_v47 = vpop.f32.mrb[6].mxu0 }
 0x21b   : > { %5242 = vst [vmem:[%s8741_s13 + $0x30] sm:$0xff] %v6603_v51  ;;  %v6605_v18 = vadd.f32 %v6558_v47, %v6318_v2  ;;  %v5096_v36 = vpop.f32.mrb[7].mxu0  ;;  %v5312_v32 = vmul.f32 %v6603_v51, %v6603_v51 }
 0x21c   : > { %5240 = vst [vmem:[%s8741_s13 + $0x20] sm:$0xff] %v6604_v9  ;;  %v5271_v42 = vadd.f32 %v6604_v9, %v5270_v4  ;;  %v5310_v50 = vmul.f32 %v6604_v9, %v6604_v9  ;;  %v5340_v29 = vadd.f32 %v5339_v10, %v5309_v3  ;;  %v6606_v46 = vadd.f32 %v5096_v36, %v2205_v53 }
 0x21d   : > { %5243 = vst [vmem:[%s8741_s13 + $0x38] sm:$0xff] %v6605_v18  ;;  %v5313_v49 = vmul.f32 %v6605_v18, %v6605_v18 }
 0x21e   : > { %v5341_v12 = vadd.f32 %v5340_v29, %v5310_v50  ;;  %5241 = vst [vmem:[%s8741_s13 + $0x28] sm:$0xff] %v6606_v46  ;;  %v5272_v15 = vadd.f32 %v6606_v46, %v5271_v42  ;;  %v5311_v37 = vmul.f32 %v6606_v46, %v6606_v46 }
 0x220   : > { %v5273_v27 = vadd.f32 %v6603_v51, %v5272_v15  ;;  %v5342_v59 = vadd.f32 %v5341_v12, %v5311_v37  ;;  %v6561_v63 = vpop.f32.mrb[8].mxu0 }
 0x221   : > { %v6607_v41 = vadd.f32 %v6561_v63, %v6321_v11  ;;  %v5109_v25 = vpop.f32.mrb[9].mxu0 }
 0x222   : > { %v5343_v23 = vadd.f32 %v5342_v59, %v5312_v32  ;;  %v6608_v22 = vadd.f32 %v5109_v25, %v2218_v48  ;;  %v5274_v14 = vadd.f32 %v6605_v18, %v5273_v27  ;;  %v6562_v44 = vpop.f32.mrb[10].mxu0 }
 0x223   : > { %5246 = vst [vmem:[%s8741_s13 + $0x50] sm:$0xff] %v6607_v41  ;;  %v6609_v7 = vadd.f32 %v6562_v44, %v6322_v40  ;;  %v5112_v45 = vpop.f32.mrb[11].mxu0  ;;  %v5316_v28 = vmul.f32 %v6607_v41, %v6607_v41 }
 0x224   : > { %5244 = vst [vmem:[%s8741_s13 + $0x40] sm:$0xff] %v6608_v22  ;;  %v5275_v38 = vadd.f32 %v6608_v22, %v5274_v14  ;;  %v5314_v0 = vmul.f32 %v6608_v22, %v6608_v22  ;;  %v5344_v52 = vadd.f32 %v5343_v23, %v5313_v49  ;;  %v6610_v34 = vadd.f32 %v5112_v45, %v8727_v33 }
 0x225   : > { %5247 = vst [vmem:[%s8741_s13 + $0x58] sm:$0xff] %v6609_v7  ;;  %v5317_v48 = vmul.f32 %v6609_v7, %v6609_v7 }
 0x226   : > { %v5345_v60 = vadd.f32 %v5344_v52, %v5314_v0  ;;  %5245 = vst [vmem:[%s8741_s13 + $0x48] sm:$0xff] %v6610_v34  ;;  %v5276_v55 = vadd.f32 %v6610_v34, %v5275_v38  ;;  %v5315_v35 = vmul.f32 %v6610_v34, %v6610_v34 }
 0x228   : > { %v5277_v58 = vadd.f32 %v6607_v41, %v5276_v55  ;;  %v5346_v62 = vadd.f32 %v5345_v60, %v5315_v35  ;;  %v6565_v2 = vpop.f32.mrb[12].mxu0 }
 0x229   : > { %v6611_v53 = vadd.f32 %v6565_v2, %v8729_v61  ;;  %v5125_v11 = vpop.f32.mrb[13].mxu0 }
 0x22a   : > { %v5347_v40 = vadd.f32 %v5346_v62, %v5316_v28  ;;  %v6612_v33 = vadd.f32 %v5125_v11, %v8731_v6  ;;  %v5278_v56 = vadd.f32 %v6609_v7, %v5277_v58  ;;  %v6566_v54 = vpop.f32.mrb[14].mxu0 }
 0x22b   : > { %5250 = vst [vmem:[%s8741_s13 + $0x70] sm:$0xff] %v6611_v53  ;;  %v6613_v31 = vadd.f32 %v6566_v54, %v8733_v1  ;;  %v5128_v21 = vpop.f32.mrb[15].mxu0  ;;  %v5320_v6 = vmul.f32 %v6611_v53, %v6611_v53 }
 0x22c   : > { %5248 = vst [vmem:[%s8741_s13 + $0x60] sm:$0xff] %v6612_v33  ;;  %v5279_v17 = vadd.f32 %v6612_v33, %v5278_v56  ;;  %v5318_v57 = vmul.f32 %v6612_v33, %v6612_v33  ;;  %v5348_v16 = vadd.f32 %v5347_v40, %v5317_v48  ;;  %v6614_v39 = vadd.f32 %v5128_v21, %v8735_v26 }
 0x22d   : > { %5251 = vst [vmem:[%s8741_s13 + $0x78] sm:$0xff] %v6613_v31  ;;  %v5321_v3 = vmul.f32 %v6613_v31, %v6613_v31 }
 0x22e   : > { %v5349_v61 = vadd.f32 %v5348_v16, %v5318_v57  ;;  %5249 = vst [vmem:[%s8741_s13 + $0x68] sm:$0xff] %v6614_v39  ;;  %v5280_v43 = vadd.f32 %v6614_v39, %v5279_v17  ;;  %v5319_v5 = vmul.f32 %v6614_v39, %v6614_v39 }
 0x230   : > { %v5281_v20 = vadd.f32 %v6611_v53, %v5280_v43  ;;  %v5350_v13 = vadd.f32 %v5349_v61, %v5319_v5  ;;  %v6569_v24 = vpop.f32.mrb[16].mxu0 }
 0x231   : > { %v6377_v30 = vpop.f32.mrb[16].mxu1  ;;  %v5141_v51 = vpop.f32.mrb[17].mxu0 }
 0x232   : > { %v3004_v1 = vpop.f32.mrb[17].mxu1  ;;  %v6615_v19 = vadd.f32 %v6569_v24, %v6377_v30  ;;  %v5351_v26 = vadd.f32 %v5350_v13, %v5320_v6  ;;  %v5282_v9 = vadd.f32 %v6613_v31, %v5281_v20  ;;  %v6570_v4 = vpop.f32.mrb[18].mxu0 }
 0x233   : > { %v6378_v8 = vpop.f32.mrb[18].mxu1  ;;  %v6616_v10 = vadd.f32 %v5141_v51, %v3004_v1  ;;  %v5144_v36 = vpop.f32.mrb[19].mxu0 }
 0x234   : > { %v3007_v47 = vpop.f32.mrb[19].mxu1  ;;  %5254 = vst [vmem:[%s8741_s13 + $0x90] sm:$0xff] %v6615_v19  ;;  %v6617_v18 = vadd.f32 %v6570_v4, %v6378_v8  ;;  %v5352_v29 = vadd.f32 %v5351_v26, %v5321_v3  ;;  %v5324_v27 = vmul.f32 %v6615_v19, %v6615_v19 }
 0x235   : > { %5252 = vst [vmem:[%s8741_s13 + $0x80] sm:$0xff] %v6616_v10  ;;  %v5283_v42 = vadd.f32 %v6616_v10, %v5282_v9  ;;  %v5322_v50 = vmul.f32 %v6616_v10, %v6616_v10  ;;  %v6618_v46 = vadd.f32 %v5144_v36, %v3007_v47 }
 0x236   : > { %5255 = vst [vmem:[%s8741_s13 + $0x98] sm:$0xff] %v6617_v18  ;;  %v5325_v14 = vmul.f32 %v6617_v18, %v6617_v18 }
 0x237   : > { %v5353_v12 = vadd.f32 %v5352_v29, %v5322_v50  ;;  %5253 = vst [vmem:[%s8741_s13 + $0x88] sm:$0xff] %v6618_v46  ;;  %v5284_v15 = vadd.f32 %v6618_v46, %v5283_v42  ;;  %v5323_v37 = vmul.f32 %v6618_v46, %v6618_v46 }
 0x238   : > { %v6573_v41 = vpop.f32.mrb[20].mxu0 }
 0x239   : > { %v6381_v32 = vpop.f32.mrb[20].mxu1  ;;  %v5285_v59 = vadd.f32 %v6615_v19, %v5284_v15  ;;  %v5354_v63 = vadd.f32 %v5353_v12, %v5323_v37  ;;  %v5157_v23 = vpop.f32.mrb[21].mxu0 }
 0x23a   : > { %v3020_v25 = vpop.f32.mrb[21].mxu1  ;;  %v6619_v49 = vadd.f32 %v6573_v41, %v6381_v32  ;;  %v6574_v38 = vpop.f32.mrb[22].mxu0 }
 0x23b   : > { %v6382_v22 = vpop.f32.mrb[22].mxu1  ;;  %v5355_v44 = vadd.f32 %v5354_v63, %v5324_v27  ;;  %v6620_v7 = vadd.f32 %v5157_v23, %v3020_v25  ;;  %v5286_v45 = vadd.f32 %v6617_v18, %v5285_v59  ;;  %v5160_v34 = vpop.f32.mrb[23].mxu0 }
 0x23c   : > { %v3023_v0 = vpop.f32.mrb[23].mxu1  ;;  %5258 = vst [vmem:[%s8741_s13 + $0xb0] sm:$0xff] %v6619_v49  ;;  %v6621_v52 = vadd.f32 %v6574_v38, %v6382_v22  ;;  %v5328_v11 = vmul.f32 %v6619_v49, %v6619_v49 }
 0x23d   : > { %5256 = vst [vmem:[%s8741_s13 + $0xa0] sm:$0xff] %v6620_v7  ;;  %v5287_v60 = vadd.f32 %v6620_v7, %v5286_v45  ;;  %v5326_v55 = vmul.f32 %v6620_v7, %v6620_v7  ;;  %v5356_v35 = vadd.f32 %v5355_v44, %v5325_v14  ;;  %v6622_v28 = vadd.f32 %v5160_v34, %v3023_v0 }
 0x23e   : > { %5259 = vst [vmem:[%s8741_s13 + $0xb8] sm:$0xff] %v6621_v52  ;;  %v5329_v17 = vmul.f32 %v6621_v52, %v6621_v52 }
 0x23f   : > { %v5357_v58 = vadd.f32 %v5356_v35, %v5326_v55  ;;  %5257 = vst [vmem:[%s8741_s13 + $0xa8] sm:$0xff] %v6622_v28  ;;  %v5288_v62 = vadd.f32 %v6622_v28, %v5287_v60  ;;  %v5327_v2 = vmul.f32 %v6622_v28, %v6622_v28 }
 0x240   : > { %v6577_v33 = vpop.f32.mrb[24].mxu0 }
 0x241   : > { %v6385_v53 = vpop.f32.mrb[24].mxu1  ;;  %v5289_v48 = vadd.f32 %v6619_v49, %v5288_v62  ;;  %v5358_v40 = vadd.f32 %v5357_v58, %v5327_v2  ;;  %v5173_v31 = vpop.f32.mrb[25].mxu0 }
 0x242   : > { %v3036_v56 = vpop.f32.mrb[25].mxu1  ;;  %v6623_v54 = vadd.f32 %v6577_v33, %v6385_v53  ;;  %v6578_v61 = vpop.f32.mrb[26].mxu0 }
 0x243   : > { %v6386_v21 = vpop.f32.mrb[26].mxu1  ;;  %v5359_v57 = vadd.f32 %v5358_v40, %v5328_v11  ;;  %v6624_v16 = vadd.f32 %v5173_v31, %v3036_v56  ;;  %v5290_v39 = vadd.f32 %v6621_v52, %v5289_v48  ;;  %v5176_v30 = vpop.f32.mrb[27].mxu0 }
 0x244   : > { %v3039_v43 = vpop.f32.mrb[27].mxu1  ;;  %5262 = vst [vmem:[%s8741_s13 + $0xd0] sm:$0xff] %v6623_v54  ;;  %v6625_v5 = vadd.f32 %v6578_v61, %v6386_v21  ;;  %v5332_v3 = vmul.f32 %v6623_v54, %v6623_v54 }
 0x245   : > { %5260 = vst [vmem:[%s8741_s13 + $0xc0] sm:$0xff] %v6624_v16  ;;  %v5291_v6 = vadd.f32 %v6624_v16, %v5290_v39  ;;  %v5330_v20 = vmul.f32 %v6624_v16, %v6624_v16  ;;  %v5360_v13 = vadd.f32 %v5359_v57, %v5329_v17  ;;  %v6626_v24 = vadd.f32 %v5176_v30, %v3039_v43 }
 0x246   : > { %5263 = vst [vmem:[%s8741_s13 + $0xd8] sm:$0xff] %v6625_v5  ;;  %v5333_v42 = vmul.f32 %v6625_v5, %v6625_v5 }
 0x247   : > { %v5361_v1 = vadd.f32 %v5360_v13, %v5330_v20  ;;  %5261 = vst [vmem:[%s8741_s13 + $0xc8] sm:$0xff] %v6626_v24  ;;  %v5292_v19 = vadd.f32 %v6626_v24, %v5291_v6  ;;  %v5331_v51 = vmul.f32 %v6626_v24, %v6626_v24 }
 0x248   : > { %v6581_v9 = vpop.f32.mrb[28].mxu0 }
 0x249   : > { %v6389_v8 = vpop.f32.mrb[28].mxu1  ;;  %v5293_v26 = vadd.f32 %v6623_v54, %v5292_v19  ;;  %v5362_v10 = vadd.f32 %v5361_v1, %v5331_v51  ;;  %v5189_v18 = vpop.f32.mrb[29].mxu0 }
 0x24a   : > { %v3052_v4 = vpop.f32.mrb[29].mxu1  ;;  %v6627_v47 = vadd.f32 %v6581_v9, %v6389_v8  ;;  %v6582_v12 = vpop.f32.mrb[30].mxu0 }
 0x24b   : > { %v6390_v36 = vpop.f32.mrb[30].mxu1  ;;  %v5363_v50 = vadd.f32 %v5362_v10, %v5332_v3  ;;  %v6628_v29 = vadd.f32 %v5189_v18, %v3052_v4  ;;  %v5294_v46 = vadd.f32 %v6625_v5, %v5293_v26  ;;  %v5192_v32 = vpop.f32.mrb[31].mxu0 }
 0x24c   : > { %v3055_v15 = vpop.f32.mrb[31].mxu1  ;;  %5266 = vst [vmem:[%s8741_s13 + $0xf0] sm:$0xff] %v6627_v47  ;;  %v6629_v37 = vadd.f32 %v6582_v12, %v6390_v36  ;;  %v5336_v22 = vmul.f32 %v6627_v47, %v6627_v47 }
 0x24d   : > { %5264 = vst [vmem:[%s8741_s13 + $0xe0] sm:$0xff] %v6628_v29  ;;  %v5295_v27 = vadd.f32 %v6628_v29, %v5294_v46  ;;  %v5334_v59 = vmul.f32 %v6628_v29, %v6628_v29  ;;  %v5364_v63 = vadd.f32 %v5363_v50, %v5333_v42  ;;  %v6630_v41 = vadd.f32 %v5192_v32, %v3055_v15 }
 0x24e   : > { %5267 = vst [vmem:[%s8741_s13 + $0xf8] sm:$0xff] %v6629_v37  ;;  %v5337_v7 = vmul.f32 %v6629_v37, %v6629_v37 }
 0x24f   : > { %v5365_v25 = vadd.f32 %v5364_v63, %v5334_v59  ;;  %5265 = vst [vmem:[%s8741_s13 + $0xe8] sm:$0xff] %v6630_v41  ;;  %v5296_v49 = vadd.f32 %v6630_v41, %v5295_v27  ;;  %v5335_v23 = vmul.f32 %v6630_v41, %v6630_v41 }
 0x251   : > { %v5297_v14 = vadd.f32 %v6627_v47, %v5296_v49  ;;  %v5366_v44 = vadd.f32 %v5365_v25, %v5335_v23 }
 0x253   : > { %v5298_v45 = vadd.f32 %v6629_v37, %v5297_v14  ;;  %v5367_v38 = vadd.f32 %v5366_v44, %v5336_v22 }
 0x255   : > { %v5299_v0 = vrot.slane %v5298_v45, 4  ;;  %v5368_v52 = vadd.f32 %v5367_v38, %v5337_v7 }
 0x257   : > { %v5300_v34 = vadd.f32 %v5299_v0, %v5298_v45  ;;  %v5369_v60 = vrot.slane %v5368_v52, 4 }
 0x259   : > { %v5301_v55 = vrot.slane %v5300_v34, 2  ;;  %v5370_v35 = vadd.f32 %v5369_v60, %v5368_v52 }
 0x25b   : > { %v5302_v28 = vadd.f32 %v5301_v55, %v5300_v34  ;;  %v5371_v58 = vrot.slane %v5370_v35, 2 }
 0x25d   : > { %v5303_v62 = vrot.slane %v5302_v28, 1  ;;  %v5372_v2 = vadd.f32 %v5371_v58, %v5370_v35 }
 0x25f   : > { %v5304_v53 = vadd.f32 %v5303_v62, %v5302_v28  ;;  %v5373_v11 = vrot.slane %v5372_v2, 1 }
 0x261   : > { %5305 = vst [vmem:[%s316_s22] sm:$0x1] %v5304_v53  ;;  %v5374_v48 = vadd.f32 %v5373_v11, %v5372_v2 }
 0x263   : > { %5375 = vst [vmem:[%s316_s22 + $0x1] sm:$0x1] %v5374_v48 }
 0x264 PF: > { %s15_s17 = sadd.s32 1, %s7093_s17   ;;  %s8877_s15 = smov %s7089_s16 }
 0x265   : > { %p12_p5 = scmp.ge.s32.totalorder %s15_s17, 4   ;;  %s8878_s16 = smov %s8880_s18 }
 0x267   :  { %14 = sbr.rel (!%p12_p5) target bundleno = 2 (0x2), region = 88 }

// kernel: block2d_forward.18
= control target key start
LH: loop header
LB: loop body
LE: loop exit
PB: predicated region body
PF: predicated region fallthrough
CT: control target
= control target key end

     0   :  { %s3941_s15 = smov 0   ;;  %s3943_s16 = smov 0   ;;  %s4775_s0 = inlined_call_operand.vmem [shape: bf16[2,9,9,512], index: 0, kind: input, shape index: {}]   ;;  %s4776_s1 = inlined_call_operand.vmem [shape: bf16[2,1,1,9,512], index: 1, kind: input, shape index: {}]   ;;  %s4777_s2 = inlined_call_operand.vmem [shape: bf16[4,512,128], index: 2, kind: input, shape index: {}]   ;;  %s4778_s3 = inlined_call_operand.vmem [shape: f32[2,1,64,128], index: 3, kind: output, shape index: {0}]   ;;  %s4779_s4 = inlined_call_operand.vmem [shape: f32[2,1,2,128], index: 4, kind: output, shape index: {1}]  }
   0x1   :  { %s3945_s17 = smov 0  }
   0x2 LB: > { %s27_s18 = sadd.s32 1, %s3910_s16  ;;  %p3024_p0 = scmp.ge.s32.totalorder %s3914_s17, 1  ;;  %s3914_s17 = sphi %s3945_s17, %s15_s17   ;;  %s3910_s16 = sphi %s3943_s16, %s4785_s16   ;;  %s3906_s15 = sphi %s3941_s15, %s4784_s15  }
   0x3   : > { %p29_p1 = scmp.ge.s32.totalorder %s27_s18, 2  ;;  %p217_p2 = scmp.lt.s32.totalorder %s3914_s17, 3 }
   0x5   : > { %s4787_s18 = smov (%p29_p1, %s27_s18), 0  ;;  %p218_p3 = pnand %p3024_p0, %p217_p2 }
   0x6   : > { %v3764_v0 = vld [vmem:[%s4777_s2 + $0x140] sm:$0xff] (!%p218_p3)   ;;  %v3768_v4 = vld [vmem:[%s4777_s2 + $0x148] sm:$0xff] (!%p218_p3)   ;;  %v3772_v8 = vld [vmem:[%s4777_s2 + $0x150] sm:$0xff] (!%p218_p3)   ;;  %p281_p4 = scmp.lt.s32.totalorder (!%p218_p3), %s3906_s15, 1  ;;  %vm357_vm0 = vcmask (!%p218_p3), 1040384   ;;  %vm360_vm1 = vcmask (!%p218_p3), 1044484  }
   0x7   : > { %221 = sbr.rel (%p218_p3) target bundleno = 415 (0x19f), region = 32  ;;  %v3765_v1 = vld [vmem:[%s4777_s2 + $0x1c0] sm:$0xff] (!%p218_p3)   ;;  %3419 = vmatprep.subr.bf16.mxu0 (!%p218_p3), %v3764_v0  ;;  %v3769_v5 = vld [vmem:[%s4777_s2 + $0x1c8] sm:$0xff] (!%p218_p3)   ;;  %v3773_v9 = vld [vmem:[%s4777_s2 + $0x1d0] sm:$0xff] (!%p218_p3)   ;;  %vm358_vm2 = vsmask.f32 (!%p218_p3), 256 }
   0x8   : > { %v3766_v2 = vld [vmem:[%s4777_s2 + $0x100] sm:$0xff] (!%p218_p3)   ;;  %3459 = vmatprep.subr.bf16.mxu1 (!%p218_p3), %v3765_v1  ;;  %v3770_v6 = vld [vmem:[%s4777_s2 + $0x108] sm:$0xff] (!%p218_p3)   ;;  %v3774_v10 = vld [vmem:[%s4777_s2 + $0x110] sm:$0xff] (!%p218_p3)   ;;  %vm361_vm4 = vsmask.f32 (!%p218_p3), 4352 }
   0x9   : > { %v3767_v3 = vld [vmem:[%s4777_s2 + $0x180] sm:$0xff] (!%p218_p3)   ;;  %3420 = vmatpush3.bf16.msra.mxu0 (!%p218_p3), %v3766_v2  ;;  %v3771_v7 = vld [vmem:[%s4777_s2 + $0x188] sm:$0xff] (!%p218_p3)   ;;  %v3775_v11 = vld [vmem:[%s4777_s2 + $0x190] sm:$0xff] (!%p218_p3)   ;;  %vm535_vm7 = vsmask.f32 (!%p218_p3), 3328 }
   0xa   : > { %3460 = vmatpush3.bf16.msra.mxu1 (!%p218_p3), %v3767_v3  ;;  %3421 = vmatprep.subr.bf16.mxu0 (!%p218_p3), %v3768_v4  ;;  %v3776_v12 = vld [vmem:[%s4777_s2 + $0x158] sm:$0xff] (!%p218_p3)   ;;  %v3780_v16 = vld [vmem:[%s4777_s2 + $0x160] sm:$0xff] (!%p218_p3)   ;;  %v3784_v20 = vld [vmem:[%s4777_s2 + $0x168] sm:$0xff] (!%p218_p3)   ;;  %vm536_vm8 = vsmask.f32 (!%p218_p3), 7440 }
   0xb   : > { %3461 = vmatprep.subr.bf16.mxu1 (!%p218_p3), %v3769_v5  ;;  %v3777_v13 = vld [vmem:[%s4777_s2 + $0x1d8] sm:$0xff] (!%p218_p3)   ;;  %v3781_v17 = vld [vmem:[%s4777_s2 + $0x1e0] sm:$0xff] (!%p218_p3)   ;;  %v3785_v21 = vld [vmem:[%s4777_s2 + $0x1e8] sm:$0xff] (!%p218_p3)  }
   0xc   : > { %v3778_v14 = vld [vmem:[%s4777_s2 + $0x118] sm:$0xff] (!%p218_p3)   ;;  %v3782_v18 = vld [vmem:[%s4777_s2 + $0x120] sm:$0xff] (!%p218_p3)   ;;  %v3786_v22 = vld [vmem:[%s4777_s2 + $0x128] sm:$0xff] (!%p218_p3)  }
   0xd   : > { %3422 = vmatpush3.bf16.msra.mxu0 (!%p218_p3), %v3770_v6  ;;  %v3779_v15 = vld [vmem:[%s4777_s2 + $0x198] sm:$0xff] (!%p218_p3)   ;;  %v3783_v19 = vld [vmem:[%s4777_s2 + $0x1a0] sm:$0xff] (!%p218_p3)   ;;  %v3787_v23 = vld [vmem:[%s4777_s2 + $0x1a8] sm:$0xff] (!%p218_p3)  }
   0xe   : > { %3462 = vmatpush3.bf16.msra.mxu1 %v3771_v7  ;;  %3423 = vmatprep.subr.bf16.mxu0 %v3772_v8  ;;  %s4789_s15 = smov (!%p281_p4, %s3906_s15), 1  ;;  %v3788_v24 = vld [vmem:[%s4777_s2 + $0x170] sm:$0xff]   ;;  %v3792_v28 = vld [vmem:[%s4777_s2 + $0x178] sm:$0xff]   ;;  %vm359_vm3 = vmand %vm357_vm0, %vm358_vm2 }
   0xf   : > { %3463 = vmatprep.subr.bf16.mxu1 %v3773_v9  ;;  %v3789_v25 = vld [vmem:[%s4777_s2 + $0x1f0] sm:$0xff]   ;;  %s3739_s27 = smul.u32 288, %s4789_s15  ;;  %v3793_v29 = vld [vmem:[%s4777_s2 + $0x1f8] sm:$0xff]   ;;  %vm362_vm5 = vmand %vm360_vm1, %vm361_vm4  ;;  %s3417_s25 = sshll.u32 %s4789_s15, 5 }
  0x10   : > { %v3790_v26 = vld [vmem:[%s4777_s2 + $0x130] sm:$0xff]   ;;  %v3794_v30 = vld [vmem:[%s4777_s2 + $0x138] sm:$0xff]   ;;  %vm4080_vm6 = vmor %vm362_vm5, %vm359_vm3  ;;  %s4567_s7 = scalar_lea.vmem %s4776_s1, %s3417_s25  ;;  %s3030_s25 = sshll.u32 %s4789_s15, 1 }
  0x11   : > { %3424 = vmatpush3.bf16.msra.mxu0 %v3774_v10  ;;  %v3791_v27 = vld [vmem:[%s4777_s2 + $0x1b0] sm:$0xff]   ;;  %s4059_s12 = scalar_lea.vmem %s4775_s0, %s3739_s27  ;;  %v3795_v31 = vld [vmem:[%s4777_s2 + $0x1b8] sm:$0xff]   ;;  %v3796_v63 = vld [vmem:[%s4777_s2 + $0x40] sm:$0xff]   ;;  %s321_s27 = scalar_lea.vmem %s4779_s4, %s3030_s25 }
  0x12   : > { %3464 = vmatpush3.bf16.msra.mxu1 %v3775_v11  ;;  %3425 = vmatprep.subr.bf16.mxu0 %v3776_v12  ;;  %v4068_v32 = vld [vmem:[%s4059_s12] sm:$0xff]  ;;  %v325_v33 = vld [vmem:[%s4059_s12 + $0x10] sm:$0x11]  ;;  %v4089_v45 = vld [vmem:[%s4059_s12 + $0x8] sm:$0xff] }
  0x13   : > { %3465 = vmatprep.subr.bf16.mxu1 %v3777_v13  ;;  %v4072_v34 = vld [vmem:[%s4059_s12 + $0x20] sm:$0xff]  ;;  %v329_v35 = vld [vmem:[%s4059_s12 + $0x30] sm:$0x11]  ;;  %v539_v41 = vshrl.u32 %v4068_v32, 16  ;;  %v542_v42 = vshll.u32 %v4068_v32, 16  ;;  %v4092_v46 = vld [vmem:[%s4059_s12 + $0x28] sm:$0xff] }
  0x14   : > { %v364_v36 = vld [vmem:[#allocation2 + $0x10] sm:$0x11]  ;;  %370 = vst [vmem:[#allocation2 + $0x20] sm:$0xff] %v4072_v34  ;;  %v3144_v37 = vcombine.high %v4068_v32, %v4072_v34  ;;  %v3143_v38 = vcombine.low %v4068_v32, %v4072_v34  ;;  %v567_v43 = vshrl.u32 %v4072_v34, 16  ;;  %v570_v44 = vshll.u32 %v4072_v34, 16  ;;  %371 = vst [vmem:[#allocation2 + $0x28] sm:$0xff] %v4092_v46 }
  0x15   : > { %3426 = vmatpush3.bf16.msra.mxu0 %v3778_v14  ;;  %v372_v39 = vld [vmem:[#allocation2 + $0x30] sm:$0x11]  ;;  %v365_v47 = vsel %vm4080_vm6, %v325_v33, %v364_v36  ;;  %v326_v49 = vld [vmem:[%s4059_s12 + $0x18] sm:$0x11]  ;;  %v553_v51 = vshrl.u32 %v4089_v45, 16  ;;  %v556_v52 = vshll.u32 %v4089_v45, 16  ;;  %v3146_v4 = vcombine.high %v4089_v45, %v4092_v46  ;;  %vm4119_vm9 = vmor %vm535_vm7, %vm536_vm8 }
  0x16   : > { %3466 = vmatpush3.bf16.msra.mxu1 %v3779_v15  ;;  %3427 = vmatprep.subr.bf16.mxu0 %v3780_v16  ;;  %v373_v48 = vsel %vm4080_vm6, %v329_v35, %v372_v39  ;;  %v330_v50 = vld [vmem:[%s4059_s12 + $0x38] sm:$0x11]  ;;  %366 = vst [vmem:[#allocation2 + $0x10] sm:$0x11] %v365_v47  ;;  %v541_v53 = vrot.slane %v539_v41, 4  ;;  %v544_v54 = vrot.slane %v542_v42, 5  ;;  %v3145_v5 = vcombine.low %v4089_v45, %v4092_v46 }
  0x17   : > { %3467 = vmatprep.subr.bf16.mxu1 %v3781_v17  ;;  %374 = vst [vmem:[#allocation2 + $0x30] sm:$0x11] %v373_v48  ;;  %v569_v55 = vrot.slane %v567_v43, 4  ;;  %v572_v56 = vrot.slane %v570_v44, 5  ;;  %v367_v57 = vld [vmem:[#allocation2 + $0x18] sm:$0x11] }
  0x18   : > { %v368_v58 = vsel %vm4080_vm6, %v326_v49, %v367_v57  ;;  %v375_v59 = vld [vmem:[#allocation2 + $0x38] sm:$0x11]  ;;  %v555_v60 = vrot.slane %v553_v51, 4  ;;  %v558_v61 = vrot.slane %v556_v52, 5  ;;  %v581_v62 = vshrl.u32 %v4092_v46, 16  ;;  %v3797_v2 = vld [vmem:[%s4777_s2 + $0xc0] sm:$0xff]  }
  0x19   : > { %3428 = vmatpush3.bf16.msra.mxu0 %v3782_v18  ;;  %369 = vst [vmem:[#allocation2 + $0x18] sm:$0x11] %v368_v58  ;;  %v376_v0 = vsel %vm4080_vm6, %v330_v50, %v375_v59  ;;  %v584_v1 = vshll.u32 %v4092_v46, 16  ;;  %v545_v6 = vor.u32 %v544_v54, %v541_v53  ;;  %v573_v7 = vor.u32 %v572_v56, %v569_v55  ;;  %v333_v33 = vld [vmem:[%s4059_s12 + $0x50] sm:$0x11]  ;;  %v4138_v35 = vld [vmem:[%s4059_s12 + $0x60] sm:$0xff] }
  0x1a   : > { %3468 = vmatpush3.bf16.msra.mxu1 %v3783_v19  ;;  %3429 = vmatprep.subr.bf16.mxu0 %v3784_v20  ;;  %377 = vst [vmem:[#allocation2 + $0x38] sm:$0x11] %v376_v0  ;;  %v583_v3 = vrot.slane %v581_v62, 4  ;;  %v559_v9 = vor.u32 %v558_v61, %v555_v60  ;;  %v337_v42 = vld [vmem:[%s4059_s12 + $0x70] sm:$0x11]  ;;  %386 = vst [vmem:[#allocation2 + $0x60] sm:$0xff] %v4138_v35 }
  0x1b   : > { %3469 = vmatprep.subr.bf16.mxu1 %v3785_v21  ;;  %v586_v8 = vrot.slane %v584_v1, 5  ;;  %v546_v14 = vrot.slane %v545_v6, 4  ;;  %v574_v16 = vrot.slane %v573_v7, 4  ;;  %v380_v43 = vld [vmem:[#allocation2 + $0x50] sm:$0x11]  ;;  %v3799_v48 = vld [vmem:[%s4777_s2 + $0x80] sm:$0xff]  }
  0x1c   : > { %v381_v49 = vsel %vm4080_vm6, %v333_v33, %v380_v43  ;;  %v388_v50 = vld [vmem:[#allocation2 + $0x70] sm:$0x11]  ;;  %v623_v52 = vshrl.u32 %v4138_v35, 16  ;;  %v4154_v53 = vld [vmem:[%s4059_s12 + $0x48] sm:$0xff]  ;;  %v626_v60 = vshll.u32 %v4138_v35, 16  ;;  %v3840_v46 = vld [vmem:[%s4777_s2 + $0x258] sm:$0xff]  }
  0x1d   : > { %3430 = vmatpush3.bf16.msra.mxu0 %v3786_v22  ;;  %v519_v10 = vld [vmem:[#allocation2 + $0x10] sm:$0x11]  ;;  %v587_v12 = vor.u32 %v586_v8, %v583_v3  ;;  %v560_v22 = vrot.slane %v559_v9, 4  ;;  %v4157_v54 = vld [vmem:[%s4059_s12 + $0x68] sm:$0xff]  ;;  %382 = vst [vmem:[#allocation2 + $0x50] sm:$0x11] %v381_v49  ;;  %v389_v58 = vsel %vm4080_vm6, %v337_v42, %v388_v50 }
  0x1e   : > { %3470 = vmatpush3.bf16.msra.mxu1 %v3787_v23  ;;  %3431 = vmatprep.subr.bf16.mxu0 %v3788_v24  ;;  %v521_v11 = vld [vmem:[#allocation2 + $0x30] sm:$0x11]  ;;  %v548_v15 = vshll.u32 %v519_v10, 16  ;;  %v3801_v56 = vld [vmem:[%s4777_s2 + $0xc8] sm:$0xff]   ;;  %v334_v61 = vld [vmem:[%s4059_s12 + $0x58] sm:$0x11] }
  0x1f   : > { %3471 = vmatprep.subr.bf16.mxu1 %v3789_v25  ;;  %v576_v17 = vshll.u32 %v521_v11, 16  ;;  %v588_v24 = vrot.slane %v587_v12, 4  ;;  %v3802_v57 = vld [vmem:[%s4777_s2 + $0x8] sm:$0xff]   ;;  %v338_v62 = vld [vmem:[%s4059_s12 + $0x78] sm:$0x11]  ;;  %379 = vst [vmem:[#allocation2 + $0x48] sm:$0xff] %v4154_v53 }
  0x20   : > { %v520_v18 = vld [vmem:[#allocation2 + $0x18] sm:$0x11]  ;;  %v550_v19 = vrot.slane %v548_v15, 5  ;;  %387 = vst [vmem:[#allocation2 + $0x68] sm:$0xff] %v4157_v54  ;;  %390 = vst [vmem:[#allocation2 + $0x70] sm:$0x11] %v389_v58 }
  0x21   : > { %3432 = vmatpush3.bf16.msra.mxu0 %v3790_v26  ;;  %v578_v20 = vrot.slane %v576_v17, 5  ;;  %v522_v21 = vld [vmem:[#allocation2 + $0x38] sm:$0x11]  ;;  %v562_v23 = vshll.u32 %v520_v18, 16  ;;  %v3798_v26 = vld [vmem:[%s4777_s2] sm:$0xff]   ;;  %v628_v7 = vrot.slane %v626_v60, 5 }
  0x22   : > { %3472 = vmatpush3.bf16.msra.mxu1 %v3791_v27  ;;  %3433 = vmatprep.subr.bf16.mxu0 %v3792_v28  ;;  %v590_v25 = vshll.u32 %v522_v21, 16  ;;  %v551_v27 = vsel %vm4119_vm9, %v546_v14, %v550_v19  ;;  %v383_v3 = vld [vmem:[#allocation2 + $0x58] sm:$0x11]  ;;  %v609_v10 = vshrl.u32 %v4154_v53, 16  ;;  %v612_v12 = vshll.u32 %v4154_v53, 16  ;;  %v3803_v17 = vld [vmem:[%s4777_s2 + $0x88] sm:$0xff]  }
  0x23   : > { %3473 = vmatprep.subr.bf16.mxu1 %v3793_v29  ;;  %v579_v28 = vsel %vm4119_vm9, %v574_v16, %v578_v20  ;;  %v564_v29 = vrot.slane %v562_v23, 5  ;;  %v391_v6 = vld [vmem:[#allocation2 + $0x78] sm:$0x11]  ;;  %v384_v8 = vsel %vm4080_vm6, %v334_v61, %v383_v3  ;;  %v637_v14 = vshrl.u32 %v4157_v54, 16  ;;  %v3804_v16 = vld [vmem:[%s4777_s2 + $0x50] sm:$0xff]   ;;  %v4214_v61 = vld [vmem:[%s4059_s12 + $0x80] sm:$0xff] }
  0x24   : > { %v3095_v36 = vcombine.low %v551_v27, %v579_v28  ;;  %v3096_v39 = vcombine.high %v551_v27, %v579_v28  ;;  %v592_v41 = vrot.slane %v590_v25, 5  ;;  %v392_v9 = vsel %vm4080_vm6, %v338_v62, %v391_v6  ;;  %385 = vst [vmem:[#allocation2 + $0x58] sm:$0x11] %v384_v8  ;;  %v3805_v23 = vld [vmem:[%s4777_s2 + $0xd0] sm:$0xff]   ;;  %v3810_v50 = vld [vmem:[%s4777_s2 + $0x18] sm:$0xff]   ;;  %v4217_v62 = vld [vmem:[%s4059_s12 + $0xa0] sm:$0xff] }
  0x25   : > { %3434 = vmatpush3.bf16.msra.mxu0 %v3794_v30  ;;  %v3800_v30 = vld [vmem:[%s4777_s2 + $0x48] sm:$0xff]   ;;  %v565_v47 = vsel %vm4119_vm9, %v560_v22, %v564_v29  ;;  %393 = vst [vmem:[#allocation2 + $0x78] sm:$0x11] %v392_v9  ;;  %v640_v15 = vshll.u32 %v4157_v54, 16  ;;  %v611_v19 = vrot.slane %v609_v10, 4  ;;  %v614_v20 = vrot.slane %v612_v12, 5 }
  0x26   : > { %3474 = vmatpush3.bf16.msra.mxu1 %v3795_v31  ;;  %3499 = vmatprep.subr.bf16.mxu0 %v3796_v63  ;;  %v4134_v31 = vld [vmem:[%s4059_s12 + $0x40] sm:$0xff]  ;;  %v593_v55 = vsel %vm4119_vm9, %v588_v24, %v592_v41  ;;  %v639_v21 = vrot.slane %v637_v14, 4  ;;  %v3806_v25 = vld [vmem:[%s4777_s2 + $0x10] sm:$0xff]   ;;  %394 = vst [vmem:[#allocation2 + $0x80] sm:$0xff] %v4214_v61  ;;  %402 = vst [vmem:[#allocation2 + $0xa0] sm:$0xff] %v4217_v62  ;;  %v651_v10 = vshrl.u32 %v4214_v61, 16 }
  0x27   : > { %3539 = vmatprep.subr.bf16.mxu1 %v3797_v2  ;;  %378 = vst [vmem:[#allocation2 + $0x40] sm:$0xff] %v4134_v31  ;;  %v595_v44 = vshrl.u32 %v4134_v31, 16  ;;  %v598_v51 = vshll.u32 %v4134_v31, 16  ;;  %1115 = vmatprep.mubr.bf16.mxu0 %v3096_v39  ;;  %v3097_v63 = vcombine.low %v565_v47, %v593_v55  ;;  %v3098_v0 = vcombine.high %v565_v47, %v593_v55  ;;  %v525_v33 = vld [vmem:[#allocation2 + $0x70] sm:$0x11]  ;;  %v3808_v39 = vld [vmem:[%s4777_s2 + $0x58] sm:$0xff]  }
  0x28   : > { %1116 = vmatmul.mubr.bf16.vlgmr.msra.gmra.mrb[0].mxu0 %v3095_v36  ;;  %v625_v2 = vrot.slane %v623_v52, 4  ;;  %v642_v22 = vrot.slane %v640_v15, 5  ;;  %v615_v28 = vor.u32 %v614_v20, %v611_v19  ;;  %v632_v41 = vshll.u32 %v525_v33, 16  ;;  %v396_v3 = vld [vmem:[#allocation2 + $0x90] sm:$0x11]  ;;  %v3813_v33 = vld [vmem:[%s4777_s2 + $0xe0] sm:$0xff]  }
  0x29   : > { %v597_v59 = vrot.slane %v595_v44, 4  ;;  %v600_v1 = vrot.slane %v598_v51, 5  ;;  %3500 = vmatpush3.bf16.msra.mxu0 %v3798_v26  ;;  %1180 = vmatprep.mubr.bf16.mxu1 %v3098_v0  ;;  %v523_v26 = vld [vmem:[#allocation2 + $0x50] sm:$0x11]  ;;  %v3809_v44 = vld [vmem:[%s4777_s2 + $0xd8] sm:$0xff]   ;;  %v3835_v32 = vld [vmem:[%s4777_s2 + $0x288] sm:$0xff]   ;;  %v3147_v34 = vcombine.low %v4134_v31, %v4138_v35 }
  0x2a   : > { %3501 = vmatprep.subr.bf16.mxu0 %v3800_v30  ;;  %1181 = vmatmul.mubr.bf16.vlgmr.msra.gmra.mrb[0].mxu1 %v3097_v63  ;;  %v629_v18 = vor.u32 %v628_v7, %v625_v2  ;;  %v643_v29 = vor.u32 %v642_v22, %v639_v21  ;;  %v3807_v30 = vld [vmem:[%s4777_s2 + $0x90] sm:$0xff]   ;;  %v604_v36 = vshll.u32 %v523_v26, 16  ;;  %v616_v42 = vrot.slane %v615_v28, 4  ;;  %v342_v12 = vld [vmem:[%s4059_s12 + $0x98] sm:$0x11]  ;;  %v3812_v26 = vld [vmem:[%s4777_s2 + $0x60] sm:$0xff]  }
  0x2b   : > { %v601_v11 = vor.u32 %v600_v1, %v597_v59  ;;  %3540 = vmatpush3.bf16.msra.mxu1 %v3799_v48  ;;  %v524_v48 = vld [vmem:[#allocation2 + $0x58] sm:$0x11]  ;;  %v634_v51 = vrot.slane %v632_v41, 5  ;;  %v341_v1 = vld [vmem:[%s4059_s12 + $0x90] sm:$0x11]  ;;  %v653_v21 = vrot.slane %v651_v10, 4 }
  0x2c   : > { %3541 = vmatprep.subr.bf16.mxu1 %v3801_v56  ;;  %v630_v27 = vrot.slane %v629_v18, 4  ;;  %v644_v43 = vrot.slane %v643_v29, 4  ;;  %v606_v47 = vrot.slane %v604_v36, 5  ;;  %v526_v49 = vld [vmem:[#allocation2 + $0x78] sm:$0x11]  ;;  %v618_v52 = vshll.u32 %v524_v48, 16 }
  0x2d   : > { %3502 = vmatpush3.bf16.msra.mxu0 %v3802_v57  ;;  %v602_v24 = vrot.slane %v601_v11, 4  ;;  %v646_v55 = vshll.u32 %v526_v49, 16  ;;  %v3811_v56 = vld [vmem:[%s4777_s2 + $0x98] sm:$0xff]   ;;  %v345_v2 = vld [vmem:[%s4059_s12 + $0xb0] sm:$0x11]  ;;  %v397_v8 = vsel %vm4080_vm6, %v341_v1, %v396_v3  ;;  %v4231_v11 = vld [vmem:[%s4059_s12 + $0x88] sm:$0xff] }
  0x2e   : > { %3503 = vmatprep.subr.bf16.mxu0 %v3804_v16  ;;  %v635_v58 = vsel %vm4119_vm9, %v630_v27, %v634_v51  ;;  %v620_v59 = vrot.slane %v618_v52, 5  ;;  %v404_v9 = vld [vmem:[#allocation2 + $0xb0] sm:$0x11]  ;;  %398 = vst [vmem:[#allocation2 + $0x90] sm:$0x11] %v397_v8  ;;  %v4238_v18 = vld [vmem:[%s4059_s12 + $0xa8] sm:$0xff] }
  0x2f   : > { %3542 = vmatpush3.bf16.msra.mxu1 %v3803_v17  ;;  %v607_v57 = vsel %vm4119_vm9, %v602_v24, %v606_v47  ;;  %v648_v60 = vrot.slane %v646_v55, 5  ;;  %v405_v16 = vsel %vm4080_vm6, %v345_v2, %v404_v9  ;;  %v654_v17 = vshll.u32 %v4214_v61, 16  ;;  %v346_v19 = vld [vmem:[%s4059_s12 + $0xb8] sm:$0x11]  ;;  %395 = vst [vmem:[#allocation2 + $0x88] sm:$0xff] %v4231_v11  ;;  %403 = vst [vmem:[#allocation2 + $0xa8] sm:$0xff] %v4238_v18 }
  0x30   : > { %3543 = vmatprep.subr.bf16.mxu1 %v3805_v23  ;;  %v3100_v63 = vcombine.high %v607_v57, %v635_v58  ;;  %v3099_v0 = vcombine.low %v607_v57, %v635_v58  ;;  %v621_v6 = vsel %vm4119_vm9, %v616_v42, %v620_v59  ;;  %v399_v20 = vld [vmem:[#allocation2 + $0x98] sm:$0x11]  ;;  %406 = vst [vmem:[#allocation2 + $0xb0] sm:$0x11] %v405_v16  ;;  %v679_v22 = vshrl.u32 %v4217_v62, 16  ;;  %v3814_v55 = vld [vmem:[%s4777_s2 + $0x20] sm:$0xff]  }
  0x31   : > { %3504 = vmatpush3.bf16.msra.mxu0 %v3806_v25  ;;  %v649_v7 = vsel %vm4119_vm9, %v644_v43, %v648_v60  ;;  %v682_v23 = vshll.u32 %v4217_v62, 16  ;;  %v400_v24 = vsel %vm4080_vm6, %v342_v12, %v399_v20  ;;  %v407_v25 = vld [vmem:[#allocation2 + $0xb8] sm:$0x11]  ;;  %v656_v27 = vrot.slane %v654_v17, 5  ;;  %v3815_v60 = vld [vmem:[%s4777_s2 + $0xa0] sm:$0xff]   ;;  %v3816_v8 = vld [vmem:[%s4777_s2 + $0x68] sm:$0xff]  }
  0x32   : > { %3505 = vmatprep.subr.bf16.mxu0 %v3808_v39  ;;  %1123 = vmatprep.mubr.bf16.mxu0 %v3100_v63  ;;  %v3102_v14 = vcombine.high %v621_v6, %v649_v7  ;;  %v3101_v15 = vcombine.low %v621_v6, %v649_v7  ;;  %401 = vst [vmem:[#allocation2 + $0x98] sm:$0x11] %v400_v24  ;;  %v665_v29 = vshrl.u32 %v4231_v11, 16  ;;  %v681_v36 = vrot.slane %v679_v22, 4  ;;  %v3817_v9 = vld [vmem:[%s4777_s2 + $0xe8] sm:$0xff]   ;;  %v4286_v24 = vld [vmem:[%s4059_s12 + $0xc0] sm:$0xff] }
  0x33   : > { %3544 = vmatpush3.bf16.msra.mxu1 %v3807_v30  ;;  %1124 = vmatmul.mubr.bf16.gmra.mrb[4].mxu0 %v3099_v0  ;;  %v408_v28 = vsel %vm4080_vm6, %v346_v19, %v407_v25  ;;  %v668_v30 = vshll.u32 %v4231_v11, 16  ;;  %v684_v39 = vrot.slane %v682_v23, 5  ;;  %v693_v41 = vshrl.u32 %v4238_v18, 16  ;;  %v3818_v20 = vld [vmem:[%s4777_s2 + $0x28] sm:$0xff]   ;;  %410 = vst [vmem:[#allocation2 + $0xc0] sm:$0xff] %v4286_v24  ;;  %v3838_v45 = vld [vmem:[%s4777_s2 + $0x210] sm:$0xff]  }
  0x34   : > { %3545 = vmatprep.subr.bf16.mxu1 %v3809_v44  ;;  %1188 = vmatprep.mubr.bf16.mxu1 %v3102_v14  ;;  %409 = vst [vmem:[#allocation2 + $0xb8] sm:$0x11] %v408_v28  ;;  %v696_v42 = vshll.u32 %v4238_v18, 16  ;;  %v657_v43 = vor.u32 %v656_v27, %v653_v21  ;;  %v667_v44 = vrot.slane %v665_v29, 4  ;;  %v3261_v63 = vcombine.low %v4157_v54, %v4231_v11  ;;  %v3819_v23 = vld [vmem:[%s4777_s2 + $0xa8] sm:$0xff]   ;;  %v4292_v29 = vld [vmem:[%s4059_s12 + $0xe0] sm:$0xff] }
  0x35   : > { %3506 = vmatpush3.bf16.msra.mxu0 %v3810_v50  ;;  %1189 = vmatmul.mubr.bf16.gmra.mrb[4].mxu1 %v3101_v15  ;;  %v670_v47 = vrot.slane %v668_v30, 5  ;;  %v685_v48 = vor.u32 %v684_v39, %v681_v36  ;;  %v695_v49 = vrot.slane %v693_v41, 4  ;;  %v527_v57 = vld [vmem:[#allocation2 + $0x90] sm:$0x11]  ;;  %418 = vst [vmem:[#allocation2 + $0xe0] sm:$0xff] %v4292_v29 }
  0x36   : > { %3507 = vmatprep.subr.bf16.mxu0 %v3812_v26  ;;  %v698_v50 = vrot.slane %v696_v42, 5  ;;  %v658_v51 = vrot.slane %v657_v43, 4  ;;  %v660_v1 = vshll.u32 %v527_v57, 16  ;;  %v349_v28 = vld [vmem:[%s4059_s12 + $0xd0] sm:$0x11]  ;;  %v710_v42 = vshll.u32 %v4286_v24, 16 }
  0x37   : > { %3546 = vmatpush3.bf16.msra.mxu1 %v3811_v56  ;;  %v671_v52 = vor.u32 %v670_v47, %v667_v44  ;;  %v3262_v56 = vcombine.high %v4157_v54, %v4231_v11  ;;  %v686_v58 = vrot.slane %v685_v48, 4  ;;  %v529_v0 = vld [vmem:[#allocation2 + $0xb0] sm:$0x11]  ;;  %v735_v43 = vshrl.u32 %v4292_v29, 16 }
  0x38   : > { %3547 = vmatprep.subr.bf16.mxu1 %v3813_v33  ;;  %v699_v59 = vor.u32 %v698_v50, %v695_v49  ;;  %v688_v3 = vshll.u32 %v529_v0, 16  ;;  %v662_v10 = vrot.slane %v660_v1, 5  ;;  %v353_v30 = vld [vmem:[%s4059_s12 + $0xf0] sm:$0x11]  ;;  %v707_v33 = vshrl.u32 %v4286_v24, 16  ;;  %v4307_v50 = vld [vmem:[%s4059_s12 + $0xc8] sm:$0xff] }
  0x39   : > { %v672_v2 = vrot.slane %v671_v52, 4  ;;  %3508 = vmatpush3.bf16.msra.mxu0 %v3814_v55  ;;  %v528_v6 = vld [vmem:[#allocation2 + $0x98] sm:$0x11]  ;;  %v412_v39 = vld [vmem:[#allocation2 + $0xd0] sm:$0x11]  ;;  %v4311_v52 = vld [vmem:[%s4059_s12 + $0xe8] sm:$0xff] }
  0x3a   : > { %v700_v7 = vrot.slane %v699_v59, 4  ;;  %v674_v14 = vshll.u32 %v528_v6, 16  ;;  %v690_v15 = vrot.slane %v688_v3, 5  ;;  %3509 = vmatprep.subr.bf16.mxu0 %v3816_v8  ;;  %v663_v17 = vsel %vm4119_vm9, %v658_v51, %v662_v10  ;;  %v420_v41 = vld [vmem:[#allocation2 + $0xf0] sm:$0x11]  ;;  %411 = vst [vmem:[#allocation2 + $0xc8] sm:$0xff] %v4307_v50 }
  0x3b   : > { %3548 = vmatpush3.bf16.msra.mxu1 %v3815_v60  ;;  %v530_v12 = vld [vmem:[#allocation2 + $0xb8] sm:$0x11]  ;;  %v413_v48 = vsel %vm4080_vm6, %v349_v28, %v412_v39  ;;  %v421_v49 = vsel %vm4080_vm6, %v353_v30, %v420_v41  ;;  %v709_v55 = vrot.slane %v707_v33, 4  ;;  %v712_v57 = vrot.slane %v710_v42, 5  ;;  %419 = vst [vmem:[#allocation2 + $0xe8] sm:$0xff] %v4311_v52  ;;  %v3820_v10 = vld [vmem:[%s4777_s2 + $0x70] sm:$0xff]  }
  0x3c   : > { %v702_v16 = vshll.u32 %v530_v12, 16  ;;  %3549 = vmatprep.subr.bf16.mxu1 %v3817_v9  ;;  %v676_v19 = vrot.slane %v674_v14, 5  ;;  %v691_v21 = vsel %vm4119_vm9, %v686_v58, %v690_v15  ;;  %v350_v51 = vld [vmem:[%s4059_s12 + $0xd8] sm:$0x11]  ;;  %414 = vst [vmem:[#allocation2 + $0xd0] sm:$0x11] %v413_v48  ;;  %v3266_v28 = vcombine.high %v4238_v18, %v4307_v50 }
  0x3d   : > { %v3104_v25 = vcombine.high %v663_v17, %v691_v21  ;;  %v3103_v27 = vcombine.low %v663_v17, %v691_v21  ;;  %3510 = vmatpush3.bf16.msra.mxu0 %v3818_v20  ;;  %422 = vst [vmem:[#allocation2 + $0xf0] sm:$0x11] %v421_v49  ;;  %v737_v58 = vrot.slane %v735_v43, 4  ;;  %v738_v59 = vshll.u32 %v4292_v29, 16  ;;  %v354_v60 = vld [vmem:[%s4059_s12 + $0xf8] sm:$0x11] }
  0x3e   : > { %v704_v22 = vrot.slane %v702_v16, 5  ;;  %v677_v26 = vsel %vm4119_vm9, %v672_v2, %v676_v19  ;;  %v415_v0 = vld [vmem:[#allocation2 + $0xd8] sm:$0x11]  ;;  %v721_v2 = vshrl.u32 %v4307_v50, 16  ;;  %v724_v3 = vshll.u32 %v4307_v50, 16  ;;  %3511 = vmatprep.subr.bf16.mxu0 %v3820_v10  ;;  %v3821_v20 = vld [vmem:[%s4777_s2 + $0xf0] sm:$0xff]  }
  0x3f   : > { %3550 = vmatpush3.bf16.msra.mxu1 %v3819_v23  ;;  %1131 = vmatprep.mubr.bf16.mxu0 %v3104_v25  ;;  %v423_v1 = vld [vmem:[#allocation2 + $0xf8] sm:$0x11]  ;;  %v713_v6 = vor.u32 %v712_v57, %v709_v55  ;;  %v416_v8 = vsel %vm4080_vm6, %v350_v51, %v415_v0  ;;  %v749_v15 = vshrl.u32 %v4311_v52, 16  ;;  %v752_v16 = vshll.u32 %v4311_v52, 16 }
  0x40   : > { %v705_v36 = vsel %vm4119_vm9, %v700_v7, %v704_v22  ;;  %1132 = vmatmul.mubr.bf16.gmra.mrb[8].mxu0 %v3103_v27  ;;  %v740_v7 = vrot.slane %v738_v59, 5  ;;  %v424_v9 = vsel %vm4080_vm6, %v354_v60, %v423_v1  ;;  %417 = vst [vmem:[#allocation2 + $0xd8] sm:$0x11] %v416_v8  ;;  %v723_v12 = vrot.slane %v721_v2, 4  ;;  %v3823_v27 = vld [vmem:[%s4777_s2 + $0xb0] sm:$0xff]   ;;  %3551 = vmatprep.subr.bf16.mxu1 %v3821_v20  ;;  %v3824_v33 = vld [vmem:[%s4777_s2 + $0x78] sm:$0xff]  }
  0x41   : > { %v3106_v44 = vcombine.high %v677_v26, %v705_v36  ;;  %v3105_v47 = vcombine.low %v677_v26, %v705_v36  ;;  %425 = vst [vmem:[#allocation2 + $0xf8] sm:$0x11] %v424_v9  ;;  %v726_v14 = vrot.slane %v724_v3, 5  ;;  %v714_v17 = vrot.slane %v713_v6, 4  ;;  %v3822_v26 = vld [vmem:[%s4777_s2 + $0x30] sm:$0xff]   ;;  %v3826_v55 = vld [vmem:[%s4777_s2 + $0x38] sm:$0xff]  }
  0x42   : > { %v741_v19 = vor.u32 %v740_v7, %v737_v58  ;;  %v3264_v21 = vcombine.high %v4217_v62, %v4286_v24  ;;  %v751_v23 = vrot.slane %v749_v15, 4  ;;  %v754_v25 = vrot.slane %v752_v16, 5  ;;  %3512 = vmatpush3.bf16.msra.mxu0 %v3822_v26  ;;  %v3827_v6 = vld [vmem:[%s4777_s2 + $0xb8] sm:$0xff]   ;;  %v3829_v16 = vld [vmem:[%s4777_s2 + $0x2c0] sm:$0xff]   ;;  %v3834_v26 = vld [vmem:[%s4777_s2 + $0x208] sm:$0xff]  }
  0x43   : > { %1196 = vmatprep.mubr.bf16.mxu1 %v3106_v44  ;;  %v727_v22 = vor.u32 %v726_v14, %v723_v12  ;;  %v3263_v36 = vcombine.low %v4217_v62, %v4286_v24  ;;  %v3265_v39 = vcombine.low %v4238_v18, %v4307_v50  ;;  %v531_v41 = vld [vmem:[#allocation2 + $0xd0] sm:$0x11]  ;;  %3552 = vmatpush3.bf16.msra.mxu1 %v3823_v27  ;;  %v3828_v12 = vld [vmem:[%s4777_s2 + $0x240] sm:$0xff]  }
  0x44   : > { %1197 = vmatmul.mubr.bf16.gmra.mrb[8].mxu1 %v3105_v47  ;;  %v742_v30 = vrot.slane %v741_v19, 4  ;;  %v533_v42 = vld [vmem:[#allocation2 + $0xf0] sm:$0x11]  ;;  %v755_v44 = vor.u32 %v754_v25, %v751_v23  ;;  %v3825_v47 = vld [vmem:[%s4777_s2 + $0xf8] sm:$0xff]   ;;  %v716_v48 = vshll.u32 %v531_v41, 16  ;;  %3513 = vmatprep.subr.bf16.mxu0 %v3824_v33  ;;  %v3830_v20 = vld [vmem:[%s4777_s2 + $0x200] sm:$0xff]   ;;  %v3150_v25 = vcombine.high %v4154_v53, %v4157_v54 }
  0x45   : > { %v728_v43 = vrot.slane %v727_v22, 4  ;;  %v744_v49 = vshll.u32 %v533_v42, 16  ;;  %3553 = vmatprep.subr.bf16.mxu1 %v3825_v47  ;;  %v3148_v22 = vcombine.high %v4134_v31, %v4138_v35  ;;  %v3832_v23 = vld [vmem:[%s4777_s2 + $0x248] sm:$0xff]   ;;  %v3836_v27 = vld [vmem:[%s4777_s2 + $0x250] sm:$0xff]   ;;  %v3149_v35 = vcombine.low %v4154_v53, %v4157_v54  ;;  %v3841_v33 = vld [vmem:[%s4777_s2 + $0x2d8] sm:$0xff]  }
  0x46   : > { %v756_v51 = vrot.slane %v755_v44, 4  ;;  %v718_v57 = vrot.slane %v716_v48, 5  ;;  %3514 = vmatpush3.bf16.msra.mxu0 %v3826_v55  ;;  %v3154_v41 = vcombine.high %v4231_v11, %v4238_v18  ;;  %v3842_v42 = vld [vmem:[%s4777_s2 + $0x218] sm:$0xff]   ;;  %v3151_v47 = vcombine.low %v4214_v61, %v4217_v62  ;;  %v3845_v48 = vld [vmem:[%s4777_s2 + $0x2e0] sm:$0xff]  }
  0x47   : > { %v746_v58 = vrot.slane %v744_v49, 5  ;;  %v532_v59 = vld [vmem:[#allocation2 + $0xd8] sm:$0x11]  ;;  %3554 = vmatpush3.bf16.msra.mxu1 %v3827_v6  ;;  %3579 = vmatprep.subr.bf16.mxu0 %v3828_v12  ;;  %v3846_v49 = vld [vmem:[%s4777_s2 + $0x220] sm:$0xff]   ;;  %v3156_v55 = vcombine.high %v4286_v24, %v4292_v29  ;;  %v3853_v6 = vld [vmem:[%s4777_s2 + $0x2f0] sm:$0xff]  }
  0x48   : > { %v534_v60 = vld [vmem:[#allocation2 + $0xf8] sm:$0x11]  ;;  %v730_v0 = vshll.u32 %v532_v59, 16  ;;  %v719_v2 = vsel %vm4119_vm9, %v714_v17, %v718_v57  ;;  %3619 = vmatprep.subr.bf16.mxu1 %v3829_v16  ;;  %v3153_v57 = vcombine.low %v4231_v11, %v4238_v18  ;;  %v3849_v59 = vld [vmem:[%s4777_s2 + $0x2e8] sm:$0xff]   ;;  %v3877_v54 = vld [vmem:[%s4777_s2 + $0x3e0] sm:$0xff]  }
  0x49   : > { %v758_v1 = vshll.u32 %v534_v60, 16  ;;  %v747_v3 = vsel %vm4119_vm9, %v742_v30, %v746_v58  ;;  %v3839_v30 = vld [vmem:[%s4777_s2 + $0x290] sm:$0xff]   ;;  %v3843_v44 = vld [vmem:[%s4777_s2 + $0x298] sm:$0xff]   ;;  %v3847_v58 = vld [vmem:[%s4777_s2 + $0x2a0] sm:$0xff]   ;;  %v3158_v60 = vcombine.high %v4307_v50, %v4311_v52 }
  0x4a   : > { %v3108_v7 = vcombine.high %v719_v2, %v747_v3  ;;  %v732_v8 = vrot.slane %v730_v0, 5  ;;  %v3107_v10 = vcombine.low %v719_v2, %v747_v3  ;;  %v3850_v0 = vld [vmem:[%s4777_s2 + $0x228] sm:$0xff]   ;;  %v3155_v3 = vcombine.low %v4286_v24, %v4292_v29  ;;  %v3857_v16 = vld [vmem:[%s4777_s2 + $0x2f8] sm:$0xff]   ;;  %v3878_v11 = vld [vmem:[%s4777_s2 + $0x320] sm:$0xff]  }
  0x4b   : > { %v760_v9 = vrot.slane %v758_v1, 5  ;;  %v3852_v1 = vld [vmem:[%s4777_s2 + $0x270] sm:$0xff]   ;;  %v3851_v2 = vld [vmem:[%s4777_s2 + $0x2a8] sm:$0xff]  }
  0x4c   : > { %1139 = vmatprep.mubr.bf16.mxu0 %v3108_v7  ;;  %v733_v14 = vsel %vm4119_vm9, %v728_v43, %v732_v8  ;;  %v3844_v43 = vld [vmem:[%s4777_s2 + $0x260] sm:$0xff]   ;;  %v3854_v7 = vld [vmem:[%s4777_s2 + $0x230] sm:$0xff]  }
  0x4d   : > { %v761_v15 = vsel %vm4119_vm9, %v756_v51, %v760_v9  ;;  %1140 = vmatmul.mubr.bf16.gmra.mrb[12].mxu0 %v3107_v10  ;;  %v3848_v51 = vld [vmem:[%s4777_s2 + $0x268] sm:$0xff]   ;;  %v1616_v8 = vld [vmem:[#allocation2 + $0x20] sm:$0xff]  ;;  %v3856_v10 = vld [vmem:[%s4777_s2 + $0x278] sm:$0xff]  }
  0x4e   : > { %v3110_v17 = vcombine.high %v733_v14, %v761_v15  ;;  %v3109_v19 = vcombine.low %v733_v14, %v761_v15  ;;  %1517 = vmatprep.mubr.bf16.mxu0 %v3144_v37  ;;  %v3831_v37 = vld [vmem:[%s4777_s2 + $0x280] sm:$0xff]   ;;  %v1617_v9 = vld [vmem:[#allocation2 + $0x28] sm:$0xff]  ;;  %v3256_v12 = vcombine.high %v1616_v8, %v4134_v31  ;;  %v3157_v14 = vcombine.low %v4307_v50, %v4311_v52  ;;  %v3855_v15 = vld [vmem:[%s4777_s2 + $0x2b0] sm:$0xff]  }
  0x4f   : > { %v3886_v18 = vld [vmem:[%s4777_s2 + $0x330] sm:$0xff]  }
  0x50   : > { %1204 = vmatprep.mubr.bf16.mxu1 %v3110_v17  ;;  %v3258_v17 = vcombine.high %v1617_v9, %v4154_v53 }
  0x51   : > { %1205 = vmatmul.mubr.bf16.gmra.mrb[12].mxu1 %v3109_v19  ;;  %v3858_v19 = vld [vmem:[%s4777_s2 + $0x238] sm:$0xff]  }
  0x52   : > { %1582 = vmatprep.mubr.bf16.mxu1 %v3146_v4  ;;  %v3833_v4 = vld [vmem:[%s4777_s2 + $0x2c8] sm:$0xff]  }
  0x55   : > { %1518 = vmatmul.mubr.bf16.vlgmr.msra.gmra.mrb[16].mxu0 %v3143_v38  ;;  %v3837_v38 = vld [vmem:[%s4777_s2 + $0x2d0] sm:$0xff]  }
  0x56   : > { %3580 = vmatpush3.bf16.msra.mxu0 %v3830_v20  ;;  %1525 = vmatprep.mubr.bf16.mxu0 %v3148_v22  ;;  %v3859_v20 = vld [vmem:[%s4777_s2 + $0x2b8] sm:$0xff]   ;;  %v3860_v22 = vld [vmem:[%s4777_s2 + $0x340] sm:$0xff]  }
  0x57   : > { %3581 = vmatprep.subr.bf16.mxu0 %v3832_v23  ;;  %v3861_v23 = vld [vmem:[%s4777_s2 + $0x3c0] sm:$0xff]  }
  0x59   : > { %1583 = vmatmul.mubr.bf16.vlgmr.msra.gmra.mrb[16].mxu1 %v3145_v5  ;;  %v3152_v5 = vcombine.high %v4214_v61, %v4217_v62  ;;  %v3884_v62 = vld [vmem:[%s4777_s2 + $0x370] sm:$0xff]  }
  0x5a   : > { %3620 = vmatpush3.bf16.msra.mxu1 %v3831_v37  ;;  %1590 = vmatprep.mubr.bf16.mxu1 %v3150_v25  ;;  %v3255_v37 = vcombine.low %v1616_v8, %v4134_v31  ;;  %v3864_v25 = vld [vmem:[%s4777_s2 + $0x348] sm:$0xff]   ;;  %v3863_v31 = vld [vmem:[%s4777_s2 + $0x380] sm:$0xff]  }
  0x5b   : > { %3621 = vmatprep.subr.bf16.mxu1 %v3833_v4  ;;  %3582 = vmatpush3.bf16.msra.mxu0 %v3834_v26  ;;  %v3862_v4 = vld [vmem:[%s4777_s2 + $0x300] sm:$0xff]   ;;  %v2140_v26 = vshrl.u32 %v1616_v8, 16 }
  0x5c   : > { %3583 = vmatprep.subr.bf16.mxu0 %v3836_v27  ;;  %v1620_v27 = vld [vmem:[#allocation2 + $0x60] sm:$0xff] }
  0x5d   : > { %1526 = vmatmul.mubr.bf16.gmra.mrb[20].mxu0 %v3147_v34  ;;  %v3257_v34 = vcombine.low %v1617_v9, %v4154_v53  ;;  %v2142_v53 = vrot.slane %v2140_v26, 4  ;;  %v2109_v26 = vld [vmem:[#allocation2 + $0x30] sm:$0x11] }
  0x5e   : > { %3622 = vmatpush3.bf16.msra.mxu1 %v3835_v32  ;;  %1533 = vmatprep.mubr.bf16.mxu0 %v3152_v5  ;;  %v2143_v32 = vshll.u32 %v1616_v8, 16  ;;  %v3866_v5 = vld [vmem:[%s4777_s2 + $0x308] sm:$0xff]  }
  0x5f   : > { %3623 = vmatprep.subr.bf16.mxu1 %v3837_v38  ;;  %3584 = vmatpush3.bf16.msra.mxu0 %v3838_v45  ;;  %v3260_v38 = vcombine.high %v1620_v27, %v4214_v61  ;;  %v3865_v45 = vld [vmem:[%s4777_s2 + $0x3c8] sm:$0xff]  }
  0x60   : > { %3585 = vmatprep.subr.bf16.mxu0 %v3840_v46  ;;  %v2154_v46 = vshrl.u32 %v1617_v9, 16 }
  0x61   : > { %1591 = vmatmul.mubr.bf16.gmra.mrb[20].mxu1 %v3149_v35  ;;  %v3868_v35 = vld [vmem:[%s4777_s2 + $0x350] sm:$0xff]  }
  0x62   : > { %3624 = vmatpush3.bf16.msra.mxu1 %v3839_v30  ;;  %1598 = vmatprep.mubr.bf16.mxu1 %v3154_v41  ;;  %v2145_v30 = vrot.slane %v2143_v32, 5  ;;  %v2157_v41 = vshll.u32 %v1617_v9, 16  ;;  %v2111_v32 = vld [vmem:[#allocation2 + $0x40] sm:$0xff] }
  0x63   : > { %3625 = vmatprep.subr.bf16.mxu1 %v3841_v33  ;;  %3586 = vmatpush3.bf16.msra.mxu0 %v3842_v42  ;;  %v3867_v33 = vld [vmem:[%s4777_s2 + $0x388] sm:$0xff]   ;;  %v3259_v42 = vcombine.low %v1620_v27, %v4214_v61  ;;  %v3871_v61 = vld [vmem:[%s4777_s2 + $0x390] sm:$0xff]  }
  0x64   : > { %3587 = vmatprep.subr.bf16.mxu0 %v3844_v43  ;;  %v3869_v43 = vld [vmem:[%s4777_s2 + $0x3d0] sm:$0xff]  }
  0x65   : > { %1534 = vmatmul.mubr.bf16.gmra.mrb[24].mxu0 %v3151_v47  ;;  %v3870_v47 = vld [vmem:[%s4777_s2 + $0x310] sm:$0xff]  }
  0x66   : > { %3626 = vmatpush3.bf16.msra.mxu1 %v3843_v44  ;;  %1541 = vmatprep.mubr.bf16.mxu0 %v3156_v55  ;;  %v2156_v44 = vrot.slane %v2154_v46, 4  ;;  %v3873_v55 = vld [vmem:[%s4777_s2 + $0x3d8] sm:$0xff]  }
  0x67   : > { %3627 = vmatprep.subr.bf16.mxu1 %v3845_v48  ;;  %3588 = vmatpush3.bf16.msra.mxu0 %v3846_v49  ;;  %v2196_v48 = vshrl.u32 %v1620_v27, 16  ;;  %v2199_v49 = vshll.u32 %v1620_v27, 16 }
  0x68   : > { %3589 = vmatprep.subr.bf16.mxu0 %v3848_v51  ;;  %v2159_v51 = vrot.slane %v2157_v41, 5 }
  0x69   : > { %1599 = vmatmul.mubr.bf16.gmra.mrb[24].mxu1 %v3153_v57  ;;  %v3874_v57 = vld [vmem:[%s4777_s2 + $0x318] sm:$0xff]  }
  0x6a   : > { %3628 = vmatpush3.bf16.msra.mxu1 %v3847_v58  ;;  %1606 = vmatprep.mubr.bf16.mxu1 %v3158_v60  ;;  %v2198_v58 = vrot.slane %v2196_v48, 4  ;;  %v2201_v60 = vrot.slane %v2199_v49, 5  ;;  %v2119_v49 = vld [vmem:[#allocation2 + $0x80] sm:$0xff] }
  0x6b   : > { %3629 = vmatprep.subr.bf16.mxu1 %v3849_v59  ;;  %3590 = vmatpush3.bf16.msra.mxu0 %v3850_v0  ;;  %v3876_v59 = vld [vmem:[%s4777_s2 + $0x360] sm:$0xff]   ;;  %v3875_v0 = vld [vmem:[%s4777_s2 + $0x398] sm:$0xff]  }
  0x6c   : > { %3591 = vmatprep.subr.bf16.mxu0 %v3852_v1  ;;  %v2160_v1 = vor.u32 %v2159_v51, %v2156_v44 }
  0x6d   : > { %1542 = vmatmul.mubr.bf16.gmra.mrb[28].mxu0 %v3155_v3  ;;  %v2202_v3 = vor.u32 %v2201_v60, %v2198_v58  ;;  %v2121_v58 = vld [vmem:[#allocation2 + $0x90] sm:$0x11] }
  0x6e   : > { %3630 = vmatpush3.bf16.msra.mxu1 %v3851_v2  ;;  %2001 = vmatprep.mubr.bf16.mxu0 %v3256_v12  ;;  %v426_v2 = vld [vmem:[%s4567_s7] sm:$0xff]  ;;  %v4591_v9 = vrot.slane %v2160_v1, 4  ;;  %v2224_v1 = vshrl.u32 %v2119_v49, 16 }
  0x6f   : > { %3631 = vmatprep.subr.bf16.mxu1 %v3853_v6  ;;  %3592 = vmatpush3.bf16.msra.mxu0 %v3854_v7  ;;  %v3268_v6 = vcombine.high %v4292_v29, %v426_v2  ;;  %v4587_v7 = vld [vmem:[%s4567_s7 + $0x8] sm:$0xff]  ;;  %v4607_v24 = vrot.slane %v2202_v3, 4  ;;  %v2118_v3 = vld [vmem:[#allocation2 + $0x78] sm:$0x11] }
  0x70   : > { %3593 = vmatprep.subr.bf16.mxu0 %v3856_v10  ;;  %v3881_v10 = vld [vmem:[%s4777_s2 + $0x3e8] sm:$0xff]   ;;  %v3270_v12 = vcombine.high %v4311_v52, %v4587_v7 }
  0x71   : > { %1607 = vmatmul.mubr.bf16.gmra.mrb[28].mxu1 %v3157_v14  ;;  %v2336_v14 = vshrl.u32 %v426_v2, 16 }
  0x72   : > { %3632 = vmatpush3.bf16.msra.mxu1 %v3855_v15  ;;  %2066 = vmatprep.mubr.bf16.mxu1 %v3258_v17  ;;  %v3882_v15 = vld [vmem:[%s4777_s2 + $0x328] sm:$0xff]   ;;  %v2350_v17 = vshrl.u32 %v4587_v7, 16 }
  0x73   : > { %3633 = vmatprep.subr.bf16.mxu1 %v3857_v16  ;;  %3594 = vmatpush3.bf16.msra.mxu0 %v3858_v19  ;;  %v2339_v16 = vshll.u32 %v426_v2, 16  ;;  %v3267_v19 = vcombine.low %v4292_v29, %v426_v2  ;;  %v3888_v29 = vld [vmem:[%s4777_s2 + $0x378] sm:$0xff]   ;;  %v2233_v2 = vshll.u32 %v2121_v58, 16 }
  0x74   : > { %3659 = vmatprep.subr.bf16.mxu0 %v3860_v22  ;;  %v4620_v22 = vrot.slane %v2336_v14, 4  ;;  %v4642_v27 = vrot.slane %v2350_v17, 4  ;;  %v2122_v17 = vld [vmem:[#allocation2 + $0x98] sm:$0x11] }
  0x75   : > { %v4625_v50 = vrot.slane %v2339_v16, 5 }
  0x76   : > { %3634 = vmatpush3.bf16.msra.mxu1 %v3859_v20  ;;  %2002 = vmatmul.mubr.bf16.vlgmr.msra.gmra.mrb[32].mxu0 %v3255_v37  ;;  %v3885_v20 = vld [vmem:[%s4777_s2 + $0x3f0] sm:$0xff]   ;;  %v3269_v37 = vcombine.low %v4311_v52, %v4587_v7  ;;  %v2168_v52 = vshrl.u32 %v2111_v32, 16 }
  0x77   : > { %3699 = vmatprep.subr.bf16.mxu1 %v3861_v23  ;;  %3660 = vmatpush3.bf16.msra.mxu0 %v3862_v4  ;;  %v2353_v23 = vshll.u32 %v4587_v7, 16  ;;  %v3889_v4 = vld [vmem:[%s4777_s2 + $0x3f8] sm:$0xff]  }
  0x78   : > { %3661 = vmatprep.subr.bf16.mxu0 %v3864_v25  ;;  %2009 = vmatprep.mubr.bf16.mxu0 %v3260_v38  ;;  %v3890_v25 = vld [vmem:[%s4777_s2 + $0x338] sm:$0xff]   ;;  %v2170_v44 = vrot.slane %v2168_v52, 4 }
  0x79   : > { %2067 = vmatmul.mubr.bf16.vlgmr.msra.gmra.mrb[32].mxu1 %v3257_v34  ;;  %v2113_v34 = vld [vmem:[#allocation2 + $0x50] sm:$0x11]  ;;  %v2110_v38 = vld [vmem:[#allocation2 + $0x38] sm:$0x11] }
  0x7a   : > { %3700 = vmatpush3.bf16.msra.mxu1 %v3863_v31  ;;  %2074 = vmatprep.mubr.bf16.mxu1 %v3262_v56  ;;  %v3872_v56 = vld [vmem:[%s4777_s2 + $0x358] sm:$0xff]   ;;  %v2149_v31 = vshll.u32 %v2109_v26, 16  ;;  %v2177_v46 = vshll.u32 %v2113_v34, 16 }
  0x7b   : > { %3701 = vmatprep.subr.bf16.mxu1 %v3865_v45  ;;  %3662 = vmatpush3.bf16.msra.mxu0 %v3866_v5  ;;  %v2171_v45 = vshll.u32 %v2111_v32, 16  ;;  %v2112_v5 = vld [vmem:[#allocation2 + $0x48] sm:$0xff] }
  0x7c   : > { %3663 = vmatprep.subr.bf16.mxu0 %v3868_v35  ;;  %v2151_v35 = vrot.slane %v2149_v31, 5  ;;  %v2185_v41 = vshll.u32 %v2112_v5, 16  ;;  %v2179_v48 = vrot.slane %v2177_v46, 5 }
  0x7e   : > { %3702 = vmatpush3.bf16.msra.mxu1 %v3867_v33  ;;  %2010 = vmatmul.mubr.bf16.gmra.mrb[36].mxu0 %v3259_v42  ;;  %v2182_v33 = vshrl.u32 %v2112_v5, 16  ;;  %v2117_v42 = vld [vmem:[#allocation2 + $0x70] sm:$0x11]  ;;  %v2127_v5 = vld [vmem:[#allocation2 + $0xc0] sm:$0xff] }
  0x7f   : > { %3703 = vmatprep.subr.bf16.mxu1 %v3869_v43  ;;  %3664 = vmatpush3.bf16.msra.mxu0 %v3870_v47  ;;  %v3891_v43 = vld [vmem:[%s4777_s2 + $0x3b8] sm:$0xff]   ;;  %v2173_v47 = vrot.slane %v2171_v45, 5  ;;  %v2247_v45 = vshll.u32 %v2122_v17, 16  ;;  %v2280_v58 = vshrl.u32 %v2127_v5, 16  ;;  %v2131_v17 = vld [vmem:[#allocation2 + $0xe0] sm:$0xff] }
  0x80   : > { %3665 = vmatprep.subr.bf16.mxu0 %v3872_v56  ;;  %2017 = vmatprep.mubr.bf16.mxu0 %v3264_v21  ;;  %v2146_v21 = vor.u32 %v2145_v30, %v2142_v53  ;;  %v2114_v53 = vld [vmem:[#allocation2 + $0x58] sm:$0x11]  ;;  %v2163_v30 = vshll.u32 %v2110_v38, 16 }
  0x81   : > { %2075 = vmatmul.mubr.bf16.gmra.mrb[36].mxu1 %v3261_v63  ;;  %v3880_v63 = vld [vmem:[%s4777_s2 + $0x368] sm:$0xff]   ;;  %v2191_v56 = vshll.u32 %v2114_v53, 16  ;;  %v2174_v60 = vor.u32 %v2173_v47, %v2170_v44  ;;  %v2129_v44 = vld [vmem:[#allocation2 + $0xd0] sm:$0x11] }
  0x82   : > { %3704 = vmatpush3.bf16.msra.mxu1 %v3871_v61  ;;  %2082 = vmatprep.mubr.bf16.mxu1 %v3266_v28  ;;  %v3879_v28 = vld [vmem:[%s4777_s2 + $0x3a0] sm:$0xff]   ;;  %v4589_v8 = vrot.slane %v2146_v21, 4  ;;  %v2165_v51 = vrot.slane %v2163_v30, 5  ;;  %v2205_v21 = vshll.u32 %v2117_v42, 16  ;;  %v2124_v47 = vld [vmem:[#allocation2 + $0xa8] sm:$0xff] }
  0x83   : > { %3705 = vmatprep.subr.bf16.mxu1 %v3873_v55  ;;  %3666 = vmatpush3.bf16.msra.mxu0 %v3874_v57  ;;  %v2184_v55 = vrot.slane %v2182_v33, 4  ;;  %v2187_v57 = vrot.slane %v2185_v41, 5 }
  0x84   : > { %3667 = vmatprep.subr.bf16.mxu0 %v3876_v59  ;;  %v2152_v61 = vsel %vm4119_vm9, %v4589_v8, %v2151_v35  ;;  %v2116_v59 = vld [vmem:[#allocation2 + $0x68] sm:$0xff]  ;;  %v2226_v8 = vrot.slane %v2224_v1, 4 }
  0x85   : > { %v2213_v16 = vshll.u32 %v2116_v59, 16  ;;  %v2128_v1 = vld [vmem:[#allocation2 + $0xc8] sm:$0xff] }
  0x86   : > { %3706 = vmatpush3.bf16.msra.mxu1 %v3875_v0  ;;  %2018 = vmatmul.mubr.bf16.gmra.mrb[40].mxu0 %v3263_v36  ;;  %v3883_v36 = vld [vmem:[%s4777_s2 + $0x3a8] sm:$0xff]   ;;  %v2193_v0 = vrot.slane %v2191_v56, 5 }
  0x87   : > { %3707 = vmatprep.subr.bf16.mxu1 %v3877_v54  ;;  %3668 = vmatpush3.bf16.msra.mxu0 %v3878_v11  ;;  %v2166_v54 = vsel %vm4119_vm9, %v4591_v9, %v2165_v51  ;;  %v2188_v11 = vor.u32 %v2187_v57, %v2184_v55  ;;  %v2215_v34 = vrot.slane %v2213_v16, 5 }
  0x88   : > { %3669 = vmatprep.subr.bf16.mxu0 %v3880_v63  ;;  %2025 = vmatprep.mubr.bf16.mxu0 %v3268_v6  ;;  %v2227_v63 = vshll.u32 %v2119_v49, 16  ;;  %v2207_v6 = vrot.slane %v2205_v21, 5  ;;  %v2289_v21 = vshll.u32 %v2129_v44, 16 }
  0x89   : > { %2083 = vmatmul.mubr.bf16.gmra.mrb[40].mxu1 %v3265_v39  ;;  %v3887_v39 = vld [vmem:[%s4777_s2 + $0x3b0] sm:$0xff]  }
  0x8a   : > { %3708 = vmatpush3.bf16.msra.mxu1 %v3879_v28  ;;  %2090 = vmatprep.mubr.bf16.mxu1 %v3270_v12  ;;  %v2175_v28 = vrot.slane %v2174_v60, 4  ;;  %v2189_v12 = vrot.slane %v2188_v11, 4  ;;  %v2229_v14 = vrot.slane %v2227_v63, 5  ;;  %v4658_v9 = vsel %vm4119_vm9, %v4607_v24, %v2207_v6  ;;  %v428_v11 = vld [vmem:[%s4567_s7 + $0x10] sm:$0x11] }
  0x8b   : > { %3709 = vmatprep.subr.bf16.mxu1 %v3881_v10  ;;  %3670 = vmatpush3.bf16.msra.mxu0 %v3882_v15  ;;  %v2210_v10 = vshrl.u32 %v2116_v59, 16  ;;  %v2235_v15 = vrot.slane %v2233_v2, 5  ;;  %v2126_v59 = vld [vmem:[#allocation2 + $0xb8] sm:$0x11] }
  0x8c   : > { %3671 = vmatprep.subr.bf16.mxu0 %v3884_v62  ;;  %v2180_v62 = vsel %vm4119_vm9, %v2175_v28, %v2179_v48  ;;  %v2269_v28 = vshll.u32 %v2124_v47, 16 }
  0x8e   : > { %3710 = vmatpush3.bf16.msra.mxu1 %v3883_v36  ;;  %2026 = vmatmul.mubr.bf16.gmra.mrb[44].mxu0 %v3267_v19  ;;  %v2120_v36 = vld [vmem:[#allocation2 + $0x88] sm:$0xff]  ;;  %v2212_v19 = vrot.slane %v2210_v10, 4 }
  0x8f   : > { %3711 = vmatprep.subr.bf16.mxu1 %v3885_v20  ;;  %3672 = vmatpush3.bf16.msra.mxu0 %v3886_v18  ;;  %v2219_v20 = vshll.u32 %v2118_v3, 16  ;;  %v3367_v18 = vcombine.low %v2152_v61, %v2180_v62  ;;  %v2238_v24 = vshrl.u32 %v2120_v36, 16  ;;  %v2241_v52 = vshll.u32 %v2120_v36, 16  ;;  %v433_v36 = vld [vmem:[#allocation2 + $0x110] sm:$0x11] }
  0x90   : > { %3673 = vmatprep.subr.bf16.mxu0 %v3888_v29  ;;  %v2194_v29 = vsel %vm4119_vm9, %v2189_v12, %v2193_v0  ;;  %v2216_v46 = vor.u32 %v2215_v34, %v2212_v19  ;;  %v2283_v0 = vshll.u32 %v2127_v5, 16  ;;  %v2282_v3 = vrot.slane %v2280_v58, 4  ;;  %v429_v19 = vld [vmem:[%s4567_s7 + $0x18] sm:$0x11]  ;;  %v2132_v5 = vld [vmem:[#allocation2 + $0xe8] sm:$0xff]  ;;  %s3418_s7 = sshll.u32 %s4789_s15, 6 }
  0x91   : > { %2091 = vmatmul.mubr.bf16.gmra.mrb[44].mxu1 %v3269_v37  ;;  %v2230_v37 = vor.u32 %v2229_v14, %v2226_v8  ;;  %v3369_v26 = vcombine.low %v2166_v54, %v2194_v29  ;;  %v3370_v32 = vcombine.high %v2166_v54, %v2194_v29  ;;  %v2221_v31 = vrot.slane %v2219_v20, 5  ;;  %v2130_v8 = vld [vmem:[#allocation2 + $0xd8] sm:$0x11]  ;;  %s4744_s24 = scalar_lea.vmem %s4778_s3, %s3418_s7 }
  0x92   : > { %3712 = vmatpush3.bf16.msra.mxu1 %v3887_v39  ;;  %v3368_v39 = vcombine.high %v2152_v61, %v2180_v62  ;;  %v2240_v41 = vrot.slane %v2238_v24, 4  ;;  %v2243_v42 = vrot.slane %v2241_v52, 5  ;;  %v2217_v56 = vrot.slane %v2216_v46, 4 }
  0x93   : > { %3713 = vmatprep.subr.bf16.mxu1 %v3889_v4  ;;  %3674 = vmatpush3.bf16.msra.mxu0 %v3890_v25  ;;  %v2123_v4 = vld [vmem:[#allocation2 + $0xa0] sm:$0xff]  ;;  %v2125_v25 = vld [vmem:[#allocation2 + $0xb0] sm:$0x11]  ;;  %v2231_v38 = vrot.slane %v2230_v37, 4  ;;  %v2266_v54 = vshrl.u32 %v2124_v47, 16  ;;  %v2285_v6 = vrot.slane %v2283_v0, 5 }
  0x94   : > { %2716 = vmatprep.mubr.bf16.mxu0 %v3368_v39  ;;  %2781 = vmatprep.mubr.bf16.mxu1 %v3370_v32  ;;  %v2252_v53 = vshrl.u32 %v2123_v4, 16  ;;  %v2255_v35 = vshll.u32 %v2123_v4, 16  ;;  %v2261_v30 = vshll.u32 %v2125_v25, 16  ;;  %v2244_v51 = vor.u32 %v2243_v42, %v2240_v41  ;;  %v2133_v25 = vld [vmem:[#allocation2 + $0xf0] sm:$0x11] }
  0x95   : > { %v2236_v33 = vsel %vm4119_vm9, %v2231_v38, %v2235_v15  ;;  %v2222_v60 = vsel %vm4119_vm9, %v2217_v56, %v2221_v31  ;;  %v2268_v10 = vrot.slane %v2266_v54, 4  ;;  %v2275_v12 = vshll.u32 %v2126_v59, 16  ;;  %v2134_v41 = vld [vmem:[#allocation2 + $0xf8] sm:$0x11] }
  0x96   : > { %3714 = vmatpush3.bf16.msra.mxu1 %v3891_v43  ;;  %2717 = vmatmul.mubr.bf16.vlgmr.msra.gmra.mrb[48].mxu0 %v3367_v18  ;;  %v2249_v43 = vrot.slane %v2247_v45, 5  ;;  %v3372_v48 = vcombine.high %v4658_v9, %v2236_v33  ;;  %v3371_v49 = vcombine.low %v4658_v9, %v2236_v33  ;;  %v2254_v61 = vrot.slane %v2252_v53, 4 }
  0x97   : > { %v2257_v55 = vrot.slane %v2255_v35, 5  ;;  %v2263_v57 = vrot.slane %v2261_v30, 5  ;;  %v2245_v63 = vrot.slane %v2244_v51, 4  ;;  %v4671_v14 = vrot.slane %v2353_v23, 5 }
  0x98   : > { %2724 = vmatprep.mubr.bf16.mxu0 %v3372_v48  ;;  %v2271_v62 = vrot.slane %v2269_v28, 5  ;;  %v2294_v9 = vshrl.u32 %v2128_v1, 16  ;;  %v2286_v39 = vor.u32 %v2285_v6, %v2282_v3  ;;  %v2291_v29 = vrot.slane %v2289_v21, 5 }
  0x99   : > { %2782 = vmatmul.mubr.bf16.vlgmr.msra.gmra.mrb[48].mxu1 %v3369_v26  ;;  %v2258_v2 = vor.u32 %v2257_v55, %v2254_v61  ;;  %v2250_v15 = vsel %vm4119_vm9, %v2245_v63, %v2249_v43  ;;  %v2297_v4 = vshll.u32 %v2128_v1, 16  ;;  %v436_v26 = vld [vmem:[#allocation2 + $0x118] sm:$0x11]  ;;  %v2303_v34 = vshll.u32 %v2130_v8, 16 }
  0x9a   : > { %v3374_v20 = vcombine.high %v2222_v60, %v2250_v15  ;;  %v3373_v18 = vcombine.low %v2222_v60, %v2250_v15  ;;  %v2272_v7 = vor.u32 %v2271_v62, %v2268_v10  ;;  %v2296_v23 = vrot.slane %v2294_v9, 4 }
  0x9b   : > { %v2259_v16 = vrot.slane %v2258_v2, 4  ;;  %v2287_v32 = vrot.slane %v2286_v39, 4  ;;  %v434_v31 = vsel %vm4080_vm6, %v428_v11, %v433_v36  ;;  %v2308_v38 = vshrl.u32 %v2131_v17, 16 }
  0x9c   : > { %2789 = vmatprep.mubr.bf16.mxu1 %v3374_v20  ;;  %v2273_v24 = vrot.slane %v2272_v7, 4  ;;  %v2277_v52 = vrot.slane %v2275_v12, 5  ;;  %v2299_v45 = vrot.slane %v2297_v4, 5  ;;  %435 = vst [vmem:[#allocation2 + $0x110] sm:$0x11] %v434_v31  ;;  %v2311_v46 = vshll.u32 %v2131_v17, 16 }
  0x9d   : > { %v2264_v37 = vsel %vm4119_vm9, %v2259_v16, %v2263_v57  ;;  %v2292_v53 = vsel %vm4119_vm9, %v2287_v32, %v2291_v29  ;;  %v2310_v35 = vrot.slane %v2308_v38, 4  ;;  %v2317_v30 = vshll.u32 %v2133_v25, 16 }
  0x9e   : > { %2725 = vmatmul.mubr.bf16.gmra.mrb[52].mxu0 %v3371_v49  ;;  %v437_v33 = vsel %vm4080_vm6, %v429_v19, %v436_v26  ;;  %v3376_v42 = vcombine.high %v2264_v37, %v2292_v53  ;;  %v2300_v43 = vor.u32 %v2299_v45, %v2296_v23  ;;  %v2305_v44 = vrot.slane %v2303_v34, 5 }
  0x9f   : > { %v3375_v47 = vcombine.low %v2264_v37, %v2292_v53  ;;  %438 = vst [vmem:[#allocation2 + $0x118] sm:$0x11] %v437_v33  ;;  %v2313_v48 = vrot.slane %v2311_v46, 5  ;;  %v2322_v56 = vshrl.u32 %v2132_v5, 16  ;;  %v2325_v49 = vshll.u32 %v2132_v5, 16 }
  0xa0   : > { %2732 = vmatprep.mubr.bf16.mxu0 %v3376_v42  ;;  %v2278_v61 = vsel %vm4119_vm9, %v2273_v24, %v2277_v52  ;;  %v2301_v51 = vrot.slane %v2300_v43, 4  ;;  %v2342_v55 = vor.u32 %v4625_v50, %v4620_v22  ;;  %v2331_v57 = vshll.u32 %v2134_v41, 16 }
  0xa1   : > { %2790 = vmatmul.mubr.bf16.gmra.mrb[52].mxu1 %v3373_v18  ;;  %v2314_v40 = vor.u32 %v2313_v48, %v2310_v35  ;;  %v2324_v58 = vrot.slane %v2322_v56, 4  ;;  %v2327_v59 = vrot.slane %v2325_v49, 5  ;;  %v2319_v0 = vrot.slane %v2317_v30, 5 }
  0xa2   : > { %v2306_v60 = vsel %vm4119_vm9, %v2301_v51, %v2305_v44  ;;  %v2356_v21 = vor.u32 %v4671_v14, %v4642_v27  ;;  %v2343_v3 = vrot.slane %v2342_v55, 4  ;;  %v2333_v22 = vrot.slane %v2331_v57, 5 }
  0xa3   : > { %v3378_v1 = vcombine.high %v2278_v61, %v2306_v60  ;;  %v3377_v54 = vcombine.low %v2278_v61, %v2306_v60  ;;  %v2137_v11 = vld [vmem:[#allocation2 + $0x110] sm:$0x11]  ;;  %v2315_v63 = vrot.slane %v2314_v40, 4  ;;  %v2328_v2 = vor.u32 %v2327_v59, %v2324_v58 }
  0xa4   : > { %v2345_v28 = vshll.u32 %v2137_v11, 16  ;;  %v2357_v12 = vrot.slane %v2356_v21, 4 }
  0xa5   : > { %2797 = vmatprep.mubr.bf16.mxu1 %v3378_v1  ;;  %v2329_v6 = vrot.slane %v2328_v2, 4  ;;  %v2320_v8 = vsel %vm4119_vm9, %v2315_v63, %v2319_v0 }
  0xa6   : > { %2733 = vmatmul.mubr.bf16.gmra.mrb[56].mxu0 %v3375_v47  ;;  %v2138_v50 = vld [vmem:[#allocation2 + $0x118] sm:$0x11]  ;;  %v2347_v10 = vrot.slane %v2345_v28, 5 }
  0xa7   : > { %v2359_v15 = vshll.u32 %v2138_v50, 16  ;;  %v2334_v14 = vsel %vm4119_vm9, %v2329_v6, %v2333_v22 }
  0xa8   : > { %v2348_v27 = vsel %vm4119_vm9, %v2343_v3, %v2347_v10 }
  0xa9   : > { %2798 = vmatmul.mubr.bf16.gmra.mrb[56].mxu1 %v3377_v54  ;;  %v2361_v16 = vrot.slane %v2359_v15, 5  ;;  %v3380_v62 = vcombine.high %v2320_v8, %v2348_v27  ;;  %v3379_v9 = vcombine.low %v2320_v8, %v2348_v27 }
  0xab   : > { %v2362_v36 = vsel %vm4119_vm9, %v2357_v12, %v2361_v16  ;;  %2740 = vmatprep.mubr.bf16.mxu0 %v3380_v62 }
  0xac   : > { %v3382_v17 = vcombine.high %v2334_v14, %v2362_v36  ;;  %v3381_v19 = vcombine.low %v2334_v14, %v2362_v36 }
  0xae   : > { %2741 = vmatmul.mubr.bf16.gmra.mrb[60].mxu0 %v3379_v9  ;;  %2805 = vmatprep.mubr.bf16.mxu1 %v3382_v17 }
  0xb1   : > { %2806 = vmatmul.mubr.bf16.gmra.mrb[60].mxu1 %v3381_v19 }
  0xfb   : > { %v3435_v20 = vpop.f32.mrb[0].mxu0 }
  0xfc   : > { %v3436_v18 = vpop.f32.mrb[1].mxu0 }
  0xfd   : > { %v3437_v39 = vadd.f32 %v3436_v18, %v3435_v20  ;;  %v3438_v29 = vpop.f32.mrb[2].mxu0  ;;  %v3475_v37 = vpop.f32.mrb[0].mxu1 }
  0xfe   : > { %v3439_v7 = vpop.f32.mrb[3].mxu0  ;;  %v3476_v23 = vpop.f32.mrb[1].mxu1 }
  0xff   : > { %v3440_v4 = vadd.f32 %v3439_v7, %v3438_v29  ;;  %v3477_v25 = vadd.f32 %v3476_v23, %v3475_v37  ;;  %v3478_v26 = vpop.f32.mrb[2].mxu1 }
 0x100   : > { %v3479_v32 = vpop.f32.mrb[3].mxu1 }
 0x101   : > { %v1183_v34 = vadd.f32 %v3477_v25, %v3437_v39  ;;  %v3480_v13 = vadd.f32 %v3479_v32, %v3478_v26 }
 0x103   : > { %v1186_v31 = vadd.f32 %v3480_v13, %v3440_v4 }
 0x106   : > { %v3441_v38 = vpop.f32.mrb[4].mxu0 }
 0x107   : > { %v3442_v24 = vpop.f32.mrb[5].mxu0 }
 0x108   : > { %v3481_v52 = vpop.f32.mrb[4].mxu1  ;;  %v3443_v45 = vadd.f32 %v3442_v24, %v3441_v38  ;;  %v3444_v46 = vpop.f32.mrb[6].mxu0 }
 0x109   : > { %v3482_v5 = vpop.f32.mrb[5].mxu1  ;;  %v3445_v53 = vpop.f32.mrb[7].mxu0 }
 0x10a   : > { %v3483_v35 = vadd.f32 %v3482_v5, %v3481_v52  ;;  %v3484_v30 = vpop.f32.mrb[6].mxu1  ;;  %v3446_v33 = vadd.f32 %v3445_v53, %v3444_v46 }
 0x10b   : > { %v3485_v41 = vpop.f32.mrb[7].mxu1 }
 0x10c   : > { %v1191_v42 = vadd.f32 %v3483_v35, %v3443_v45  ;;  %v3486_v43 = vadd.f32 %v3485_v41, %v3484_v30 }
 0x10e   : > { %v1194_v44 = vadd.f32 %v3486_v43, %v3446_v33 }
 0x113   : > { %v3447_v47 = vpop.f32.mrb[8].mxu0 }
 0x114   : > { %v3448_v48 = vpop.f32.mrb[9].mxu0 }
 0x115   : > { %v3449_v49 = vadd.f32 %v3448_v48, %v3447_v47  ;;  %v3450_v61 = vpop.f32.mrb[10].mxu0 }
 0x116   : > { %v3451_v55 = vpop.f32.mrb[11].mxu0 }
 0x117   : > { %v3487_v56 = vpop.f32.mrb[8].mxu1  ;;  %v3452_v58 = vadd.f32 %v3451_v55, %v3450_v61 }
 0x118   : > { %v3488_v51 = vpop.f32.mrb[9].mxu1 }
 0x119   : > { %v3489_v57 = vadd.f32 %v3488_v51, %v3487_v56  ;;  %v3490_v40 = vpop.f32.mrb[10].mxu1 }
 0x11a   : > { %v3491_v59 = vpop.f32.mrb[11].mxu1 }
 0x11b   : > { %v1199_v60 = vadd.f32 %v3489_v57, %v3449_v49  ;;  %v3492_v0 = vadd.f32 %v3491_v59, %v3490_v40 }
 0x11d   : > { %v1202_v21 = vadd.f32 %v3492_v0, %v3452_v58 }
 0x120   : > { %v3453_v1 = vpop.f32.mrb[12].mxu0 }
 0x121   : > { %v3454_v54 = vpop.f32.mrb[13].mxu0 }
 0x122   : > { %v3455_v11 = vadd.f32 %v3454_v54, %v3453_v1  ;;  %v3456_v63 = vpop.f32.mrb[14].mxu0 }
 0x123   : > { %v3457_v3 = vpop.f32.mrb[15].mxu0 }
 0x124   : > { %v3493_v2 = vpop.f32.mrb[12].mxu1  ;;  %v3458_v22 = vadd.f32 %v3457_v3, %v3456_v63 }
 0x125   : > { %v3494_v28 = vpop.f32.mrb[13].mxu1 }
 0x126   : > { %v3495_v50 = vadd.f32 %v3494_v28, %v3493_v2  ;;  %v3496_v6 = vpop.f32.mrb[14].mxu1 }
 0x127   : > { %v3497_v8 = vpop.f32.mrb[15].mxu1 }
 0x128   : > { %v1207_v10 = vadd.f32 %v3495_v50, %v3455_v11  ;;  %v3498_v12 = vadd.f32 %v3497_v8, %v3496_v6  ;;  %v3515_v15 = vpop.f32.mrb[16].mxu0 }
 0x129   : > { %v3516_v14 = vpop.f32.mrb[17].mxu0 }
 0x12a   : > { %v1210_v27 = vadd.f32 %v3498_v12, %v3458_v22  ;;  %v3517_v16 = vadd.f32 %v3516_v14, %v3515_v15  ;;  %v3518_v62 = vpop.f32.mrb[18].mxu0 }
 0x12b   : > { %v3519_v36 = vpop.f32.mrb[19].mxu0 }
 0x12c   : > { %v3555_v9 = vpop.f32.mrb[16].mxu1  ;;  %v1520_v17 = vadd.f32 %v3517_v16, %v1183_v34  ;;  %v3520_v20 = vadd.f32 %v3519_v36, %v3518_v62 }
 0x12d   : > { %v3556_v19 = vpop.f32.mrb[17].mxu1 }
 0x12e   : > { %v3557_v18 = vadd.f32 %v3556_v19, %v3555_v9  ;;  %v3558_v39 = vpop.f32.mrb[18].mxu1  ;;  %v1523_v29 = vadd.f32 %v3520_v20, %v1186_v31 }
 0x12f   : > { %v3559_v37 = vpop.f32.mrb[19].mxu1 }
 0x130   : > { %v4700_v7 = vadd.f32 %v3557_v18, %v1520_v17  ;;  %v3560_v23 = vadd.f32 %v3559_v37, %v3558_v39  ;;  %v3521_v4 = vpop.f32.mrb[20].mxu0 }
 0x131   : > { %v3522_v26 = vpop.f32.mrb[21].mxu0 }
 0x132   : > { %v4702_v25 = vadd.f32 %v3560_v23, %v1523_v29  ;;  %v3523_v32 = vadd.f32 %v3522_v26, %v3521_v4  ;;  %v3524_v13 = vpop.f32.mrb[22].mxu0 }
 0x133   : > { %v3525_v24 = vpop.f32.mrb[23].mxu0 }
 0x134   : > { %v3561_v38 = vpop.f32.mrb[20].mxu1  ;;  %v1528_v52 = vadd.f32 %v3523_v32, %v1191_v42  ;;  %v3526_v34 = vadd.f32 %v3525_v24, %v3524_v13 }
 0x135   : > { %v3562_v45 = vpop.f32.mrb[21].mxu1 }
 0x136   : > { %v3563_v46 = vadd.f32 %v3562_v45, %v3561_v38  ;;  %v3564_v5 = vpop.f32.mrb[22].mxu1  ;;  %v1531_v53 = vadd.f32 %v3526_v34, %v1194_v44 }
 0x137   : > { %v3565_v35 = vpop.f32.mrb[23].mxu1 }
 0x138   : > { %v4704_v31 = vadd.f32 %v3563_v46, %v1528_v52  ;;  %v3566_v30 = vadd.f32 %v3565_v35, %v3564_v5  ;;  %v3527_v33 = vpop.f32.mrb[24].mxu0 }
 0x139   : > { %v3528_v43 = vpop.f32.mrb[25].mxu0 }
 0x13a   : > { %v4706_v41 = vadd.f32 %v3566_v30, %v1531_v53  ;;  %v3529_v47 = vadd.f32 %v3528_v43, %v3527_v33  ;;  %v3530_v48 = vpop.f32.mrb[26].mxu0 }
 0x13b   : > { %v3531_v49 = vpop.f32.mrb[27].mxu0 }
 0x13c   : > { %v3567_v56 = vpop.f32.mrb[24].mxu1  ;;  %v1536_v61 = vadd.f32 %v3529_v47, %v1199_v60  ;;  %v3532_v42 = vadd.f32 %v3531_v49, %v3530_v48 }
 0x13d   : > { %v3568_v51 = vpop.f32.mrb[25].mxu1 }
 0x13e   : > { %v3569_v55 = vadd.f32 %v3568_v51, %v3567_v56  ;;  %v3570_v57 = vpop.f32.mrb[26].mxu1  ;;  %v1539_v40 = vadd.f32 %v3532_v42, %v1202_v21 }
 0x13f   : > { %v3571_v58 = vpop.f32.mrb[27].mxu1 }
 0x140   : > { %v4708_v44 = vadd.f32 %v3569_v55, %v1536_v61  ;;  %v3572_v59 = vadd.f32 %v3571_v58, %v3570_v57  ;;  %v3533_v0 = vpop.f32.mrb[28].mxu0 }
 0x141   : > { %v3534_v54 = vpop.f32.mrb[29].mxu0 }
 0x142   : > { %v4710_v1 = vadd.f32 %v3572_v59, %v1539_v40  ;;  %v3535_v11 = vadd.f32 %v3534_v54, %v3533_v0  ;;  %v3536_v63 = vpop.f32.mrb[30].mxu0 }
 0x143   : > { %v3537_v3 = vpop.f32.mrb[31].mxu0 }
 0x144   : > { %v3573_v2 = vpop.f32.mrb[28].mxu1  ;;  %v1544_v28 = vadd.f32 %v3535_v11, %v1207_v10  ;;  %v3538_v60 = vadd.f32 %v3537_v3, %v3536_v63 }
 0x145   : > { %v3574_v22 = vpop.f32.mrb[29].mxu1 }
 0x146   : > { %v3575_v50 = vadd.f32 %v3574_v22, %v3573_v2  ;;  %v3576_v6 = vpop.f32.mrb[30].mxu1  ;;  %v1547_v8 = vadd.f32 %v3538_v60, %v1210_v27 }
 0x147   : > { %v3577_v12 = vpop.f32.mrb[31].mxu1 }
 0x148   : > { %v4712_v21 = vadd.f32 %v3575_v50, %v1544_v28  ;;  %v3578_v15 = vadd.f32 %v3577_v12, %v3576_v6 }
 0x149   : > { %v3595_v14 = vpop.f32.mrb[32].mxu0 }
 0x14a   : > { %v4714_v16 = vadd.f32 %v3578_v15, %v1547_v8  ;;  %v3596_v62 = vpop.f32.mrb[33].mxu0 }
 0x14b   : > { %v3597_v9 = vadd.f32 %v3596_v62, %v3595_v14  ;;  %v3598_v36 = vpop.f32.mrb[34].mxu0 }
 0x14c   : > { %v3635_v17 = vpop.f32.mrb[32].mxu1  ;;  %v3599_v19 = vpop.f32.mrb[35].mxu0 }
 0x14d   : > { %v3636_v20 = vpop.f32.mrb[33].mxu1  ;;  %v3600_v18 = vadd.f32 %v3599_v19, %v3598_v36 }
 0x14e   : > { %v3637_v10 = vadd.f32 %v3636_v20, %v3635_v17  ;;  %v3638_v39 = vpop.f32.mrb[34].mxu1 }
 0x14f   : > { %v3639_v29 = vpop.f32.mrb[35].mxu1 }
 0x150   : > { %v2069_v37 = vadd.f32 %v3637_v10, %v3597_v9  ;;  %v3640_v23 = vadd.f32 %v3639_v29, %v3638_v39 }
 0x151   : > { %v3601_v27 = vpop.f32.mrb[36].mxu0 }
 0x152   : > { %v4717_v4 = vadd.f32 %v2069_v37, %v4700_v7  ;;  %v2072_v26 = vadd.f32 %v3640_v23, %v3600_v18  ;;  %v3602_v32 = vpop.f32.mrb[37].mxu0 }
 0x153   : > { %v3603_v13 = vadd.f32 %v3602_v32, %v3601_v27  ;;  %v3604_v38 = vpop.f32.mrb[38].mxu0 }
 0x154   : > { %v4720_v24 = vadd.f32 %v2072_v26, %v4702_v25  ;;  %v3641_v52 = vpop.f32.mrb[36].mxu1  ;;  %v3605_v45 = vpop.f32.mrb[39].mxu0 }
 0x155   : > { %v3642_v34 = vpop.f32.mrb[37].mxu1  ;;  %v3606_v46 = vadd.f32 %v3605_v45, %v3604_v38 }
 0x156   : > { %v3643_v5 = vadd.f32 %v3642_v34, %v3641_v52  ;;  %v3644_v53 = vpop.f32.mrb[38].mxu1 }
 0x157   : > { %v3645_v35 = vpop.f32.mrb[39].mxu1 }
 0x158   : > { %v2077_v30 = vadd.f32 %v3643_v5, %v3603_v13  ;;  %v3646_v33 = vadd.f32 %v3645_v35, %v3644_v53 }
 0x159   : > { %v3607_v43 = vpop.f32.mrb[40].mxu0 }
 0x15a   : > { %v4723_v7 = vadd.f32 %v2077_v30, %v4704_v31  ;;  %v2080_v47 = vadd.f32 %v3646_v33, %v3606_v46  ;;  %v3608_v48 = vpop.f32.mrb[41].mxu0 }
 0x15b   : > { %v3609_v56 = vadd.f32 %v3608_v48, %v3607_v43  ;;  %v3610_v49 = vpop.f32.mrb[42].mxu0 }
 0x15c   : > { %v4726_v25 = vadd.f32 %v2080_v47, %v4706_v41  ;;  %v3647_v61 = vpop.f32.mrb[40].mxu1  ;;  %v3611_v51 = vpop.f32.mrb[43].mxu0 }
 0x15d   : > { %v3648_v42 = vpop.f32.mrb[41].mxu1  ;;  %v3612_v55 = vadd.f32 %v3611_v51, %v3610_v49 }
 0x15e   : > { %v3649_v57 = vadd.f32 %v3648_v42, %v3647_v61  ;;  %v3650_v40 = vpop.f32.mrb[42].mxu1 }
 0x15f   : > { %v3651_v58 = vpop.f32.mrb[43].mxu1 }
 0x160   : > { %v2085_v59 = vadd.f32 %v3649_v57, %v3609_v56  ;;  %v3652_v0 = vadd.f32 %v3651_v58, %v3650_v40 }
 0x161   : > { %v3613_v54 = vpop.f32.mrb[44].mxu0 }
 0x162   : > { %v4729_v31 = vadd.f32 %v2085_v59, %v4708_v44  ;;  %v2088_v11 = vadd.f32 %v3652_v0, %v3612_v55  ;;  %v3614_v63 = vpop.f32.mrb[45].mxu0 }
 0x163   : > { %v3615_v2 = vadd.f32 %v3614_v63, %v3613_v54  ;;  %v3616_v3 = vpop.f32.mrb[46].mxu0 }
 0x164   : > { %v4732_v41 = vadd.f32 %v2088_v11, %v4710_v1  ;;  %v3653_v28 = vpop.f32.mrb[44].mxu1  ;;  %v3617_v22 = vpop.f32.mrb[47].mxu0 }
 0x165   : > { %v3654_v60 = vpop.f32.mrb[45].mxu1  ;;  %v3618_v50 = vadd.f32 %v3617_v22, %v3616_v3 }
 0x166   : > { %v3655_v6 = vadd.f32 %v3654_v60, %v3653_v28  ;;  %v3656_v8 = vpop.f32.mrb[46].mxu1 }
 0x167   : > { %v3657_v12 = vpop.f32.mrb[47].mxu1 }
 0x168   : > { %v2093_v15 = vadd.f32 %v3655_v6, %v3615_v2  ;;  %v3658_v14 = vadd.f32 %v3657_v12, %v3656_v8 }
 0x169   : > { %v3675_v36 = vpop.f32.mrb[48].mxu0 }
 0x16a   : > { %v4735_v44 = vadd.f32 %v2093_v15, %v4712_v21  ;;  %v2096_v62 = vadd.f32 %v3658_v14, %v3618_v50  ;;  %v3676_v17 = vpop.f32.mrb[49].mxu0 }
 0x16b   : > { %v3677_v19 = vadd.f32 %v3676_v17, %v3675_v36  ;;  %v3678_v18 = vpop.f32.mrb[50].mxu0 }
 0x16c   : > { %v4738_v9 = vadd.f32 %v2096_v62, %v4714_v16  ;;  %v3715_v1 = vpop.f32.mrb[48].mxu1  ;;  %v3679_v29 = vpop.f32.mrb[51].mxu0 }
 0x16d   : > { %v3716_v20 = vpop.f32.mrb[49].mxu1  ;;  %v3680_v37 = vadd.f32 %v3679_v29, %v3678_v18 }
 0x16e   : > { %v3717_v10 = vadd.f32 %v3716_v20, %v3715_v1  ;;  %v3718_v39 = vpop.f32.mrb[50].mxu1 }
 0x16f   : > { %v3719_v23 = vpop.f32.mrb[51].mxu1 }
 0x170   : > { %v2784_v27 = vadd.f32 %v3717_v10, %v3677_v19  ;;  %v3720_v26 = vadd.f32 %v3719_v23, %v3718_v39 }
 0x171   : > { %v3681_v32 = vpop.f32.mrb[52].mxu0 }
 0x172   : > { %v2814_v21 = vadd.f32 %v2784_v27, %v4717_v4  ;;  %v2787_v16 = vadd.f32 %v3720_v26, %v3680_v37  ;;  %v3682_v38 = vpop.f32.mrb[53].mxu0 }
 0x173   : > { %v3683_v52 = vadd.f32 %v3682_v38, %v3681_v32  ;;  %v3684_v45 = vpop.f32.mrb[54].mxu0 }
 0x174   : > { %2822 = vst [vmem:[%s4744_s24] sm:$0xff] %v2814_v21  ;;  %v2815_v13 = vadd.f32 %v2787_v16, %v4720_v24  ;;  %v2844_v34 = vmul.f32 %v2814_v21, %v2814_v21  ;;  %v3721_v53 = vpop.f32.mrb[52].mxu1  ;;  %v3685_v35 = vpop.f32.mrb[55].mxu0 }
 0x175   : > { %v3722_v30 = vpop.f32.mrb[53].mxu1  ;;  %v3686_v33 = vadd.f32 %v3685_v35, %v3684_v45 }
 0x176   : > { %2823 = vst [vmem:[%s4744_s24 + $0x8] sm:$0xff] %v2815_v13  ;;  %v2830_v46 = vadd.f32 %v2815_v13, %v2814_v21  ;;  %v2845_v5 = vmul.f32 %v2815_v13, %v2815_v13  ;;  %v3723_v47 = vadd.f32 %v3722_v30, %v3721_v53  ;;  %v3724_v4 = vpop.f32.mrb[54].mxu1 }
 0x177   : > { %v3725_v48 = vpop.f32.mrb[55].mxu1 }
 0x178   : > { %v2852_v43 = vadd.f32 %v2845_v5, %v2844_v34  ;;  %v2792_v56 = vadd.f32 %v3723_v47, %v3683_v52  ;;  %v3726_v49 = vadd.f32 %v3725_v48, %v3724_v4 }
 0x179   : > { %v3687_v24 = vpop.f32.mrb[56].mxu0 }
 0x17a   : > { %v2816_v61 = vadd.f32 %v2792_v56, %v4723_v7  ;;  %v2795_v51 = vadd.f32 %v3726_v49, %v3686_v33  ;;  %v3688_v42 = vpop.f32.mrb[57].mxu0 }
 0x17b   : > { %v3689_v55 = vadd.f32 %v3688_v42, %v3687_v24  ;;  %v3690_v57 = vpop.f32.mrb[58].mxu0 }
 0x17c   : > { %2824 = vst [vmem:[%s4744_s24 + $0x10] sm:$0xff] %v2816_v61  ;;  %v2831_v40 = vadd.f32 %v2830_v46, %v2816_v61  ;;  %v2846_v58 = vmul.f32 %v2816_v61, %v2816_v61  ;;  %v2817_v59 = vadd.f32 %v2795_v51, %v4726_v25  ;;  %v3691_v0 = vpop.f32.mrb[59].mxu0  ;;  %v3727_v3 = vpop.f32.mrb[56].mxu1 }
 0x17d   : > { %v3692_v54 = vadd.f32 %v3691_v0, %v3690_v57  ;;  %v3728_v28 = vpop.f32.mrb[57].mxu1 }
 0x17e   : > { %v2853_v11 = vadd.f32 %v2852_v43, %v2846_v58  ;;  %2825 = vst [vmem:[%s4744_s24 + $0x18] sm:$0xff] %v2817_v59  ;;  %v2832_v63 = vadd.f32 %v2831_v40, %v2817_v59  ;;  %v2847_v2 = vmul.f32 %v2817_v59, %v2817_v59  ;;  %v3729_v7 = vadd.f32 %v3728_v28, %v3727_v3  ;;  %v3730_v60 = vpop.f32.mrb[58].mxu1 }
 0x17f   : > { %v3731_v50 = vpop.f32.mrb[59].mxu1 }
 0x180   : > { %v2854_v22 = vadd.f32 %v2853_v11, %v2847_v2  ;;  %v2800_v6 = vadd.f32 %v3729_v7, %v3689_v55  ;;  %v3732_v8 = vadd.f32 %v3731_v50, %v3730_v60 }
 0x181   : > { %v3693_v25 = vpop.f32.mrb[60].mxu0 }
 0x182   : > { %v2818_v12 = vadd.f32 %v2800_v6, %v4729_v31  ;;  %v2803_v15 = vadd.f32 %v3732_v8, %v3692_v54  ;;  %v3694_v14 = vpop.f32.mrb[61].mxu0 }
 0x183   : > { %v3695_v19 = vadd.f32 %v3694_v14, %v3693_v25  ;;  %v3696_v20 = vpop.f32.mrb[62].mxu0 }
 0x184   : > { %2826 = vst [vmem:[%s4744_s24 + $0x20] sm:$0xff] %v2818_v12  ;;  %v2833_v62 = vadd.f32 %v2832_v63, %v2818_v12  ;;  %v2848_v36 = vmul.f32 %v2818_v12, %v2818_v12  ;;  %v2819_v1 = vadd.f32 %v2803_v15, %v4732_v41  ;;  %v3733_v17 = vpop.f32.mrb[60].mxu1  ;;  %v3697_v10 = vpop.f32.mrb[63].mxu0 }
 0x185   : > { %v3734_v18 = vpop.f32.mrb[61].mxu1  ;;  %v3698_v27 = vadd.f32 %v3697_v10, %v3696_v20 }
 0x186   : > { %v2855_v39 = vadd.f32 %v2854_v22, %v2848_v36  ;;  %2827 = vst [vmem:[%s4744_s24 + $0x28] sm:$0xff] %v2819_v1  ;;  %v2834_v29 = vadd.f32 %v2833_v62, %v2819_v1  ;;  %v2849_v37 = vmul.f32 %v2819_v1, %v2819_v1  ;;  %v3735_v31 = vadd.f32 %v3734_v18, %v3733_v17  ;;  %v3736_v23 = vpop.f32.mrb[62].mxu1 }
 0x187   : > { %v3737_v26 = vpop.f32.mrb[63].mxu1 }
 0x188   : > { %v2856_v21 = vadd.f32 %v2855_v39, %v2849_v37  ;;  %v2808_v16 = vadd.f32 %v3735_v31, %v3695_v19  ;;  %v3738_v32 = vadd.f32 %v3737_v26, %v3736_v23 }
 0x18a   : > { %v2820_v41 = vadd.f32 %v2808_v16, %v4735_v44  ;;  %v2811_v13 = vadd.f32 %v3738_v32, %v3698_v27 }
 0x18c   : > { %2828 = vst [vmem:[%s4744_s24 + $0x30] sm:$0xff] %v2820_v41  ;;  %v2835_v38 = vadd.f32 %v2834_v29, %v2820_v41  ;;  %v2850_v52 = vmul.f32 %v2820_v41, %v2820_v41  ;;  %v2821_v45 = vadd.f32 %v2811_v13, %v4738_v9 }
 0x18e   : > { %v2857_v34 = vadd.f32 %v2856_v21, %v2850_v52  ;;  %2829 = vst [vmem:[%s4744_s24 + $0x38] sm:$0xff] %v2821_v45  ;;  %v2836_v46 = vadd.f32 %v2835_v38, %v2821_v45  ;;  %v2851_v5 = vmul.f32 %v2821_v45, %v2821_v45 }
 0x190   : > { %v2837_v53 = vrot.slane %v2836_v46, 4  ;;  %v2858_v35 = vadd.f32 %v2857_v34, %v2851_v5 }
 0x192   : > { %v2838_v30 = vadd.f32 %v2837_v53, %v2836_v46  ;;  %v2859_v33 = vrot.slane %v2858_v35, 4 }
 0x194   : > { %v2839_v43 = vrot.slane %v2838_v30, 2  ;;  %v2860_v47 = vadd.f32 %v2859_v33, %v2858_v35 }
 0x196   : > { %v2840_v4 = vadd.f32 %v2839_v43, %v2838_v30  ;;  %v2861_v44 = vrot.slane %v2860_v47, 2 }
 0x198   : > { %v2841_v48 = vrot.slane %v2840_v4, 1  ;;  %v2862_v56 = vadd.f32 %v2861_v44, %v2860_v47 }
 0x19a   : > { %v2842_v9 = vadd.f32 %v2841_v48, %v2840_v4  ;;  %v2863_v49 = vrot.slane %v2862_v56, 1 }
 0x19c   : > { %2843 = vst [vmem:[%s321_s27] sm:$0x1] %v2842_v9  ;;  %v2864_v24 = vadd.f32 %v2863_v49, %v2862_v56 }
 0x19e   : > { %2865 = vst [vmem:[%s321_s27 + $0x1] sm:$0x1] %v2864_v24 }
 0x19f PF: > { %s15_s17 = sadd.s32 1, %s3914_s17   ;;  %s4784_s15 = smov %s3910_s16 }
 0x1a0   : > { %p12_p5 = scmp.ge.s32.totalorder %s15_s17, 4   ;;  %s4785_s16 = smov %s4787_s18 }
 0x1a2   :  { %14 = sbr.rel (!%p12_p5) target bundleno = 2 (0x2), region = 82 }

</bundles_post_ra>
